<compile_context>
chip_gen: v6e
topology: v6e:2x2x1
jax: 0.10.0
libtpu: 0.0.40
codegen_flags: <defaults>
</compile_context>

<pallas_src>
import math

import jax
import jax.numpy as jnp
import numpy as np
from jax.experimental import pallas as pl
from jax.experimental.pallas import tpu as pltpu


# ---------------------------------------------------------------------------
# Fused Pallas kernel (built per static (B, N, S, H, L))
# ---------------------------------------------------------------------------

def _build_fused_kernel(B, N, S, H, L):
    M = B * N * S
    NS = N * S
    inv_sqrt_h = 1.0 / math.sqrt(H)

    def _attention(hl2, e_ref, w_ref, b_ref, ln_ref):
        # hl2   : [M, H]   VMEM-resident activation (residual source)
        # e_ref : [M, H]   additive encoding (zeros / adj*W_a_S / pos enc)
        # w_ref : [6, H, H] stacked (q, k, v, 0, 1, 2) weights, already (in, out)
        # b_ref : [6, 1, H] stacked biases
        # ln_ref: [2, 1, H] (gamma, beta)
        x2 = hl2 + e_ref[...]

        def lin(i, inp):
            return (jnp.dot(inp, w_ref[i], preferred_element_type=jnp.float32)
                    + b_ref[i])

        q = lin(0, x2) * inv_sqrt_h            # fold 1/sqrt(H) into q
        k = lin(1, x2)
        v = lin(2, x2)
        q4 = q.reshape(B, N, S, H)
        k4 = k.reshape(B, N, S, H)
        v4 = v.reshape(B, N, S, H)

        # energy[b,i,j,h] = sum_s q[b,i,s,h] * k[b,j,s,h]
        energy = jnp.sum(q4[:, :, None, :, :] * k4[:, None, :, :, :], axis=3)

        # softmax over j (torch Softmax(dim=-2))
        m = jnp.max(energy, axis=2, keepdims=True)
        p = jnp.exp(energy - m)
        attn = p * pl.reciprocal(jnp.sum(p, axis=2, keepdims=True), approx=True)

        # ctx[b,i,s,h] = sum_j attn[b,i,j,h] * v[b,j,s,h]   (N small & static)
        ctx = attn[:, :, 0:1, :] * v4[:, 0:1, :, :]
        for j in range(1, N):
            ctx = ctx + attn[:, :, j:j + 1, :] * v4[:, j:j + 1, :, :]
        c2 = ctx.reshape(M, H)

        f = jnp.maximum(lin(3, c2), 0.0)
        f = jnp.maximum(lin(4, f), 0.0)
        f = lin(5, f)

        # residual + LayerNorm(H)
        y = f + hl2
        mu = jnp.mean(y, axis=-1, keepdims=True)
        d = y - mu
        var = jnp.mean(d * d, axis=-1, keepdims=True)
        return ln_ref[0] * (d * jax.lax.rsqrt(var + 1e-5)) + ln_ref[1]

    def kernel(*refs):
        out_ref = refs[-1]
        in_refs = refs[:-1]
        x_ref, cw_ref, cb_ref = in_refs[0:3]
        pos = 3

        # conv1x1(1 -> H) + permute(0,2,3,1): outer product w/ per-channel w, b
        hl = x_ref[...] * cw_ref[...] + cb_ref[...]           # [M, H]

        for _ in range(L):
            es_ref, ws_ref, bs_ref, lns_ref = in_refs[pos:pos + 4]
            pos += 4
            et_ref, wt_ref, bt_ref, lnt_ref = in_refs[pos:pos + 4]
            pos += 4
            wm_ref, bm_ref = in_refs[pos:pos + 2]
            pos += 2

            ys = _attention(hl, es_ref, ws_ref, bs_ref, lns_ref)
            yt = _attention(hl, et_ref, wt_ref, bt_ref, lnt_ref)

            # cat([hl, YS, YT], -1) @ Wm.T + b == hl@W1 + YS@W2 + YT@W3 + b
            z = (jnp.dot(hl, wm_ref[0], preferred_element_type=jnp.float32)
                 + jnp.dot(ys, wm_ref[1], preferred_element_type=jnp.float32)
                 + jnp.dot(yt, wm_ref[2], preferred_element_type=jnp.float32)
                 + bm_ref[...])
            hl = jnp.maximum(z, 0.0)

        # head: W_d0 -> flatten (N,S,H order) -> W_d1 -> sigmoid (batched)
        wd0_ref, bd0_ref, wd1_ref, bd1_ref = in_refs[pos:pos + 4]
        h = (jnp.dot(hl, wd0_ref[...], preferred_element_type=jnp.float32)
             + bd0_ref[...])                                   # [M, H]
        h3 = h.reshape(B, NS, H)
        prod = h3 * wd1_ref[...][None]                         # [B, NS, H]
        s = jnp.sum(prod, axis=2, keepdims=True)               # [B, NS, 1]
        logit = jnp.sum(s, axis=1, keepdims=True).reshape(B, 1) + bd1_ref[...]
        out_ref[...] = 1.0 / (1.0 + jnp.exp(-logit))

    return kernel


# ---------------------------------------------------------------------------
# One-time operand packing (transposes / stacking / encoding broadcasts)
# ---------------------------------------------------------------------------

def pack_discriminator_operands(params, batch_size, adj_matrix=None):
    H = params['conv_w'].shape[0]
    L = len(params['spatial'])
    N, S, _ = params['spatial'][0]['W_a_S'].shape
    B = batch_size
    M = B * N * S

    def branch(p):
        w = jnp.stack([p['wq'].T, p['wk'].T, p['wv'].T,
                       p['w0'].T, p['w1'].T, p['w2'].T])        # [6, H, H]
        b = jnp.stack([p['bq'], p['bk'], p['bv'],
                       p['b0'], p['b1'], p['b2']]).reshape(6, 1, H)
        ln = jnp.stack([p['gamma'], p['beta']]).reshape(2, 1, H)
        return [w, b, ln]

    ops = [params['conv_w'].reshape(1, H), params['conv_b'].reshape(1, H)]
    for l in range(L):
        sp = params['spatial'][l]
        tp = params['temporal'][l]
        mp = params['merge'][l]
        if adj_matrix is not None:
            Es = jnp.einsum('ij,jsh->ish', adj_matrix, sp['W_a_S'])
        else:
            Es = jnp.zeros((N, S, H), jnp.float32)              # XS = hl
        Es_b = jnp.broadcast_to(Es[None], (B, N, S, H)).reshape(M, H)
        Et_b = jnp.broadcast_to(tp['pos'][None, None],
                                (B, N, S, H)).reshape(M, H)
        ops += [Es_b] + branch(sp)
        ops += [Et_b] + branch(tp)
        w = mp['w']                                             # [H, 3H]
        wm = jnp.stack([w[:, :H].T, w[:, H:2 * H].T, w[:, 2 * H:].T])  # [3,H,H]
        ops += [wm, mp['b'].reshape(1, H)]

    ops += [params['wd0'].T, params['bd0'].reshape(1, H),
            params['wd1'].reshape(N * S, H),   # flatten order (N, S, H)
            params['bd1'].reshape(1, 1)]
    return tuple(ops), (B, N, S, H, L)


def discriminator_forward(packed, x):
    """x: [B, input_dim, seq_len]  ->  validity [B, 1]"""
    ops, (B, N, S, H, L) = packed
    assert x.shape == (B, N, S)
    M = B * N * S
    kernel = _build_fused_kernel(B, N, S, H, L)
    return pl.pallas_call(
        kernel,
        out_shape=jax.ShapeDtypeStruct((B, 1), jnp.float32),
        compiler_params=pltpu.CompilerParams(
            vmem_limit_bytes=32 * 1024 * 1024),
    )(x.reshape(M, 1).astype(jnp.float32), *ops)


# ---------------------------------------------------------------------------
# Deterministic parameter initialization (shapes match the PyTorch module)
# ---------------------------------------------------------------------------

def _linear_init(key, out_dim, in_dim):
    kw, kb = jax.random.split(key)
    scale = 1.0 / math.sqrt(in_dim)
    w = jax.random.uniform(kw, (out_dim, in_dim), jnp.float32, -scale, scale)
    b = jax.random.uniform(kb, (out_dim,), jnp.float32, -scale, scale)
    return w, b


def _attn_params(key, N, S, H, kind):
    keys = jax.random.split(key, 8)
    p = {}
    for name, k in zip(['q', 'k', 'v', '0', '1', '2'], keys[:6]):
        w, b = _linear_init(k, H, H)
        p['w' + name] = w
        p['b' + name] = b
    p['gamma'] = jnp.ones((H,), jnp.float32)
    p['beta'] = jnp.zeros((H,), jnp.float32)
    if kind == 'spatial':
        p['W_a_S'] = 0.1 * jax.random.normal(keys[6], (N, S, H), jnp.float32)
        p['A'] = 0.1 * jax.random.normal(keys[7], (N, N), jnp.float32)  # unused in fwd
    else:
        p['pos'] = 0.1 * jax.random.normal(keys[6], (S, H), jnp.float32)
    return p


def init_discriminator_params(key, input_dim, seq_len, hidden_dim, num_layers,
                              output_dim=1):
    N, S, H = input_dim, seq_len, hidden_dim
    keys = jax.random.split(key, 4 + 3 * num_layers)
    params = {}
    params['conv_w'] = jax.random.uniform(keys[0], (H,), jnp.float32, -1.0, 1.0)
    params['conv_b'] = jax.random.uniform(keys[1], (H,), jnp.float32, -1.0, 1.0)
    params['spatial'] = []
    params['temporal'] = []
    params['merge'] = []
    for i in range(num_layers):
        params['spatial'].append(_attn_params(keys[4 + 3 * i], N, S, H, 'spatial'))
        params['temporal'].append(_attn_params(keys[5 + 3 * i], N, S, H, 'temporal'))
        mw, mb = _linear_init(keys[6 + 3 * i], H, 3 * H)
        params['merge'].append({'w': mw, 'b': mb})
    wd0, bd0 = _linear_init(keys[2], H, H)
    params['wd0'], params['bd0'] = wd0, bd0
    wd1, bd1 = _linear_init(keys[3], output_dim, H * N * S)
    params['wd1'], params['bd1'] = wd1, bd1
    return params


# ---------------------------------------------------------------------------
# Pure-JAX reference (numerical sanity check)
# ---------------------------------------------------------------------------

def _ref_attention(hl, E, p):
    B, N, S, H = hl.shape
    X = hl + E[None]
    X2 = X.reshape(-1, H)
    q = (X2 @ p['wq'].T + p['bq']).reshape(B, N, S, H)
    k = (X2 @ p['wk'].T + p['bk']).reshape(B, N, S, H)
    v = (X2 @ p['wv'].T + p['bv']).reshape(B, N, S, H)
    energy = jnp.einsum('bish,bjsh->bijh', q, k) / math.sqrt(H)
    attn = jax.nn.softmax(energy, axis=2)            # torch Softmax(dim=-2)
    ctx = jnp.einsum('bijh,bjsh->bish', attn, v)
    c2 = ctx.reshape(-1, H)
    f = jax.nn.relu(c2 @ p['w0'].T + p['b0'])
    f = jax.nn.relu(f @ p['w1'].T + p['b1'])
    f = (f @ p['w2'].T + p['b2']).reshape(B, N, S, H)
    y = f + hl
    mu = jnp.mean(y, axis=-1, keepdims=True)
    var = jnp.mean((y - mu) ** 2, axis=-1, keepdims=True)
    return p['gamma'] * (y - mu) / jnp.sqrt(var + 1e-5) + p['beta']


def ref_discriminator(params, x, adj_matrix=None):
    B, N, S = x.shape
    H = params['conv_w'].shape[0]
    x_conv = (x[..., None] * params['conv_w'][None, None, None, :]
              + params['conv_b'][None, None, None, :])
    hl = x_conv
    for i in range(len(params['spatial'])):
        sp = params['spatial'][i]
        tp = params['temporal'][i]
        if adj_matrix is not None:
            E_s = jnp.einsum('ij,jsh->ish', adj_matrix, sp['W_a_S'])
        else:
            E_s = jnp.zeros((N, S, H), jnp.float32)
        E_t = jnp.broadcast_to(tp['pos'][None, :, :], (N, S, H))
        YS = _ref_attention(hl, E_s, sp)
        YT = _ref_attention(hl, E_t, tp)
        merged = jnp.concatenate([hl, YS, YT], axis=-1).reshape(B * N * S, 3 * H)
        mp = params['merge'][i]
        hl = jax.nn.relu(merged @ mp['w'].T + mp['b']).reshape(B, N, S, H)
    h2 = hl.reshape(B * N * S, H) @ params['wd0'].T + params['bd0']
    flat = h2.reshape(B, N * S * H)
    logit = flat @ params['wd1'].T + params['bd1']
    return jax.nn.sigmoid(logit)


# ---------------------------------------------------------------------------

if __name__ == "__main__":
    B, input_dim, seq_len, hidden_dim, num_layers = 2, 4, 8, 32, 2

    key = jax.random.PRNGKey(0)
    pkey, xkey = jax.random.split(key)
    params = init_discriminator_params(pkey, input_dim, seq_len, hidden_dim,
                                       num_layers, output_dim=1)
    x = jax.random.normal(xkey, (B, input_dim, seq_len), jnp.float32)

    # One-time operand packing, then a single fused pallas_call per forward.
    packed = pack_discriminator_operands(params, B, adj_matrix=None)
    validity = discriminator_forward(packed, x)
    validity = jax.block_until_ready(validity)

    ref = ref_discriminator(params, x, adj_matrix=None)
    assert validity.shape == (B, 1)
    np.testing.assert_allclose(np.asarray(validity), np.asarray(ref),
                               atol=1e-2, rtol=1e-2)
    print("KERNEL_OK")
</pallas_src>

<mosaic_0001>
module attributes {stable_mosaic.version = 11 : i64} {
  func.func @kernel(%arg0: memref<64x1xf32, #tpu.memory_space<vmem>>, %arg1: memref<1x32xf32, #tpu.memory_space<vmem>>, %arg2: memref<1x32xf32, #tpu.memory_space<vmem>>, %arg3: memref<64x32xf32, #tpu.memory_space<vmem>>, %arg4: memref<6x32x32xf32, #tpu.memory_space<vmem>>, %arg5: memref<6x1x32xf32, #tpu.memory_space<vmem>>, %arg6: memref<2x1x32xf32, #tpu.memory_space<vmem>>, %arg7: memref<64x32xf32, #tpu.memory_space<vmem>>, %arg8: memref<6x32x32xf32, #tpu.memory_space<vmem>>, %arg9: memref<6x1x32xf32, #tpu.memory_space<vmem>>, %arg10: memref<2x1x32xf32, #tpu.memory_space<vmem>>, %arg11: memref<3x32x32xf32, #tpu.memory_space<vmem>>, %arg12: memref<1x32xf32, #tpu.memory_space<vmem>>, %arg13: memref<64x32xf32, #tpu.memory_space<vmem>>, %arg14: memref<6x32x32xf32, #tpu.memory_space<vmem>>, %arg15: memref<6x1x32xf32, #tpu.memory_space<vmem>>, %arg16: memref<2x1x32xf32, #tpu.memory_space<vmem>>, %arg17: memref<64x32xf32, #tpu.memory_space<vmem>>, %arg18: memref<6x32x32xf32, #tpu.memory_space<vmem>>, %arg19: memref<6x1x32xf32, #tpu.memory_space<vmem>>, %arg20: memref<2x1x32xf32, #tpu.memory_space<vmem>>, %arg21: memref<3x32x32xf32, #tpu.memory_space<vmem>>, %arg22: memref<1x32xf32, #tpu.memory_space<vmem>>, %arg23: memref<32x32xf32, #tpu.memory_space<vmem>>, %arg24: memref<1x32xf32, #tpu.memory_space<vmem>>, %arg25: memref<32x32xf32, #tpu.memory_space<vmem>>, %arg26: memref<1x1xf32, #tpu.memory_space<vmem>>, %arg27: memref<2x1xf32, #tpu.memory_space<vmem>>) attributes {dimension_semantics = [], scalar_prefetch = 0 : i64, scratch_operands = 0 : i64, tpu.core_type = #tpu.core_type<tc>} {
    %c0 = arith.constant 0 : index
    %c0_0 = arith.constant 0 : index
    %0 = vector.load %arg0[%c0, %c0_0] : memref<64x1xf32, #tpu.memory_space<vmem>>, vector<64x1xf32>
    %c0_1 = arith.constant 0 : index
    %c0_2 = arith.constant 0 : index
    %1 = vector.load %arg1[%c0_1, %c0_2] : memref<1x32xf32, #tpu.memory_space<vmem>>, vector<1x32xf32>
    %2 = vector.broadcast %0 : vector<64x1xf32> to vector<64x32xf32>
    %3 = vector.broadcast %1 : vector<1x32xf32> to vector<64x32xf32>
    %4 = arith.mulf %2, %3 : vector<64x32xf32>
    %c0_3 = arith.constant 0 : index
    %c0_4 = arith.constant 0 : index
    %5 = vector.load %arg2[%c0_3, %c0_4] : memref<1x32xf32, #tpu.memory_space<vmem>>, vector<1x32xf32>
    %6 = vector.broadcast %5 : vector<1x32xf32> to vector<64x32xf32>
    %7 = arith.addf %4, %6 : vector<64x32xf32>
    %c0_5 = arith.constant 0 : index
    %c0_6 = arith.constant 0 : index
    %8 = vector.load %arg3[%c0_5, %c0_6] : memref<64x32xf32, #tpu.memory_space<vmem>>, vector<64x32xf32>
    %9 = arith.addf %7, %8 : vector<64x32xf32>
    %c0_7 = arith.constant 0 : index
    %c0_8 = arith.constant 0 : index
    %c0_9 = arith.constant 0 : index
    %10 = vector.load %arg4[%c0_7, %c0_8, %c0_9] : memref<6x32x32xf32, #tpu.memory_space<vmem>>, vector<1x32x32xf32>
    %11 = vector.shape_cast %10 : vector<1x32x32xf32> to vector<32x32xf32>
    %cst = arith.constant dense<0.000000e+00> : vector<64x32xf32>
    %12 = tpu.matmul %9, %11, %cst {dimension_numbers = #tpu.dot_dimension_numbers<[1], [0], [0], [1], [0, 0, 1, 1], [], []>} : vector<64x32xf32>, vector<32x32xf32>, vector<64x32xf32> -> vector<64x32xf32>
    %c0_10 = arith.constant 0 : index
    %c0_11 = arith.constant 0 : index
    %c0_12 = arith.constant 0 : index
    %13 = vector.load %arg5[%c0_10, %c0_11, %c0_12] : memref<6x1x32xf32, #tpu.memory_space<vmem>>, vector<1x1x32xf32>
    %14 = vector.shape_cast %13 : vector<1x1x32xf32> to vector<1x32xf32>
    %15 = vector.broadcast %14 : vector<1x32xf32> to vector<64x32xf32>
    %16 = arith.addf %12, %15 : vector<64x32xf32>
    %cst_13 = arith.constant 0.176776692 : f32
    %17 = vector.broadcast %cst_13 : f32 to vector<64x32xf32>
    %18 = arith.mulf %16, %17 : vector<64x32xf32>
    %c1 = arith.constant 1 : index
    %c0_14 = arith.constant 0 : index
    %c0_15 = arith.constant 0 : index
    %19 = vector.load %arg4[%c1, %c0_14, %c0_15] : memref<6x32x32xf32, #tpu.memory_space<vmem>>, vector<1x32x32xf32>
    %20 = vector.shape_cast %19 : vector<1x32x32xf32> to vector<32x32xf32>
    %cst_16 = arith.constant dense<0.000000e+00> : vector<64x32xf32>
    %21 = tpu.matmul %9, %20, %cst_16 {dimension_numbers = #tpu.dot_dimension_numbers<[1], [0], [0], [1], [0, 0, 1, 1], [], []>} : vector<64x32xf32>, vector<32x32xf32>, vector<64x32xf32> -> vector<64x32xf32>
    %c1_17 = arith.constant 1 : index
    %c0_18 = arith.constant 0 : index
    %c0_19 = arith.constant 0 : index
    %22 = vector.load %arg5[%c1_17, %c0_18, %c0_19] : memref<6x1x32xf32, #tpu.memory_space<vmem>>, vector<1x1x32xf32>
    %23 = vector.shape_cast %22 : vector<1x1x32xf32> to vector<1x32xf32>
    %24 = vector.broadcast %23 : vector<1x32xf32> to vector<64x32xf32>
    %25 = arith.addf %21, %24 : vector<64x32xf32>
    %c2 = arith.constant 2 : index
    %c0_20 = arith.constant 0 : index
    %c0_21 = arith.constant 0 : index
    %26 = vector.load %arg4[%c2, %c0_20, %c0_21] : memref<6x32x32xf32, #tpu.memory_space<vmem>>, vector<1x32x32xf32>
    %27 = vector.shape_cast %26 : vector<1x32x32xf32> to vector<32x32xf32>
    %cst_22 = arith.constant dense<0.000000e+00> : vector<64x32xf32>
    %28 = tpu.matmul %9, %27, %cst_22 {dimension_numbers = #tpu.dot_dimension_numbers<[1], [0], [0], [1], [0, 0, 1, 1], [], []>} : vector<64x32xf32>, vector<32x32xf32>, vector<64x32xf32> -> vector<64x32xf32>
    %c2_23 = arith.constant 2 : index
    %c0_24 = arith.constant 0 : index
    %c0_25 = arith.constant 0 : index
    %29 = vector.load %arg5[%c2_23, %c0_24, %c0_25] : memref<6x1x32xf32, #tpu.memory_space<vmem>>, vector<1x1x32xf32>
    %30 = vector.shape_cast %29 : vector<1x1x32xf32> to vector<1x32xf32>
    %31 = vector.broadcast %30 : vector<1x32xf32> to vector<64x32xf32>
    %32 = arith.addf %28, %31 : vector<64x32xf32>
    %33 = vector.shape_cast %18 : vector<64x32xf32> to vector<2x4x8x32xf32>
    %34 = vector.shape_cast %25 : vector<64x32xf32> to vector<2x4x8x32xf32>
    %35 = vector.shape_cast %32 : vector<64x32xf32> to vector<2x4x8x32xf32>
    %36 = vector.shape_cast %33 : vector<2x4x8x32xf32> to vector<2x4x1x8x32xf32>
    %37 = vector.shape_cast %34 : vector<2x4x8x32xf32> to vector<2x1x4x8x32xf32>
    %38 = vector.broadcast %36 : vector<2x4x1x8x32xf32> to vector<2x4x4x8x32xf32>
    %39 = vector.broadcast %37 : vector<2x1x4x8x32xf32> to vector<2x4x4x8x32xf32>
    %40 = arith.mulf %38, %39 : vector<2x4x4x8x32xf32>
    %cst_26 = arith.constant dense<0.000000e+00> : vector<2x4x4x32xf32>
    %41 = vector.multi_reduction <add>, %40, %cst_26 [3] : vector<2x4x4x8x32xf32> to vector<2x4x4x32xf32>
    %cst_27 = arith.constant dense<0xFF800000> : vector<2x4x32xf32>
    %42 = vector.multi_reduction <maximumf>, %41, %cst_27 [2] : vector<2x4x4x32xf32> to vector<2x4x32xf32>
    %43 = vector.shape_cast %42 : vector<2x4x32xf32> to vector<2x4x1x32xf32>
    %44 = vector.broadcast %43 : vector<2x4x1x32xf32> to vector<2x4x4x32xf32>
    %45 = arith.subf %41, %44 : vector<2x4x4x32xf32>
    %46 = math.exp %45 : vector<2x4x4x32xf32>
    %cst_28 = arith.constant dense<0.000000e+00> : vector<2x4x32xf32>
    %47 = vector.multi_reduction <add>, %46, %cst_28 [2] : vector<2x4x4x32xf32> to vector<2x4x32xf32>
    %48 = vector.shape_cast %47 : vector<2x4x32xf32> to vector<2x4x1x32xf32>
    %49 = tpu.reciprocal %48 {approx = true} : vector<2x4x1x32xf32> -> vector<2x4x1x32xf32>
    %50 = vector.broadcast %49 : vector<2x4x1x32xf32> to vector<2x4x4x32xf32>
    %51 = arith.mulf %46, %50 : vector<2x4x4x32xf32>
    %52 = vector.extract_strided_slice %51 {offsets = [0, 0, 0, 0], sizes = [2, 4, 1, 32], strides = [1, 1, 1, 1]} : vector<2x4x4x32xf32> to vector<2x4x1x32xf32>
    %53 = vector.extract_strided_slice %35 {offsets = [0, 0, 0, 0], sizes = [2, 1, 8, 32], strides = [1, 1, 1, 1]} : vector<2x4x8x32xf32> to vector<2x1x8x32xf32>
    %54 = vector.broadcast %52 : vector<2x4x1x32xf32> to vector<2x4x8x32xf32>
    %55 = vector.broadcast %53 : vector<2x1x8x32xf32> to vector<2x4x8x32xf32>
    %56 = arith.mulf %54, %55 : vector<2x4x8x32xf32>
    %57 = vector.extract_strided_slice %51 {offsets = [0, 0, 1, 0], sizes = [2, 4, 1, 32], strides = [1, 1, 1, 1]} : vector<2x4x4x32xf32> to vector<2x4x1x32xf32>
    %58 = vector.extract_strided_slice %35 {offsets = [0, 1, 0, 0], sizes = [2, 1, 8, 32], strides = [1, 1, 1, 1]} : vector<2x4x8x32xf32> to vector<2x1x8x32xf32>
    %59 = vector.broadcast %57 : vector<2x4x1x32xf32> to vector<2x4x8x32xf32>
    %60 = vector.broadcast %58 : vector<2x1x8x32xf32> to vector<2x4x8x32xf32>
    %61 = arith.mulf %59, %60 : vector<2x4x8x32xf32>
    %62 = arith.addf %56, %61 : vector<2x4x8x32xf32>
    %63 = vector.extract_strided_slice %51 {offsets = [0, 0, 2, 0], sizes = [2, 4, 1, 32], strides = [1, 1, 1, 1]} : vector<2x4x4x32xf32> to vector<2x4x1x32xf32>
    %64 = vector.extract_strided_slice %35 {offsets = [0, 2, 0, 0], sizes = [2, 1, 8, 32], strides = [1, 1, 1, 1]} : vector<2x4x8x32xf32> to vector<2x1x8x32xf32>
    %65 = vector.broadcast %63 : vector<2x4x1x32xf32> to vector<2x4x8x32xf32>
    %66 = vector.broadcast %64 : vector<2x1x8x32xf32> to vector<2x4x8x32xf32>
    %67 = arith.mulf %65, %66 : vector<2x4x8x32xf32>
    %68 = arith.addf %62, %67 : vector<2x4x8x32xf32>
    %69 = vector.extract_strided_slice %51 {offsets = [0, 0, 3, 0], sizes = [2, 4, 1, 32], strides = [1, 1, 1, 1]} : vector<2x4x4x32xf32> to vector<2x4x1x32xf32>
    %70 = vector.extract_strided_slice %35 {offsets = [0, 3, 0, 0], sizes = [2, 1, 8, 32], strides = [1, 1, 1, 1]} : vector<2x4x8x32xf32> to vector<2x1x8x32xf32>
    %71 = vector.broadcast %69 : vector<2x4x1x32xf32> to vector<2x4x8x32xf32>
    %72 = vector.broadcast %70 : vector<2x1x8x32xf32> to vector<2x4x8x32xf32>
    %73 = arith.mulf %71, %72 : vector<2x4x8x32xf32>
    %74 = arith.addf %68, %73 : vector<2x4x8x32xf32>
    %75 = vector.shape_cast %74 : vector<2x4x8x32xf32> to vector<64x32xf32>
    %c3 = arith.constant 3 : index
    %c0_29 = arith.constant 0 : index
    %c0_30 = arith.constant 0 : index
    %76 = vector.load %arg4[%c3, %c0_29, %c0_30] : memref<6x32x32xf32, #tpu.memory_space<vmem>>, vector<1x32x32xf32>
    %77 = vector.shape_cast %76 : vector<1x32x32xf32> to vector<32x32xf32>
    %cst_31 = arith.constant dense<0.000000e+00> : vector<64x32xf32>
    %78 = tpu.matmul %75, %77, %cst_31 {dimension_numbers = #tpu.dot_dimension_numbers<[1], [0], [0], [1], [0, 0, 1, 1], [], []>} : vector<64x32xf32>, vector<32x32xf32>, vector<64x32xf32> -> vector<64x32xf32>
    %c3_32 = arith.constant 3 : index
    %c0_33 = arith.constant 0 : index
    %c0_34 = arith.constant 0 : index
    %79 = vector.load %arg5[%c3_32, %c0_33, %c0_34] : memref<6x1x32xf32, #tpu.memory_space<vmem>>, vector<1x1x32xf32>
    %80 = vector.shape_cast %79 : vector<1x1x32xf32> to vector<1x32xf32>
    %81 = vector.broadcast %80 : vector<1x32xf32> to vector<64x32xf32>
    %82 = arith.addf %78, %81 : vector<64x32xf32>
    %cst_35 = arith.constant 0.000000e+00 : f32
    %83 = vector.broadcast %cst_35 : f32 to vector<64x32xf32>
    %84 = arith.maximumf %82, %83 : vector<64x32xf32>
    %c4 = arith.constant 4 : index
    %c0_36 = arith.constant 0 : index
    %c0_37 = arith.constant 0 : index
    %85 = vector.load %arg4[%c4, %c0_36, %c0_37] : memref<6x32x32xf32, #tpu.memory_space<vmem>>, vector<1x32x32xf32>
    %86 = vector.shape_cast %85 : vector<1x32x32xf32> to vector<32x32xf32>
    %cst_38 = arith.constant dense<0.000000e+00> : vector<64x32xf32>
    %87 = tpu.matmul %84, %86, %cst_38 {dimension_numbers = #tpu.dot_dimension_numbers<[1], [0], [0], [1], [0, 0, 1, 1], [], []>} : vector<64x32xf32>, vector<32x32xf32>, vector<64x32xf32> -> vector<64x32xf32>
    %c4_39 = arith.constant 4 : index
    %c0_40 = arith.constant 0 : index
    %c0_41 = arith.constant 0 : index
    %88 = vector.load %arg5[%c4_39, %c0_40, %c0_41] : memref<6x1x32xf32, #tpu.memory_space<vmem>>, vector<1x1x32xf32>
    %89 = vector.shape_cast %88 : vector<1x1x32xf32> to vector<1x32xf32>
    %90 = vector.broadcast %89 : vector<1x32xf32> to vector<64x32xf32>
    %91 = arith.addf %87, %90 : vector<64x32xf32>
    %cst_42 = arith.constant 0.000000e+00 : f32
    %92 = vector.broadcast %cst_42 : f32 to vector<64x32xf32>
    %93 = arith.maximumf %91, %92 : vector<64x32xf32>
    %c5 = arith.constant 5 : index
    %c0_43 = arith.constant 0 : index
    %c0_44 = arith.constant 0 : index
    %94 = vector.load %arg4[%c5, %c0_43, %c0_44] : memref<6x32x32xf32, #tpu.memory_space<vmem>>, vector<1x32x32xf32>
    %95 = vector.shape_cast %94 : vector<1x32x32xf32> to vector<32x32xf32>
    %cst_45 = arith.constant dense<0.000000e+00> : vector<64x32xf32>
    %96 = tpu.matmul %93, %95, %cst_45 {dimension_numbers = #tpu.dot_dimension_numbers<[1], [0], [0], [1], [0, 0, 1, 1], [], []>} : vector<64x32xf32>, vector<32x32xf32>, vector<64x32xf32> -> vector<64x32xf32>
    %c5_46 = arith.constant 5 : index
    %c0_47 = arith.constant 0 : index
    %c0_48 = arith.constant 0 : index
    %97 = vector.load %arg5[%c5_46, %c0_47, %c0_48] : memref<6x1x32xf32, #tpu.memory_space<vmem>>, vector<1x1x32xf32>
    %98 = vector.shape_cast %97 : vector<1x1x32xf32> to vector<1x32xf32>
    %99 = vector.broadcast %98 : vector<1x32xf32> to vector<64x32xf32>
    %100 = arith.addf %96, %99 : vector<64x32xf32>
    %101 = arith.addf %100, %7 : vector<64x32xf32>
    %cst_49 = arith.constant dense<0.000000e+00> : vector<64xf32>
    %102 = vector.multi_reduction <add>, %101, %cst_49 [1] : vector<64x32xf32> to vector<64xf32>
    %103 = vector.shape_cast %102 : vector<64xf32> to vector<64x1xf32>
    %cst_50 = arith.constant 3.200000e+01 : f32
    %104 = vector.broadcast %cst_50 : f32 to vector<64x1xf32>
    %105 = arith.divf %103, %104 : vector<64x1xf32>
    %106 = vector.broadcast %105 : vector<64x1xf32> to vector<64x32xf32>
    %107 = arith.subf %101, %106 : vector<64x32xf32>
    %108 = arith.mulf %107, %107 : vector<64x32xf32>
    %cst_51 = arith.constant dense<0.000000e+00> : vector<64xf32>
    %109 = vector.multi_reduction <add>, %108, %cst_51 [1] : vector<64x32xf32> to vector<64xf32>
    %110 = vector.shape_cast %109 : vector<64xf32> to vector<64x1xf32>
    %cst_52 = arith.constant 3.200000e+01 : f32
    %111 = vector.broadcast %cst_52 : f32 to vector<64x1xf32>
    %112 = arith.divf %110, %111 : vector<64x1xf32>
    %c0_53 = arith.constant 0 : index
    %c0_54 = arith.constant 0 : index
    %c0_55 = arith.constant 0 : index
    %113 = vector.load %arg6[%c0_53, %c0_54, %c0_55] : memref<2x1x32xf32, #tpu.memory_space<vmem>>, vector<1x1x32xf32>
    %114 = vector.shape_cast %113 : vector<1x1x32xf32> to vector<1x32xf32>
    %cst_56 = arith.constant 9.99999974E-6 : f32
    %115 = vector.broadcast %cst_56 : f32 to vector<64x1xf32>
    %116 = arith.addf %112, %115 : vector<64x1xf32>
    %117 = math.rsqrt %116 : vector<64x1xf32>
    %118 = vector.broadcast %117 : vector<64x1xf32> to vector<64x32xf32>
    %119 = arith.mulf %107, %118 : vector<64x32xf32>
    %120 = vector.broadcast %114 : vector<1x32xf32> to vector<64x32xf32>
    %121 = arith.mulf %120, %119 : vector<64x32xf32>
    %c1_57 = arith.constant 1 : index
    %c0_58 = arith.constant 0 : index
    %c0_59 = arith.constant 0 : index
    %122 = vector.load %arg6[%c1_57, %c0_58, %c0_59] : memref<2x1x32xf32, #tpu.memory_space<vmem>>, vector<1x1x32xf32>
    %123 = vector.shape_cast %122 : vector<1x1x32xf32> to vector<1x32xf32>
    %124 = vector.broadcast %123 : vector<1x32xf32> to vector<64x32xf32>
    %125 = arith.addf %121, %124 : vector<64x32xf32>
    %c0_60 = arith.constant 0 : index
    %c0_61 = arith.constant 0 : index
    %126 = vector.load %arg7[%c0_60, %c0_61] : memref<64x32xf32, #tpu.memory_space<vmem>>, vector<64x32xf32>
    %127 = arith.addf %7, %126 : vector<64x32xf32>
    %c0_62 = arith.constant 0 : index
    %c0_63 = arith.constant 0 : index
    %c0_64 = arith.constant 0 : index
    %128 = vector.load %arg8[%c0_62, %c0_63, %c0_64] : memref<6x32x32xf32, #tpu.memory_space<vmem>>, vector<1x32x32xf32>
    %129 = vector.shape_cast %128 : vector<1x32x32xf32> to vector<32x32xf32>
    %cst_65 = arith.constant dense<0.000000e+00> : vector<64x32xf32>
    %130 = tpu.matmul %127, %129, %cst_65 {dimension_numbers = #tpu.dot_dimension_numbers<[1], [0], [0], [1], [0, 0, 1, 1], [], []>} : vector<64x32xf32>, vector<32x32xf32>, vector<64x32xf32> -> vector<64x32xf32>
    %c0_66 = arith.constant 0 : index
    %c0_67 = arith.constant 0 : index
    %c0_68 = arith.constant 0 : index
    %131 = vector.load %arg9[%c0_66, %c0_67, %c0_68] : memref<6x1x32xf32, #tpu.memory_space<vmem>>, vector<1x1x32xf32>
    %132 = vector.shape_cast %131 : vector<1x1x32xf32> to vector<1x32xf32>
    %133 = vector.broadcast %132 : vector<1x32xf32> to vector<64x32xf32>
    %134 = arith.addf %130, %133 : vector<64x32xf32>
    %cst_69 = arith.constant 0.176776692 : f32
    %135 = vector.broadcast %cst_69 : f32 to vector<64x32xf32>
    %136 = arith.mulf %134, %135 : vector<64x32xf32>
    %c1_70 = arith.constant 1 : index
    %c0_71 = arith.constant 0 : index
    %c0_72 = arith.constant 0 : index
    %137 = vector.load %arg8[%c1_70, %c0_71, %c0_72] : memref<6x32x32xf32, #tpu.memory_space<vmem>>, vector<1x32x32xf32>
    %138 = vector.shape_cast %137 : vector<1x32x32xf32> to vector<32x32xf32>
    %cst_73 = arith.constant dense<0.000000e+00> : vector<64x32xf32>
    %139 = tpu.matmul %127, %138, %cst_73 {dimension_numbers = #tpu.dot_dimension_numbers<[1], [0], [0], [1], [0, 0, 1, 1], [], []>} : vector<64x32xf32>, vector<32x32xf32>, vector<64x32xf32> -> vector<64x32xf32>
    %c1_74 = arith.constant 1 : index
    %c0_75 = arith.constant 0 : index
    %c0_76 = arith.constant 0 : index
    %140 = vector.load %arg9[%c1_74, %c0_75, %c0_76] : memref<6x1x32xf32, #tpu.memory_space<vmem>>, vector<1x1x32xf32>
    %141 = vector.shape_cast %140 : vector<1x1x32xf32> to vector<1x32xf32>
    %142 = vector.broadcast %141 : vector<1x32xf32> to vector<64x32xf32>
    %143 = arith.addf %139, %142 : vector<64x32xf32>
    %c2_77 = arith.constant 2 : index
    %c0_78 = arith.constant 0 : index
    %c0_79 = arith.constant 0 : index
    %144 = vector.load %arg8[%c2_77, %c0_78, %c0_79] : memref<6x32x32xf32, #tpu.memory_space<vmem>>, vector<1x32x32xf32>
    %145 = vector.shape_cast %144 : vector<1x32x32xf32> to vector<32x32xf32>
    %cst_80 = arith.constant dense<0.000000e+00> : vector<64x32xf32>
    %146 = tpu.matmul %127, %145, %cst_80 {dimension_numbers = #tpu.dot_dimension_numbers<[1], [0], [0], [1], [0, 0, 1, 1], [], []>} : vector<64x32xf32>, vector<32x32xf32>, vector<64x32xf32> -> vector<64x32xf32>
    %c2_81 = arith.constant 2 : index
    %c0_82 = arith.constant 0 : index
    %c0_83 = arith.constant 0 : index
    %147 = vector.load %arg9[%c2_81, %c0_82, %c0_83] : memref<6x1x32xf32, #tpu.memory_space<vmem>>, vector<1x1x32xf32>
    %148 = vector.shape_cast %147 : vector<1x1x32xf32> to vector<1x32xf32>
    %149 = vector.broadcast %148 : vector<1x32xf32> to vector<64x32xf32>
    %150 = arith.addf %146, %149 : vector<64x32xf32>
    %151 = vector.shape_cast %136 : vector<64x32xf32> to vector<2x4x8x32xf32>
    %152 = vector.shape_cast %143 : vector<64x32xf32> to vector<2x4x8x32xf32>
    %153 = vector.shape_cast %150 : vector<64x32xf32> to vector<2x4x8x32xf32>
    %154 = vector.shape_cast %151 : vector<2x4x8x32xf32> to vector<2x4x1x8x32xf32>
    %155 = vector.shape_cast %152 : vector<2x4x8x32xf32> to vector<2x1x4x8x32xf32>
    %156 = vector.broadcast %154 : vector<2x4x1x8x32xf32> to vector<2x4x4x8x32xf32>
    %157 = vector.broadcast %155 : vector<2x1x4x8x32xf32> to vector<2x4x4x8x32xf32>
    %158 = arith.mulf %156, %157 : vector<2x4x4x8x32xf32>
    %cst_84 = arith.constant dense<0.000000e+00> : vector<2x4x4x32xf32>
    %159 = vector.multi_reduction <add>, %158, %cst_84 [3] : vector<2x4x4x8x32xf32> to vector<2x4x4x32xf32>
    %cst_85 = arith.constant dense<0xFF800000> : vector<2x4x32xf32>
    %160 = vector.multi_reduction <maximumf>, %159, %cst_85 [2] : vector<2x4x4x32xf32> to vector<2x4x32xf32>
    %161 = vector.shape_cast %160 : vector<2x4x32xf32> to vector<2x4x1x32xf32>
    %162 = vector.broadcast %161 : vector<2x4x1x32xf32> to vector<2x4x4x32xf32>
    %163 = arith.subf %159, %162 : vector<2x4x4x32xf32>
    %164 = math.exp %163 : vector<2x4x4x32xf32>
    %cst_86 = arith.constant dense<0.000000e+00> : vector<2x4x32xf32>
    %165 = vector.multi_reduction <add>, %164, %cst_86 [2] : vector<2x4x4x32xf32> to vector<2x4x32xf32>
    %166 = vector.shape_cast %165 : vector<2x4x32xf32> to vector<2x4x1x32xf32>
    %167 = tpu.reciprocal %166 {approx = true} : vector<2x4x1x32xf32> -> vector<2x4x1x32xf32>
    %168 = vector.broadcast %167 : vector<2x4x1x32xf32> to vector<2x4x4x32xf32>
    %169 = arith.mulf %164, %168 : vector<2x4x4x32xf32>
    %170 = vector.extract_strided_slice %169 {offsets = [0, 0, 0, 0], sizes = [2, 4, 1, 32], strides = [1, 1, 1, 1]} : vector<2x4x4x32xf32> to vector<2x4x1x32xf32>
    %171 = vector.extract_strided_slice %153 {offsets = [0, 0, 0, 0], sizes = [2, 1, 8, 32], strides = [1, 1, 1, 1]} : vector<2x4x8x32xf32> to vector<2x1x8x32xf32>
    %172 = vector.broadcast %170 : vector<2x4x1x32xf32> to vector<2x4x8x32xf32>
    %173 = vector.broadcast %171 : vector<2x1x8x32xf32> to vector<2x4x8x32xf32>
    %174 = arith.mulf %172, %173 : vector<2x4x8x32xf32>
    %175 = vector.extract_strided_slice %169 {offsets = [0, 0, 1, 0], sizes = [2, 4, 1, 32], strides = [1, 1, 1, 1]} : vector<2x4x4x32xf32> to vector<2x4x1x32xf32>
    %176 = vector.extract_strided_slice %153 {offsets = [0, 1, 0, 0], sizes = [2, 1, 8, 32], strides = [1, 1, 1, 1]} : vector<2x4x8x32xf32> to vector<2x1x8x32xf32>
    %177 = vector.broadcast %175 : vector<2x4x1x32xf32> to vector<2x4x8x32xf32>
    %178 = vector.broadcast %176 : vector<2x1x8x32xf32> to vector<2x4x8x32xf32>
    %179 = arith.mulf %177, %178 : vector<2x4x8x32xf32>
    %180 = arith.addf %174, %179 : vector<2x4x8x32xf32>
    %181 = vector.extract_strided_slice %169 {offsets = [0, 0, 2, 0], sizes = [2, 4, 1, 32], strides = [1, 1, 1, 1]} : vector<2x4x4x32xf32> to vector<2x4x1x32xf32>
    %182 = vector.extract_strided_slice %153 {offsets = [0, 2, 0, 0], sizes = [2, 1, 8, 32], strides = [1, 1, 1, 1]} : vector<2x4x8x32xf32> to vector<2x1x8x32xf32>
    %183 = vector.broadcast %181 : vector<2x4x1x32xf32> to vector<2x4x8x32xf32>
    %184 = vector.broadcast %182 : vector<2x1x8x32xf32> to vector<2x4x8x32xf32>
    %185 = arith.mulf %183, %184 : vector<2x4x8x32xf32>
    %186 = arith.addf %180, %185 : vector<2x4x8x32xf32>
    %187 = vector.extract_strided_slice %169 {offsets = [0, 0, 3, 0], sizes = [2, 4, 1, 32], strides = [1, 1, 1, 1]} : vector<2x4x4x32xf32> to vector<2x4x1x32xf32>
    %188 = vector.extract_strided_slice %153 {offsets = [0, 3, 0, 0], sizes = [2, 1, 8, 32], strides = [1, 1, 1, 1]} : vector<2x4x8x32xf32> to vector<2x1x8x32xf32>
    %189 = vector.broadcast %187 : vector<2x4x1x32xf32> to vector<2x4x8x32xf32>
    %190 = vector.broadcast %188 : vector<2x1x8x32xf32> to vector<2x4x8x32xf32>
    %191 = arith.mulf %189, %190 : vector<2x4x8x32xf32>
    %192 = arith.addf %186, %191 : vector<2x4x8x32xf32>
    %193 = vector.shape_cast %192 : vector<2x4x8x32xf32> to vector<64x32xf32>
    %c3_87 = arith.constant 3 : index
    %c0_88 = arith.constant 0 : index
    %c0_89 = arith.constant 0 : index
    %194 = vector.load %arg8[%c3_87, %c0_88, %c0_89] : memref<6x32x32xf32, #tpu.memory_space<vmem>>, vector<1x32x32xf32>
    %195 = vector.shape_cast %194 : vector<1x32x32xf32> to vector<32x32xf32>
    %cst_90 = arith.constant dense<0.000000e+00> : vector<64x32xf32>
    %196 = tpu.matmul %193, %195, %cst_90 {dimension_numbers = #tpu.dot_dimension_numbers<[1], [0], [0], [1], [0, 0, 1, 1], [], []>} : vector<64x32xf32>, vector<32x32xf32>, vector<64x32xf32> -> vector<64x32xf32>
    %c3_91 = arith.constant 3 : index
    %c0_92 = arith.constant 0 : index
    %c0_93 = arith.constant 0 : index
    %197 = vector.load %arg9[%c3_91, %c0_92, %c0_93] : memref<6x1x32xf32, #tpu.memory_space<vmem>>, vector<1x1x32xf32>
    %198 = vector.shape_cast %197 : vector<1x1x32xf32> to vector<1x32xf32>
    %199 = vector.broadcast %198 : vector<1x32xf32> to vector<64x32xf32>
    %200 = arith.addf %196, %199 : vector<64x32xf32>
    %cst_94 = arith.constant 0.000000e+00 : f32
    %201 = vector.broadcast %cst_94 : f32 to vector<64x32xf32>
    %202 = arith.maximumf %200, %201 : vector<64x32xf32>
    %c4_95 = arith.constant 4 : index
    %c0_96 = arith.constant 0 : index
    %c0_97 = arith.constant 0 : index
    %203 = vector.load %arg8[%c4_95, %c0_96, %c0_97] : memref<6x32x32xf32, #tpu.memory_space<vmem>>, vector<1x32x32xf32>
    %204 = vector.shape_cast %203 : vector<1x32x32xf32> to vector<32x32xf32>
    %cst_98 = arith.constant dense<0.000000e+00> : vector<64x32xf32>
    %205 = tpu.matmul %202, %204, %cst_98 {dimension_numbers = #tpu.dot_dimension_numbers<[1], [0], [0], [1], [0, 0, 1, 1], [], []>} : vector<64x32xf32>, vector<32x32xf32>, vector<64x32xf32> -> vector<64x32xf32>
    %c4_99 = arith.constant 4 : index
    %c0_100 = arith.constant 0 : index
    %c0_101 = arith.constant 0 : index
    %206 = vector.load %arg9[%c4_99, %c0_100, %c0_101] : memref<6x1x32xf32, #tpu.memory_space<vmem>>, vector<1x1x32xf32>
    %207 = vector.shape_cast %206 : vector<1x1x32xf32> to vector<1x32xf32>
    %208 = vector.broadcast %207 : vector<1x32xf32> to vector<64x32xf32>
    %209 = arith.addf %205, %208 : vector<64x32xf32>
    %cst_102 = arith.constant 0.000000e+00 : f32
    %210 = vector.broadcast %cst_102 : f32 to vector<64x32xf32>
    %211 = arith.maximumf %209, %210 : vector<64x32xf32>
    %c5_103 = arith.constant 5 : index
    %c0_104 = arith.constant 0 : index
    %c0_105 = arith.constant 0 : index
    %212 = vector.load %arg8[%c5_103, %c0_104, %c0_105] : memref<6x32x32xf32, #tpu.memory_space<vmem>>, vector<1x32x32xf32>
    %213 = vector.shape_cast %212 : vector<1x32x32xf32> to vector<32x32xf32>
    %cst_106 = arith.constant dense<0.000000e+00> : vector<64x32xf32>
    %214 = tpu.matmul %211, %213, %cst_106 {dimension_numbers = #tpu.dot_dimension_numbers<[1], [0], [0], [1], [0, 0, 1, 1], [], []>} : vector<64x32xf32>, vector<32x32xf32>, vector<64x32xf32> -> vector<64x32xf32>
    %c5_107 = arith.constant 5 : index
    %c0_108 = arith.constant 0 : index
    %c0_109 = arith.constant 0 : index
    %215 = vector.load %arg9[%c5_107, %c0_108, %c0_109] : memref<6x1x32xf32, #tpu.memory_space<vmem>>, vector<1x1x32xf32>
    %216 = vector.shape_cast %215 : vector<1x1x32xf32> to vector<1x32xf32>
    %217 = vector.broadcast %216 : vector<1x32xf32> to vector<64x32xf32>
    %218 = arith.addf %214, %217 : vector<64x32xf32>
    %219 = arith.addf %218, %7 : vector<64x32xf32>
    %cst_110 = arith.constant dense<0.000000e+00> : vector<64xf32>
    %220 = vector.multi_reduction <add>, %219, %cst_110 [1] : vector<64x32xf32> to vector<64xf32>
    %221 = vector.shape_cast %220 : vector<64xf32> to vector<64x1xf32>
    %cst_111 = arith.constant 3.200000e+01 : f32
    %222 = vector.broadcast %cst_111 : f32 to vector<64x1xf32>
    %223 = arith.divf %221, %222 : vector<64x1xf32>
    %224 = vector.broadcast %223 : vector<64x1xf32> to vector<64x32xf32>
    %225 = arith.subf %219, %224 : vector<64x32xf32>
    %226 = arith.mulf %225, %225 : vector<64x32xf32>
    %cst_112 = arith.constant dense<0.000000e+00> : vector<64xf32>
    %227 = vector.multi_reduction <add>, %226, %cst_112 [1] : vector<64x32xf32> to vector<64xf32>
    %228 = vector.shape_cast %227 : vector<64xf32> to vector<64x1xf32>
    %cst_113 = arith.constant 3.200000e+01 : f32
    %229 = vector.broadcast %cst_113 : f32 to vector<64x1xf32>
    %230 = arith.divf %228, %229 : vector<64x1xf32>
    %c0_114 = arith.constant 0 : index
    %c0_115 = arith.constant 0 : index
    %c0_116 = arith.constant 0 : index
    %231 = vector.load %arg10[%c0_114, %c0_115, %c0_116] : memref<2x1x32xf32, #tpu.memory_space<vmem>>, vector<1x1x32xf32>
    %232 = vector.shape_cast %231 : vector<1x1x32xf32> to vector<1x32xf32>
    %cst_117 = arith.constant 9.99999974E-6 : f32
    %233 = vector.broadcast %cst_117 : f32 to vector<64x1xf32>
    %234 = arith.addf %230, %233 : vector<64x1xf32>
    %235 = math.rsqrt %234 : vector<64x1xf32>
    %236 = vector.broadcast %235 : vector<64x1xf32> to vector<64x32xf32>
    %237 = arith.mulf %225, %236 : vector<64x32xf32>
    %238 = vector.broadcast %232 : vector<1x32xf32> to vector<64x32xf32>
    %239 = arith.mulf %238, %237 : vector<64x32xf32>
    %c1_118 = arith.constant 1 : index
    %c0_119 = arith.constant 0 : index
    %c0_120 = arith.constant 0 : index
    %240 = vector.load %arg10[%c1_118, %c0_119, %c0_120] : memref<2x1x32xf32, #tpu.memory_space<vmem>>, vector<1x1x32xf32>
    %241 = vector.shape_cast %240 : vector<1x1x32xf32> to vector<1x32xf32>
    %242 = vector.broadcast %241 : vector<1x32xf32> to vector<64x32xf32>
    %243 = arith.addf %239, %242 : vector<64x32xf32>
    %c0_121 = arith.constant 0 : index
    %c0_122 = arith.constant 0 : index
    %c0_123 = arith.constant 0 : index
    %244 = vector.load %arg11[%c0_121, %c0_122, %c0_123] : memref<3x32x32xf32, #tpu.memory_space<vmem>>, vector<1x32x32xf32>
    %245 = vector.shape_cast %244 : vector<1x32x32xf32> to vector<32x32xf32>
    %cst_124 = arith.constant dense<0.000000e+00> : vector<64x32xf32>
    %246 = tpu.matmul %7, %245, %cst_124 {dimension_numbers = #tpu.dot_dimension_numbers<[1], [0], [0], [1], [0, 0, 1, 1], [], []>} : vector<64x32xf32>, vector<32x32xf32>, vector<64x32xf32> -> vector<64x32xf32>
    %c1_125 = arith.constant 1 : index
    %c0_126 = arith.constant 0 : index
    %c0_127 = arith.constant 0 : index
    %247 = vector.load %arg11[%c1_125, %c0_126, %c0_127] : memref<3x32x32xf32, #tpu.memory_space<vmem>>, vector<1x32x32xf32>
    %248 = vector.shape_cast %247 : vector<1x32x32xf32> to vector<32x32xf32>
    %cst_128 = arith.constant dense<0.000000e+00> : vector<64x32xf32>
    %249 = tpu.matmul %125, %248, %cst_128 {dimension_numbers = #tpu.dot_dimension_numbers<[1], [0], [0], [1], [0, 0, 1, 1], [], []>} : vector<64x32xf32>, vector<32x32xf32>, vector<64x32xf32> -> vector<64x32xf32>
    %250 = arith.addf %246, %249 : vector<64x32xf32>
    %c2_129 = arith.constant 2 : index
    %c0_130 = arith.constant 0 : index
    %c0_131 = arith.constant 0 : index
    %251 = vector.load %arg11[%c2_129, %c0_130, %c0_131] : memref<3x32x32xf32, #tpu.memory_space<vmem>>, vector<1x32x32xf32>
    %252 = vector.shape_cast %251 : vector<1x32x32xf32> to vector<32x32xf32>
    %cst_132 = arith.constant dense<0.000000e+00> : vector<64x32xf32>
    %253 = tpu.matmul %243, %252, %cst_132 {dimension_numbers = #tpu.dot_dimension_numbers<[1], [0], [0], [1], [0, 0, 1, 1], [], []>} : vector<64x32xf32>, vector<32x32xf32>, vector<64x32xf32> -> vector<64x32xf32>
    %254 = arith.addf %250, %253 : vector<64x32xf32>
    %c0_133 = arith.constant 0 : index
    %c0_134 = arith.constant 0 : index
    %255 = vector.load %arg12[%c0_133, %c0_134] : memref<1x32xf32, #tpu.memory_space<vmem>>, vector<1x32xf32>
    %256 = vector.broadcast %255 : vector<1x32xf32> to vector<64x32xf32>
    %257 = arith.addf %254, %256 : vector<64x32xf32>
    %cst_135 = arith.constant 0.000000e+00 : f32
    %258 = vector.broadcast %cst_135 : f32 to vector<64x32xf32>
    %259 = arith.maximumf %257, %258 : vector<64x32xf32>
    %c0_136 = arith.constant 0 : index
    %c0_137 = arith.constant 0 : index
    %260 = vector.load %arg13[%c0_136, %c0_137] : memref<64x32xf32, #tpu.memory_space<vmem>>, vector<64x32xf32>
    %261 = arith.addf %259, %260 : vector<64x32xf32>
    %c0_138 = arith.constant 0 : index
    %c0_139 = arith.constant 0 : index
    %c0_140 = arith.constant 0 : index
    %262 = vector.load %arg14[%c0_138, %c0_139, %c0_140] : memref<6x32x32xf32, #tpu.memory_space<vmem>>, vector<1x32x32xf32>
    %263 = vector.shape_cast %262 : vector<1x32x32xf32> to vector<32x32xf32>
    %cst_141 = arith.constant dense<0.000000e+00> : vector<64x32xf32>
    %264 = tpu.matmul %261, %263, %cst_141 {dimension_numbers = #tpu.dot_dimension_numbers<[1], [0], [0], [1], [0, 0, 1, 1], [], []>} : vector<64x32xf32>, vector<32x32xf32>, vector<64x32xf32> -> vector<64x32xf32>
    %c0_142 = arith.constant 0 : index
    %c0_143 = arith.constant 0 : index
    %c0_144 = arith.constant 0 : index
    %265 = vector.load %arg15[%c0_142, %c0_143, %c0_144] : memref<6x1x32xf32, #tpu.memory_space<vmem>>, vector<1x1x32xf32>
    %266 = vector.shape_cast %265 : vector<1x1x32xf32> to vector<1x32xf32>
    %267 = vector.broadcast %266 : vector<1x32xf32> to vector<64x32xf32>
    %268 = arith.addf %264, %267 : vector<64x32xf32>
    %cst_145 = arith.constant 0.176776692 : f32
    %269 = vector.broadcast %cst_145 : f32 to vector<64x32xf32>
    %270 = arith.mulf %268, %269 : vector<64x32xf32>
    %c1_146 = arith.constant 1 : index
    %c0_147 = arith.constant 0 : index
    %c0_148 = arith.constant 0 : index
    %271 = vector.load %arg14[%c1_146, %c0_147, %c0_148] : memref<6x32x32xf32, #tpu.memory_space<vmem>>, vector<1x32x32xf32>
    %272 = vector.shape_cast %271 : vector<1x32x32xf32> to vector<32x32xf32>
    %cst_149 = arith.constant dense<0.000000e+00> : vector<64x32xf32>
    %273 = tpu.matmul %261, %272, %cst_149 {dimension_numbers = #tpu.dot_dimension_numbers<[1], [0], [0], [1], [0, 0, 1, 1], [], []>} : vector<64x32xf32>, vector<32x32xf32>, vector<64x32xf32> -> vector<64x32xf32>
    %c1_150 = arith.constant 1 : index
    %c0_151 = arith.constant 0 : index
    %c0_152 = arith.constant 0 : index
    %274 = vector.load %arg15[%c1_150, %c0_151, %c0_152] : memref<6x1x32xf32, #tpu.memory_space<vmem>>, vector<1x1x32xf32>
    %275 = vector.shape_cast %274 : vector<1x1x32xf32> to vector<1x32xf32>
    %276 = vector.broadcast %275 : vector<1x32xf32> to vector<64x32xf32>
    %277 = arith.addf %273, %276 : vector<64x32xf32>
    %c2_153 = arith.constant 2 : index
    %c0_154 = arith.constant 0 : index
    %c0_155 = arith.constant 0 : index
    %278 = vector.load %arg14[%c2_153, %c0_154, %c0_155] : memref<6x32x32xf32, #tpu.memory_space<vmem>>, vector<1x32x32xf32>
    %279 = vector.shape_cast %278 : vector<1x32x32xf32> to vector<32x32xf32>
    %cst_156 = arith.constant dense<0.000000e+00> : vector<64x32xf32>
    %280 = tpu.matmul %261, %279, %cst_156 {dimension_numbers = #tpu.dot_dimension_numbers<[1], [0], [0], [1], [0, 0, 1, 1], [], []>} : vector<64x32xf32>, vector<32x32xf32>, vector<64x32xf32> -> vector<64x32xf32>
    %c2_157 = arith.constant 2 : index
    %c0_158 = arith.constant 0 : index
    %c0_159 = arith.constant 0 : index
    %281 = vector.load %arg15[%c2_157, %c0_158, %c0_159] : memref<6x1x32xf32, #tpu.memory_space<vmem>>, vector<1x1x32xf32>
    %282 = vector.shape_cast %281 : vector<1x1x32xf32> to vector<1x32xf32>
    %283 = vector.broadcast %282 : vector<1x32xf32> to vector<64x32xf32>
    %284 = arith.addf %280, %283 : vector<64x32xf32>
    %285 = vector.shape_cast %270 : vector<64x32xf32> to vector<2x4x8x32xf32>
    %286 = vector.shape_cast %277 : vector<64x32xf32> to vector<2x4x8x32xf32>
    %287 = vector.shape_cast %284 : vector<64x32xf32> to vector<2x4x8x32xf32>
    %288 = vector.shape_cast %285 : vector<2x4x8x32xf32> to vector<2x4x1x8x32xf32>
    %289 = vector.shape_cast %286 : vector<2x4x8x32xf32> to vector<2x1x4x8x32xf32>
    %290 = vector.broadcast %288 : vector<2x4x1x8x32xf32> to vector<2x4x4x8x32xf32>
    %291 = vector.broadcast %289 : vector<2x1x4x8x32xf32> to vector<2x4x4x8x32xf32>
    %292 = arith.mulf %290, %291 : vector<2x4x4x8x32xf32>
    %cst_160 = arith.constant dense<0.000000e+00> : vector<2x4x4x32xf32>
    %293 = vector.multi_reduction <add>, %292, %cst_160 [3] : vector<2x4x4x8x32xf32> to vector<2x4x4x32xf32>
    %cst_161 = arith.constant dense<0xFF800000> : vector<2x4x32xf32>
    %294 = vector.multi_reduction <maximumf>, %293, %cst_161 [2] : vector<2x4x4x32xf32> to vector<2x4x32xf32>
    %295 = vector.shape_cast %294 : vector<2x4x32xf32> to vector<2x4x1x32xf32>
    %296 = vector.broadcast %295 : vector<2x4x1x32xf32> to vector<2x4x4x32xf32>
    %297 = arith.subf %293, %296 : vector<2x4x4x32xf32>
    %298 = math.exp %297 : vector<2x4x4x32xf32>
    %cst_162 = arith.constant dense<0.000000e+00> : vector<2x4x32xf32>
    %299 = vector.multi_reduction <add>, %298, %cst_162 [2] : vector<2x4x4x32xf32> to vector<2x4x32xf32>
    %300 = vector.shape_cast %299 : vector<2x4x32xf32> to vector<2x4x1x32xf32>
    %301 = tpu.reciprocal %300 {approx = true} : vector<2x4x1x32xf32> -> vector<2x4x1x32xf32>
    %302 = vector.broadcast %301 : vector<2x4x1x32xf32> to vector<2x4x4x32xf32>
    %303 = arith.mulf %298, %302 : vector<2x4x4x32xf32>
    %304 = vector.extract_strided_slice %303 {offsets = [0, 0, 0, 0], sizes = [2, 4, 1, 32], strides = [1, 1, 1, 1]} : vector<2x4x4x32xf32> to vector<2x4x1x32xf32>
    %305 = vector.extract_strided_slice %287 {offsets = [0, 0, 0, 0], sizes = [2, 1, 8, 32], strides = [1, 1, 1, 1]} : vector<2x4x8x32xf32> to vector<2x1x8x32xf32>
    %306 = vector.broadcast %304 : vector<2x4x1x32xf32> to vector<2x4x8x32xf32>
    %307 = vector.broadcast %305 : vector<2x1x8x32xf32> to vector<2x4x8x32xf32>
    %308 = arith.mulf %306, %307 : vector<2x4x8x32xf32>
    %309 = vector.extract_strided_slice %303 {offsets = [0, 0, 1, 0], sizes = [2, 4, 1, 32], strides = [1, 1, 1, 1]} : vector<2x4x4x32xf32> to vector<2x4x1x32xf32>
    %310 = vector.extract_strided_slice %287 {offsets = [0, 1, 0, 0], sizes = [2, 1, 8, 32], strides = [1, 1, 1, 1]} : vector<2x4x8x32xf32> to vector<2x1x8x32xf32>
    %311 = vector.broadcast %309 : vector<2x4x1x32xf32> to vector<2x4x8x32xf32>
    %312 = vector.broadcast %310 : vector<2x1x8x32xf32> to vector<2x4x8x32xf32>
    %313 = arith.mulf %311, %312 : vector<2x4x8x32xf32>
    %314 = arith.addf %308, %313 : vector<2x4x8x32xf32>
    %315 = vector.extract_strided_slice %303 {offsets = [0, 0, 2, 0], sizes = [2, 4, 1, 32], strides = [1, 1, 1, 1]} : vector<2x4x4x32xf32> to vector<2x4x1x32xf32>
    %316 = vector.extract_strided_slice %287 {offsets = [0, 2, 0, 0], sizes = [2, 1, 8, 32], strides = [1, 1, 1, 1]} : vector<2x4x8x32xf32> to vector<2x1x8x32xf32>
    %317 = vector.broadcast %315 : vector<2x4x1x32xf32> to vector<2x4x8x32xf32>
    %318 = vector.broadcast %316 : vector<2x1x8x32xf32> to vector<2x4x8x32xf32>
    %319 = arith.mulf %317, %318 : vector<2x4x8x32xf32>
    %320 = arith.addf %314, %319 : vector<2x4x8x32xf32>
    %321 = vector.extract_strided_slice %303 {offsets = [0, 0, 3, 0], sizes = [2, 4, 1, 32], strides = [1, 1, 1, 1]} : vector<2x4x4x32xf32> to vector<2x4x1x32xf32>
    %322 = vector.extract_strided_slice %287 {offsets = [0, 3, 0, 0], sizes = [2, 1, 8, 32], strides = [1, 1, 1, 1]} : vector<2x4x8x32xf32> to vector<2x1x8x32xf32>
    %323 = vector.broadcast %321 : vector<2x4x1x32xf32> to vector<2x4x8x32xf32>
    %324 = vector.broadcast %322 : vector<2x1x8x32xf32> to vector<2x4x8x32xf32>
    %325 = arith.mulf %323, %324 : vector<2x4x8x32xf32>
    %326 = arith.addf %320, %325 : vector<2x4x8x32xf32>
    %327 = vector.shape_cast %326 : vector<2x4x8x32xf32> to vector<64x32xf32>
    %c3_163 = arith.constant 3 : index
    %c0_164 = arith.constant 0 : index
    %c0_165 = arith.constant 0 : index
    %328 = vector.load %arg14[%c3_163, %c0_164, %c0_165] : memref<6x32x32xf32, #tpu.memory_space<vmem>>, vector<1x32x32xf32>
    %329 = vector.shape_cast %328 : vector<1x32x32xf32> to vector<32x32xf32>
    %cst_166 = arith.constant dense<0.000000e+00> : vector<64x32xf32>
    %330 = tpu.matmul %327, %329, %cst_166 {dimension_numbers = #tpu.dot_dimension_numbers<[1], [0], [0], [1], [0, 0, 1, 1], [], []>} : vector<64x32xf32>, vector<32x32xf32>, vector<64x32xf32> -> vector<64x32xf32>
    %c3_167 = arith.constant 3 : index
    %c0_168 = arith.constant 0 : index
    %c0_169 = arith.constant 0 : index
    %331 = vector.load %arg15[%c3_167, %c0_168, %c0_169] : memref<6x1x32xf32, #tpu.memory_space<vmem>>, vector<1x1x32xf32>
    %332 = vector.shape_cast %331 : vector<1x1x32xf32> to vector<1x32xf32>
    %333 = vector.broadcast %332 : vector<1x32xf32> to vector<64x32xf32>
    %334 = arith.addf %330, %333 : vector<64x32xf32>
    %cst_170 = arith.constant 0.000000e+00 : f32
    %335 = vector.broadcast %cst_170 : f32 to vector<64x32xf32>
    %336 = arith.maximumf %334, %335 : vector<64x32xf32>
    %c4_171 = arith.constant 4 : index
    %c0_172 = arith.constant 0 : index
    %c0_173 = arith.constant 0 : index
    %337 = vector.load %arg14[%c4_171, %c0_172, %c0_173] : memref<6x32x32xf32, #tpu.memory_space<vmem>>, vector<1x32x32xf32>
    %338 = vector.shape_cast %337 : vector<1x32x32xf32> to vector<32x32xf32>
    %cst_174 = arith.constant dense<0.000000e+00> : vector<64x32xf32>
    %339 = tpu.matmul %336, %338, %cst_174 {dimension_numbers = #tpu.dot_dimension_numbers<[1], [0], [0], [1], [0, 0, 1, 1], [], []>} : vector<64x32xf32>, vector<32x32xf32>, vector<64x32xf32> -> vector<64x32xf32>
    %c4_175 = arith.constant 4 : index
    %c0_176 = arith.constant 0 : index
    %c0_177 = arith.constant 0 : index
    %340 = vector.load %arg15[%c4_175, %c0_176, %c0_177] : memref<6x1x32xf32, #tpu.memory_space<vmem>>, vector<1x1x32xf32>
    %341 = vector.shape_cast %340 : vector<1x1x32xf32> to vector<1x32xf32>
    %342 = vector.broadcast %341 : vector<1x32xf32> to vector<64x32xf32>
    %343 = arith.addf %339, %342 : vector<64x32xf32>
    %cst_178 = arith.constant 0.000000e+00 : f32
    %344 = vector.broadcast %cst_178 : f32 to vector<64x32xf32>
    %345 = arith.maximumf %343, %344 : vector<64x32xf32>
    %c5_179 = arith.constant 5 : index
    %c0_180 = arith.constant 0 : index
    %c0_181 = arith.constant 0 : index
    %346 = vector.load %arg14[%c5_179, %c0_180, %c0_181] : memref<6x32x32xf32, #tpu.memory_space<vmem>>, vector<1x32x32xf32>
    %347 = vector.shape_cast %346 : vector<1x32x32xf32> to vector<32x32xf32>
    %cst_182 = arith.constant dense<0.000000e+00> : vector<64x32xf32>
    %348 = tpu.matmul %345, %347, %cst_182 {dimension_numbers = #tpu.dot_dimension_numbers<[1], [0], [0], [1], [0, 0, 1, 1], [], []>} : vector<64x32xf32>, vector<32x32xf32>, vector<64x32xf32> -> vector<64x32xf32>
    %c5_183 = arith.constant 5 : index
    %c0_184 = arith.constant 0 : index
    %c0_185 = arith.constant 0 : index
    %349 = vector.load %arg15[%c5_183, %c0_184, %c0_185] : memref<6x1x32xf32, #tpu.memory_space<vmem>>, vector<1x1x32xf32>
    %350 = vector.shape_cast %349 : vector<1x1x32xf32> to vector<1x32xf32>
    %351 = vector.broadcast %350 : vector<1x32xf32> to vector<64x32xf32>
    %352 = arith.addf %348, %351 : vector<64x32xf32>
    %353 = arith.addf %352, %259 : vector<64x32xf32>
    %cst_186 = arith.constant dense<0.000000e+00> : vector<64xf32>
    %354 = vector.multi_reduction <add>, %353, %cst_186 [1] : vector<64x32xf32> to vector<64xf32>
    %355 = vector.shape_cast %354 : vector<64xf32> to vector<64x1xf32>
    %cst_187 = arith.constant 3.200000e+01 : f32
    %356 = vector.broadcast %cst_187 : f32 to vector<64x1xf32>
    %357 = arith.divf %355, %356 : vector<64x1xf32>
    %358 = vector.broadcast %357 : vector<64x1xf32> to vector<64x32xf32>
    %359 = arith.subf %353, %358 : vector<64x32xf32>
    %360 = arith.mulf %359, %359 : vector<64x32xf32>
    %cst_188 = arith.constant dense<0.000000e+00> : vector<64xf32>
    %361 = vector.multi_reduction <add>, %360, %cst_188 [1] : vector<64x32xf32> to vector<64xf32>
    %362 = vector.shape_cast %361 : vector<64xf32> to vector<64x1xf32>
    %cst_189 = arith.constant 3.200000e+01 : f32
    %363 = vector.broadcast %cst_189 : f32 to vector<64x1xf32>
    %364 = arith.divf %362, %363 : vector<64x1xf32>
    %c0_190 = arith.constant 0 : index
    %c0_191 = arith.constant 0 : index
    %c0_192 = arith.constant 0 : index
    %365 = vector.load %arg16[%c0_190, %c0_191, %c0_192] : memref<2x1x32xf32, #tpu.memory_space<vmem>>, vector<1x1x32xf32>
    %366 = vector.shape_cast %365 : vector<1x1x32xf32> to vector<1x32xf32>
    %cst_193 = arith.constant 9.99999974E-6 : f32
    %367 = vector.broadcast %cst_193 : f32 to vector<64x1xf32>
    %368 = arith.addf %364, %367 : vector<64x1xf32>
    %369 = math.rsqrt %368 : vector<64x1xf32>
    %370 = vector.broadcast %369 : vector<64x1xf32> to vector<64x32xf32>
    %371 = arith.mulf %359, %370 : vector<64x32xf32>
    %372 = vector.broadcast %366 : vector<1x32xf32> to vector<64x32xf32>
    %373 = arith.mulf %372, %371 : vector<64x32xf32>
    %c1_194 = arith.constant 1 : index
    %c0_195 = arith.constant 0 : index
    %c0_196 = arith.constant 0 : index
    %374 = vector.load %arg16[%c1_194, %c0_195, %c0_196] : memref<2x1x32xf32, #tpu.memory_space<vmem>>, vector<1x1x32xf32>
    %375 = vector.shape_cast %374 : vector<1x1x32xf32> to vector<1x32xf32>
    %376 = vector.broadcast %375 : vector<1x32xf32> to vector<64x32xf32>
    %377 = arith.addf %373, %376 : vector<64x32xf32>
    %c0_197 = arith.constant 0 : index
    %c0_198 = arith.constant 0 : index
    %378 = vector.load %arg17[%c0_197, %c0_198] : memref<64x32xf32, #tpu.memory_space<vmem>>, vector<64x32xf32>
    %379 = arith.addf %259, %378 : vector<64x32xf32>
    %c0_199 = arith.constant 0 : index
    %c0_200 = arith.constant 0 : index
    %c0_201 = arith.constant 0 : index
    %380 = vector.load %arg18[%c0_199, %c0_200, %c0_201] : memref<6x32x32xf32, #tpu.memory_space<vmem>>, vector<1x32x32xf32>
    %381 = vector.shape_cast %380 : vector<1x32x32xf32> to vector<32x32xf32>
    %cst_202 = arith.constant dense<0.000000e+00> : vector<64x32xf32>
    %382 = tpu.matmul %379, %381, %cst_202 {dimension_numbers = #tpu.dot_dimension_numbers<[1], [0], [0], [1], [0, 0, 1, 1], [], []>} : vector<64x32xf32>, vector<32x32xf32>, vector<64x32xf32> -> vector<64x32xf32>
    %c0_203 = arith.constant 0 : index
    %c0_204 = arith.constant 0 : index
    %c0_205 = arith.constant 0 : index
    %383 = vector.load %arg19[%c0_203, %c0_204, %c0_205] : memref<6x1x32xf32, #tpu.memory_space<vmem>>, vector<1x1x32xf32>
    %384 = vector.shape_cast %383 : vector<1x1x32xf32> to vector<1x32xf32>
    %385 = vector.broadcast %384 : vector<1x32xf32> to vector<64x32xf32>
    %386 = arith.addf %382, %385 : vector<64x32xf32>
    %cst_206 = arith.constant 0.176776692 : f32
    %387 = vector.broadcast %cst_206 : f32 to vector<64x32xf32>
    %388 = arith.mulf %386, %387 : vector<64x32xf32>
    %c1_207 = arith.constant 1 : index
    %c0_208 = arith.constant 0 : index
    %c0_209 = arith.constant 0 : index
    %389 = vector.load %arg18[%c1_207, %c0_208, %c0_209] : memref<6x32x32xf32, #tpu.memory_space<vmem>>, vector<1x32x32xf32>
    %390 = vector.shape_cast %389 : vector<1x32x32xf32> to vector<32x32xf32>
    %cst_210 = arith.constant dense<0.000000e+00> : vector<64x32xf32>
    %391 = tpu.matmul %379, %390, %cst_210 {dimension_numbers = #tpu.dot_dimension_numbers<[1], [0], [0], [1], [0, 0, 1, 1], [], []>} : vector<64x32xf32>, vector<32x32xf32>, vector<64x32xf32> -> vector<64x32xf32>
    %c1_211 = arith.constant 1 : index
    %c0_212 = arith.constant 0 : index
    %c0_213 = arith.constant 0 : index
    %392 = vector.load %arg19[%c1_211, %c0_212, %c0_213] : memref<6x1x32xf32, #tpu.memory_space<vmem>>, vector<1x1x32xf32>
    %393 = vector.shape_cast %392 : vector<1x1x32xf32> to vector<1x32xf32>
    %394 = vector.broadcast %393 : vector<1x32xf32> to vector<64x32xf32>
    %395 = arith.addf %391, %394 : vector<64x32xf32>
    %c2_214 = arith.constant 2 : index
    %c0_215 = arith.constant 0 : index
    %c0_216 = arith.constant 0 : index
    %396 = vector.load %arg18[%c2_214, %c0_215, %c0_216] : memref<6x32x32xf32, #tpu.memory_space<vmem>>, vector<1x32x32xf32>
    %397 = vector.shape_cast %396 : vector<1x32x32xf32> to vector<32x32xf32>
    %cst_217 = arith.constant dense<0.000000e+00> : vector<64x32xf32>
    %398 = tpu.matmul %379, %397, %cst_217 {dimension_numbers = #tpu.dot_dimension_numbers<[1], [0], [0], [1], [0, 0, 1, 1], [], []>} : vector<64x32xf32>, vector<32x32xf32>, vector<64x32xf32> -> vector<64x32xf32>
    %c2_218 = arith.constant 2 : index
    %c0_219 = arith.constant 0 : index
    %c0_220 = arith.constant 0 : index
    %399 = vector.load %arg19[%c2_218, %c0_219, %c0_220] : memref<6x1x32xf32, #tpu.memory_space<vmem>>, vector<1x1x32xf32>
    %400 = vector.shape_cast %399 : vector<1x1x32xf32> to vector<1x32xf32>
    %401 = vector.broadcast %400 : vector<1x32xf32> to vector<64x32xf32>
    %402 = arith.addf %398, %401 : vector<64x32xf32>
    %403 = vector.shape_cast %388 : vector<64x32xf32> to vector<2x4x8x32xf32>
    %404 = vector.shape_cast %395 : vector<64x32xf32> to vector<2x4x8x32xf32>
    %405 = vector.shape_cast %402 : vector<64x32xf32> to vector<2x4x8x32xf32>
    %406 = vector.shape_cast %403 : vector<2x4x8x32xf32> to vector<2x4x1x8x32xf32>
    %407 = vector.shape_cast %404 : vector<2x4x8x32xf32> to vector<2x1x4x8x32xf32>
    %408 = vector.broadcast %406 : vector<2x4x1x8x32xf32> to vector<2x4x4x8x32xf32>
    %409 = vector.broadcast %407 : vector<2x1x4x8x32xf32> to vector<2x4x4x8x32xf32>
    %410 = arith.mulf %408, %409 : vector<2x4x4x8x32xf32>
    %cst_221 = arith.constant dense<0.000000e+00> : vector<2x4x4x32xf32>
    %411 = vector.multi_reduction <add>, %410, %cst_221 [3] : vector<2x4x4x8x32xf32> to vector<2x4x4x32xf32>
    %cst_222 = arith.constant dense<0xFF800000> : vector<2x4x32xf32>
    %412 = vector.multi_reduction <maximumf>, %411, %cst_222 [2] : vector<2x4x4x32xf32> to vector<2x4x32xf32>
    %413 = vector.shape_cast %412 : vector<2x4x32xf32> to vector<2x4x1x32xf32>
    %414 = vector.broadcast %413 : vector<2x4x1x32xf32> to vector<2x4x4x32xf32>
    %415 = arith.subf %411, %414 : vector<2x4x4x32xf32>
    %416 = math.exp %415 : vector<2x4x4x32xf32>
    %cst_223 = arith.constant dense<0.000000e+00> : vector<2x4x32xf32>
    %417 = vector.multi_reduction <add>, %416, %cst_223 [2] : vector<2x4x4x32xf32> to vector<2x4x32xf32>
    %418 = vector.shape_cast %417 : vector<2x4x32xf32> to vector<2x4x1x32xf32>
    %419 = tpu.reciprocal %418 {approx = true} : vector<2x4x1x32xf32> -> vector<2x4x1x32xf32>
    %420 = vector.broadcast %419 : vector<2x4x1x32xf32> to vector<2x4x4x32xf32>
    %421 = arith.mulf %416, %420 : vector<2x4x4x32xf32>
    %422 = vector.extract_strided_slice %421 {offsets = [0, 0, 0, 0], sizes = [2, 4, 1, 32], strides = [1, 1, 1, 1]} : vector<2x4x4x32xf32> to vector<2x4x1x32xf32>
    %423 = vector.extract_strided_slice %405 {offsets = [0, 0, 0, 0], sizes = [2, 1, 8, 32], strides = [1, 1, 1, 1]} : vector<2x4x8x32xf32> to vector<2x1x8x32xf32>
    %424 = vector.broadcast %422 : vector<2x4x1x32xf32> to vector<2x4x8x32xf32>
    %425 = vector.broadcast %423 : vector<2x1x8x32xf32> to vector<2x4x8x32xf32>
    %426 = arith.mulf %424, %425 : vector<2x4x8x32xf32>
    %427 = vector.extract_strided_slice %421 {offsets = [0, 0, 1, 0], sizes = [2, 4, 1, 32], strides = [1, 1, 1, 1]} : vector<2x4x4x32xf32> to vector<2x4x1x32xf32>
    %428 = vector.extract_strided_slice %405 {offsets = [0, 1, 0, 0], sizes = [2, 1, 8, 32], strides = [1, 1, 1, 1]} : vector<2x4x8x32xf32> to vector<2x1x8x32xf32>
    %429 = vector.broadcast %427 : vector<2x4x1x32xf32> to vector<2x4x8x32xf32>
    %430 = vector.broadcast %428 : vector<2x1x8x32xf32> to vector<2x4x8x32xf32>
    %431 = arith.mulf %429, %430 : vector<2x4x8x32xf32>
    %432 = arith.addf %426, %431 : vector<2x4x8x32xf32>
    %433 = vector.extract_strided_slice %421 {offsets = [0, 0, 2, 0], sizes = [2, 4, 1, 32], strides = [1, 1, 1, 1]} : vector<2x4x4x32xf32> to vector<2x4x1x32xf32>
    %434 = vector.extract_strided_slice %405 {offsets = [0, 2, 0, 0], sizes = [2, 1, 8, 32], strides = [1, 1, 1, 1]} : vector<2x4x8x32xf32> to vector<2x1x8x32xf32>
    %435 = vector.broadcast %433 : vector<2x4x1x32xf32> to vector<2x4x8x32xf32>
    %436 = vector.broadcast %434 : vector<2x1x8x32xf32> to vector<2x4x8x32xf32>
    %437 = arith.mulf %435, %436 : vector<2x4x8x32xf32>
    %438 = arith.addf %432, %437 : vector<2x4x8x32xf32>
    %439 = vector.extract_strided_slice %421 {offsets = [0, 0, 3, 0], sizes = [2, 4, 1, 32], strides = [1, 1, 1, 1]} : vector<2x4x4x32xf32> to vector<2x4x1x32xf32>
    %440 = vector.extract_strided_slice %405 {offsets = [0, 3, 0, 0], sizes = [2, 1, 8, 32], strides = [1, 1, 1, 1]} : vector<2x4x8x32xf32> to vector<2x1x8x32xf32>
    %441 = vector.broadcast %439 : vector<2x4x1x32xf32> to vector<2x4x8x32xf32>
    %442 = vector.broadcast %440 : vector<2x1x8x32xf32> to vector<2x4x8x32xf32>
    %443 = arith.mulf %441, %442 : vector<2x4x8x32xf32>
    %444 = arith.addf %438, %443 : vector<2x4x8x32xf32>
    %445 = vector.shape_cast %444 : vector<2x4x8x32xf32> to vector<64x32xf32>
    %c3_224 = arith.constant 3 : index
    %c0_225 = arith.constant 0 : index
    %c0_226 = arith.constant 0 : index
    %446 = vector.load %arg18[%c3_224, %c0_225, %c0_226] : memref<6x32x32xf32, #tpu.memory_space<vmem>>, vector<1x32x32xf32>
    %447 = vector.shape_cast %446 : vector<1x32x32xf32> to vector<32x32xf32>
    %cst_227 = arith.constant dense<0.000000e+00> : vector<64x32xf32>
    %448 = tpu.matmul %445, %447, %cst_227 {dimension_numbers = #tpu.dot_dimension_numbers<[1], [0], [0], [1], [0, 0, 1, 1], [], []>} : vector<64x32xf32>, vector<32x32xf32>, vector<64x32xf32> -> vector<64x32xf32>
    %c3_228 = arith.constant 3 : index
    %c0_229 = arith.constant 0 : index
    %c0_230 = arith.constant 0 : index
    %449 = vector.load %arg19[%c3_228, %c0_229, %c0_230] : memref<6x1x32xf32, #tpu.memory_space<vmem>>, vector<1x1x32xf32>
    %450 = vector.shape_cast %449 : vector<1x1x32xf32> to vector<1x32xf32>
    %451 = vector.broadcast %450 : vector<1x32xf32> to vector<64x32xf32>
    %452 = arith.addf %448, %451 : vector<64x32xf32>
    %cst_231 = arith.constant 0.000000e+00 : f32
    %453 = vector.broadcast %cst_231 : f32 to vector<64x32xf32>
    %454 = arith.maximumf %452, %453 : vector<64x32xf32>
    %c4_232 = arith.constant 4 : index
    %c0_233 = arith.constant 0 : index
    %c0_234 = arith.constant 0 : index
    %455 = vector.load %arg18[%c4_232, %c0_233, %c0_234] : memref<6x32x32xf32, #tpu.memory_space<vmem>>, vector<1x32x32xf32>
    %456 = vector.shape_cast %455 : vector<1x32x32xf32> to vector<32x32xf32>
    %cst_235 = arith.constant dense<0.000000e+00> : vector<64x32xf32>
    %457 = tpu.matmul %454, %456, %cst_235 {dimension_numbers = #tpu.dot_dimension_numbers<[1], [0], [0], [1], [0, 0, 1, 1], [], []>} : vector<64x32xf32>, vector<32x32xf32>, vector<64x32xf32> -> vector<64x32xf32>
    %c4_236 = arith.constant 4 : index
    %c0_237 = arith.constant 0 : index
    %c0_238 = arith.constant 0 : index
    %458 = vector.load %arg19[%c4_236, %c0_237, %c0_238] : memref<6x1x32xf32, #tpu.memory_space<vmem>>, vector<1x1x32xf32>
    %459 = vector.shape_cast %458 : vector<1x1x32xf32> to vector<1x32xf32>
    %460 = vector.broadcast %459 : vector<1x32xf32> to vector<64x32xf32>
    %461 = arith.addf %457, %460 : vector<64x32xf32>
    %cst_239 = arith.constant 0.000000e+00 : f32
    %462 = vector.broadcast %cst_239 : f32 to vector<64x32xf32>
    %463 = arith.maximumf %461, %462 : vector<64x32xf32>
    %c5_240 = arith.constant 5 : index
    %c0_241 = arith.constant 0 : index
    %c0_242 = arith.constant 0 : index
    %464 = vector.load %arg18[%c5_240, %c0_241, %c0_242] : memref<6x32x32xf32, #tpu.memory_space<vmem>>, vector<1x32x32xf32>
    %465 = vector.shape_cast %464 : vector<1x32x32xf32> to vector<32x32xf32>
    %cst_243 = arith.constant dense<0.000000e+00> : vector<64x32xf32>
    %466 = tpu.matmul %463, %465, %cst_243 {dimension_numbers = #tpu.dot_dimension_numbers<[1], [0], [0], [1], [0, 0, 1, 1], [], []>} : vector<64x32xf32>, vector<32x32xf32>, vector<64x32xf32> -> vector<64x32xf32>
    %c5_244 = arith.constant 5 : index
    %c0_245 = arith.constant 0 : index
    %c0_246 = arith.constant 0 : index
    %467 = vector.load %arg19[%c5_244, %c0_245, %c0_246] : memref<6x1x32xf32, #tpu.memory_space<vmem>>, vector<1x1x32xf32>
    %468 = vector.shape_cast %467 : vector<1x1x32xf32> to vector<1x32xf32>
    %469 = vector.broadcast %468 : vector<1x32xf32> to vector<64x32xf32>
    %470 = arith.addf %466, %469 : vector<64x32xf32>
    %471 = arith.addf %470, %259 : vector<64x32xf32>
    %cst_247 = arith.constant dense<0.000000e+00> : vector<64xf32>
    %472 = vector.multi_reduction <add>, %471, %cst_247 [1] : vector<64x32xf32> to vector<64xf32>
    %473 = vector.shape_cast %472 : vector<64xf32> to vector<64x1xf32>
    %cst_248 = arith.constant 3.200000e+01 : f32
    %474 = vector.broadcast %cst_248 : f32 to vector<64x1xf32>
    %475 = arith.divf %473, %474 : vector<64x1xf32>
    %476 = vector.broadcast %475 : vector<64x1xf32> to vector<64x32xf32>
    %477 = arith.subf %471, %476 : vector<64x32xf32>
    %478 = arith.mulf %477, %477 : vector<64x32xf32>
    %cst_249 = arith.constant dense<0.000000e+00> : vector<64xf32>
    %479 = vector.multi_reduction <add>, %478, %cst_249 [1] : vector<64x32xf32> to vector<64xf32>
    %480 = vector.shape_cast %479 : vector<64xf32> to vector<64x1xf32>
    %cst_250 = arith.constant 3.200000e+01 : f32
    %481 = vector.broadcast %cst_250 : f32 to vector<64x1xf32>
    %482 = arith.divf %480, %481 : vector<64x1xf32>
    %c0_251 = arith.constant 0 : index
    %c0_252 = arith.constant 0 : index
    %c0_253 = arith.constant 0 : index
    %483 = vector.load %arg20[%c0_251, %c0_252, %c0_253] : memref<2x1x32xf32, #tpu.memory_space<vmem>>, vector<1x1x32xf32>
    %484 = vector.shape_cast %483 : vector<1x1x32xf32> to vector<1x32xf32>
    %cst_254 = arith.constant 9.99999974E-6 : f32
    %485 = vector.broadcast %cst_254 : f32 to vector<64x1xf32>
    %486 = arith.addf %482, %485 : vector<64x1xf32>
    %487 = math.rsqrt %486 : vector<64x1xf32>
    %488 = vector.broadcast %487 : vector<64x1xf32> to vector<64x32xf32>
    %489 = arith.mulf %477, %488 : vector<64x32xf32>
    %490 = vector.broadcast %484 : vector<1x32xf32> to vector<64x32xf32>
    %491 = arith.mulf %490, %489 : vector<64x32xf32>
    %c1_255 = arith.constant 1 : index
    %c0_256 = arith.constant 0 : index
    %c0_257 = arith.constant 0 : index
    %492 = vector.load %arg20[%c1_255, %c0_256, %c0_257] : memref<2x1x32xf32, #tpu.memory_space<vmem>>, vector<1x1x32xf32>
    %493 = vector.shape_cast %492 : vector<1x1x32xf32> to vector<1x32xf32>
    %494 = vector.broadcast %493 : vector<1x32xf32> to vector<64x32xf32>
    %495 = arith.addf %491, %494 : vector<64x32xf32>
    %c0_258 = arith.constant 0 : index
    %c0_259 = arith.constant 0 : index
    %c0_260 = arith.constant 0 : index
    %496 = vector.load %arg21[%c0_258, %c0_259, %c0_260] : memref<3x32x32xf32, #tpu.memory_space<vmem>>, vector<1x32x32xf32>
    %497 = vector.shape_cast %496 : vector<1x32x32xf32> to vector<32x32xf32>
    %cst_261 = arith.constant dense<0.000000e+00> : vector<64x32xf32>
    %498 = tpu.matmul %259, %497, %cst_261 {dimension_numbers = #tpu.dot_dimension_numbers<[1], [0], [0], [1], [0, 0, 1, 1], [], []>} : vector<64x32xf32>, vector<32x32xf32>, vector<64x32xf32> -> vector<64x32xf32>
    %c1_262 = arith.constant 1 : index
    %c0_263 = arith.constant 0 : index
    %c0_264 = arith.constant 0 : index
    %499 = vector.load %arg21[%c1_262, %c0_263, %c0_264] : memref<3x32x32xf32, #tpu.memory_space<vmem>>, vector<1x32x32xf32>
    %500 = vector.shape_cast %499 : vector<1x32x32xf32> to vector<32x32xf32>
    %cst_265 = arith.constant dense<0.000000e+00> : vector<64x32xf32>
    %501 = tpu.matmul %377, %500, %cst_265 {dimension_numbers = #tpu.dot_dimension_numbers<[1], [0], [0], [1], [0, 0, 1, 1], [], []>} : vector<64x32xf32>, vector<32x32xf32>, vector<64x32xf32> -> vector<64x32xf32>
    %502 = arith.addf %498, %501 : vector<64x32xf32>
    %c2_266 = arith.constant 2 : index
    %c0_267 = arith.constant 0 : index
    %c0_268 = arith.constant 0 : index
    %503 = vector.load %arg21[%c2_266, %c0_267, %c0_268] : memref<3x32x32xf32, #tpu.memory_space<vmem>>, vector<1x32x32xf32>
    %504 = vector.shape_cast %503 : vector<1x32x32xf32> to vector<32x32xf32>
    %cst_269 = arith.constant dense<0.000000e+00> : vector<64x32xf32>
    %505 = tpu.matmul %495, %504, %cst_269 {dimension_numbers = #tpu.dot_dimension_numbers<[1], [0], [0], [1], [0, 0, 1, 1], [], []>} : vector<64x32xf32>, vector<32x32xf32>, vector<64x32xf32> -> vector<64x32xf32>
    %506 = arith.addf %502, %505 : vector<64x32xf32>
    %c0_270 = arith.constant 0 : index
    %c0_271 = arith.constant 0 : index
    %507 = vector.load %arg22[%c0_270, %c0_271] : memref<1x32xf32, #tpu.memory_space<vmem>>, vector<1x32xf32>
    %508 = vector.broadcast %507 : vector<1x32xf32> to vector<64x32xf32>
    %509 = arith.addf %506, %508 : vector<64x32xf32>
    %cst_272 = arith.constant 0.000000e+00 : f32
    %510 = vector.broadcast %cst_272 : f32 to vector<64x32xf32>
    %511 = arith.maximumf %509, %510 : vector<64x32xf32>
    %c0_273 = arith.constant 0 : index
    %c0_274 = arith.constant 0 : index
    %512 = vector.load %arg23[%c0_273, %c0_274] : memref<32x32xf32, #tpu.memory_space<vmem>>, vector<32x32xf32>
    %cst_275 = arith.constant dense<0.000000e+00> : vector<64x32xf32>
    %513 = tpu.matmul %511, %512, %cst_275 {dimension_numbers = #tpu.dot_dimension_numbers<[1], [0], [0], [1], [0, 0, 1, 1], [], []>} : vector<64x32xf32>, vector<32x32xf32>, vector<64x32xf32> -> vector<64x32xf32>
    %c0_276 = arith.constant 0 : index
    %c0_277 = arith.constant 0 : index
    %514 = vector.load %arg24[%c0_276, %c0_277] : memref<1x32xf32, #tpu.memory_space<vmem>>, vector<1x32xf32>
    %515 = vector.broadcast %514 : vector<1x32xf32> to vector<64x32xf32>
    %516 = arith.addf %513, %515 : vector<64x32xf32>
    %517 = vector.shape_cast %516 : vector<64x32xf32> to vector<2x32x32xf32>
    %c0_278 = arith.constant 0 : index
    %c0_279 = arith.constant 0 : index
    %518 = vector.load %arg25[%c0_278, %c0_279] : memref<32x32xf32, #tpu.memory_space<vmem>>, vector<32x32xf32>
    %519 = vector.shape_cast %518 : vector<32x32xf32> to vector<1x32x32xf32>
    %520 = vector.broadcast %519 : vector<1x32x32xf32> to vector<2x32x32xf32>
    %521 = arith.mulf %517, %520 : vector<2x32x32xf32>
    %cst_280 = arith.constant dense<0.000000e+00> : vector<2x32xf32>
    %522 = vector.multi_reduction <add>, %521, %cst_280 [2] : vector<2x32x32xf32> to vector<2x32xf32>
    %523 = vector.shape_cast %522 : vector<2x32xf32> to vector<2x32x1xf32>
    %cst_281 = arith.constant dense<0.000000e+00> : vector<2x1xf32>
    %524 = vector.multi_reduction <add>, %523, %cst_281 [1] : vector<2x32x1xf32> to vector<2x1xf32>
    %525 = vector.shape_cast %524 : vector<2x1xf32> to vector<2x1x1xf32>
    %526 = vector.shape_cast %525 : vector<2x1x1xf32> to vector<2x1xf32>
    %c0_282 = arith.constant 0 : index
    %c0_283 = arith.constant 0 : index
    %527 = vector.load %arg26[%c0_282, %c0_283] : memref<1x1xf32, #tpu.memory_space<vmem>>, vector<1x1xf32>
    %528 = vector.broadcast %527 : vector<1x1xf32> to vector<2x1xf32>
    %529 = arith.addf %526, %528 : vector<2x1xf32>
    %cst_284 = arith.constant 0.000000e+00 : f32
    %530 = vector.broadcast %cst_284 : f32 to vector<2x1xf32>
    %531 = arith.subf %530, %529 : vector<2x1xf32>
    %532 = math.exp %531 : vector<2x1xf32>
    %cst_285 = arith.constant 1.000000e+00 : f32
    %533 = vector.broadcast %cst_285 : f32 to vector<2x1xf32>
    %534 = arith.addf %533, %532 : vector<2x1xf32>
    %cst_286 = arith.constant 1.000000e+00 : f32
    %535 = vector.broadcast %cst_286 : f32 to vector<2x1xf32>
    %536 = arith.divf %535, %534 : vector<2x1xf32>
    %c0_287 = arith.constant 0 : index
    %c0_288 = arith.constant 0 : index
    %537 = vector.load %arg27[%c0_287, %c0_288] : memref<2x1xf32, #tpu.memory_space<vmem>>, vector<2x1xf32>
    tpu.vector_store %arg27[%c0_287, %c0_288], %536 {strides = array<i32>} : memref<2x1xf32, #tpu.memory_space<vmem>>, vector<2x1xf32>,
    return
  }
}

</mosaic_0001>

<bundles_post_ra>
// kernel: tpu_custom_call.1
= control target key start
LH: loop header
LB: loop body
LE: loop exit
PB: predicated region body
PF: predicated region fallthrough
CT: control target
= control target key end

     0   :  { %s14331_s0 = inlined_call_operand.vmem [shape: f32[64,1], index: 0, kind: input, shape index: {}]   ;;  %s14332_s1 = inlined_call_operand.hbm [shape: f32[1,32], index: 1, kind: input, shape index: {}]   ;;  %s14333_s2 = inlined_call_operand.hbm [shape: f32[1,32], index: 2, kind: input, shape index: {}]   ;;  %s14334_s3 = inlined_call_operand.vmem [shape: f32[64,32], index: 3, kind: input, shape index: {}]   ;;  %s14335_s4 = inlined_call_operand.vmem [shape: f32[6,32,32], index: 4, kind: input, shape index: {}]   ;;  %s14336_s5 = inlined_call_operand.hbm [shape: f32[6,1,32], index: 5, kind: input, shape index: {}]   ;;  %s14337_s6 = inlined_call_operand.vmem [shape: f32[2,1,32], index: 6, kind: input, shape index: {}]   ;;  %s14338_s7 = inlined_call_operand.vmem [shape: f32[64,32], index: 7, kind: input, shape index: {}]   ;;  %s14339_s8 = inlined_call_operand.vmem [shape: f32[6,32,32], index: 8, kind: input, shape index: {}]   ;;  %s14340_s9 = inlined_call_operand.hbm [shape: f32[6,1,32], index: 9, kind: input, shape index: {}]   ;;  %s14341_s10 = inlined_call_operand.hbm [shape: f32[2,1,32], index: 10, kind: input, shape index: {}]   ;;  %s14342_s11 = inlined_call_operand.hbm [shape: f32[3,32,32], index: 11, kind: input, shape index: {}]   ;;  %s14343_s12 = inlined_call_operand.hbm [shape: f32[1,32], index: 12, kind: input, shape index: {}]   ;;  %s14344_s13 = inlined_call_operand.vmem [shape: f32[64,32], index: 13, kind: input, shape index: {}]   ;;  %s14345_s14 = inlined_call_operand.hbm [shape: f32[6,32,32], index: 14, kind: input, shape index: {}]   ;;  %s14346_s15 = inlined_call_operand.hbm [shape: f32[6,1,32], index: 15, kind: input, shape index: {}]   ;;  %s14347_s16 = inlined_call_operand.hbm [shape: f32[2,1,32], index: 16, kind: input, shape index: {}]   ;;  %s14348_s17 = inlined_call_operand.vmem [shape: f32[64,32], index: 17, kind: input, shape index: {}]   ;;  %s14349_s18 = inlined_call_operand.hbm [shape: f32[6,32,32], index: 18, kind: input, shape index: {}]   ;;  %s14350_s19 = inlined_call_operand.hbm [shape: f32[6,1,32], index: 19, kind: input, shape index: {}]   ;;  %s14351_s20 = inlined_call_operand.vmem [shape: f32[2,1,32], index: 20, kind: input, shape index: {}]   ;;  %s14352_s21 = inlined_call_operand.vmem [shape: f32[3,32,32], index: 21, kind: input, shape index: {}]   ;;  %s14353_s22 = inlined_call_operand.vmem [shape: f32[1,32], index: 22, kind: input, shape index: {}]   ;;  %s14354_s23 = inlined_call_operand.hbm [shape: f32[32,32], index: 23, kind: input, shape index: {}]   ;;  %s14355_s24 = inlined_call_operand.vmem [shape: f32[1,32], index: 24, kind: input, shape index: {}]   ;;  %s14356_s25 = inlined_call_operand.hbm [shape: f32[32,32], index: 25, kind: input, shape index: {}]   ;;  %s14357_s26 = inlined_call_operand.<no memory space> [shape: f32[1,1], index: 26, kind: input, shape index: {}]   ;;  %s14358_s27 = inlined_call_operand.vmem [shape: f32[2,1], index: 27, kind: output, shape index: {}]  }
   0x1   :  { %14438 = sst [smem:[#allocation51_spill]] %s14331_s0  ;;  %v32_v0 = vstv %s14357_s26 }
   0x2   :  { %14439 = sst [smem:[#allocation52_spill]] %s14332_s1  ;;  %33 = vst [vmem:[#allocation2] sm:$0x1] %v32_v0 }
   0x3   :  { %14440 = sst [smem:[#allocation53_spill]] %s14333_s2 }
   0x4   :  { %14441 = sst [smem:[#allocation54_spill]] %s14334_s3 }
   0x5   :  { %14442 = sst [smem:[#allocation55_spill]] %s14335_s4 }
   0x6   :  { %14443 = sst [smem:[#allocation56_spill]] %s14336_s5 }
   0x7   :  { %14444 = sst [smem:[#allocation57_spill]] %s14337_s6 }
   0x8   :  { %14445 = sst [smem:[#allocation58_spill]] %s14338_s7 }
   0x9   :  { %14446 = sst [smem:[#allocation59_spill]] %s14339_s8 }
   0xa   :  { %14447 = sst [smem:[#allocation60_spill]] %s14340_s9 }
   0xb   :  { %14448 = sst [smem:[#allocation61_spill]] %s14341_s10 }
   0xc   :  { %14449 = sst [smem:[#allocation62_spill]] %s14342_s11 }
   0xd   :  { %34 = vsyncpa [#allocation4], 0 }
   0xe   :  { %35 = vsyncpa [#allocation6], 0 }
   0xf   :  { %36 = vsyncpa [#allocation9], 0 }
  0x10   :  { %37 = vsyncpa [#allocation12], 0 }
  0x11   :  { %38 = vsyncpa [#allocation15], 0 }
  0x12   :  { %39 = vsyncpa [#allocation18], 0 }
  0x13   :  { %40 = vsyncpa [#allocation21], 0 }
  0x14   :  { %41 = vsyncpa [#allocation24], 0  ;;  %s10671_s8 = smov [#allocation5]  }
  0x15   :  { %s60_s30 = sshll.u32 %s10671_s8, 4  ;;  %s61_s30 = int_to_ptr.vmem [resolvable:$true] %s60_s30 }
  0x16   :  { %s10383_s9 = scalar_lea.vmem %s61_s30, 16  ;;  %s10387_s5 = scalar_lea.vmem %s61_s30, 32 }
  0x17   :  { %p10384_p0 = scmp.ne.s32.totalorder %s61_s30, %s10383_s9  ;;  %p10388_p1 = scmp.lt.s32.totalorder %s61_s30, %s61_s30 }
  0x18   :  { %p10389_p2 = scmp.lt.s32.totalorder %s10387_s5, %s10383_s9 }
  0x1a   :  { %p10390_p3 = por %p10389_p2, %p10388_p1 }
  0x1c   :  { %p10391_p4 = pnand %p10390_p3, %p10384_p0 }
  0x1e   :  { %10394 = shalt.err (!%p10391_p4)
}
  0x1f   :  { %s14450_s0 = sld [smem:[#allocation53_spill]]  ;;  %s10672_s10 = smov [#allocation8]  }
  0x20   :  { %s91_s29 = sshll.u32 %s10672_s10, 4  ;;  %s10673_s1 = smov [#allocation11]   ;;  %s92_s29 = int_to_ptr.vmem [resolvable:$true] %s91_s29 }
  0x21   :  { %s115_s6 = sshll.u32 %s10673_s1, 4  ;;  %s10403_s11 = scalar_lea.vmem %s92_s29, 96  ;;  %s116_s6 = int_to_ptr.vmem [resolvable:$true] %s115_s6 }
  0x22   :  { %p10404_p5 = scmp.ne.s32.totalorder %s92_s29, %s10403_s11  ;;  %p10408_p6 = scmp.lt.s32.totalorder %s92_s29, %s92_s29 }
  0x23   :  { %p10409_p7 = scmp.lt.s32.totalorder %s10403_s11, %s10403_s11 }
  0x25   :  { %63 = dma.hbm_to_vmem [thread:$0]  %s14450_s0, 16, %s61_s30, [#allocation6]  }
  0x26   :  { %p10410_p8 = por %p10409_p7, %p10408_p6 }
  0x28   :  { %p10411_p9 = pnand %p10410_p8, %p10404_p5 }
  0x2a   :  { %10414 = shalt.err (!%p10411_p9)
}
  0x2b   :  { %s10674_s2 = smov 16   ;;  %s10675_s3 = smov 1  }
  0x2c   :  { %s14451_s8 = sld [smem:[#allocation60_spill]]  ;;  %s10423_s30 = scalar_lea.vmem %s116_s6, 1536 }
  0x2d   :  { %p10424_p10 = scmp.ne.s32.totalorder %s116_s6, %s10423_s30  ;;  %p10428_p11 = scmp.lt.s32.totalorder %s116_s6, %s116_s6 }
  0x2e   :  { %p10429_p12 = scmp.lt.s32.totalorder %s10423_s30, %s10423_s30 }
  0x30   :  { %p10430_p13 = por %p10429_p12, %p10428_p11 }
  0x32   :  { %97 = dma.hbm_to_vmem [thread:$0]  %s14451_s8, 96, %s92_s29, [#allocation9], %s10674_s2, %s10674_s2, %s10675_s3  }
  0x33   :  { %p10431_p0 = pnand %p10430_p13, %p10424_p10 }
  0x35   :  { %10434 = shalt.err (!%p10431_p0)
}
  0x36   :  { %s10676_s9 = smov 128   ;;  %s10677_s5 = smov 8  }
  0x37   :  { %s14452_s0 = sld [smem:[#allocation62_spill]]  ;;  %s10678_s10 = smov [#allocation14]  }
  0x38   :  { %s139_s1 = sshll.u32 %s10678_s10, 4  ;;  %s10679_s29 = smov [#allocation17]   ;;  %s140_s1 = int_to_ptr.vmem [resolvable:$true] %s139_s1 }
  0x39   :  { %s163_s11 = sshll.u32 %s10679_s29, 4  ;;  %s10443_s7 = scalar_lea.vmem %s140_s1, 3072  ;;  %s164_s11 = int_to_ptr.vmem [resolvable:$true] %s163_s11 }
  0x3a   :  { %p10444_p1 = scmp.ne.s32.totalorder %s140_s1, %s10443_s7  ;;  %p10448_p2 = scmp.lt.s32.totalorder %s140_s1, %s140_s1 }
  0x3b   :  { %p10449_p3 = scmp.lt.s32.totalorder %s10443_s7, %s10443_s7 }
  0x3d   :  { %121 = dma.hbm_to_vmem [thread:$0]  %s14452_s0, 1536, %s116_s6, [#allocation12], %s10676_s9, %s10676_s9, %s10677_s5  }
  0x3e   :  { %p10450_p4 = por %p10449_p3, %p10448_p2 }
  0x40   :  { %p10451_p5 = pnand %p10450_p4, %p10444_p1 }
  0x42   :  { %10454 = shalt.err (!%p10451_p5)
}
  0x43   :  { %145 = dma.hbm_to_vmem [thread:$0]  %s14345_s14, 3072, %s140_s1, [#allocation15], %s10676_s9, %s10676_s9, %s10677_s5  }
  0x44   :  { %s10463_s6 = scalar_lea.vmem %s164_s11, 32  ;;  %p10468_p7 = scmp.lt.s32.totalorder %s164_s11, %s164_s11 }
  0x45   :  { %p10464_p6 = scmp.ne.s32.totalorder %s164_s11, %s10463_s6  ;;  %p10469_p8 = scmp.lt.s32.totalorder %s10463_s6, %s10463_s6 }
  0x47   :  { %p10470_p9 = por %p10469_p8, %p10468_p7 }
  0x49   :  { %p10471_p10 = pnand %p10470_p9, %p10464_p6 }
  0x4b   :  { %10474 = shalt.err (!%p10471_p10)
}
  0x4c   :  { %169 = dma.hbm_to_vmem [thread:$0]  %s14347_s16, 32, %s164_s11, [#allocation18], %s10674_s2, %s10674_s2, %s10675_s3  }
  0x4d   :  { %s10680_s28 = smov [#allocation20]   ;;  %s10681_s10 = smov [#allocation3]  }
  0x4e   :  { %s189_s0 = sshll.u32 %s10680_s28, 4  ;;  %s50_s14 = sshll.u32 %s10681_s10, 4  ;;  %s190_s0 = int_to_ptr.vmem [resolvable:$true] %s189_s0  ;;  %s51_s14 = int_to_ptr.vmem [resolvable:$true] %s50_s14 }
  0x4f   :  { %s10483_s1 = scalar_lea.vmem %s190_s0, 96  ;;  %p10488_p12 = scmp.lt.s32.totalorder %s190_s0, %s190_s0 }
  0x50   :  { %p10484_p11 = scmp.ne.s32.totalorder %s190_s0, %s10483_s1  ;;  %p10489_p13 = scmp.lt.s32.totalorder %s10483_s1, %s10483_s1 }
  0x52   :  { %p10490_p0 = por %p10489_p13, %p10488_p12 }
  0x54   :  { %p10491_p1 = pnand %p10490_p0, %p10484_p11 }
  0x56   :  { %10494 = shalt.err (!%p10491_p1)
}
  0x57   :  { %195 = dma.hbm_to_vmem [thread:$0]  %s14350_s19, 96, %s190_s0, [#allocation21], %s10674_s2, %s10674_s2, %s10675_s3  }
  0x58   :  { %s10503_s16 = scalar_lea.vmem %s51_s14, 16  ;;  %s10507_s11 = scalar_lea.vmem %s51_s14, 32 }
  0x59   :  { %p10504_p2 = scmp.ne.s32.totalorder %s51_s14, %s10503_s16  ;;  %p10508_p3 = scmp.lt.s32.totalorder %s51_s14, %s51_s14 }
  0x5a   :  { %p10509_p4 = scmp.lt.s32.totalorder %s10507_s11, %s10503_s16 }
  0x5c   :  { %p10510_p5 = por %p10509_p4, %p10508_p3 }
  0x5e   :  { %p10511_p6 = pnand %p10510_p5, %p10504_p2 }
  0x60   :  { %10514 = shalt.err (!%p10511_p6)
}
  0x61   :  { %s14453_s6 = sld [smem:[#allocation52_spill]]  ;;  %s10682_s30 = smov [#allocation7]  }
  0x62   :  { %s73_s26 = sshll.u32 %s10682_s30, 4  ;;  %s10683_s28 = smov [#allocation10]   ;;  %s74_s26 = int_to_ptr.vmem [resolvable:$true] %s73_s26 }
  0x63   :  { %s103_s10 = sshll.u32 %s10683_s28, 4  ;;  %s10523_s1 = scalar_lea.vmem %s74_s26, 96  ;;  %s104_s10 = int_to_ptr.vmem [resolvable:$true] %s103_s10 }
  0x64   :  { %p10524_p7 = scmp.ne.s32.totalorder %s74_s26, %s10523_s1  ;;  %p10528_p8 = scmp.lt.s32.totalorder %s74_s26, %s74_s26 }
  0x65   :  { %p10529_p9 = scmp.lt.s32.totalorder %s10523_s1, %s10523_s1 }
  0x67   :  { %53 = dma.hbm_to_vmem [thread:$0]  %s14453_s6, 16, %s51_s14, [#allocation4]  }
  0x68   :  { %p10530_p10 = por %p10529_p9, %p10528_p8 }
  0x6a   :  { %p10531_p11 = pnand %p10530_p10, %p10524_p7 }
  0x6c   :  { %10534 = shalt.err (!%p10531_p11)
}
  0x6d   :  { %s14454_s29 = sld [smem:[#allocation56_spill]]  ;;  %s10543_s14 = scalar_lea.vmem %s104_s10, 32 }
  0x6e   :  { %p10544_p12 = scmp.ne.s32.totalorder %s104_s10, %s10543_s14  ;;  %p10548_p13 = scmp.lt.s32.totalorder %s104_s10, %s104_s10 }
  0x6f   :  { %p10549_p0 = scmp.lt.s32.totalorder %s10543_s14, %s10543_s14 }
  0x71   :  { %p10550_p1 = por %p10549_p0, %p10548_p13 }
  0x73   :  { %79 = dma.hbm_to_vmem [thread:$0]  %s14454_s29, 96, %s74_s26, [#allocation6], %s10674_s2, %s10674_s2, %s10675_s3  }
  0x74   :  { %p10551_p2 = pnand %p10550_p1, %p10544_p12 }
  0x76   :  { %10554 = shalt.err (!%p10551_p2)
}
  0x77   :  { %s14455_s11 = sld [smem:[#allocation61_spill]]  ;;  %s10684_s4 = smov [#allocation13]  }
  0x78   :  { %s128_s8 = sshll.u32 %s10684_s4, 4  ;;  %s10685_s6 = smov [#allocation16]   ;;  %s129_s8 = int_to_ptr.vmem [resolvable:$true] %s128_s8 }
  0x79   :  { %s151_s30 = sshll.u32 %s10685_s6, 4  ;;  %s10563_s26 = scalar_lea.vmem %s129_s8, 16  ;;  %s152_s30 = int_to_ptr.vmem [resolvable:$true] %s151_s30 }
  0x7a   :  { %p10564_p3 = scmp.ne.s32.totalorder %s129_s8, %s10563_s26  ;;  %s10567_s28 = scalar_lea.vmem %s129_s8, 32 }
  0x7b   :  { %p10568_p4 = scmp.lt.s32.totalorder %s129_s8, %s129_s8  ;;  %p10569_p5 = scmp.lt.s32.totalorder %s10567_s28, %s10563_s26 }
  0x7d   :  { %109 = dma.hbm_to_vmem [thread:$0]  %s14455_s11, 32, %s104_s10, [#allocation9], %s10674_s2, %s10674_s2, %s10675_s3  }
  0x7e   :  { %p10570_p6 = por %p10569_p5, %p10568_p4 }
  0x80   :  { %p10571_p7 = pnand %p10570_p6, %p10564_p3 }
  0x82   :  { %10574 = shalt.err (!%p10571_p7)
}
  0x83   :  { %131 = dma.hbm_to_vmem [thread:$0]  %s14343_s12, 16, %s129_s8, [#allocation12]  }
  0x84   :  { %s10583_s0 = scalar_lea.vmem %s152_s30, 96  ;;  %p10588_p9 = scmp.lt.s32.totalorder %s152_s30, %s152_s30 }
  0x85   :  { %p10584_p8 = scmp.ne.s32.totalorder %s152_s30, %s10583_s0  ;;  %p10589_p10 = scmp.lt.s32.totalorder %s10583_s0, %s10583_s0 }
  0x87   :  { %p10590_p11 = por %p10589_p10, %p10588_p9 }
  0x89   :  { %p10591_p12 = pnand %p10590_p11, %p10584_p8 }
  0x8b   :  { %10594 = shalt.err (!%p10591_p12)
}
  0x8c   :  { %157 = dma.hbm_to_vmem [thread:$0]  %s14346_s15, 96, %s152_s30, [#allocation15], %s10674_s2, %s10674_s2, %s10675_s3  }
  0x8d   :  { %s10686_s14 = smov [#allocation19]   ;;  %s10687_s16 = smov [#allocation22]  }
  0x8e   :  { %s177_s7 = sshll.u32 %s10686_s14, 4  ;;  %s207_s12 = sshll.u32 %s10687_s16, 4  ;;  %s178_s7 = int_to_ptr.vmem [resolvable:$true] %s177_s7  ;;  %s208_s12 = int_to_ptr.vmem [resolvable:$true] %s207_s12 }
  0x8f   :  { %s10603_s11 = scalar_lea.vmem %s178_s7, 3072  ;;  %p10608_p0 = scmp.lt.s32.totalorder %s178_s7, %s178_s7 }
  0x90   :  { %p10604_p13 = scmp.ne.s32.totalorder %s178_s7, %s10603_s11  ;;  %p10609_p1 = scmp.lt.s32.totalorder %s10603_s11, %s10603_s11 }
  0x92   :  { %p10610_p2 = por %p10609_p1, %p10608_p0 }
  0x94   :  { %p10611_p3 = pnand %p10610_p2, %p10604_p13 }
  0x96   :  { %10614 = shalt.err (!%p10611_p3)
}
  0x97   :  { %183 = dma.hbm_to_vmem [thread:$0]  %s14349_s18, 3072, %s178_s7, [#allocation18], %s10676_s9, %s10676_s9, %s10677_s5  }
  0x98   :  { %s10623_s15 = scalar_lea.vmem %s208_s12, 512  ;;  %p10628_p5 = scmp.lt.s32.totalorder %s208_s12, %s208_s12 }
  0x99   :  { %p10624_p4 = scmp.ne.s32.totalorder %s208_s12, %s10623_s15  ;;  %p10629_p6 = scmp.lt.s32.totalorder %s10623_s15, %s10623_s15 }
  0x9b   :  { %p10630_p7 = por %p10629_p6, %p10628_p5 }
  0x9d   :  { %p10631_p8 = pnand %p10630_p7, %p10624_p4 }
  0x9f   :  { %10634 = shalt.err (!%p10631_p8)
}
  0xa0   :  { %213 = dma.hbm_to_vmem [thread:$0]  %s14354_s23, 512, %s208_s12, [#allocation21], %s10676_s9, %s10676_s9, %s10677_s5  }
  0xa1   :  { %s10688_s6 = smov [#allocation23]  }
  0xa2   :  { %s221_s30 = sshll.u32 %s10688_s6, 4  ;;  %s222_s30 = int_to_ptr.vmem [resolvable:$true] %s221_s30 }
  0xa3   :  { %s10643_s26 = scalar_lea.vmem %s222_s30, 512  ;;  %p10648_p10 = scmp.lt.s32.totalorder %s222_s30, %s222_s30 }
  0xa4   :  { %p10644_p9 = scmp.ne.s32.totalorder %s222_s30, %s10643_s26  ;;  %p10649_p11 = scmp.lt.s32.totalorder %s10643_s26, %s10643_s26 }
  0xa6   :  { %p10650_p12 = por %p10649_p11, %p10648_p10 }
  0xa8   :  { %p10651_p13 = pnand %p10650_p12, %p10644_p9 }
  0xaa   :  { %10654 = shalt.err (!%p10651_p13)
}
  0xab   :  { %227 = dma.hbm_to_vmem [thread:$0]  %s14356_s25, 512, %s222_s30, [#allocation24], %s10676_s9, %s10676_s9, %s10677_s5  }
  0xac   :  { %10655 = dma.done.wait [#allocation4], 16  }
  0xad   :  { %10656 = vsyncadd [#allocation4], 4294967280 }
  0xae   :  { %10657 = dma.done.wait [#allocation6], 112  }
  0xaf   :  { %10658 = vsyncadd [#allocation6], 4294967184 }
  0xb0   :  { %10659 = dma.done.wait [#allocation9], 128  }
  0xb1   :  { %10660 = vsyncadd [#allocation9], 4294967168 }
  0xb2   :  { %10661 = dma.done.wait [#allocation12], 1552  }
  0xb3   :  { %10662 = vsyncadd [#allocation12], 4294965744 }
  0xb4   :  { %10663 = dma.done.wait [#allocation15], 3168  }
  0xb5   :  { %10664 = vsyncadd [#allocation15], 4294964128 }
  0xb6   :  { %10665 = dma.done.wait [#allocation18], 3104  }
  0xb7   :  { %10666 = vsyncadd [#allocation18], 4294964192 }
  0xb8   :  { %10667 = dma.done.wait [#allocation21], 608  }
  0xb9   :  { %10668 = vsyncadd [#allocation21], 4294966688 }
  0xba   :  { %10669 = dma.done.wait [#allocation24], 512  }
  0xbb   :  { %10670 = vsyncadd [#allocation24], 4294966784  ;;  %v10689_v1 = vmov 0   ;;  %s14456_s9 = sld [smem:[#allocation51_spill]]  ;;  %v8626_v16 = vld [vmem:[#allocation3] ss:$0 sm:$0xff] }
  0xbc   :  { %9982 = vset.pattern.permute.xlu1 %v10689_v1  ;;  %9981 = vset.pattern.permute.xlu0 %v10689_v1  ;;  %s14457_s16 = sld [smem:[#allocation55_spill]]  ;;  %v8627_v17 = vld [vmem:[#allocation5] ss:$0 sm:$0xff]  ;;  %vm377_vm0 = vcmask 261120   ;;  %v11054_v0 = vld [vmem:[#allocation7] ss:$0 sm:$0xff] }
  0xbd   :  { %s14458_s29 = sld [smem:[#allocation54_spill]]  ;;  %vm1192_vm1 = vcmask 1041409   ;;  %vm1195_vm2 = vcmask 1042434   ;;  %vm1198_vm3 = vcmask 1043459   ;;  %vm1250_vm4 = vcmask 257024  }
  0xbe   :  { %s14481_s10 = sld [smem:[#allocation59_spill]]  ;;  %vm8612_vm5 = vcmask 1024  }
  0xbf   :  { %s14482_s1 = sld [smem:[#allocation58_spill]] }
  0xc0   :  { %s14523_s12 = sld [smem:[#allocation57_spill]] }
  0xc1   :  { %v278_v2 = vld [vmem:[%s14456_s9 + $0x30] sm:$0xff]  ;;  %v276_v3 = vld [vmem:[%s14456_s9 + $0x20] sm:$0xff]  ;;  %v279_v4 = vld [vmem:[%s14456_s9 + $0x38] sm:$0xff] }
  0xc2   :  { %313 = vperm.xlu1 %9982, %v278_v2   ;;  %303 = vperm.xlu0 %9981, %v276_v3   ;;  %v277_v5 = vld [vmem:[%s14456_s9 + $0x28] sm:$0xff]  ;;  %v369_v6 = vld [vmem:[%s14457_s16 + $0x18] sm:$0xff]  ;;  %v368_v7 = vld [vmem:[%s14457_s16 + $0x10] sm:$0xff] }
  0xc3   :  { %9954 = vmatprep.subr.mxu1 %v369_v6  ;;  %9334 = vmatprep.subr.mxu0 %v369_v6  ;;  %v273_v8 = vld [vmem:[%s14456_s9 + $0x8] sm:$0xff]  ;;  %v272_v9 = vld [vmem:[%s14456_s9] sm:$0xff]  ;;  %v275_v12 = vld [vmem:[%s14456_s9 + $0x18] sm:$0xff] }
  0xc4   :  { %9958 = vmatpush3.msra.mxu1 %v369_v6  ;;  %9335 = vmatpush3.msra.mxu0 %v369_v6  ;;  %v367_v10 = vld [vmem:[%s14457_s16 + $0x8] sm:$0xff]  ;;  %v366_v11 = vld [vmem:[%s14457_s16] sm:$0xff]  ;;  %v274_v13 = vld [vmem:[%s14456_s9 + $0x10] sm:$0xff] }
  0xc5   :  { %9955 = vmatprep.subr.mxu1 %v368_v7  ;;  %9336 = vmatprep.subr.mxu0 %v368_v7  ;;  %v8640_v14 = vld [vmem:[%s14457_s16 + $0x38] sm:$0xff]  ;;  %v354_v22 = vld [vmem:[%s14458_s29 + $0x20] sm:$0xff]  ;;  %v356_v29 = vld [vmem:[%s14458_s29 + $0x30] sm:$0xff] }
  0xc6   :  { %318 = vperm.xlu1 %9982, %v279_v4   ;;  %308 = vperm.xlu0 %9981, %v277_v5   ;;  %v10950_v15 = vld [vmem:[%s14457_s16 + $0x58] sm:$0xff]  ;;  %v355_v31 = vld [vmem:[%s14458_s29 + $0x28] sm:$0xff]  ;;  %v8639_v40 = vld [vmem:[%s14457_s16 + $0x30] sm:$0xff] }
  0xc7   :  { %9959 = vmatpush3.msra.mxu1 %v368_v7  ;;  %9337 = vmatpush3.msra.mxu0 %v368_v7  ;;  %v350_v41 = vld [vmem:[%s14458_s29] sm:$0xff]  ;;  %v357_v44 = vld [vmem:[%s14458_s29 + $0x38] sm:$0xff]  ;;  %v351_v45 = vld [vmem:[%s14458_s29 + $0x8] sm:$0xff] }
  0xc8   :  { %9956 = vmatprep.subr.mxu1 %v367_v10  ;;  %9338 = vmatprep.subr.mxu0 %v367_v10  ;;  %v8638_v48 = vld [vmem:[%s14457_s16 + $0x28] sm:$0xff]  ;;  %v352_v54 = vld [vmem:[%s14458_s29 + $0x10] sm:$0xff]  ;;  %v8637_v57 = vld [vmem:[%s14457_s16 + $0x20] sm:$0xff] }
  0xc9   :  { %9960 = vmatpush3.msra.mxu1 %v367_v10  ;;  %9339 = vmatpush3.msra.mxu0 %v367_v10  ;;  %v353_v58 = vld [vmem:[%s14458_s29 + $0x18] sm:$0xff]  ;;  %v8652_v59 = vld [vmem:[%s14457_s16 + $0x50] sm:$0xff]  ;;  %v8651_v62 = vld [vmem:[%s14457_s16 + $0x48] sm:$0xff] }
  0xca   :  { %288 = vperm.xlu1 %9982, %v273_v8   ;;  %283 = vperm.xlu0 %9981, %v272_v9   ;;  %v8650_v63 = vld [vmem:[%s14457_s16 + $0x40] sm:$0xff] }
  0xcb   :  { %9957 = vmatprep.subr.mxu1 %v366_v11  ;;  %9340 = vmatprep.subr.mxu0 %v366_v11  ;;  %v11065_v10 = vld [vmem:[#allocation7 + $0x1] ss:$0 sm:$0xff] }
  0xcc   :  { %9961 = vmatpush3.msra.mxu1 %v366_v11  ;;  %9341 = vmatpush3.msra.mxu0 %v366_v11 }
  0xcd   :  { %9354 = vmatprep.subr.mxu1 %v8640_v14  ;;  %9374 = vmatprep.subr.mxu0 %v10950_v15 }
  0xce   :  { %298 = vperm.xlu1 %9982, %v275_v12   ;;  %293 = vperm.xlu0 %9981, %v274_v13  }
 0x13d   :  { %v314_v18 = vpop.permute.xlu1 %313  ;;  %v304_v19 = vpop.permute.xlu0 %303 }
 0x13e   :  { %v333_v20 = vmul.f32 %v8626_v16, %v314_v18  ;;  %v331_v21 = vmul.f32 %v8626_v16, %v304_v19 }
 0x140   :  { %v10956_v23 = vadd.f32 %v8627_v17, %v331_v21  ;;  %v10958_v24 = vadd.f32 %v8627_v17, %v333_v20 }
 0x141   :  { %v319_v25 = vpop.permute.xlu1 %318  ;;  %v309_v26 = vpop.permute.xlu0 %308 }
 0x142   :  { %14459 = vst [vmem:[#allocation33_spill] sm:$0xff] %v10956_v23  ;;  %14460 = vst [vmem:[#allocation34_spill] sm:$0xff] %v10958_v24  ;;  %v332_v27 = vmul.f32 %v8626_v16, %v309_v26  ;;  %v10961_v28 = vadd.f32 %v354_v22, %v10956_v23  ;;  %v334_v30 = vmul.f32 %v8626_v16, %v319_v25 }
 0x143   :  { %v10974_v35 = vadd.f32 %v356_v29, %v10958_v24 }
 0x144   :  { %v10969_v32 = vadd.f32 %v8627_v17, %v332_v27  ;;  %9348 = vmatprep.mubr.msk.f32.mxu1 %vm377_vm0, %v10961_v28  ;;  %v10977_v39 = vadd.f32 %v8627_v17, %v334_v30 }
 0x145   :  { %v289_v33 = vpop.permute.xlu1 %288  ;;  %v284_v34 = vpop.permute.xlu0 %283 }
 0x146   :  { %14461 = vst [vmem:[#allocation35_spill] sm:$0xff] %v10969_v32  ;;  %v328_v36 = vmul.f32 %v8626_v16, %v289_v33  ;;  %v327_v37 = vmul.f32 %v8626_v16, %v284_v34  ;;  %v363_v38 = vadd.f32 %v355_v31, %v10969_v32  ;;  %14462 = vst [vmem:[#allocation36_spill] sm:$0xff] %v10977_v39 }
 0x147   :  { %v365_v52 = vadd.f32 %v357_v44, %v10977_v39 }
 0x148   :  { %v10985_v42 = vadd.f32 %v8627_v17, %v328_v36  ;;  %v10987_v43 = vadd.f32 %v8627_v17, %v327_v37  ;;  %9349 = vmatmul.mubr.msk.f32.vlgmr.msra.gmra.mxu1 %vm377_vm0, %v363_v38 }
 0x149   :  { %9355 = vmatpush3.msra.mxu1 %v8640_v14  ;;  %9351 = vmatprep.mubr.msk.f32.mxu1 %vm377_vm0, %v10974_v35  ;;  %v299_v46 = vpop.permute.xlu1 %298  ;;  %v294_v47 = vpop.permute.xlu0 %293 }
 0x14a   :  { %14463 = vst [vmem:[#allocation37_spill] sm:$0xff] %v10985_v42  ;;  %14464 = vst [vmem:[#allocation38_spill] sm:$0xff] %v10987_v43  ;;  %9356 = vmatprep.subr.mxu1 %v8639_v40  ;;  %v330_v49 = vmul.f32 %v8626_v16, %v299_v46  ;;  %v329_v50 = vmul.f32 %v8626_v16, %v294_v47  ;;  %v358_v51 = vadd.f32 %v350_v41, %v10987_v43 }
 0x14b   :  { %9357 = vmatpush3.msra.mxu1 %v8639_v40  ;;  %v359_v53 = vadd.f32 %v351_v45, %v10985_v42 }
 0x14c   :  { %v11007_v55 = vadd.f32 %v8627_v17, %v330_v49  ;;  %v11009_v56 = vadd.f32 %v8627_v17, %v329_v50  ;;  %9358 = vmatprep.subr.mxu1 %v8638_v48  ;;  %9342 = vmatprep.mubr.msk.f32.mxu0 %vm377_vm0, %v358_v51 }
 0x14d   :  { %9352 = vmatmul.mubr.msk.f32.gmra.mxu1 %vm377_vm0, %v365_v52  ;;  %9343 = vmatmul.mubr.msk.f32.vlgmr.msra.gmra.mxu0 %vm377_vm0, %v359_v53 }
 0x14e   :  { %14465 = vst [vmem:[#allocation39_spill] sm:$0xff] %v11007_v55  ;;  %14466 = vst [vmem:[#allocation40_spill] sm:$0xff] %v11009_v56  ;;  %9359 = vmatpush3.msra.mxu1 %v8638_v48  ;;  %9362 = vmatprep.mubr.msk.f32.mxu1 %vm377_vm0, %v358_v51  ;;  %v360_v60 = vadd.f32 %v352_v54, %v11009_v56  ;;  %v361_v61 = vadd.f32 %v353_v58, %v11007_v55 }
 0x14f   :  { %9360 = vmatprep.subr.mxu1 %v8637_v57  ;;  %9375 = vmatpush3.msra.mxu0 %v10950_v15 }
 0x150   :  { %9361 = vmatpush3.msra.mxu1 %v8637_v57  ;;  %9376 = vmatprep.subr.mxu0 %v8652_v59 }
 0x151   :  { %9345 = vmatprep.mubr.msk.f32.mxu0 %vm377_vm0, %v360_v60  ;;  %9363 = vmatmul.mubr.msk.f32.vlgmr.msra.gmra.mxu1 %vm377_vm0, %v359_v53 }
 0x152   :  { %9377 = vmatpush3.msra.mxu0 %v8652_v59  ;;  %9365 = vmatprep.mubr.msk.f32.mxu1 %vm377_vm0, %v360_v60 }
 0x153   :  { %9346 = vmatmul.mubr.msk.f32.gmra.mxu0 %vm377_vm0, %v361_v61  ;;  %9378 = vmatprep.subr.mxu0 %v8651_v62 }
 0x154   :  { %9379 = vmatpush3.msra.mxu0 %v8651_v62  ;;  %9382 = vmatprep.mubr.msk.f32.mxu0 %vm377_vm0, %v358_v51 }
 0x155   :  { %9380 = vmatprep.subr.mxu0 %v8650_v63  ;;  %9366 = vmatmul.mubr.msk.f32.gmra.mxu1 %vm377_vm0, %v361_v61 }
 0x156   :  { %9381 = vmatpush3.msra.mxu0 %v8650_v63  ;;  %9368 = vmatprep.mubr.msk.f32.mxu1 %vm377_vm0, %v10961_v28 }
 0x157   :  { %9383 = vmatmul.mubr.msk.f32.vlgmr.msra.gmra.mxu0 %vm377_vm0, %v359_v53 }
 0x158   :  { %9385 = vmatprep.mubr.msk.f32.mxu0 %vm377_vm0, %v360_v60 }
 0x159   :  { %9369 = vmatmul.mubr.msk.f32.gmra.mxu1 %vm377_vm0, %v363_v38 }
 0x15a   :  { %9371 = vmatprep.mubr.msk.f32.mxu1 %vm377_vm0, %v10974_v35 }
 0x15b   :  { %9386 = vmatmul.mubr.msk.f32.gmra.mxu0 %vm377_vm0, %v361_v61 }
 0x15c   :  { %9388 = vmatprep.mubr.msk.f32.mxu0 %vm377_vm0, %v10961_v28 }
 0x15d   :  { %9372 = vmatmul.mubr.msk.f32.gmra.mxu1 %vm377_vm0, %v365_v52 }
 0x15f   :  { %9389 = vmatmul.mubr.msk.f32.gmra.mxu0 %vm377_vm0, %v363_v38 }
 0x160   :  { %9391 = vmatprep.mubr.msk.f32.mxu0 %vm377_vm0, %v10974_v35 }
 0x163   :  { %9392 = vmatmul.mubr.msk.f32.gmra.mxu0 %vm377_vm0, %v365_v52 }
 0x208   :  { %v9350_v1 = vpop.f32.mrf.mxu1 }
 0x209   :  { %v11057_v2 = vadd.f32 %v9350_v1, %v11054_v0 }
 0x20a   :  { %v11059_v3 = vpop.f32.mrf.mxu1 }
 0x20d   :  { %v9353_v4 = vpop.f32.mrf.mxu1  ;;  %v9344_v5 = vpop.f32.mrf.mxu0 }
 0x20e   :  { %v11062_v6 = vadd.f32 %v9353_v4, %v11054_v0  ;;  %v474_v7 = vadd.f32 %v9344_v5, %v11054_v0 }
 0x20f   :  { %v498_v8 = vpop.f32.mrf.mxu1  ;;  %v468_v9 = vpop.f32.mrf.mxu0 }
 0x210   :  { %v11067_v11 = vmul.f32 0.17677669, %v474_v7  ;;  %v469_v12 = vadd.f32 %v11054_v0, %v468_v9 }
 0x211   :  { %v9364_v13 = vpop.f32.mrf.mxu1 }
 0x212   :  { %v11070_v14 = vmul.f32 0.17677669, %v469_v12  ;;  %v600_v15 = vadd.f32 %v9364_v13, %v11065_v10 }
 0x213   :  { %v9347_v16 = vpop.f32.mrf.mxu0  ;;  %v594_v17 = vpop.f32.mrf.mxu1 }
 0x214   :  { %v752_v18 = vmul.f32 %v600_v15, %v11070_v14  ;;  %v756_v19 = vmul.f32 %v600_v15, %v11067_v11  ;;  %v484_v20 = vadd.f32 %v9347_v16, %v11054_v0  ;;  %v595_v21 = vadd.f32 %v11065_v10, %v594_v17 }
 0x215   :  { %v478_v22 = vpop.f32.mrf.mxu0  ;;  %v9367_v5 = vpop.f32.mrf.mxu1 }
 0x216   :  { %v790_v25 = vsel %vm377_vm0, %v752_v18, 0.0  ;;  %v818_v26 = vsel %vm377_vm0, %v756_v19, 0.0  ;;  %v11079_v27 = vmul.f32 0.17677669, %v484_v20  ;;  %v751_v28 = vmul.f32 %v595_v21, %v11070_v14 }
 0x217   :  { %v791_v29 = vrot.slane %v790_v25, 4  ;;  %v819_v30 = vrot.slane %v818_v26, 4  ;;  %v755_v31 = vmul.f32 %v595_v21, %v11067_v11  ;;  %v479_v33 = vadd.f32 %v11054_v0, %v478_v22 }
 0x218   :  { %v764_v34 = vmul.f32 %v600_v15, %v11079_v27  ;;  %v763_v35 = vmul.f32 %v595_v21, %v11079_v27  ;;  %v783_v36 = vsel %vm377_vm0, %v751_v28, 0.0  ;;  %v489_v19 = vadd.f32 %v11054_v0, %v11059_v3 }
 0x219   :  { %v792_v37 = vadd.f32 %v791_v29, %v790_v25  ;;  %v820_v38 = vadd.f32 %v819_v30, %v818_v26  ;;  %v784_v40 = vrot.slane %v783_v36, 4  ;;  %v811_v41 = vsel %vm377_vm0, %v755_v31, 0.0 }
 0x21a   :  { %v874_v44 = vsel %vm377_vm0, %v764_v34, 0.0  ;;  %v812_v45 = vrot.slane %v811_v41, 4  ;;  %v867_v46 = vsel %vm377_vm0, %v763_v35, 0.0  ;;  %v11090_v47 = vmul.f32 0.17677669, %v479_v33 }
 0x21b   :  { %v793_v48 = vrot.slane %v792_v37, 2  ;;  %v821_v49 = vrot.slane %v820_v38, 2  ;;  %v875_v50 = vrot.slane %v874_v44, 4  ;;  %v785_v51 = vadd.f32 %v784_v40, %v783_v36 }
 0x21c   :  { %v813_v52 = vadd.f32 %v812_v45, %v811_v41  ;;  %v868_v53 = vrot.slane %v867_v46, 4  ;;  %v759_v54 = vmul.f32 %v595_v21, %v11090_v47  ;;  %v760_v57 = vmul.f32 %v600_v15, %v11090_v47 }
 0x21d   :  { %v794_v58 = vadd.f32 %v793_v48, %v792_v37  ;;  %v822_v59 = vadd.f32 %v821_v49, %v820_v38  ;;  %v876_v60 = vadd.f32 %v875_v50, %v874_v44  ;;  %v786_v61 = vrot.slane %v785_v51, 2 }
 0x21e   :  { %v814_v62 = vrot.slane %v813_v52, 2  ;;  %v869_v63 = vadd.f32 %v868_v53, %v867_v46  ;;  %v839_v1 = vsel %vm377_vm0, %v759_v54, 0.0  ;;  %v846_v4 = vsel %vm377_vm0, %v760_v57, 0.0 }
 0x21f   :  { %v795_v7 = vrot.slane %v794_v58, 1  ;;  %v823_v9 = vrot.slane %v822_v59, 1  ;;  %v787_v12 = vadd.f32 %v786_v61, %v785_v51  ;;  %v877_v13 = vrot.slane %v876_v60, 2  ;;  %v604_v51 = vpop.f32.mrf.mxu1 }
 0x220   :  { %v840_v16 = vrot.slane %v839_v1, 4  ;;  %v815_v17 = vadd.f32 %v814_v62, %v813_v52  ;;  %v847_v18 = vrot.slane %v846_v4, 4  ;;  %v610_v15 = vadd.f32 %v9367_v5, %v11065_v10 }
 0x221   :  { %v499_v20 = vadd.f32 %v11054_v0, %v498_v8  ;;  %v870_v21 = vrot.slane %v869_v63, 2  ;;  %v11100_v22 = vadd.f32 %v795_v7, %v794_v58  ;;  %v11102_v25 = vadd.f32 %v823_v9, %v822_v59 }
 0x222   :  { %v788_v26 = vrot.slane %v787_v12, 1  ;;  %v11105_v28 = vmul.f32 0.17677669, %v11057_v2  ;;  %v878_v29 = vadd.f32 %v877_v13, %v876_v60  ;;  %v841_v30 = vadd.f32 %v840_v16, %v839_v1 }
 0x223   :  { %v816_v31 = vrot.slane %v815_v17, 1  ;;  %v848_v33 = vadd.f32 %v847_v18, %v846_v4  ;;  %v754_v34 = vmul.f32 %v610_v15, %v11070_v14  ;;  %v758_v35 = vmul.f32 %v610_v15, %v11067_v11 }
 0x224   :  { %v11109_v3 = vmul.f32 0.17677669, %v489_v19  ;;  %v11112_v0 = vmul.f32 0.17677669, %v11062_v6  ;;  %v11114_v8 = vmul.f32 0.17677669, %v499_v20  ;;  %v871_v36 = vadd.f32 %v870_v21, %v869_v63 }
 0x225   :  { %v11118_v2 = vsel %vm377_vm0, %v11100_v22, -inf  ;;  %v11122_v37 = vsel %vm377_vm0, %v11102_v25, -inf  ;;  %v11124_v38 = vadd.f32 %v788_v26, %v787_v12  ;;  %v762_v40 = vmul.f32 %v610_v15, %v11090_v47 }
 0x226   :  { %v879_v41 = vrot.slane %v878_v29, 1  ;;  %v842_v44 = vrot.slane %v841_v30, 2  ;;  %v766_v6 = vmul.f32 %v610_v15, %v11079_v27  ;;  %v804_v45 = vsel %vm377_vm0, %v754_v34, 0.0 }
 0x227   :  { %v11129_v46 = vadd.f32 %v816_v31, %v815_v17  ;;  %v849_v48 = vrot.slane %v848_v33, 2  ;;  %v805_v49 = vrot.slane %v804_v45, 4  ;;  %v832_v50 = vsel %vm377_vm0, %v758_v35, 0.0 }
 0x228   :  { %v872_v52 = vrot.slane %v871_v36, 1  ;;  %v833_v53 = vrot.slane %v832_v50, 4  ;;  %v860_v54 = vsel %vm377_vm0, %v762_v40, 0.0  ;;  %v888_v57 = vsel %vm377_vm0, %v766_v6, 0.0 }
 0x229   :  { %v11136_v58 = vsel %vm377_vm0, %v11124_v38, -inf  ;;  %v806_v59 = vadd.f32 %v805_v49, %v804_v45  ;;  %v861_v60 = vrot.slane %v860_v54, 4  ;;  %v889_v61 = vrot.slane %v888_v57, 4 }
 0x22a   :  { %v11138_v62 = vadd.f32 %v879_v41, %v878_v29  ;;  %v843_v63 = vadd.f32 %v842_v44, %v841_v30  ;;  %v834_v1 = vadd.f32 %v833_v53, %v832_v50  ;;  %v605_v4 = vadd.f32 %v11065_v10, %v604_v51 }
 0x22b   :  { %v850_v5 = vadd.f32 %v849_v48, %v848_v33  ;;  %v807_v7 = vrot.slane %v806_v59, 2  ;;  %v862_v9 = vadd.f32 %v861_v60, %v860_v54  ;;  %v890_v12 = vadd.f32 %v889_v61, %v888_v57  ;;  %v9370_v57 = vpop.f32.mrf.mxu1 }
 0x22c   :  { %v11141_v13 = vadd.f32 %v872_v52, %v871_v36  ;;  %v1009_v16 = vmax.f32 %v11136_v58, %v11118_v2  ;;  %v753_v17 = vmul.f32 %v605_v4, %v11070_v14  ;;  %v757_v18 = vmul.f32 %v605_v4, %v11067_v11 }
 0x22d   :  { %v835_v15 = vrot.slane %v834_v1, 2  ;;  %v863_v19 = vrot.slane %v862_v9, 2  ;;  %v891_v20 = vrot.slane %v890_v12, 2  ;;  %v761_v21 = vmul.f32 %v605_v4, %v11090_v47 }
 0x22e   :  { %v11150_v26 = vsel %vm377_vm0, %v11129_v46, -inf  ;;  %v765_v29 = vmul.f32 %v605_v4, %v11079_v27  ;;  %v797_v30 = vsel %vm377_vm0, %v753_v17, 0.0  ;;  %v825_v31 = vsel %vm377_vm0, %v757_v18, 0.0 }
 0x22f   :  { %v844_v33 = vrot.slane %v843_v63, 1  ;;  %v851_v34 = vrot.slane %v850_v5, 1  ;;  %v808_v14 = vadd.f32 %v807_v7, %v806_v59  ;;  %v798_v35 = vrot.slane %v797_v30, 4 }
 0x230   :  { %v11157_v11 = vsel %vm377_vm0, %v11138_v62, -inf  ;;  %v826_v36 = vrot.slane %v825_v31, 4  ;;  %v853_v47 = vsel %vm377_vm0, %v761_v21, 0.0  ;;  %v881_v40 = vsel %vm377_vm0, %v765_v29, 0.0 }
 0x231   :  { %v836_v41 = vadd.f32 %v835_v15, %v834_v1  ;;  %v864_v44 = vadd.f32 %v863_v19, %v862_v9  ;;  %v892_v27 = vadd.f32 %v891_v20, %v890_v12  ;;  %v799_v6 = vadd.f32 %v798_v35, %v797_v30 }
 0x232   :  { %v1016_v45 = vmax.f32 %v11150_v26, %v11122_v37  ;;  %v827_v48 = vadd.f32 %v826_v36, %v825_v31  ;;  %v854_v49 = vrot.slane %v853_v47, 4  ;;  %v882_v50 = vrot.slane %v881_v40, 4 }
 0x233   :  { %v11163_v51 = vadd.f32 %v844_v33, %v843_v63  ;;  %v11165_v52 = vadd.f32 %v851_v34, %v850_v5  ;;  %v809_v53 = vrot.slane %v808_v14, 1  ;;  %v800_v54 = vrot.slane %v799_v6, 2 }
 0x234   :  { %v1028_v59 = vsel %vm377_vm0, %v11141_v13, -inf  ;;  %v828_v60 = vrot.slane %v827_v48, 2  ;;  %v855_v61 = vadd.f32 %v854_v49, %v853_v47  ;;  %v883_v1 = vadd.f32 %v882_v50, %v881_v40 }
 0x235   :  { %v837_v4 = vrot.slane %v836_v41, 1  ;;  %v865_v7 = vrot.slane %v864_v44, 1  ;;  %v893_v9 = vrot.slane %v892_v27, 1  ;;  %v801_v37 = vadd.f32 %v800_v54, %v799_v6 }
 0x236   :  { %v829_v12 = vadd.f32 %v828_v60, %v827_v48  ;;  %v856_v17 = vrot.slane %v855_v61, 2  ;;  %v884_v18 = vrot.slane %v883_v1, 2  ;;  %v620_v63 = vadd.f32 %v9370_v57, %v11065_v10 }
 0x237   :  { %v1021_v5 = vsel %vm377_vm0, %v11163_v51, -inf  ;;  %v1022_v15 = vsel %vm377_vm0, %v11165_v52, -inf  ;;  %v810_v19 = vadd.f32 %v809_v53, %v808_v14  ;;  %v802_v20 = vrot.slane %v801_v37, 1 }
 0x238   :  { %v830_v21 = vrot.slane %v829_v12, 1  ;;  %v857_v26 = vadd.f32 %v856_v17, %v855_v61  ;;  %v885_v29 = vadd.f32 %v884_v18, %v883_v1  ;;  %v768_v30 = vmul.f32 %v620_v63, %v11109_v3 }
 0x239   :  { %v838_v31 = vadd.f32 %v837_v4, %v836_v41  ;;  %v866_v33 = vadd.f32 %v865_v7, %v864_v44  ;;  %v11175_v34 = vadd.f32 %v893_v9, %v892_v27  ;;  %v803_v35 = vadd.f32 %v802_v20, %v801_v37 }
 0x23a   :  { %v1030_v36 = vmax.f32 %v1028_v59, %v11157_v11  ;;  %v831_v47 = vadd.f32 %v830_v21, %v829_v12  ;;  %v858_v40 = vrot.slane %v857_v26, 1  ;;  %v886_v6 = vrot.slane %v885_v29, 1 }
 0x23b   :  { %v1023_v48 = vmax.f32 %v1021_v5, %v1022_v15  ;;  %v1012_v49 = vsel %vm377_vm0, %v810_v19, -inf  ;;  %v1010_v14 = vsel %vm377_vm0, %v803_v35, -inf  ;;  %v902_v50 = vsel %vm377_vm0, %v768_v30, 0.0 }
 0x23c   :  { %v859_v53 = vadd.f32 %v858_v40, %v857_v26  ;;  %v887_v54 = vadd.f32 %v886_v6, %v885_v29  ;;  %v1011_v41 = vmax.f32 %v1009_v16, %v1010_v14  ;;  %v1017_v44 = vsel %vm377_vm0, %v831_v47, -inf }
 0x23d   :  { %v1019_v11 = vsel %vm377_vm0, %v838_v31, -inf  ;;  %v1026_v27 = vsel %vm377_vm0, %v866_v33, -inf  ;;  %v1033_v57 = vsel %vm377_vm0, %v11175_v34, -inf  ;;  %v1018_v59 = vmax.f32 %v1016_v45, %v1017_v44  ;;  %v11203_v44 = vpop.f32.mrf.mxu0 }
 0x23e   :  { %v1013_v60 = vmax.f32 %v1011_v41, %v1012_v49  ;;  %v1024_v61 = vsel %vm377_vm0, %v859_v53, -inf  ;;  %v1031_v1 = vsel %vm377_vm0, %v887_v54, -inf  ;;  %v772_v4 = vmul.f32 %v620_v63, %v11105_v28 }
 0x23f   :  { %v1020_v7 = vmax.f32 %v1018_v59, %v1019_v11  ;;  %v1025_v2 = vmax.f32 %v1023_v48, %v1024_v61  ;;  %v1032_v58 = vmax.f32 %v1030_v36, %v1031_v1  ;;  %v903_v16 = vrot.slane %v902_v50, 4 }
 0x240   :  { %v1064_v9 = vsub.f32 %v11100_v22, %v1013_v60  ;;  %v1065_v37 = vsub.f32 %v803_v35, %v1013_v60  ;;  %v1066_v12 = vsub.f32 %v810_v19, %v1013_v60  ;;  %v776_v17 = vmul.f32 %v620_v63, %v11114_v8 }
 0x241   :  { %v1027_v18 = vmax.f32 %v1025_v2, %v1026_v27  ;;  %v1034_v5 = vmax.f32 %v1032_v58, %v1033_v57  ;;  %v1068_v45 = vsub.f32 %v11102_v25, %v1020_v7  ;;  %v1069_v15 = vsub.f32 %v831_v47, %v1020_v7 }
 0x242   :  { %v1070_v20 = vsub.f32 %v838_v31, %v1020_v7  ;;  %v1097_v21 = vmul.f32 1.442695, %v1064_v9  ;;  %v1099_v26 = vmul.f32 1.442695, %v1065_v37  ;;  %v1101_v29 = vmul.f32 1.442695, %v1066_v12 }
 0x243   :  { %v1072_v30 = vsub.f32 %v11165_v52, %v1027_v18  ;;  %v1073_v40 = vsub.f32 %v859_v53, %v1027_v18  ;;  %v780_v36 = vmul.f32 %v620_v63, %v11112_v0  ;;  %v904_v6 = vadd.f32 %v903_v16, %v902_v50  ;;  %v614_v52 = vpop.f32.mrf.mxu1 }
 0x244   :  { %v1074_v22 = vsub.f32 %v866_v33, %v1027_v18  ;;  %9983 = vpow2.f32 %v1097_v21  ;;  %v1105_v19 = vmul.f32 1.442695, %v1068_v45  ;;  %v930_v35 = vsel %vm377_vm0, %v772_v4, 0.0 }
 0x245   :  { %v1076_v48 = vsub.f32 %v11138_v62, %v1034_v5  ;;  %9985 = vpow2.f32 %v1099_v26  ;;  %v1107_v25 = vmul.f32 1.442695, %v1069_v15  ;;  %v1109_v47 = vmul.f32 1.442695, %v1070_v20 }
 0x246   :  { %v1077_v31 = vsub.f32 %v887_v54, %v1034_v5  ;;  %9987 = vpow2.f32 %v1101_v29  ;;  %v1113_v49 = vmul.f32 1.442695, %v1072_v30  ;;  %v958_v14 = vsel %vm377_vm0, %v776_v17, 0.0 }
 0x247   :  { %v1078_v53 = vsub.f32 %v11175_v34, %v1034_v5  ;;  %9989 = vpow2.f32 %v1105_v19  ;;  %v1115_v63 = vmul.f32 1.442695, %v1073_v40  ;;  %v905_v33 = vrot.slane %v904_v6, 2 }
 0x248   :  { %9991 = vpow2.f32 %v1107_v25  ;;  %v1117_v50 = vmul.f32 1.442695, %v1074_v22  ;;  %v1063_v41 = vsub.f32 %v11124_v38, %v1013_v60  ;;  %v1067_v62 = vsub.f32 %v11129_v46, %v1020_v7  ;;  %v712_v7 = vpop.f32.mrf.mxu0 }
 0x249   :  { %9993 = vpow2.f32 %v1109_v47  ;;  %v1121_v54 = vmul.f32 1.442695, %v1076_v48  ;;  %v931_v11 = vrot.slane %v930_v35, 4  ;;  %v615_v27 = vadd.f32 %v11065_v10, %v614_v52  ;;  %v8664_v47 = vld [vmem:[%s14457_s16 + $0x68] sm:$0xff] }
 0x24a   :  { %9995 = vpow2.f32 %v1113_v49  ;;  %v1123_v57 = vmul.f32 1.442695, %v1077_v31  ;;  %v1071_v34 = vsub.f32 %v11163_v51, %v1027_v18  ;;  %v959_v59 = vrot.slane %v958_v14, 4  ;;  %v8666_v18 = vld [vmem:[%s14457_s16 + $0x78] sm:$0xff]  ;;  %v9387_v15 = vpop.f32.mrf.mxu0 }
 0x24b   :  { %9997 = vpow2.f32 %v1115_v63  ;;  %v1125_v61 = vmul.f32 1.442695, %v1078_v53  ;;  %v1075_v1 = vsub.f32 %v11141_v13, %v1034_v5  ;;  %v986_v38 = vsel %vm377_vm0, %v780_v36, 0.0  ;;  %9394 = vmatprep.subr.mxu1 %v8666_v18  ;;  %v8665_v36 = vld [vmem:[%s14457_s16 + $0x70] sm:$0xff] }
 0x24c   :  { %9999 = vpow2.f32 %v1117_v50  ;;  %v1095_v46 = vmul.f32 1.442695, %v1063_v41  ;;  %v1103_v60 = vmul.f32 1.442695, %v1067_v62  ;;  %v906_v4 = vadd.f32 %v905_v33, %v904_v6  ;;  %9395 = vmatpush3.msra.mxu1 %v8666_v18  ;;  %v722_v52 = vpop.f32.mrf.mxu0  ;;  %v8663_v62 = vld [vmem:[%s14457_s16 + $0x60] sm:$0xff] }
 0x24d   :  { %10001 = vpow2.f32 %v1121_v54  ;;  %v932_v2 = vadd.f32 %v931_v11, %v930_v35  ;;  %v767_v58 = vmul.f32 %v615_v27, %v11109_v3  ;;  %v771_v16 = vmul.f32 %v615_v27, %v11105_v28  ;;  %9396 = vmatprep.subr.mxu1 %v8665_v36  ;;  %v11229_v35 = vld [vmem:[#allocation7 + $0x2] ss:$0 sm:$0xff] }
 0x24e   :  { %10003 = vpow2.f32 %v1123_v57  ;;  %v1111_v51 = vmul.f32 1.442695, %v1071_v34  ;;  %v987_v9 = vrot.slane %v986_v38, 4  ;;  %v1119_v37 = vmul.f32 1.442695, %v1075_v1  ;;  %14467 = vst [vmem:[#allocation41_spill] sm:$0xff] %v11229_v35  ;;  %9397 = vmatpush3.msra.mxu1 %v8665_v36  ;;  %v9373_v34 = vpop.f32.mrf.mxu1 }
 0x24f   :  { %10005 = vpow2.f32 %v1125_v61  ;;  %v1315_v12 = vlaneseq  ;;  %v907_v13 = vrot.slane %v906_v4, 1  ;;  %v960_v17 = vadd.f32 %v959_v59, %v958_v14  ;;  %9398 = vmatprep.subr.mxu1 %v8664_v47 }
 0x250   :  { %10007 = vpow2.f32 %v1095_v46  ;;  %v933_v45 = vrot.slane %v932_v2, 2  ;;  %v895_v20 = vsel %vm377_vm0, %v767_v58, 0.0  ;;  %v923_v21 = vsel %vm377_vm0, %v771_v16, 0.0  ;;  %9399 = vmatpush3.msra.mxu1 %v8664_v47 }
 0x251   :  { %v11214_v5 = vpop.eup %9983  ;;  %10009 = vpow2.f32 %v1103_v60  ;;  %v988_v29 = vadd.f32 %v987_v9, %v986_v38  ;;  %v775_v30 = vmul.f32 %v615_v27, %v11114_v8  ;;  %v779_v40 = vmul.f32 %v615_v27, %v11112_v0  ;;  %9400 = vmatprep.subr.mxu1 %v8663_v62 }
 0x252   :  { %v11218_v26 = vpop.eup %9985  ;;  %10011 = vpow2.f32 %v1111_v51  ;;  %v1316_v22 = vshrl.u32 %v1315_v12, 7  ;;  %v896_v48 = vrot.slane %v895_v20, 4  ;;  %v924_v25 = vrot.slane %v923_v21, 4  ;;  %9401 = vmatpush3.msra.mxu1 %v8663_v62 }
 0x253   :  { %v11225_v6 = vpop.eup %9987  ;;  %10013 = vpow2.f32 %v1119_v37  ;;  %v11236_v49 = vadd.f32 %v933_v45, %v932_v2  ;;  %v961_v14 = vrot.slane %v960_v17, 2  ;;  %v11240_v63 = vadd.f32 %v907_v13, %v906_v4 }
 0x254   :  { %v11227_v19 = vpop.eup %9989  ;;  %v989_v33 = vrot.slane %v988_v29, 2  ;;  %v951_v50 = vsel %vm377_vm0, %v775_v30, 0.0  ;;  %v979_v41 = vsel %vm377_vm0, %v779_v40, 0.0  ;;  %v11251_v11 = vadd.f32 %v11203_v44, %v11229_v35 }
 0x255   :  { %v11234_v31 = vpop.eup %9991  ;;  %v11254_v27 = vadd.f32 %v11229_v35, %v712_v7  ;;  %v11256_v57 = vsub.s32 0, %v1316_v22  ;;  %v11261_v61 = vadd.f32 %v9387_v15, %v11229_v35  ;;  %v897_v1 = vadd.f32 %v896_v48, %v895_v20 }
 0x256   :  { %v11238_v53 = vpop.eup %9993  ;;  %v11263_v38 = vadd.f32 %v924_v25, %v923_v21  ;;  %v11266_v46 = vadd.f32 %v11229_v35, %v722_v52  ;;  %v11271_v4 = vadd.f32 %v961_v14, %v960_v17  ;;  %v952_v7 = vrot.slane %v951_v50, 4 }
 0x257   :  { %v11247_v54 = vpop.eup %9995  ;;  %v980_v2 = vrot.slane %v979_v41, 4  ;;  %v1191_v16 = vrot.slane %v11214_v5, 7  ;;  %v11276_v51 = vadd.f32 %v989_v33, %v988_v29  ;;  %v11280_v9 = vsel %vm377_vm0, %v11240_v63, -inf }
 0x258   :  { %14468 = vst [vmem:[#allocation42_spill] sm:$0xff] %v11247_v54  ;;  %v11258_v59 = vpop.eup %9997  ;;  %v630_v37 = vadd.f32 %v9373_v34, %v11065_v10  ;;  %v1194_v13 = vrot.slane %v11218_v26, 6  ;;  %v1197_v17 = vrot.slane %v11225_v6, 5  ;;  %v1200_v18 = vrot.slane %v11227_v19, 7 }
 0x259   :  { %v11268_v44 = vpop.eup %9999  ;;  %v1202_v45 = vrot.slane %v11234_v31, 6  ;;  %v1204_v20 = vrot.slane %v11238_v53, 5  ;;  %v1206_v21 = vrot.slane %v11247_v54, 7  ;;  %v898_v29 = vrot.slane %v897_v1, 2 }
 0x25a   :  { %v11273_v58 = vpop.eup %10001  ;;  %v926_v30 = vrot.slane %v11263_v38, 2  ;;  %v1208_v36 = vrot.slane %v11258_v59, 6  ;;  %v953_v48 = vadd.f32 %v952_v7, %v951_v50  ;;  %v11298_v25 = vadd.f32 %v980_v2, %v979_v41 }
 0x25b   :  { %14469 = vst [vmem:[#allocation43_spill] sm:$0xff] %v11273_v58  ;;  %v11283_v12 = vpop.eup %10003  ;;  %v1212_v22 = vrot.slane %v11273_v58, 7  ;;  %v770_v33 = vmul.f32 %v630_v37, %v11109_v3  ;;  %v774_v62 = vmul.f32 %v630_v37, %v11105_v28  ;;  %v1210_v60 = vrot.slane %v11268_v44, 5 }
 0x25c   :  { %v11289_v15 = vpop.eup %10005  ;;  %v1214_v14 = vrot.slane %v11283_v12, 6  ;;  %v778_v41 = vmul.f32 %v630_v37, %v11114_v8 }
 0x25d   :  { %v11294_v40 = vpop.eup %10007  ;;  %v1216_v2 = vrot.slane %v11289_v15, 5 }
 0x25e   :  { %v11300_v47 = vpop.eup %10009  ;;  %v1193_v52 = vsel %vm1192_vm1, %v1191_v16, %v11294_v40 }
 0x25f   :  { %v11307_v34 = vpop.eup %10011  ;;  %v1196_v39 = vsel %vm1195_vm2, %v1194_v13, %v1193_v52  ;;  %v1201_v50 = vsel %vm1192_vm1, %v1200_v18, %v11300_v47 }
 0x260   :  { %v11314_v7 = vpop.eup %10013  ;;  %v1199_v16 = vsel %vm1198_vm3, %v1197_v17, %v1196_v39  ;;  %v1203_v24 = vsel %vm1195_vm2, %v1202_v45, %v1201_v50  ;;  %v1207_v32 = vsel %vm1192_vm1, %v1206_v21, %v11307_v34 }
 0x261   :  { %v1205_v23 = vsel %vm1198_vm3, %v1204_v20, %v1203_v24  ;;  %v1209_v13 = vsel %vm1195_vm2, %v1208_v36, %v1207_v32  ;;  %v1213_v18 = vsel %vm1192_vm1, %v1212_v22, %v11314_v7  ;;  %v1251_v52 = vsel %vm1250_vm4, %v1199_v16, 0.0 }
 0x262   :  { %v1211_v55 = vsel %vm1198_vm3, %v1210_v60, %v1209_v13  ;;  %v1215_v56 = vsel %vm1195_vm2, %v1214_v14, %v1213_v18  ;;  %v1252_v42 = vrot.slane %v1251_v52, 4  ;;  %v1258_v39 = vsel %vm1250_vm4, %v1205_v23, 0.0 }
 0x263   :  { %v1217_v17 = vsel %vm1198_vm3, %v1216_v2, %v1215_v56  ;;  %v1259_v45 = vrot.slane %v1258_v39, 4  ;;  %v1265_v21 = vsel %vm1250_vm4, %v1211_v55, 0.0  ;;  %v916_v24 = vsel %vm377_vm0, %v770_v33, 0.0 }
 0x264   :  { %v1253_v32 = vadd.f32 %v1252_v42, %v1251_v52  ;;  %v1266_v20 = vrot.slane %v1265_v21, 4  ;;  %v1272_v36 = vsel %vm1250_vm4, %v1217_v17, 0.0  ;;  %v944_v22 = vsel %vm377_vm0, %v774_v62, 0.0  ;;  %v8679_v42 = vld [vmem:[%s14457_s16 + $0x98] sm:$0xff]  ;;  %v8678_v62 = vld [vmem:[%s14457_s16 + $0x90] sm:$0xff] }
 0x265   :  { %v1260_v50 = vadd.f32 %v1259_v45, %v1258_v39  ;;  %v1273_v60 = vrot.slane %v1272_v36, 4  ;;  %v899_v16 = vadd.f32 %v898_v29, %v897_v1  ;;  %v782_v14 = vmul.f32 %v630_v37, %v11112_v0  ;;  %9414 = vmatprep.subr.mxu0 %v8679_v42 }
 0x266   :  { %v1254_v13 = vrot.slane %v1253_v32, 2  ;;  %v1267_v23 = vadd.f32 %v1266_v20, %v1265_v21  ;;  %v954_v18 = vrot.slane %v953_v48, 2  ;;  %v982_v56 = vrot.slane %v11298_v25, 2  ;;  %9415 = vmatpush3.msra.mxu0 %v8679_v42  ;;  %v8677_v20 = vld [vmem:[%s14457_s16 + $0x88] sm:$0xff] }
 0x267   :  { %v1261_v2 = vrot.slane %v1260_v50, 2  ;;  %v1274_v55 = vadd.f32 %v1273_v60, %v1272_v36  ;;  %v917_v43 = vrot.slane %v916_v24, 4  ;;  %v945_v33 = vrot.slane %v944_v22, 4  ;;  %9416 = vmatprep.subr.mxu0 %v8678_v62 }
 0x268   :  { %v1255_v1 = vadd.f32 %v1254_v13, %v1253_v32  ;;  %v1268_v29 = vrot.slane %v1267_v23, 2  ;;  %v927_v37 = vadd.f32 %v926_v30, %v11263_v38  ;;  %v972_v52 = vsel %vm377_vm0, %v778_v41, 0.0  ;;  %9417 = vmatpush3.msra.mxu0 %v8678_v62 }
 0x269   :  { %v1262_v39 = vadd.f32 %v1261_v2, %v1260_v50  ;;  %v1275_v17 = vrot.slane %v1274_v55, 2  ;;  %v918_v45 = vadd.f32 %v917_v43, %v916_v24  ;;  %v1000_v21 = vsel %vm377_vm0, %v782_v14, 0.0  ;;  %9418 = vmatprep.subr.mxu0 %v8677_v20 }
 0x26a   :  { %v1256_v36 = vrot.slane %v1255_v1, 1  ;;  %v1269_v60 = vadd.f32 %v1268_v29, %v1267_v23  ;;  %v955_v35 = vadd.f32 %v954_v18, %v953_v48  ;;  %v973_v32 = vrot.slane %v972_v52, 4  ;;  %9419 = vmatpush3.msra.mxu0 %v8677_v20  ;;  %v624_v29 = vpop.f32.mrf.mxu1 }
 0x26b   :  { %v1263_v13 = vrot.slane %v1262_v39, 1  ;;  %v1276_v38 = vadd.f32 %v1275_v17, %v1274_v55  ;;  %v983_v30 = vadd.f32 %v982_v56, %v11298_v25  ;;  %v946_v41 = vadd.f32 %v945_v33, %v944_v22 }
 0x26c   :  { %v1257_v50 = vadd.f32 %v1256_v36, %v1255_v1  ;;  %v1270_v43 = vrot.slane %v1269_v60, 1  ;;  %v919_v24 = vrot.slane %v918_v45, 2  ;;  %v1001_v14 = vrot.slane %v1000_v21, 4 }
 0x26d   :  { %v1264_v2 = vadd.f32 %v1263_v13, %v1262_v39  ;;  %v1277_v42 = vrot.slane %v1276_v38, 1  ;;  %v900_v58 = vrot.slane %v899_v16, 1  ;;  %v974_v54 = vadd.f32 %v973_v32, %v972_v52 }
 0x26e   :  { %v1271_v23 = vadd.f32 %v1270_v43, %v1269_v60  ;;  %10015 = vrcp.f32 %v1257_v50  ;;  %v928_v48 = vrot.slane %v927_v37, 1  ;;  %v956_v18 = vrot.slane %v955_v35, 1 }
 0x26f   :  { %v1278_v55 = vadd.f32 %v1277_v42, %v1276_v38  ;;  %10017 = vrcp.f32 %v1264_v2  ;;  %v984_v25 = vrot.slane %v983_v30, 1  ;;  %v947_v22 = vrot.slane %v946_v41, 2 }
 0x270   :  { %10019 = vrcp.f32 %v1271_v23  ;;  %v963_v56 = vrot.slane %v11271_v4, 1  ;;  %v920_v33 = vadd.f32 %v919_v24, %v918_v45  ;;  %v1002_v62 = vadd.f32 %v1001_v14, %v1000_v21 }
 0x271   :  { %10021 = vrcp.f32 %v1278_v55  ;;  %v14470_v1 = vrot.slane %v11236_v49, 1  ;;  %v975_v39 = vrot.slane %v974_v54, 2  ;;  %v625_v17 = vadd.f32 %v11065_v10, %v624_v29 }
 0x272   :  { %v991_v20 = vrot.slane %v11276_v51, 1  ;;  %v11357_v36 = vadd.f32 %v900_v58, %v899_v16  ;;  %v11359_v60 = vadd.f32 %v928_v48, %v927_v37  ;;  %v11361_v32 = vadd.f32 %v956_v18, %v955_v35 }
 0x273   :  { %v11353_v52 = vadd.f32 %v14470_v1, %v11236_v49  ;;  %v11363_v13 = vadd.f32 %v984_v25, %v983_v30  ;;  %v948_v45 = vadd.f32 %v947_v22, %v946_v41  ;;  %v769_v21 = vmul.f32 %v625_v17, %v11109_v3 }
 0x274   :  { %v773_v38 = vmul.f32 %v625_v17, %v11105_v28  ;;  %v921_v49 = vrot.slane %v920_v33, 1  ;;  %v1003_v50 = vrot.slane %v1002_v62, 2  ;;  %v777_v43 = vmul.f32 %v625_v17, %v11114_v8 }
 0x275   :  { %v781_v10 = vmul.f32 %v625_v17, %v11112_v0  ;;  %v11370_v58 = vadd.f32 %v963_v56, %v11271_v4  ;;  %v976_v16 = vadd.f32 %v975_v39, %v974_v54  ;;  %v909_v35 = vsel %vm377_vm0, %v769_v21, 0.0 }
 0x276   :  { %v937_v37 = vsel %vm377_vm0, %v773_v38, 0.0  ;;  %v11375_v30 = vadd.f32 %v991_v20, %v11276_v51  ;;  %v11379_v28 = vsel %vm377_vm0, %v11357_v36, -inf  ;;  %v910_v3 = vrot.slane %v909_v35, 4 }
 0x277   :  { %v938_v41 = vrot.slane %v937_v37, 4  ;;  %v11383_v0 = vsel %vm377_vm0, %v11359_v60, -inf  ;;  %v11387_v8 = vsel %vm377_vm0, %v11361_v32, -inf  ;;  %v965_v54 = vsel %vm377_vm0, %v777_v43, 0.0 }
 0x278   :  { %v993_v4 = vsel %vm377_vm0, %v781_v10, 0.0  ;;  %v11393_v51 = vsel %vm377_vm0, %v11363_v13, -inf  ;;  %v11395_v24 = vadd.f32 %v921_v49, %v920_v33  ;;  %v949_v14 = vrot.slane %v948_v45, 1 }
 0x279   :  { %v1004_v2 = vadd.f32 %v1003_v50, %v1002_v62  ;;  %v11399_v42 = vsel %vm377_vm0, %v11353_v52, -inf  ;;  %v977_v23 = vrot.slane %v976_v16, 1  ;;  %v911_v48 = vadd.f32 %v910_v3, %v909_v35 }
 0x27a   :  { %v939_v18 = vadd.f32 %v938_v41, %v937_v37  ;;  %v11403_v29 = vsel %vm377_vm0, %v11370_v58, -inf  ;;  %v11407_v55 = vsel %vm377_vm0, %v11375_v30, -inf  ;;  %v966_v25 = vrot.slane %v965_v54, 4 }
 0x27b   :  { %v994_v22 = vrot.slane %v993_v4, 4  ;;  %v10016_v56 = vpop.eup %10015  ;;  %v11418_v21 = vadd.f32 %v949_v14, %v948_v45  ;;  %v1005_v38 = vrot.slane %v1004_v2, 1  ;;  %v11422_v49 = vsel %vm377_vm0, %v11395_v24, -inf }
 0x27c   :  { %v10018_v17 = vpop.eup %10017  ;;  %v1318_v20 = vrot.slane %v10016_v56, %v11256_v57  ;;  %v11425_v10 = vadd.f32 %v977_v23, %v976_v16  ;;  %v912_v35 = vrot.slane %v911_v48, 2  ;;  %v940_v37 = vrot.slane %v939_v18, 2 }
 0x27d   :  { %v10020_v50 = vpop.eup %10019  ;;  %v1322_v43 = vrot.slane %v10018_v17, %v11256_v57  ;;  %v967_v45 = vadd.f32 %v966_v25, %v965_v54  ;;  %v995_v14 = vadd.f32 %v994_v22, %v993_v4 }
 0x27e   :  { %v10022_v3 = vpop.eup %10021  ;;  %v11428_v41 = vrot.slane %v10020_v50, %v11256_v57  ;;  %v1347_v56 = vmul.f32 %v11294_v40, %v1318_v20  ;;  %v1350_v16 = vmul.f32 %v11225_v6, %v1318_v20  ;;  %v11440_v50 = vadd.f32 %v1005_v38, %v1004_v2 }
 0x27f   :  { %v11432_v39 = vrot.slane %v10022_v3, %v11256_v57  ;;  %v1351_v1 = vmul.f32 %v11300_v47, %v1322_v43  ;;  %v1352_v62 = vmul.f32 %v11227_v19, %v1322_v43  ;;  %v1354_v17 = vmul.f32 %v11238_v53, %v1322_v43 }
 0x280   :  { %v1355_v23 = vmul.f32 %v11307_v34, %v11428_v41  ;;  %v1047_v40 = vsel %vm377_vm0, %v11418_v21, -inf  ;;  %v1382_v4 = vrot.slane %v1347_v56, %v11256_v57  ;;  %v11450_v6 = vmul.f32 %v11268_v44, %v11428_v41 }
 0x281   :  { %v1359_v54 = vmul.f32 %v11314_v7, %v11432_v39  ;;  %v1386_v47 = vrot.slane %v1351_v1, %v11256_v57  ;;  %v1426_v53 = vrot.slane %v1352_v62, %v11256_v57  ;;  %v1054_v34 = vsel %vm377_vm0, %v11425_v10, -inf }
 0x282   :  { %14471 = vst [vmem:[#allocation44_spill] sm:$0xff] %v11450_v6  ;;  %v1390_v19 = vrot.slane %v1355_v23, %v11256_v57  ;;  %v913_v2 = vadd.f32 %v912_v35, %v911_v48  ;;  %v1518_v25 = vrot.slane %v1350_v16, %v11256_v57  ;;  %v941_v22 = vadd.f32 %v940_v37, %v939_v18 }
 0x283   :  { %v968_v7 = vrot.slane %v967_v45, 2  ;;  %v996_v38 = vrot.slane %v995_v14, 2  ;;  %v11459_v1 = vmul.f32 %v11289_v15, %v11432_v39  ;;  %v1522_v44 = vrot.slane %v1354_v17, %v11256_v57 }
 0x284   :  { %v1349_v3 = vmul.f32 %v11218_v26, %v1318_v20  ;;  %v1061_v62 = vsel %vm377_vm0, %v11440_v50, -inf  ;;  %v1394_v56 = vrot.slane %v1359_v54, %v11256_v57  ;;  %v1411_v48 = vmul.f32 %v1382_v4, %v11254_v27 }
 0x285   :  { %v1412_v35 = vmul.f32 %v1386_v47, %v11254_v27  ;;  %v11471_v37 = vmul.f32 %v1390_v19, %v11254_v27  ;;  %v1452_v15 = vmul.f32 %v1426_v53, %v11251_v11  ;;  %v1353_v16 = vmul.f32 %v11234_v31, %v1322_v43 }
 0x286   :  { %v914_v26 = vrot.slane %v913_v2, 1  ;;  %v11476_v23 = vmul.f32 %v1518_v25, %v11261_v61  ;;  %v942_v17 = vrot.slane %v941_v22, 1  ;;  %v969_v54 = vadd.f32 %v968_v7, %v967_v45 }
 0x287   :  { %v997_v33 = vadd.f32 %v996_v38, %v995_v14  ;;  %v1548_v4 = vmul.f32 %v1522_v44, %v11261_v61  ;;  %v1357_v47 = vmul.f32 %v11258_v59, %v11428_v41  ;;  %v11483_v19 = vmul.f32 %v11283_v12, %v11432_v39 }
 0x288   :  { %v915_v18 = vadd.f32 %v914_v26, %v913_v2  ;;  %v1470_v53 = vrot.slane %v1349_v3, %v11256_v57  ;;  %v943_v31 = vadd.f32 %v942_v17, %v941_v22  ;;  %v970_v43 = vrot.slane %v969_v54, 1 }
 0x289   :  { %v998_v6 = vrot.slane %v997_v33, 1  ;;  %v11487_v25 = vmul.f32 %v1394_v56, %v11254_v27  ;;  %v1474_v45 = vrot.slane %v1353_v16, %v11256_v57  ;;  %v1348_v7 = vmul.f32 %v11214_v5, %v1318_v20 }
 0x28a   :  { %v1038_v14 = vsel %vm377_vm0, %v915_v18, -inf  ;;  %v1460_v59 = vadd.f32 %v1452_v15, %v1412_v35  ;;  %v971_v38 = vadd.f32 %v970_v43, %v969_v54  ;;  %v14472_v12 = vmax.f32 %v11379_v28, %v11280_v9 }
 0x28b   :  { %v999_v44 = vadd.f32 %v998_v6, %v997_v33  ;;  %v1478_v22 = vrot.slane %v1357_v47, %v11256_v57  ;;  %v1482_v3 = vrot.slane %v11483_v19, %v11256_v57  ;;  %v1045_v27 = vsel %vm377_vm0, %v943_v31, -inf }
 0x28c   :  { %v1039_v2 = vmax.f32 %v14472_v12, %v1038_v14  ;;  %v1422_v56 = vrot.slane %v1348_v7, %v11256_v57  ;;  %v1499_v16 = vmul.f32 %v1470_v53, %v11266_v46  ;;  %v14473_v33 = vmax.f32 %v11383_v0, %v11399_v42 }
 0x28d   :  { %v1052_v9 = vsel %vm377_vm0, %v971_v38, -inf  ;;  %v1500_v28 = vmul.f32 %v1474_v45, %v11266_v46  ;;  %v14474_v6 = vmax.f32 %v11387_v8, %v11403_v29  ;;  %v1059_v15 = vsel %vm377_vm0, %v999_v44, -inf  ;;  %v14476_v8 = vld [vmem:[#allocation42_spill] sm:$0xff] }
 0x28e   :  { %v1041_v5 = vmax.f32 %v1039_v2, %v11422_v49  ;;  %v1046_v20 = vmax.f32 %v14473_v33, %v1045_v27  ;;  %v1451_v26 = vmul.f32 %v1422_v56, %v11251_v11  ;;  %v14475_v49 = vmax.f32 %v11393_v51, %v11407_v55 }
 0x28f   :  { %v1053_v35 = vmax.f32 %v14474_v6, %v1052_v9  ;;  %v1501_v47 = vmul.f32 %v1478_v22, %v11266_v46  ;;  %v1356_v29 = vmul.f32 %v14476_v8, %v11428_v41  ;;  %v1508_v12 = vadd.f32 %v1500_v28, %v1460_v59 }
 0x290   :  { %v1048_v17 = vmax.f32 %v1046_v20, %v1047_v40  ;;  %v1060_v54 = vmax.f32 %v14475_v49, %v1059_v15  ;;  %v1080_v0 = vsub.f32 %v11240_v63, %v1041_v5  ;;  %v1081_v42 = vsub.f32 %v915_v18, %v1041_v5 }
 0x291   :  { %v1055_v53 = vmax.f32 %v1053_v35, %v1054_v34  ;;  %v1082_v43 = vsub.f32 %v11395_v24, %v1041_v5  ;;  %v1459_v63 = vadd.f32 %v1451_v26, %v1411_v48  ;;  %v14477_v48 = vld [vmem:[#allocation43_spill] sm:$0xff] }
 0x292   :  { %v1062_v45 = vmax.f32 %v1060_v54, %v1061_v62  ;;  %v1084_v14 = vsub.f32 %v11353_v52, %v1048_v17  ;;  %v1085_v7 = vsub.f32 %v943_v31, %v1048_v17  ;;  %v1086_v40 = vsub.f32 %v11418_v21, %v1048_v17 }
 0x293   :  { %v1088_v51 = vsub.f32 %v11370_v58, %v1055_v53  ;;  %v1129_v55 = vmul.f32 1.442695, %v1080_v0  ;;  %v1089_v18 = vsub.f32 %v971_v38, %v1055_v53  ;;  %v1090_v2 = vsub.f32 %v11425_v10, %v1055_v53 }
 0x294   :  { %v1092_v34 = vsub.f32 %v11375_v30, %v1062_v45  ;;  %v1131_v24 = vmul.f32 1.442695, %v1081_v42  ;;  %v1133_v22 = vmul.f32 1.442695, %v1082_v43  ;;  %v1137_v41 = vmul.f32 1.442695, %v1084_v14 }
 0x295   :  { %10023 = vpow2.f32 %v1129_v55  ;;  %v1139_v62 = vmul.f32 1.442695, %v1085_v7  ;;  %v1093_v27 = vsub.f32 %v999_v44, %v1062_v45  ;;  %v1141_v52 = vmul.f32 1.442695, %v1086_v40 }
 0x296   :  { %10025 = vpow2.f32 %v1131_v24  ;;  %v1430_v21 = vrot.slane %v1356_v29, %v11256_v57  ;;  %v1556_v31 = vadd.f32 %v1548_v4, %v1508_v12  ;;  %v1145_v58 = vmul.f32 1.442695, %v1088_v51 }
 0x297   :  { %10027 = vpow2.f32 %v1133_v22  ;;  %v1360_v59 = vmul.f32 %v14477_v48, %v11432_v39  ;;  %v1094_v10 = vsub.f32 %v11440_v50, %v1062_v45  ;;  %v1147_v30 = vmul.f32 1.442695, %v1089_v18 }
 0x298   :  { %10029 = vpow2.f32 %v1137_v41  ;;  %v1079_v38 = vsub.f32 %v11357_v36, %v1041_v5  ;;  %v1149_v56 = vmul.f32 1.442695, %v1090_v2  ;;  %v1153_v33 = vmul.f32 1.442695, %v1092_v34 }
 0x299   :  { %10031 = vpow2.f32 %v1139_v62  ;;  %v1507_v44 = vadd.f32 %v1499_v16, %v1459_v63  ;;  %v1155_v20 = vmul.f32 1.442695, %v1093_v27  ;;  %v1083_v9 = vsub.f32 %v11359_v60, %v1048_v17 }
 0x29a   :  { %10033 = vpow2.f32 %v1141_v52  ;;  %v1453_v4 = vmul.f32 %v1430_v21, %v11251_v11  ;;  %v1087_v28 = vsub.f32 %v11361_v32, %v1055_v53  ;;  %v1434_v50 = vrot.slane %v1360_v59, %v11256_v57  ;;  %v14478_v32 = vld [vmem:[#allocation44_spill] sm:$0xff] }
 0x29b   :  { %10035 = vpow2.f32 %v1145_v58  ;;  %v1555_v39 = vadd.f32 %v11476_v23, %v1507_v44  ;;  %v1157_v6 = vmul.f32 1.442695, %v1094_v10  ;;  %v1091_v36 = vsub.f32 %v11363_v13, %v1062_v45 }
 0x29c   :  { %10037 = vpow2.f32 %v1147_v30  ;;  %v1461_v5 = vadd.f32 %v1453_v4, %v11471_v37  ;;  %v1530_v16 = vrot.slane %v11459_v1, %v11256_v57  ;;  %v1127_v60 = vmul.f32 1.442695, %v1079_v38 }
 0x29d   :  { %10039 = vpow2.f32 %v1149_v56  ;;  %9402 = vmatprep.mubr.msk.f32.mxu1 %vm377_vm0, %v1555_v39  ;;  %v1454_v35 = vmul.f32 %v1434_v50, %v11251_v11  ;;  %v14479_v23 = vrot.slane %v14478_v32, %v11256_v57  ;;  %v1135_v26 = vmul.f32 1.442695, %v1083_v9 }
 0x29e   :  { %10041 = vpow2.f32 %v1153_v33  ;;  %9403 = vmatmul.mubr.msk.f32.vlgmr.msra.gmra.mxu1 %vm377_vm0, %v1556_v31  ;;  %v1509_v13 = vadd.f32 %v1501_v47, %v1461_v5  ;;  %v1502_v1 = vmul.f32 %v1482_v3, %v11266_v46  ;;  %v1143_v37 = vmul.f32 1.442695, %v1087_v28 }
 0x29f   :  { %v1549_v15 = vmul.f32 %v14479_v23, %v11261_v61  ;;  %10043 = vpow2.f32 %v1155_v20  ;;  %v1462_v17 = vadd.f32 %v1454_v35, %v11487_v25  ;;  %v1151_v11 = vmul.f32 1.442695, %v1091_v36 }
 0x2a0   :  { %10045 = vpow2.f32 %v1157_v6  ;;  %v1550_v54 = vmul.f32 %v1530_v16, %v11261_v61 }
 0x2a1   :  { %v1557_v49 = vadd.f32 %v1549_v15, %v1509_v13  ;;  %10047 = vpow2.f32 %v1127_v60  ;;  %v1510_v0 = vadd.f32 %v1502_v1, %v1462_v17 }
 0x2a2   :  { %v11552_v42 = vpop.eup %10023  ;;  %10049 = vpow2.f32 %v1135_v26 }
 0x2a3   :  { %9405 = vmatprep.mubr.msk.f32.mxu1 %vm377_vm0, %v1557_v49  ;;  %v11555_v47 = vpop.eup %10025  ;;  %10051 = vpow2.f32 %v1143_v37  ;;  %v1558_v46 = vadd.f32 %v1550_v54, %v1510_v0  ;;  %v1218_v45 = vrot.slane %v11552_v42, 7 }
 0x2a4   :  { %v11557_v19 = vpop.eup %10027  ;;  %10053 = vpow2.f32 %v1151_v11  ;;  %v1220_v7 = vrot.slane %v11555_v47, 6 }
 0x2a5   :  { %v11559_v25 = vpop.eup %10029  ;;  %9406 = vmatmul.mubr.msk.f32.gmra.mxu1 %vm377_vm0, %v1558_v46  ;;  %v1222_v24 = vrot.slane %v11557_v19, 5 }
 0x2a6   :  { %v11562_v3 = vpop.eup %10031  ;;  %v1224_v40 = vrot.slane %v11559_v25, 7 }
 0x2a7   :  { %v11564_v61 = vpop.eup %10033  ;;  %v1226_v51 = vrot.slane %v11562_v3, 6 }
 0x2a8   :  { %v11566_v53 = vpop.eup %10035  ;;  %v1228_v27 = vrot.slane %v11564_v61, 5 }
 0x2a9   :  { %v11568_v43 = vpop.eup %10037  ;;  %v1230_v55 = vrot.slane %v11566_v53, 7 }
 0x2aa   :  { %v11570_v8 = vpop.eup %10039  ;;  %v1232_v18 = vrot.slane %v11568_v43, 6 }
 0x2ab   :  { %v11572_v29 = vpop.eup %10041  ;;  %v1234_v52 = vrot.slane %v11570_v8, 5 }
 0x2ac   :  { %v11575_v14 = vpop.eup %10043  ;;  %v1236_v2 = vrot.slane %v11572_v29, 7 }
 0x2ad   :  { %v11579_v12 = vpop.eup %10045  ;;  %v1238_v22 = vrot.slane %v11575_v14, 6 }
 0x2ae   :  { %v11583_v63 = vpop.eup %10047  ;;  %v1240_v48 = vrot.slane %v11579_v12, 5 }
 0x2af   :  { %v11587_v34 = vpop.eup %10049  ;;  %v1219_v41 = vsel %vm1192_vm1, %v1218_v45, %v11583_v63 }
 0x2b0   :  { %v10052_v62 = vpop.eup %10051  ;;  %v1221_v21 = vsel %vm1195_vm2, %v1220_v7, %v1219_v41  ;;  %v1225_v31 = vsel %vm1192_vm1, %v1224_v40, %v11587_v34 }
 0x2b1   :  { %v10054_v58 = vpop.eup %10053  ;;  %v1223_v59 = vsel %vm1198_vm3, %v1222_v24, %v1221_v21  ;;  %v1227_v10 = vsel %vm1195_vm2, %v1226_v51, %v1225_v31  ;;  %v1231_v30 = vsel %vm1192_vm1, %v1230_v55, %v10052_v62 }
 0x2b2   :  { %v1229_v38 = vsel %vm1198_vm3, %v1228_v27, %v1227_v10  ;;  %v1233_v56 = vsel %vm1195_vm2, %v1232_v18, %v1231_v30  ;;  %v1237_v33 = vsel %vm1192_vm1, %v1236_v2, %v10054_v58  ;;  %v1279_v44 = vsel %vm1250_vm4, %v1223_v59, 0.0  ;;  %v9390_v18 = vpop.f32.mrf.mxu0 }
 0x2b3   :  { %v1235_v20 = vsel %vm1198_vm3, %v1234_v52, %v1233_v56  ;;  %v1239_v9 = vsel %vm1195_vm2, %v1238_v22, %v1237_v33  ;;  %v1280_v4 = vrot.slane %v1279_v44, 4  ;;  %v1286_v28 = vsel %vm1250_vm4, %v1229_v38, 0.0 }
 0x2b4   :  { %v1241_v39 = vsel %vm1198_vm3, %v1240_v48, %v1239_v9  ;;  %v1287_v50 = vrot.slane %v1286_v28, 4  ;;  %v1293_v6 = vsel %vm1250_vm4, %v1235_v20, 0.0  ;;  %v732_v2 = vpop.f32.mrf.mxu0 }
 0x2b5   :  { %v1281_v36 = vadd.f32 %v1280_v4, %v1279_v44  ;;  %v1294_v5 = vrot.slane %v1293_v6, 4  ;;  %v1300_v16 = vsel %vm1250_vm4, %v1241_v39, 0.0  ;;  %v14480_v4 = vld [vmem:[#allocation41_spill] sm:$0xff] }
 0x2b6   :  { %v1288_v60 = vadd.f32 %v1287_v50, %v1286_v28  ;;  %v1301_v35 = vrot.slane %v1300_v16, 4  ;;  %v9393_v21 = vpop.f32.mrf.mxu0  ;;  %v738_v28 = vadd.f32 %v9390_v18, %v14480_v4  ;;  %v733_v39 = vadd.f32 %v14480_v4, %v732_v2 }
 0x2b7   :  { %v1282_v32 = vrot.slane %v1281_v36, 2  ;;  %v1295_v23 = vadd.f32 %v1294_v5, %v1293_v6 }
 0x2b8   :  { %v1289_v15 = vrot.slane %v1288_v60, 2  ;;  %v1302_v26 = vadd.f32 %v1301_v35, %v1300_v16  ;;  %v742_v44 = vpop.f32.mrf.mxu0 }
 0x2b9   :  { %v1283_v13 = vadd.f32 %v1282_v32, %v1281_v36  ;;  %v1296_v1 = vrot.slane %v1295_v23, 2 }
 0x2ba   :  { %v1290_v37 = vadd.f32 %v1289_v15, %v1288_v60  ;;  %v1303_v17 = vrot.slane %v1302_v26, 2 }
 0x2bb   :  { %v1284_v11 = vrot.slane %v1283_v13, 1  ;;  %v1297_v49 = vadd.f32 %v1296_v1, %v1295_v23 }
 0x2bc   :  { %v1291_v54 = vrot.slane %v1290_v37, 1  ;;  %v1304_v0 = vadd.f32 %v1303_v17, %v1302_v26 }
 0x2bd   :  { %v1285_v46 = vadd.f32 %v1284_v11, %v1283_v13  ;;  %v1298_v45 = vrot.slane %v1297_v49, 1 }
 0x2be   :  { %v1292_v7 = vadd.f32 %v1291_v54, %v1290_v37  ;;  %v1305_v40 = vrot.slane %v1304_v0, 1 }
 0x2bf   :  { %v1299_v51 = vadd.f32 %v1298_v45, %v1297_v49  ;;  %10055 = vrcp.f32 %v1285_v46 }
 0x2c0   :  { %v1306_v55 = vadd.f32 %v1305_v40, %v1304_v0  ;;  %10057 = vrcp.f32 %v1292_v7 }
 0x2c1   :  { %10059 = vrcp.f32 %v1299_v51 }
 0x2c2   :  { %10061 = vrcp.f32 %v1306_v55 }
 0x2cc   :  { %v10056_v24 = vpop.eup %10055 }
 0x2cd   :  { %v10058_v22 = vpop.eup %10057  ;;  %v1334_v41 = vrot.slane %v10056_v24, %v11256_v57 }
 0x2ce   :  { %v10060_v27 = vpop.eup %10059  ;;  %v1338_v52 = vrot.slane %v10058_v22, %v11256_v57 }
 0x2cf   :  { %v10062_v31 = vpop.eup %10061  ;;  %v1342_v48 = vrot.slane %v10060_v27, %v11256_v57  ;;  %v1363_v59 = vmul.f32 %v11583_v63, %v1334_v41  ;;  %v1366_v33 = vmul.f32 %v11557_v19, %v1334_v41  ;;  %v748_v63 = vadd.f32 %v9393_v21, %v14480_v4 }
 0x2d0   :  { %v1346_v10 = vrot.slane %v10062_v31, %v11256_v57  ;;  %v1367_v30 = vmul.f32 %v11587_v34, %v1338_v52  ;;  %v1370_v6 = vmul.f32 %v11564_v61, %v1338_v52  ;;  %v743_v34 = vadd.f32 %v14480_v4, %v742_v44  ;;  %v8692_v44 = vld [vmem:[%s14457_s16 + $0xb8] sm:$0xff]  ;;  %v8667_v4 = vld [vmem:[#allocation7 + $0x3] ss:$0 sm:$0xff] }
 0x2d1   :  { %v1371_v38 = vmul.f32 %v10052_v62, %v1342_v48  ;;  %v1398_v20 = vrot.slane %v1363_v59, %v11256_v57  ;;  %v1365_v62 = vmul.f32 %v11555_v47, %v1334_v41  ;;  %v1369_v19 = vmul.f32 %v11562_v3, %v1338_v52  ;;  %9434 = vmatprep.subr.mxu1 %v8692_v44 }
 0x2d2   :  { %v1375_v56 = vmul.f32 %v10054_v58, %v1346_v10  ;;  %v1402_v9 = vrot.slane %v1367_v30, %v11256_v57  ;;  %v1374_v36 = vmul.f32 %v11570_v8, %v1342_v48  ;;  %v1534_v5 = vrot.slane %v1366_v33, %v11256_v57  ;;  %v8676_v30 = vld [vmem:[%s14457_s16 + $0x80] sm:$0xff]  ;;  %v2168_v33 = vld [vmem:[%s14481_s10 + $0x18] sm:$0xff]  ;;  %9435 = vmatpush3.msra.mxu1 %v8692_v44 }
 0x2d3   :  { %v1406_v50 = vrot.slane %v1371_v38, %v11256_v57  ;;  %v1373_v16 = vmul.f32 %v11568_v43, %v1342_v48  ;;  %v1415_v60 = vmul.f32 %v1398_v20, %v733_v39  ;;  %v1364_v32 = vmul.f32 %v11552_v42, %v1334_v41  ;;  %9420 = vmatprep.subr.mxu0 %v8676_v30  ;;  %v8691_v20 = vld [vmem:[%s14457_s16 + $0xb0] sm:$0xff] }
 0x2d4   :  { %v1410_v58 = vrot.slane %v1375_v56, %v11256_v57  ;;  %v1416_v35 = vmul.f32 %v1402_v9, %v733_v39  ;;  %v1368_v61 = vmul.f32 %v11559_v25, %v1338_v52  ;;  %v1377_v15 = vmul.f32 %v11575_v14, %v1346_v10  ;;  %9421 = vmatpush3.msra.mxu0 %v8676_v30  ;;  %v8690_v9 = vld [vmem:[%s14457_s16 + $0xa8] sm:$0xff]  ;;  %v14490_v30 = vld [vmem:[#allocation36_spill] sm:$0xff] }
 0x2d5   :  { %v1417_v23 = vmul.f32 %v1406_v50, %v733_v39  ;;  %v1372_v47 = vmul.f32 %v11566_v53, %v1342_v48  ;;  %v1376_v3 = vmul.f32 %v11572_v29, %v1346_v10  ;;  %v1486_v26 = vrot.slane %v1365_v62, %v11256_v57  ;;  %9454 = vmatprep.subr.mxu0 %v2168_v33 }
 0x2d6   :  { %v1490_v8 = vrot.slane %v1369_v19, %v11256_v57  ;;  %v1438_v13 = vrot.slane %v1364_v32, %v11256_v57  ;;  %v1442_v43 = vrot.slane %v1368_v61, %v11256_v57  ;;  %v1418_v1 = vmul.f32 %v1410_v58, %v733_v39  ;;  %9436 = vmatprep.subr.mxu1 %v8691_v20  ;;  %v2167_v19 = vld [vmem:[%s14481_s10 + $0x10] sm:$0xff]  ;;  %v8730_v61 = vld [vmem:[%s14481_s10 + $0x58] sm:$0xff] }
 0x2d7   :  { %v1494_v42 = vrot.slane %v1373_v16, %v11256_v57  ;;  %v1446_v25 = vrot.slane %v1372_v47, %v11256_v57  ;;  %v1450_v37 = vrot.slane %v1376_v3, %v11256_v57  ;;  %v1378_v14 = vmul.f32 %v11579_v12, %v1346_v10  ;;  %9437 = vmatpush3.msra.mxu1 %v8691_v20 }
 0x2d8   :  { %v1538_v53 = vrot.slane %v1370_v6, %v11256_v57  ;;  %v1455_v29 = vmul.f32 %v1438_v13, %v738_v28  ;;  %v1456_v17 = vmul.f32 %v1442_v43, %v738_v28  ;;  %v1542_v11 = vrot.slane %v1374_v36, %v11256_v57  ;;  %9438 = vmatprep.subr.mxu1 %v8690_v9 }
 0x2d9   :  { %v1498_v49 = vrot.slane %v1377_v15, %v11256_v57  ;;  %v1457_v54 = vmul.f32 %v1446_v25, %v738_v28  ;;  %v1458_v0 = vmul.f32 %v1450_v37, %v738_v28  ;;  %v1503_v46 = vmul.f32 %v1486_v26, %v743_v34  ;;  %9439 = vmatpush3.msra.mxu1 %v8690_v9  ;;  %v8689_v25 = vld [vmem:[%s14457_s16 + $0xa0] sm:$0xff] }
 0x2da   :  { %v1504_v45 = vmul.f32 %v1490_v8, %v743_v34  ;;  %v1463_v7 = vadd.f32 %v1455_v29, %v1415_v60  ;;  %v1464_v40 = vadd.f32 %v1456_v17, %v1416_v35  ;;  %v1505_v51 = vmul.f32 %v1494_v42, %v743_v34  ;;  %v2165_v60 = vld [vmem:[%s14481_s10] sm:$0xff]  ;;  %9440 = vmatprep.subr.mxu1 %v8689_v25  ;;  %v2150_v29 = vld [vmem:[%s14482_s1 + $0x8] sm:$0xff] }
 0x2db   :  { %v1465_v55 = vadd.f32 %v1457_v54, %v1417_v23  ;;  %v1466_v18 = vadd.f32 %v1458_v0, %v1418_v1  ;;  %v1551_v2 = vmul.f32 %v1534_v5, %v748_v63  ;;  %v1552_v24 = vmul.f32 %v1538_v53, %v748_v63  ;;  %v2166_v5 = vld [vmem:[%s14481_s10 + $0x8] sm:$0xff]  ;;  %v2149_v37 = vld [vmem:[%s14482_s1] sm:$0xff]  ;;  %9441 = vmatpush3.msra.mxu1 %v8689_v25 }
 0x2dc   :  { %v1511_v12 = vadd.f32 %v1503_v46, %v1463_v7  ;;  %v1512_v22 = vadd.f32 %v1504_v45, %v1464_v40  ;;  %v1546_v41 = vrot.slane %v1378_v14, %v11256_v57  ;;  %v1506_v27 = vmul.f32 %v1498_v49, %v743_v34  ;;  %v14483_v17 = vld [vmem:[#allocation38_spill] sm:$0xff]  ;;  %v14484_v54 = vld [vmem:[#allocation37_spill] sm:$0xff]  ;;  %v8717_v46 = vld [vmem:[%s14481_s10 + $0x38] sm:$0xff] }
 0x2dd   :  { %v1513_v52 = vadd.f32 %v1505_v51, %v1465_v55  ;;  %v1553_v21 = vmul.f32 %v1542_v11, %v748_v63  ;;  %v11698_v11 = vadd.f32 %v2149_v37, %v14483_v17  ;;  %v2151_v49 = vld [vmem:[%s14482_s1 + $0x10] sm:$0xff]  ;;  %v11707_v0 = vadd.f32 %v2150_v29, %v14484_v54  ;;  %v14485_v45 = vld [vmem:[#allocation40_spill] sm:$0xff]  ;;  %9474 = vmatprep.subr.mxu1 %v8717_v46 }
 0x2de   :  { %v1559_v31 = vadd.f32 %v1551_v2, %v1511_v12  ;;  %v1560_v48 = vadd.f32 %v1552_v24, %v1512_v22  ;;  %v1514_v59 = vadd.f32 %v1506_v27, %v1466_v18  ;;  %v1554_v38 = vmul.f32 %v1546_v41, %v748_v63  ;;  %v2152_v40 = vld [vmem:[%s14482_s1 + $0x18] sm:$0xff]  ;;  %v8729_v51 = vld [vmem:[%s14481_s10 + $0x50] sm:$0xff]  ;;  %v2153_v55 = vld [vmem:[%s14482_s1 + $0x20] sm:$0xff] }
 0x2df   :  { %v1561_v10 = vadd.f32 %v1553_v21, %v1513_v52  ;;  %v11713_v7 = vadd.f32 %v2151_v49, %v14485_v45  ;;  %v8728_v18 = vld [vmem:[%s14481_s10 + $0x48] sm:$0xff]  ;;  %v14486_v2 = vld [vmem:[#allocation39_spill] sm:$0xff]  ;;  %v8727_v27 = vld [vmem:[%s14481_s10 + $0x40] sm:$0xff] }
 0x2e0   :  { %9408 = vmatprep.mubr.msk.f32.mxu1 %vm377_vm0, %v1559_v31  ;;  %v1562_v56 = vadd.f32 %v1554_v38, %v1514_v59  ;;  %v11732_v24 = vadd.f32 %v2152_v40, %v14486_v2  ;;  %v14487_v12 = vld [vmem:[#allocation33_spill] sm:$0xff]  ;;  %v2155_v52 = vld [vmem:[%s14482_s1 + $0x30] sm:$0xff] }
 0x2e1   :  { %9409 = vmatmul.mubr.msk.f32.gmra.mxu1 %vm377_vm0, %v1560_v48  ;;  %v11735_v22 = vadd.f32 %v2153_v55, %v14487_v12  ;;  %v2154_v41 = vld [vmem:[%s14482_s1 + $0x28] sm:$0xff]  ;;  %v14488_v21 = vld [vmem:[#allocation35_spill] sm:$0xff] }
 0x2e2   :  { %9411 = vmatprep.mubr.msk.f32.mxu1 %vm377_vm0, %v1561_v10  ;;  %v11751_v31 = vadd.f32 %v2154_v41, %v14488_v21  ;;  %v14489_v48 = vld [vmem:[#allocation34_spill] sm:$0xff]  ;;  %v2156_v10 = vld [vmem:[%s14482_s1 + $0x38] sm:$0xff] }
 0x2e3   :  { %v11754_v59 = vadd.f32 %v2155_v52, %v14489_v48  ;;  %v2164_v38 = vadd.f32 %v2156_v10, %v14490_v30 }
 0x2e5   :  { %9412 = vmatmul.mubr.msk.f32.gmra.mxu1 %vm377_vm0, %v1562_v56  ;;  %v8680_v56 = vld [vmem:[#allocation7 + $0x4] ss:$0 sm:$0xff] }
 0x35e   :  { %v9404_v28 = vpop.f32.mrf.mxu1 }
 0x35f   :  { %v1672_v39 = vadd.f32 %v9404_v28, %v8667_v4 }
 0x360   :  { %v1666_v50 = vpop.f32.mrf.mxu1 }
 0x361   :  { %v1667_v63 = vadd.f32 %v8667_v4, %v1666_v50  ;;  %v1706_v34 = vmax.f32 %v1672_v39, 0.0  ;;  %v8716_v50 = vld [vmem:[%s14481_s10 + $0x30] sm:$0xff] }
 0x363   :  { %v1705_v6 = vmax.f32 %v1667_v63, 0.0 }
 0x365   :  { %v9407_v62 = vpop.f32.mrf.mxu1  ;;  %9422 = vmatprep.mubr.msk.f32.mxu0 %vm377_vm0, %v1705_v6 }
 0x366   :  { %9423 = vmatmul.mubr.msk.f32.vlgmr.msra.gmra.mxu0 %vm377_vm0, %v1706_v34  ;;  %v1682_v58 = vadd.f32 %v9407_v62, %v8667_v4  ;;  %v8715_v34 = vld [vmem:[%s14481_s10 + $0x28] sm:$0xff] }
 0x367   :  { %v1676_v36 = vpop.f32.mrf.mxu1  ;;  %9455 = vmatpush3.msra.mxu0 %v2168_v33 }
 0x368   :  { %v1677_v16 = vadd.f32 %v8667_v4, %v1676_v36  ;;  %9456 = vmatprep.subr.mxu0 %v2167_v19  ;;  %v1708_v32 = vmax.f32 %v1682_v58, 0.0 }
 0x369   :  { %9457 = vmatpush3.msra.mxu0 %v2167_v19  ;;  %v8714_v19 = vld [vmem:[%s14481_s10 + $0x20] sm:$0xff] }
 0x36a   :  { %v1707_v35 = vmax.f32 %v1677_v16, 0.0  ;;  %9458 = vmatprep.subr.mxu0 %v2166_v5 }
 0x36b   :  { %9459 = vmatpush3.msra.mxu0 %v2166_v5 }
 0x36c   :  { %9425 = vmatprep.mubr.msk.f32.mxu0 %vm377_vm0, %v1707_v35  ;;  %9460 = vmatprep.subr.mxu0 %v2165_v60 }
 0x36d   :  { %9426 = vmatmul.mubr.msk.f32.gmra.mxu0 %vm377_vm0, %v1708_v32 }
 0x36e   :  { %9461 = vmatpush3.msra.mxu0 %v2165_v60 }
 0x36f   :  { %9494 = vmatprep.subr.mxu0 %v8730_v61 }
 0x3a1   :  { %v9410_v23 = vpop.f32.mrf.mxu1 }
 0x3a2   :  { %v1692_v15 = vadd.f32 %v9410_v23, %v8667_v4 }
 0x3a3   :  { %v1686_v47 = vpop.f32.mrf.mxu1 }
 0x3a4   :  { %v1687_v3 = vadd.f32 %v8667_v4, %v1686_v47  ;;  %v1710_v13 = vmax.f32 %v1692_v15, 0.0 }
 0x3a5   :  { %v9413_v26 = vpop.f32.mrf.mxu1 }
 0x3a6   :  { %v1709_v8 = vmax.f32 %v1687_v3, 0.0  ;;  %v1702_v43 = vadd.f32 %v9413_v26, %v8667_v4 }
 0x3a7   :  { %v1696_v1 = vpop.f32.mrf.mxu1 }
 0x3a8   :  { %v1697_v42 = vadd.f32 %v8667_v4, %v1696_v1  ;;  %9428 = vmatprep.mubr.msk.f32.mxu0 %vm377_vm0, %v1709_v8  ;;  %v1712_v53 = vmax.f32 %v1702_v43, 0.0 }
 0x3a9   :  { %9429 = vmatmul.mubr.msk.f32.gmra.mxu0 %vm377_vm0, %v1710_v13  ;;  %v8693_v13 = vld [vmem:[#allocation7 + $0x5] ss:$0 sm:$0xff] }
 0x3aa   :  { %v1711_v14 = vmax.f32 %v1697_v42, 0.0 }
 0x3ac   :  { %9431 = vmatprep.mubr.msk.f32.mxu0 %vm377_vm0, %v1711_v14 }
 0x3ad   :  { %9432 = vmatmul.mubr.msk.f32.gmra.mxu0 %vm377_vm0, %v1712_v53 }
 0x3ae   :  { %9462 = vmatprep.mubr.msk.f32.mxu0 %vm377_vm0, %v11698_v11 }
 0x3b1   :  { %9463 = vmatmul.mubr.msk.f32.vlgmr.msra.gmra.mxu0 %vm377_vm0, %v11707_v0 }
 0x3b2   :  { %9465 = vmatprep.mubr.msk.f32.mxu0 %vm377_vm0, %v11713_v7  ;;  %9495 = vmatpush3.msra.mxu0 %v8730_v61 }
 0x3b3   :  { %9496 = vmatprep.subr.mxu0 %v8729_v51 }
 0x3b4   :  { %9497 = vmatpush3.msra.mxu0 %v8729_v51 }
 0x3b5   :  { %9466 = vmatmul.mubr.msk.f32.gmra.mxu0 %vm377_vm0, %v11732_v24  ;;  %9498 = vmatprep.subr.mxu0 %v8728_v18 }
 0x3b6   :  { %9468 = vmatprep.mubr.msk.f32.mxu0 %vm377_vm0, %v11735_v22  ;;  %9499 = vmatpush3.msra.mxu0 %v8728_v18 }
 0x3b7   :  { %9500 = vmatprep.subr.mxu0 %v8727_v27 }
 0x3b8   :  { %9501 = vmatpush3.msra.mxu0 %v8727_v27  ;;  %v11832_v27 = vld [vmem:[#allocation8] ss:$0 sm:$0xff] }
 0x3b9   :  { %9469 = vmatmul.mubr.msk.f32.gmra.mxu0 %vm377_vm0, %v11751_v31 }
 0x3ba   :  { %9471 = vmatprep.mubr.msk.f32.mxu0 %vm377_vm0, %v11754_v59 }
 0x3bd   :  { %9472 = vmatmul.mubr.msk.f32.gmra.mxu0 %vm377_vm0, %v2164_v38 }
 0x3be   :  { %9502 = vmatprep.mubr.msk.f32.mxu0 %vm377_vm0, %v11698_v11 }
 0x3c1   :  { %9503 = vmatmul.mubr.msk.f32.vlgmr.msra.gmra.mxu0 %vm377_vm0, %v11707_v0 }
 0x3c2   :  { %9505 = vmatprep.mubr.msk.f32.mxu0 %vm377_vm0, %v11713_v7 }
 0x3c5   :  { %9506 = vmatmul.mubr.msk.f32.gmra.mxu0 %vm377_vm0, %v11732_v24 }
 0x3c6   :  { %9508 = vmatprep.mubr.msk.f32.mxu0 %vm377_vm0, %v11735_v22 }
 0x3c9   :  { %9509 = vmatmul.mubr.msk.f32.gmra.mxu0 %vm377_vm0, %v11751_v31 }
 0x3ca   :  { %9511 = vmatprep.mubr.msk.f32.mxu0 %vm377_vm0, %v11754_v59 }
 0x3cd   :  { %9512 = vmatmul.mubr.msk.f32.gmra.mxu0 %vm377_vm0, %v2164_v38 }
 0x426   :  { %v9424_v33 = vpop.f32.mrf.mxu0 }
 0x427   :  { %v1822_v44 = vadd.f32 %v9424_v33, %v8680_v56 }
 0x428   :  { %v1816_v20 = vpop.f32.mrf.mxu0 }
 0x429   :  { %v1817_v9 = vadd.f32 %v8680_v56, %v1816_v20  ;;  %v1856_v28 = vmax.f32 %v1822_v44, 0.0 }
 0x42b   :  { %v1855_v4 = vmax.f32 %v1817_v9, 0.0 }
 0x42d   :  { %v9427_v39 = vpop.f32.mrf.mxu0  ;;  %9442 = vmatprep.mubr.msk.f32.mxu1 %vm377_vm0, %v1855_v4 }
 0x42e   :  { %9443 = vmatmul.mubr.msk.f32.vlgmr.msra.gmra.mxu1 %vm377_vm0, %v1856_v28  ;;  %v1832_v63 = vadd.f32 %v9427_v39, %v8680_v56 }
 0x42f   :  { %v1826_v6 = vpop.f32.mrf.mxu0  ;;  %9475 = vmatpush3.msra.mxu1 %v8717_v46 }
 0x430   :  { %v1827_v62 = vadd.f32 %v8680_v56, %v1826_v6  ;;  %9476 = vmatprep.subr.mxu1 %v8716_v50  ;;  %v1858_v36 = vmax.f32 %v1832_v63, 0.0  ;;  %v11846_v63 = vld [vmem:[#allocation8 + $0x1] ss:$0 sm:$0xff] }
 0x431   :  { %9477 = vmatpush3.msra.mxu1 %v8716_v50 }
 0x432   :  { %v1857_v58 = vmax.f32 %v1827_v62, 0.0  ;;  %9478 = vmatprep.subr.mxu1 %v8715_v34 }
 0x433   :  { %9479 = vmatpush3.msra.mxu1 %v8715_v34 }
 0x434   :  { %9445 = vmatprep.mubr.msk.f32.mxu1 %vm377_vm0, %v1857_v58  ;;  %9480 = vmatprep.subr.mxu1 %v8714_v19 }
 0x435   :  { %9446 = vmatmul.mubr.msk.f32.gmra.mxu1 %vm377_vm0, %v1858_v36 }
 0x436   :  { %9481 = vmatpush3.msra.mxu1 %v8714_v19 }
 0x469   :  { %v9430_v5 = vpop.f32.mrf.mxu0 }
 0x46a   :  { %v1842_v16 = vadd.f32 %v9430_v5, %v8680_v56 }
 0x46b   :  { %v1836_v60 = vpop.f32.mrf.mxu0 }
 0x46c   :  { %v1837_v35 = vadd.f32 %v8680_v56, %v1836_v60  ;;  %v1860_v23 = vmax.f32 %v1842_v16, 0.0 }
 0x46d   :  { %v9433_v32 = vpop.f32.mrf.mxu0 }
 0x46e   :  { %v1859_v61 = vmax.f32 %v1837_v35, 0.0  ;;  %v1852_v15 = vadd.f32 %v9433_v32, %v8680_v56 }
 0x46f   :  { %v1846_v47 = vpop.f32.mrf.mxu0 }
 0x470   :  { %v1847_v3 = vadd.f32 %v8680_v56, %v1846_v47  ;;  %9448 = vmatprep.mubr.msk.f32.mxu1 %vm377_vm0, %v1859_v61  ;;  %v1862_v8 = vmax.f32 %v1852_v15, 0.0 }
 0x471   :  { %9449 = vmatmul.mubr.msk.f32.gmra.mxu1 %vm377_vm0, %v1860_v23  ;;  %v9464_v18 = vpop.f32.mrf.mxu0 }
 0x472   :  { %v1861_v26 = vmax.f32 %v1847_v3, 0.0  ;;  %v2272_v56 = vadd.f32 %v9464_v18, %v11832_v27 }
 0x474   :  { %9451 = vmatprep.mubr.msk.f32.mxu1 %vm377_vm0, %v1861_v26  ;;  %v11853_v19 = vmul.f32 0.17677669, %v2272_v56 }
 0x475   :  { %9452 = vmatmul.mubr.msk.f32.gmra.mxu1 %vm377_vm0, %v1862_v8 }
 0x476   :  { %9482 = vmatprep.mubr.msk.f32.mxu1 %vm377_vm0, %v11698_v11 }
 0x479   :  { %9483 = vmatmul.mubr.msk.f32.vlgmr.msra.gmra.mxu1 %vm377_vm0, %v11707_v0 }
 0x47a   :  { %9485 = vmatprep.mubr.msk.f32.mxu1 %vm377_vm0, %v11713_v7 }
 0x47d   :  { %9486 = vmatmul.mubr.msk.f32.gmra.mxu1 %vm377_vm0, %v11732_v24  ;;  %v2266_v24 = vpop.f32.mrf.mxu0 }
 0x47e   :  { %9488 = vmatprep.mubr.msk.f32.mxu1 %vm377_vm0, %v11735_v22  ;;  %v2267_v33 = vadd.f32 %v11832_v27, %v2266_v24  ;;  %v8743_v24 = vld [vmem:[%s14481_s10 + $0x78] sm:$0xff] }
 0x47f   :  { %v9467_v22 = vpop.f32.mrf.mxu0  ;;  %9514 = vmatprep.subr.mxu1 %v8743_v24 }
 0x480   :  { %v2282_v44 = vadd.f32 %v9467_v22, %v11832_v27  ;;  %v11855_v58 = vmul.f32 0.17677669, %v2267_v33  ;;  %v8742_v22 = vld [vmem:[%s14481_s10 + $0x70] sm:$0xff]  ;;  %9515 = vmatpush3.msra.mxu1 %v8743_v24 }
 0x481   :  { %9489 = vmatmul.mubr.msk.f32.gmra.mxu1 %vm377_vm0, %v11751_v31  ;;  %v2276_v31 = vpop.f32.mrf.mxu0  ;;  %9516 = vmatprep.subr.mxu1 %v8742_v22 }
 0x482   :  { %9491 = vmatprep.mubr.msk.f32.mxu1 %vm377_vm0, %v11754_v59  ;;  %v2277_v9 = vadd.f32 %v11832_v27, %v2276_v31  ;;  %v11857_v36 = vmul.f32 0.17677669, %v2282_v44  ;;  %9517 = vmatpush3.msra.mxu1 %v8742_v22 }
 0x483   :  { %v9470_v61 = vpop.f32.mrf.mxu0 }
 0x484   :  { %v11859_v16 = vmul.f32 0.17677669, %v2277_v9 }
 0x485   :  { %9492 = vmatmul.mubr.msk.f32.gmra.mxu1 %vm377_vm0, %v2164_v38 }
 0x4ee   :  { %v9444_v43 = vpop.f32.mrf.mxu1 }
 0x4ef   :  { %v1972_v1 = vadd.f32 %v9444_v43, %v8693_v13 }
 0x4f0   :  { %v1966_v42 = vpop.f32.mrf.mxu1 }
 0x4f1   :  { %v1967_v25 = vadd.f32 %v8693_v13, %v1966_v42  ;;  %v11813_v37 = vadd.f32 %v1972_v1, %v14484_v54 }
 0x4f3   :  { %14491 = vst [vmem:[#allocation42_spill] sm:$0xff] %v11813_v37  ;;  %v2016_v14 = vsel %vm377_vm0, %v11813_v37, 0.0  ;;  %v11818_v53 = vadd.f32 %v1967_v25, %v14483_v17 }
 0x4f4   :  { %2017 = vadd.xlane.f32.xlu1 %v2016_v14  ;;  %v2286_v14 = vpop.f32.mrf.mxu0 }
 0x4f5   :  { %14492 = vst [vmem:[#allocation43_spill] sm:$0xff] %v11818_v53  ;;  %v9447_v29 = vpop.f32.mrf.mxu1  ;;  %v2013_v11 = vsel %vm377_vm0, %v11818_v53, 0.0 }
 0x4f6   :  { %2014 = vadd.xlane.f32.xlu0 %v2013_v11  ;;  %v1982_v0 = vadd.f32 %v9447_v29, %v8693_v13  ;;  %v9473_v9 = vpop.f32.mrf.mxu0 }
 0x4f7   :  { %v1976_v49 = vpop.f32.mrf.mxu1 }
 0x4f8   :  { %v1977_v46 = vadd.f32 %v8693_v13, %v1976_v49  ;;  %v11828_v51 = vadd.f32 %v1982_v0, %v14486_v2 }
 0x4fa   :  { %v11823_v7 = vadd.f32 %v1977_v46, %v14485_v45  ;;  %14494 = vst [vmem:[#allocation41_spill] sm:$0xff] %v11828_v51  ;;  %v2022_v55 = vsel %vm377_vm0, %v11828_v51, 0.0 }
 0x4fc   :  { %14493 = vst [vmem:[#allocation44_spill] sm:$0xff] %v11823_v7  ;;  %v2019_v40 = vsel %vm377_vm0, %v11823_v7, 0.0 }
 0x4fd   :  { %2020 = vadd.xlane.f32.xlu0 %v2019_v40 }
 0x501   :  { %2023 = vadd.xlane.f32.xlu0 %v2022_v55 }
 0x531   :  { %v9450_v41 = vpop.f32.mrf.mxu1 }
 0x532   :  { %v1992_v52 = vadd.f32 %v9450_v41, %v8693_v13 }
 0x533   :  { %v1986_v59 = vpop.f32.mrf.mxu1 }
 0x534   :  { %v1987_v10 = vadd.f32 %v8693_v13, %v1986_v59  ;;  %v11835_v38 = vadd.f32 %v1992_v52, %v14488_v21 }
 0x535   :  { %v9453_v20 = vpop.f32.mrf.mxu1 }
 0x536   :  { %14495 = vst [vmem:[#allocation45_spill] sm:$0xff] %v11835_v38  ;;  %v2002_v4 = vadd.f32 %v9453_v20, %v8693_v13  ;;  %v11842_v28 = vadd.f32 %v1987_v10, %v14487_v12  ;;  %v2028_v39 = vsel %vm377_vm0, %v11835_v38, 0.0  ;;  %v8741_v20 = vld [vmem:[%s14481_s10 + $0x68] sm:$0xff] }
 0x537   :  { %v1996_v50 = vpop.f32.mrf.mxu1  ;;  %2029 = vadd.xlane.f32.xlu0 %v2028_v39  ;;  %9518 = vmatprep.subr.mxu1 %v8741_v20 }
 0x538   :  { %14496 = vst [vmem:[#allocation46_spill] sm:$0xff] %v11842_v28  ;;  %v1997_v6 = vadd.f32 %v8693_v13, %v1996_v50  ;;  %v2025_v34 = vsel %vm377_vm0, %v11842_v28, 0.0  ;;  %v11851_v62 = vadd.f32 %v2002_v4, %v14490_v30  ;;  %9519 = vmatpush3.msra.mxu1 %v8741_v20 }
 0x539   :  { %v9484_v5 = vpop.f32.mrf.mxu1  ;;  %2026 = vadd.xlane.f32.xlu1 %v2025_v34 }
 0x53a   :  { %14497 = vst [vmem:[#allocation47_spill] sm:$0xff] %v11851_v62  ;;  %v2398_v60 = vadd.f32 %v9484_v5, %v11846_v63  ;;  %v11863_v35 = vadd.f32 %v1997_v6, %v14489_v48  ;;  %v2034_v32 = vsel %vm377_vm0, %v11851_v62, 0.0 }
 0x53b   :  { %v2392_v23 = vpop.f32.mrf.mxu1  ;;  %2035 = vadd.xlane.f32.xlu0 %v2034_v32 }
 0x53c   :  { %14498 = vst [vmem:[#allocation48_spill] sm:$0xff] %v11863_v35  ;;  %v2550_v15 = vmul.f32 %v2398_v60, %v11855_v58  ;;  %v2554_v47 = vmul.f32 %v2398_v60, %v11853_v19  ;;  %v2558_v3 = vmul.f32 %v2398_v60, %v11859_v16  ;;  %v2562_v26 = vmul.f32 %v2398_v60, %v11857_v36 }
 0x53d   :  { %v2393_v8 = vadd.f32 %v11846_v63, %v2392_v23  ;;  %v2031_v13 = vsel %vm377_vm0, %v11863_v35, 0.0  ;;  %v8740_v23 = vld [vmem:[%s14481_s10 + $0x60] sm:$0xff] }
 0x53e   :  { %v2588_v43 = vsel %vm377_vm0, %v2550_v15, 0.0  ;;  %v2616_v1 = vsel %vm377_vm0, %v2554_v47, 0.0  ;;  %v2644_v42 = vsel %vm377_vm0, %v2558_v3, 0.0  ;;  %v2672_v25 = vsel %vm377_vm0, %v2562_v26, 0.0  ;;  %2032 = vadd.xlane.f32.xlu1 %v2031_v13  ;;  %9520 = vmatprep.subr.mxu1 %v8740_v23 }
 0x53f   :  { %v2589_v29 = vrot.slane %v2588_v43, 4  ;;  %v2617_v11 = vrot.slane %v2616_v1, 4  ;;  %v2645_v49 = vrot.slane %v2644_v42, 4  ;;  %v2673_v0 = vrot.slane %v2672_v25, 4  ;;  %9521 = vmatpush3.msra.mxu1 %v8740_v23 }
 0x540   :  { %v2549_v46 = vmul.f32 %v2393_v8, %v11855_v58  ;;  %v2553_v40 = vmul.f32 %v2393_v8, %v11853_v19  ;;  %v2557_v55 = vmul.f32 %v2393_v8, %v11859_v16  ;;  %v2561_v18 = vmul.f32 %v2393_v8, %v11857_v36 }
 0x541   :  { %v2590_v41 = vadd.f32 %v2589_v29, %v2588_v43  ;;  %v2618_v52 = vadd.f32 %v2617_v11, %v2616_v1  ;;  %v2646_v31 = vadd.f32 %v2645_v49, %v2644_v42  ;;  %v2674_v59 = vadd.f32 %v2673_v0, %v2672_v25  ;;  %v2296_v1 = vpop.f32.mrf.mxu0 }
 0x542   :  { %v2581_v10 = vsel %vm377_vm0, %v2549_v46, 0.0  ;;  %v2609_v56 = vsel %vm377_vm0, %v2553_v40, 0.0  ;;  %v2637_v33 = vsel %vm377_vm0, %v2557_v55, 0.0  ;;  %v2665_v44 = vsel %vm377_vm0, %v2561_v18, 0.0  ;;  %v9487_v40 = vpop.f32.mrf.mxu1 }
 0x543   :  { %v2591_v4 = vrot.slane %v2590_v41, 2  ;;  %v2619_v39 = vrot.slane %v2618_v52, 2  ;;  %v2647_v50 = vrot.slane %v2646_v31, 2  ;;  %v2675_v6 = vrot.slane %v2674_v59, 2 }
 0x544   :  { %v2582_v34 = vrot.slane %v2581_v10, 4  ;;  %v2610_v5 = vrot.slane %v2609_v56, 4  ;;  %v2638_v60 = vrot.slane %v2637_v33, 4  ;;  %v2666_v32 = vrot.slane %v2665_v44, 4 }
 0x545   :  { %v2592_v15 = vadd.f32 %v2591_v4, %v2590_v41  ;;  %v2620_v47 = vadd.f32 %v2619_v39, %v2618_v52  ;;  %v2648_v3 = vadd.f32 %v2647_v50, %v2646_v31  ;;  %v2676_v26 = vadd.f32 %v2675_v6, %v2674_v59 }
 0x546   :  { %v2583_v8 = vadd.f32 %v2582_v34, %v2581_v10  ;;  %v2611_v13 = vadd.f32 %v2610_v5, %v2609_v56  ;;  %v2292_v43 = vadd.f32 %v9470_v61, %v11832_v27  ;;  %v2639_v29 = vadd.f32 %v2638_v60, %v2637_v33 }
 0x547   :  { %v2593_v42 = vrot.slane %v2592_v15, 1  ;;  %v2621_v25 = vrot.slane %v2620_v47, 1  ;;  %v2667_v11 = vadd.f32 %v2666_v32, %v2665_v44  ;;  %v2649_v49 = vrot.slane %v2648_v3, 1  ;;  %v2402_v44 = vpop.f32.mrf.mxu1 }
 0x548   :  { %v2677_v0 = vrot.slane %v2676_v26, 1  ;;  %v2584_v46 = vrot.slane %v2583_v8, 2  ;;  %v2287_v55 = vadd.f32 %v11832_v27, %v2286_v14  ;;  %v2302_v18 = vadd.f32 %v9473_v9, %v11832_v27 }
 0x549   :  { %v2297_v24 = vadd.f32 %v11832_v27, %v2296_v1  ;;  %v2612_v22 = vrot.slane %v2611_v13, 2  ;;  %v11902_v41 = vmul.f32 0.17677669, %v2292_v43  ;;  %v11904_v61 = vadd.f32 %v2593_v42, %v2592_v15 }
 0x54a   :  { %v11906_v52 = vadd.f32 %v2621_v25, %v2620_v47  ;;  %v2640_v31 = vrot.slane %v2639_v29, 2  ;;  %v2668_v59 = vrot.slane %v2667_v11, 2  ;;  %v11908_v10 = vadd.f32 %v2649_v49, %v2648_v3 }
 0x54b   :  { %v11910_v56 = vadd.f32 %v2677_v0, %v2676_v26  ;;  %v2585_v33 = vadd.f32 %v2584_v46, %v2583_v8  ;;  %v2408_v14 = vadd.f32 %v9487_v40, %v11846_v63  ;;  %v11913_v20 = vmul.f32 0.17677669, %v2287_v55 }
 0x54c   :  { %v11915_v27 = vmul.f32 0.17677669, %v2302_v18  ;;  %v11917_v9 = vmul.f32 0.17677669, %v2297_v24  ;;  %v2613_v4 = vadd.f32 %v2612_v22, %v2611_v13  ;;  %v11925_v5 = vsel %vm377_vm0, %v11904_v61, -inf }
 0x54d   :  { %v2552_v39 = vmul.f32 %v2408_v14, %v11855_v58  ;;  %v2556_v50 = vmul.f32 %v2408_v14, %v11853_v19  ;;  %v2560_v6 = vmul.f32 %v2408_v14, %v11859_v16  ;;  %v2564_v34 = vmul.f32 %v2408_v14, %v11857_v36 }
 0x54e   :  { %v2641_v60 = vadd.f32 %v2640_v31, %v2639_v29  ;;  %v2669_v32 = vadd.f32 %v2668_v59, %v2667_v11  ;;  %v2403_v23 = vadd.f32 %v11846_v63, %v2402_v44  ;;  %v11930_v15 = vsel %vm377_vm0, %v11906_v52, -inf }
 0x54f   :  { %v11934_v47 = vsel %vm377_vm0, %v11908_v10, -inf  ;;  %v11938_v3 = vsel %vm377_vm0, %v11910_v56, -inf  ;;  %v2586_v26 = vrot.slane %v2585_v33, 1  ;;  %v2602_v8 = vsel %vm377_vm0, %v2552_v39, 0.0 }
 0x550   :  { %v2630_v13 = vsel %vm377_vm0, %v2556_v50, 0.0  ;;  %v2658_v43 = vsel %vm377_vm0, %v2560_v6, 0.0  ;;  %v2686_v1 = vsel %vm377_vm0, %v2564_v34, 0.0  ;;  %v2603_v42 = vrot.slane %v2602_v8, 4 }
 0x551   :  { %v2631_v25 = vrot.slane %v2630_v13, 4  ;;  %v2659_v29 = vrot.slane %v2658_v43, 4  ;;  %v2687_v11 = vrot.slane %v2686_v1, 4  ;;  %v2551_v49 = vmul.f32 %v2403_v23, %v11855_v58 }
 0x552   :  { %v2555_v0 = vmul.f32 %v2403_v23, %v11853_v19  ;;  %v2559_v46 = vmul.f32 %v2403_v23, %v11859_v16  ;;  %v2563_v40 = vmul.f32 %v2403_v23, %v11857_v36  ;;  %v2614_v55 = vrot.slane %v2613_v4, 1 }
 0x553   :  { %v2642_v18 = vrot.slane %v2641_v60, 1  ;;  %v2604_v24 = vadd.f32 %v2603_v42, %v2602_v8  ;;  %v2632_v22 = vadd.f32 %v2631_v25, %v2630_v13  ;;  %v2595_v31 = vsel %vm377_vm0, %v2551_v49, 0.0 }
 0x554   :  { %v2623_v59 = vsel %vm377_vm0, %v2555_v0, 0.0  ;;  %v2651_v14 = vsel %vm377_vm0, %v2559_v46, 0.0  ;;  %v2679_v44 = vsel %vm377_vm0, %v2563_v40, 0.0  ;;  %v2660_v50 = vadd.f32 %v2659_v29, %v2658_v43  ;;  %v9490_v46 = vpop.f32.mrf.mxu1 }
 0x555   :  { %v2605_v39 = vrot.slane %v2604_v24, 2  ;;  %v2633_v58 = vrot.slane %v2632_v22, 2  ;;  %v2688_v19 = vadd.f32 %v2687_v11, %v2686_v1  ;;  %v2596_v6 = vrot.slane %v2595_v31, 4 }
 0x556   :  { %v2624_v16 = vrot.slane %v2623_v59, 4  ;;  %v2652_v34 = vrot.slane %v2651_v14, 4  ;;  %v2680_v36 = vrot.slane %v2679_v44, 4  ;;  %v11952_v23 = vadd.f32 %v2586_v26, %v2585_v33 }
 0x557   :  { %v2670_v8 = vrot.slane %v2669_v32, 1  ;;  %v2606_v13 = vadd.f32 %v2605_v39, %v2604_v24  ;;  %v2634_v42 = vadd.f32 %v2633_v58, %v2632_v22  ;;  %v2597_v25 = vadd.f32 %v2596_v6, %v2595_v31 }
 0x558   :  { %v2625_v49 = vadd.f32 %v2624_v16, %v2623_v59  ;;  %v2653_v0 = vadd.f32 %v2652_v34, %v2651_v14  ;;  %v2681_v35 = vadd.f32 %v2680_v36, %v2679_v44  ;;  %v11954_v62 = vadd.f32 %v2614_v55, %v2613_v4 }
 0x559   :  { %v11956_v40 = vadd.f32 %v2642_v18, %v2641_v60  ;;  %v2661_v43 = vrot.slane %v2660_v50, 2  ;;  %v2689_v1 = vrot.slane %v2688_v19, 2  ;;  %v2598_v29 = vrot.slane %v2597_v25, 2 }
 0x55a   :  { %v2626_v11 = vrot.slane %v2625_v49, 2  ;;  %v2654_v28 = vrot.slane %v2653_v0, 2  ;;  %v2682_v38 = vrot.slane %v2681_v35, 2  ;;  %v11958_v33 = vadd.f32 %v2670_v8, %v2669_v32 }
 0x55b   :  { %v2607_v26 = vrot.slane %v2606_v13, 1  ;;  %v2635_v24 = vrot.slane %v2634_v42, 1  ;;  %v2418_v22 = vadd.f32 %v9490_v46, %v11846_v63  ;;  %v2599_v31 = vadd.f32 %v2598_v29, %v2597_v25 }
 0x55c   :  { %v2627_v59 = vadd.f32 %v2626_v11, %v2625_v49  ;;  %v2655_v14 = vadd.f32 %v2654_v28, %v2653_v0  ;;  %v2683_v44 = vadd.f32 %v2682_v38, %v2681_v35  ;;  %v2805_v4 = vsel %vm377_vm0, %v11952_v23, -inf }
 0x55d   :  { %v2812_v60 = vsel %vm377_vm0, %v11954_v62, -inf  ;;  %v2819_v55 = vsel %vm377_vm0, %v11956_v40, -inf  ;;  %v2662_v18 = vadd.f32 %v2661_v43, %v2660_v50  ;;  %v2690_v32 = vadd.f32 %v2689_v1, %v2688_v19 }
 0x55e   :  { %v2600_v39 = vrot.slane %v2599_v31, 1  ;;  %v2628_v58 = vrot.slane %v2627_v59, 1  ;;  %v2656_v6 = vrot.slane %v2655_v14, 1  ;;  %v11967_v16 = vadd.f32 %v2607_v26, %v2606_v13 }
 0x55f   :  { %v2636_v34 = vadd.f32 %v2635_v24, %v2634_v42  ;;  %v2684_v36 = vrot.slane %v2683_v44, 1  ;;  %v2566_v38 = vmul.f32 %v2418_v22, %v11913_v20  ;;  %v2570_v25 = vmul.f32 %v2418_v22, %v11902_v41 }
 0x560   :  { %v11970_v28 = vadd.f32 %v2600_v39, %v2599_v31  ;;  %v2629_v35 = vadd.f32 %v2628_v58, %v2627_v59  ;;  %v11972_v8 = vadd.f32 %v2656_v6, %v2655_v14  ;;  %v2807_v49 = vmax.f32 %v2805_v4, %v11925_v5  ;;  %v2412_v6 = vpop.f32.mrf.mxu1 }
 0x561   :  { %v2814_v50 = vmax.f32 %v2812_v60, %v11930_v15  ;;  %v2663_v19 = vrot.slane %v2662_v18, 1  ;;  %v2574_v0 = vmul.f32 %v2418_v22, %v11917_v9  ;;  %v2691_v13 = vrot.slane %v2690_v32, 1 }
 0x562   :  { %v2808_v42 = vsel %vm377_vm0, %v11970_v28, -inf  ;;  %v2815_v46 = vsel %vm377_vm0, %v2629_v35, -inf  ;;  %v2578_v43 = vmul.f32 %v2418_v22, %v11915_v27  ;;  %v2810_v1 = vsel %vm377_vm0, %v11967_v16, -inf }
 0x563   :  { %v2809_v29 = vmax.f32 %v2807_v49, %v2808_v42  ;;  %v2816_v11 = vmax.f32 %v2814_v50, %v2815_v46  ;;  %v2700_v5 = vsel %vm377_vm0, %v2566_v38, 0.0  ;;  %v2817_v15 = vsel %vm377_vm0, %v2636_v34, -inf }
 0x564   :  { %v11986_v26 = vadd.f32 %v2684_v36, %v2683_v44  ;;  %v2822_v24 = vsel %vm377_vm0, %v11972_v8, -inf  ;;  %v2728_v31 = vsel %vm377_vm0, %v2570_v25, 0.0  ;;  %v2821_v59 = vmax.f32 %v2819_v55, %v11934_v47 }
 0x565   :  { %v11992_v14 = vmax.f32 %v2809_v29, %v2810_v1  ;;  %v2818_v22 = vmax.f32 %v2816_v11, %v2817_v15  ;;  %v2756_v4 = vsel %vm377_vm0, %v2574_v0, 0.0  ;;  %v2826_v60 = vsel %vm377_vm0, %v11958_v33, -inf }
 0x566   :  { %v11997_v39 = vadd.f32 %v2663_v19, %v2662_v18  ;;  %v2701_v58 = vrot.slane %v2700_v5, 4  ;;  %v2784_v44 = vsel %vm377_vm0, %v2578_v43, 0.0  ;;  %v2823_v36 = vmax.f32 %v2821_v59, %v2822_v24 }
 0x567   :  { %v2862_v38 = vsub.f32 %v11904_v61, %v11992_v14  ;;  %v2865_v47 = vsub.f32 %v11954_v62, %v2818_v22  ;;  %v2729_v55 = vrot.slane %v2728_v31, 4  ;;  %v12003_v25 = vadd.f32 %v2691_v13, %v2690_v32 }
 0x568   :  { %v2829_v49 = vsel %vm377_vm0, %v11986_v26, -inf  ;;  %v2866_v50 = vsub.f32 %v11906_v52, %v2818_v22  ;;  %v2757_v18 = vrot.slane %v2756_v4, 4  ;;  %v2828_v19 = vmax.f32 %v2826_v60, %v11938_v3 }
 0x569   :  { %v2867_v0 = vsub.f32 %v2629_v35, %v2818_v22  ;;  %v2785_v42 = vrot.slane %v2784_v44, 4  ;;  %v2413_v46 = vadd.f32 %v11846_v63, %v2412_v6  ;;  %v2824_v61 = vsel %vm377_vm0, %v11997_v39, -inf }
 0x56a   :  { %v2868_v43 = vsub.f32 %v2636_v34, %v2818_v22  ;;  %v2895_v62 = vmul.f32 1.442695, %v2862_v38  ;;  %v2702_v1 = vadd.f32 %v2701_v58, %v2700_v5  ;;  %v12012_v32 = vmax.f32 %v2823_v36, %v2824_v61 }
 0x56b   :  { %v2830_v13 = vmax.f32 %v2828_v19, %v2829_v49  ;;  %v2901_v29 = vmul.f32 1.442695, %v2865_v47  ;;  %v2730_v11 = vadd.f32 %v2729_v55, %v2728_v31  ;;  %v2831_v52 = vsel %vm377_vm0, %v12003_v25, -inf }
 0x56c   :  { %v2903_v15 = vmul.f32 1.442695, %v2866_v50  ;;  %v2758_v3 = vadd.f32 %v2757_v18, %v2756_v4  ;;  %v2861_v35 = vsub.f32 %v11952_v23, %v11992_v14  ;;  %v2863_v24 = vsub.f32 %v11970_v28, %v11992_v14 }
 0x56d   :  { %v2905_v59 = vmul.f32 1.442695, %v2867_v0  ;;  %v2786_v34 = vadd.f32 %v2785_v42, %v2784_v44  ;;  %10063 = vpow2.f32 %v2895_v62  ;;  %v2907_v5 = vmul.f32 1.442695, %v2868_v43 }
 0x56e   :  { %v2703_v22 = vrot.slane %v2702_v1, 2  ;;  %v2565_v60 = vmul.f32 %v2413_v46, %v11913_v20  ;;  %v12021_v58 = vmax.f32 %v2830_v13, %v2831_v52  ;;  %v2869_v31 = vsub.f32 %v11956_v40, %v12012_v32 }
 0x56f   :  { %10065 = vpow2.f32 %v2901_v29  ;;  %v2731_v4 = vrot.slane %v2730_v11, 2  ;;  %v2870_v23 = vsub.f32 %v11908_v10, %v12012_v32  ;;  %v2871_v28 = vsub.f32 %v11972_v8, %v12012_v32 }
 0x570   :  { %10067 = vpow2.f32 %v2903_v15  ;;  %v2569_v44 = vmul.f32 %v2413_v46, %v11902_v41  ;;  %v2893_v6 = vmul.f32 1.442695, %v2861_v35  ;;  %v2759_v36 = vrot.slane %v2758_v3, 2  ;;  %v9493_v15 = vpop.f32.mrf.mxu1 }
 0x571   :  { %10069 = vpow2.f32 %v2905_v59  ;;  %v2787_v38 = vrot.slane %v2786_v34, 2  ;;  %v2897_v47 = vmul.f32 1.442695, %v2863_v24  ;;  %v2704_v55 = vadd.f32 %v2703_v22, %v2702_v1 }
 0x572   :  { %10071 = vpow2.f32 %v2907_v5  ;;  %v2693_v40 = vsel %vm377_vm0, %v2565_v60, 0.0  ;;  %v2873_v49 = vsub.f32 %v11958_v33, %v12021_v58  ;;  %v2874_v10 = vsub.f32 %v11910_v56, %v12021_v58 }
 0x573   :  { %v2732_v50 = vadd.f32 %v2731_v4, %v2730_v11  ;;  %v2694_v8 = vrot.slane %v2693_v40, 4  ;;  %v2875_v18 = vsub.f32 %v11986_v26, %v12021_v58  ;;  %v2573_v19 = vmul.f32 %v2413_v46, %v11917_v9 }
 0x574   :  { %v2577_v0 = vmul.f32 %v2413_v46, %v11915_v27  ;;  %v2721_v42 = vsel %vm377_vm0, %v2569_v44, 0.0  ;;  %10073 = vpow2.f32 %v2893_v6  ;;  %v2760_v61 = vadd.f32 %v2759_v36, %v2758_v3  ;;  %v8756_v6 = vld [vmem:[%s14481_s10 + $0x98] sm:$0xff]  ;;  %v8755_v36 = vld [vmem:[%s14481_s10 + $0x90] sm:$0xff] }
 0x575   :  { %v2788_v43 = vadd.f32 %v2787_v38, %v2786_v34  ;;  %v2695_v62 = vadd.f32 %v2694_v8, %v2693_v40  ;;  %10075 = vpow2.f32 %v2897_v47  ;;  %v2909_v33 = vmul.f32 1.442695, %v2869_v31  ;;  %9534 = vmatprep.subr.mxu0 %v8756_v6  ;;  %v8754_v8 = vld [vmem:[%s14481_s10 + $0x88] sm:$0xff] }
 0x576   :  { %v2705_v1 = vrot.slane %v2704_v55, 1  ;;  %v2722_v13 = vrot.slane %v2721_v42, 4  ;;  %v2911_v56 = vmul.f32 1.442695, %v2870_v23  ;;  %v2913_v29 = vmul.f32 1.442695, %v2871_v28  ;;  %9535 = vmatpush3.msra.mxu0 %v8756_v6 }
 0x577   :  { %v2733_v11 = vrot.slane %v2732_v50, 1  ;;  %v2696_v52 = vrot.slane %v2695_v62, 2  ;;  %v2917_v26 = vmul.f32 1.442695, %v2873_v49  ;;  %v2749_v24 = vsel %vm377_vm0, %v2573_v19, 0.0  ;;  %9536 = vmatprep.subr.mxu0 %v8755_v36 }
 0x578   :  { %v2723_v35 = vadd.f32 %v2722_v13, %v2721_v42  ;;  %v2777_v46 = vsel %vm377_vm0, %v2577_v0, 0.0  ;;  %v2761_v59 = vrot.slane %v2760_v61, 1  ;;  %v2789_v5 = vrot.slane %v2788_v43, 1  ;;  %9537 = vmatpush3.msra.mxu0 %v8755_v36 }
 0x579   :  { %v2750_v3 = vrot.slane %v2749_v24, 4  ;;  %v2778_v34 = vrot.slane %v2777_v46, 4  ;;  %10077 = vpow2.f32 %v2909_v33  ;;  %v12042_v22 = vadd.f32 %v2705_v1, %v2704_v55  ;;  %9538 = vmatprep.subr.mxu0 %v8754_v8 }
 0x57a   :  { %v2697_v60 = vadd.f32 %v2696_v52, %v2695_v62  ;;  %v2428_v31 = vadd.f32 %v9493_v15, %v11846_v63  ;;  %v12045_v4 = vpop.eup %10063  ;;  %10079 = vpow2.f32 %v2911_v56  ;;  %v2919_v23 = vmul.f32 1.442695, %v2874_v10  ;;  %9539 = vmatpush3.msra.mxu0 %v8754_v8 }
 0x57b   :  { %14499 = vst [vmem:[#allocation49_spill] sm:$0xff] %v12045_v4  ;;  %v12047_v28 = vadd.f32 %v2733_v11, %v2732_v50  ;;  %v2724_v44 = vrot.slane %v2723_v35, 2  ;;  %10081 = vpow2.f32 %v2913_v29  ;;  %v2751_v47 = vadd.f32 %v2750_v3, %v2749_v24  ;;  %v2422_v3 = vpop.f32.mrf.mxu1 }
 0x57c   :  { %v12055_v38 = vpop.eup %10065  ;;  %v2779_v55 = vadd.f32 %v2778_v34, %v2777_v46  ;;  %10083 = vpow2.f32 %v2917_v26  ;;  %v2921_v49 = vmul.f32 1.442695, %v2875_v18  ;;  %v12059_v10 = vadd.f32 %v2761_v59, %v2760_v61 }
 0x57d   :  { %v12057_v40 = vpop.eup %10067  ;;  %v12061_v50 = vadd.f32 %v2789_v5, %v2788_v43  ;;  %v12071_v42 = vsel %vm377_vm0, %v12042_v22, -inf  ;;  %v2698_v62 = vrot.slane %v2697_v60, 1  ;;  %v2568_v18 = vmul.f32 %v2428_v31, %v11913_v20 }
 0x57e   :  { %v12066_v19 = vpop.eup %10069  ;;  %v2995_v0 = vrot.slane %v12057_v40, 7  ;;  %10085 = vpow2.f32 %v2919_v23  ;;  %v12079_v33 = vsel %vm377_vm0, %v12047_v28, -inf  ;;  %v2725_v1 = vadd.f32 %v2724_v44, %v2723_v35 }
 0x57f   :  { %v12074_v61 = vpop.eup %10071  ;;  %v2997_v43 = vrot.slane %v12066_v19, 6  ;;  %v2752_v29 = vrot.slane %v2751_v47, 2  ;;  %v2780_v11 = vrot.slane %v2779_v55, 2  ;;  %10087 = vpow2.f32 %v2921_v49 }
 0x580   :  { %v2996_v13 = vsel %vm1192_vm1, %v2995_v0, %v12055_v38  ;;  %v2999_v56 = vrot.slane %v12074_v61, 5  ;;  %v12087_v15 = vsel %vm377_vm0, %v12059_v10, -inf  ;;  %v12091_v26 = vsel %vm377_vm0, %v12061_v50, -inf }
 0x581   :  { %v2998_v52 = vsel %vm1195_vm2, %v2997_v43, %v2996_v13  ;;  %v12093_v35 = vpop.eup %10073  ;;  %v2989_v24 = vrot.slane %v12045_v4, 7  ;;  %v12097_v59 = vadd.f32 %v2698_v62, %v2697_v60  ;;  %v2714_v5 = vsel %vm377_vm0, %v2568_v18, 0.0 }
 0x582   :  { %14500 = vst [vmem:[#allocation50_spill] sm:$0xff] %v12093_v35  ;;  %v3000_v46 = vsel %vm1198_vm3, %v2999_v56, %v2998_v52  ;;  %v12100_v34 = vpop.eup %10075  ;;  %v2726_v44 = vrot.slane %v2725_v1, 1  ;;  %v2572_v6 = vmul.f32 %v2428_v31, %v11902_v41  ;;  %v2576_v36 = vmul.f32 %v2428_v31, %v11917_v9 }
 0x583   :  { %v3052_v23 = vsel %vm1250_vm4, %v3000_v46, 0.0  ;;  %v2753_v8 = vadd.f32 %v2752_v29, %v2751_v47  ;;  %v2781_v0 = vadd.f32 %v2780_v11, %v2779_v55  ;;  %v2715_v43 = vrot.slane %v2714_v5, 4 }
 0x584   :  { %v3053_v49 = vrot.slane %v3052_v23, 4  ;;  %v2580_v13 = vmul.f32 %v2428_v31, %v11915_v27  ;;  %v2423_v60 = vadd.f32 %v11846_v63, %v2422_v3  ;;  %v2864_v62 = vsub.f32 %v11967_v16, %v11992_v14 }
 0x585   :  { %v12113_v56 = vsel %vm1192_vm1, %v2989_v24, %v12093_v35  ;;  %v12118_v47 = vsel %vm377_vm0, %v12097_v59, -inf  ;;  %v12122_v63 = vadd.f32 %v2726_v44, %v2725_v1  ;;  %v2716_v55 = vadd.f32 %v2715_v43, %v2714_v5 }
 0x586   :  { %v3054_v46 = vadd.f32 %v3053_v49, %v3052_v23  ;;  %v12120_v31 = vpop.eup %10077  ;;  %v2742_v16 = vsel %vm377_vm0, %v2572_v6, 0.0  ;;  %v2770_v14 = vsel %vm377_vm0, %v2576_v36, 0.0  ;;  %v2754_v11 = vrot.slane %v2753_v8, 1 }
 0x587   :  { %v12126_v29 = vpop.eup %10079  ;;  %v2782_v24 = vrot.slane %v2781_v0, 1  ;;  %v2743_v3 = vrot.slane %v2742_v16, 4  ;;  %v2771_v52 = vrot.slane %v2770_v14, 4  ;;  %v2798_v18 = vsel %vm377_vm0, %v2580_v13, 0.0 }
 0x588   :  { %v12128_v23 = vpop.eup %10081  ;;  %v3055_v49 = vrot.slane %v3054_v46, 2  ;;  %v2567_v7 = vmul.f32 %v2423_v60, %v11913_v20  ;;  %v2571_v1 = vmul.f32 %v2423_v60, %v11902_v41  ;;  %v2717_v44 = vrot.slane %v2716_v55, 2 }
 0x589   :  { %v12133_v5 = vpop.eup %10083  ;;  %v2744_v6 = vadd.f32 %v2743_v3, %v2742_v16  ;;  %v2772_v36 = vadd.f32 %v2771_v52, %v2770_v14  ;;  %v2799_v43 = vrot.slane %v2798_v18, 4  ;;  %v12139_v53 = vsel %vm377_vm0, %v12122_v63, -inf }
 0x58a   :  { %v2575_v37 = vmul.f32 %v2423_v60, %v11917_v9  ;;  %v2707_v13 = vsel %vm377_vm0, %v2567_v7, 0.0  ;;  %v2579_v16 = vmul.f32 %v2423_v60, %v11915_v27  ;;  %v3056_v52 = vadd.f32 %v3055_v49, %v3054_v46 }
 0x58b   :  { %v12143_v20 = vpop.eup %10085  ;;  %v2745_v41 = vrot.slane %v2744_v6, 2  ;;  %v2773_v30 = vrot.slane %v2772_v36, 2  ;;  %v2800_v48 = vadd.f32 %v2799_v43, %v2798_v18  ;;  %v2708_v14 = vrot.slane %v2707_v13, 4 }
 0x58c   :  { %v2735_v3 = vsel %vm377_vm0, %v2571_v1, 0.0  ;;  %v2763_v51 = vsel %vm377_vm0, %v2575_v37, 0.0  ;;  %v12148_v21 = vpop.eup %10087  ;;  %v12151_v9 = vadd.f32 %v2754_v11, %v2753_v8  ;;  %v12153_v7 = vadd.f32 %v2782_v24, %v2781_v0 }
 0x58d   :  { %v2718_v2 = vadd.f32 %v2717_v44, %v2716_v55  ;;  %v2842_v18 = vmax.f32 %v12139_v53, %v12079_v33  ;;  %v2709_v43 = vadd.f32 %v2708_v14, %v2707_v13  ;;  %v2736_v27 = vrot.slane %v2735_v3, 4 }
 0x58e   :  { %v2764_v60 = vrot.slane %v2763_v51, 4  ;;  %v2746_v46 = vadd.f32 %v2745_v41, %v2744_v6  ;;  %v2774_v49 = vadd.f32 %v2773_v30, %v2772_v36  ;;  %v2801_v1 = vrot.slane %v2800_v48, 2 }
 0x58f   :  { %v2791_v37 = vsel %vm377_vm0, %v2579_v16, 0.0  ;;  %v3057_v45 = vrot.slane %v3056_v52, 1  ;;  %v2710_v54 = vrot.slane %v2709_v43, 2  ;;  %v2737_v17 = vadd.f32 %v2736_v27, %v2735_v3 }
 0x590   :  { %v2765_v12 = vadd.f32 %v2764_v60, %v2763_v51  ;;  %v2847_v8 = vsel %vm377_vm0, %v12151_v9, -inf  ;;  %v2854_v0 = vsel %vm377_vm0, %v12153_v7, -inf  ;;  %v2719_v55 = vrot.slane %v2718_v2, 1 }
 0x591   :  { %v2792_v53 = vrot.slane %v2791_v37, 4  ;;  %v2711_v33 = vadd.f32 %v2710_v54, %v2709_v43  ;;  %v2738_v11 = vrot.slane %v2737_v17, 2  ;;  %v2899_v44 = vmul.f32 1.442695, %v2864_v62 }
 0x592   :  { %v2766_v24 = vrot.slane %v2765_v12, 2  ;;  %v2747_v30 = vrot.slane %v2746_v46, 1  ;;  %v2775_v6 = vrot.slane %v2774_v49, 1  ;;  %v2802_v36 = vadd.f32 %v2801_v1, %v2800_v48 }
 0x593   :  { %v2793_v13 = vadd.f32 %v2792_v53, %v2791_v37  ;;  %v3058_v41 = vadd.f32 %v3057_v45, %v3056_v52  ;;  %v2712_v16 = vrot.slane %v2711_v33, 1  ;;  %v2739_v14 = vadd.f32 %v2738_v11, %v2737_v17 }
 0x594   :  { %v2767_v51 = vadd.f32 %v2766_v24, %v2765_v12  ;;  %v12162_v3 = vadd.f32 %v2719_v55, %v2718_v2  ;;  %10089 = vpow2.f32 %v2899_v44  ;;  %v14501_v60 = vsub.f32 %v11997_v39, %v12012_v32 }
 0x595   :  { %v2794_v27 = vrot.slane %v2793_v13, 2  ;;  %v2713_v54 = vadd.f32 %v2712_v16, %v2711_v33  ;;  %v2740_v43 = vrot.slane %v2739_v14, 1  ;;  %v2876_v62 = vsub.f32 %v12003_v25, %v12021_v58 }
 0x596   :  { %v2915_v4 = vmul.f32 1.442695, %v14501_v60  ;;  %v2768_v35 = vrot.slane %v2767_v51, 1  ;;  %v12169_v48 = vadd.f32 %v2747_v30, %v2746_v46  ;;  %v12171_v45 = vadd.f32 %v2775_v6, %v2774_v49 }
 0x597   :  { %v2803_v17 = vrot.slane %v2802_v36, 1  ;;  %v2795_v12 = vadd.f32 %v2794_v27, %v2793_v13  ;;  %v2741_v2 = vadd.f32 %v2740_v43, %v2739_v14  ;;  %v2836_v1 = vsel %vm377_vm0, %v2713_v54, -inf }
 0x598   :  { %v2769_v52 = vadd.f32 %v2768_v35, %v2767_v51  ;;  %10091 = vpow2.f32 %v2915_v4  ;;  %v2849_v39 = vmax.f32 %v2847_v8, %v12087_v15  ;;  %v14502_v37 = vmax.f32 %v12118_v47, %v12071_v42 }
 0x599   :  { %v2796_v32 = vrot.slane %v2795_v12, 1  ;;  %10093 = vrcp.f32 %v3058_v41  ;;  %v2838_v25 = vsel %vm377_vm0, %v12162_v3, -inf  ;;  %v2843_v58 = vsel %vm377_vm0, %v2741_v2, -inf }
 0x59a   :  { %v2837_v55 = vmax.f32 %v14502_v37, %v2836_v1  ;;  %v2850_v46 = vsel %vm377_vm0, %v2769_v52, -inf  ;;  %v2923_v49 = vmul.f32 1.442695, %v2876_v62  ;;  %v2844_v4 = vmax.f32 %v2842_v18, %v2843_v58 }
 0x59b   :  { %v12182_v35 = vadd.f32 %v2796_v32, %v2795_v12  ;;  %v2851_v15 = vmax.f32 %v2849_v39, %v2850_v46  ;;  %v2856_v8 = vmax.f32 %v2854_v0, %v12091_v26  ;;  %v12187_v33 = vadd.f32 %v2803_v17, %v2802_v36 }
 0x59c   :  { %v12184_v53 = vmax.f32 %v2837_v55, %v2838_v25  ;;  %v2845_v42 = vsel %vm377_vm0, %v12169_v48, -inf  ;;  %v2852_v47 = vsel %vm377_vm0, %v12171_v45, -inf  ;;  %v3003_v30 = vrot.slane %v12128_v23, 6 }
 0x59d   :  { %v2846_v11 = vmax.f32 %v2844_v4, %v2845_v42  ;;  %v12193_v24 = vmax.f32 %v2851_v15, %v2852_v47  ;;  %v2857_v44 = vsel %vm377_vm0, %v12182_v35, -inf  ;;  %10095 = vpow2.f32 %v2923_v49 }
 0x59e   :  { %v2877_v18 = vsub.f32 %v12097_v59, %v12184_v53  ;;  %v2858_v26 = vmax.f32 %v2856_v8, %v2857_v44  ;;  %v2878_v0 = vsub.f32 %v12042_v22, %v12184_v53  ;;  %v14503_v6 = vrot.slane %v12126_v29, 7 }
 0x59f   :  { %v3007_v13 = vrot.slane %v12143_v20, 7  ;;  %v2879_v41 = vsub.f32 %v2713_v54, %v12184_v53  ;;  %v2882_v16 = vsub.f32 %v12047_v28, %v2846_v11  ;;  %v2859_v59 = vsel %vm377_vm0, %v12187_v33, -inf }
 0x5a0   :  { %v3002_v36 = vsel %vm1192_vm1, %v14503_v6, %v12120_v31  ;;  %v2883_v14 = vsub.f32 %v2741_v2, %v2846_v11  ;;  %v12211_v51 = vmax.f32 %v2858_v26, %v2859_v59  ;;  %v2886_v22 = vsub.f32 %v12059_v10, %v12193_v24  ;;  %v9504_v26 = vpop.f32.mrf.mxu0 }
 0x5a1   :  { %v2925_v27 = vmul.f32 1.442695, %v2877_v18  ;;  %v2927_v60 = vmul.f32 1.442695, %v2878_v0  ;;  %v12215_v43 = vpop.eup %10089  ;;  %v14504_v62 = vrot.slane %v12100_v34, 6  ;;  %v3004_v28 = vsel %vm1195_vm2, %v3003_v30, %v3002_v36 }
 0x5a2   :  { %v2881_v17 = vsub.f32 %v12122_v63, %v2846_v11  ;;  %v2887_v12 = vsub.f32 %v2769_v52, %v12193_v24  ;;  %v3008_v2 = vsel %vm1192_vm1, %v3007_v13, %v12133_v5  ;;  %v3009_v10 = vrot.slane %v12148_v21, 6 }
 0x5a3   :  { %v2992_v54 = vsel %vm1195_vm2, %v14504_v62, %v12113_v56  ;;  %v2929_v1 = vmul.f32 1.442695, %v2879_v41  ;;  %v2935_v39 = vmul.f32 1.442695, %v2882_v16  ;;  %v2885_v32 = vsub.f32 %v12151_v9, %v12193_v24 }
 0x5a4   :  { %10097 = vpow2.f32 %v2927_v60  ;;  %v2937_v37 = vmul.f32 1.442695, %v2883_v14  ;;  %v2880_v56 = vsub.f32 %v12162_v3, %v12184_v53  ;;  %v2890_v63 = vsub.f32 %v12061_v50, %v12211_v51  ;;  %v2510_v60 = vpop.f32.mrf.mxu0 }
 0x5a5   :  { %v12231_v55 = vpop.eup %10091  ;;  %10099 = vpow2.f32 %v2925_v27  ;;  %v2943_v52 = vmul.f32 1.442695, %v2886_v22  ;;  %v2993_v25 = vrot.slane %v12215_v43, 5  ;;  %v2933_v46 = vmul.f32 1.442695, %v2881_v17 }
 0x5a6   :  { %v10094_v58 = vpop.eup %10093  ;;  %10101 = vpow2.f32 %v2935_v39  ;;  %v2945_v49 = vmul.f32 1.442695, %v2887_v12  ;;  %v2884_v9 = vsub.f32 %v12169_v48, %v2846_v11  ;;  %v2889_v4 = vsub.f32 %v12153_v7, %v12211_v51  ;;  %v12267_v12 = vld [vmem:[#allocation8 + $0x2] ss:$0 sm:$0xff] }
 0x5a7   :  { %v2891_v3 = vsub.f32 %v12182_v35, %v12211_v51  ;;  %10103 = vpow2.f32 %v2929_v1  ;;  %v2994_v53 = vsel %vm1198_vm3, %v2993_v25, %v2992_v54  ;;  %v2941_v50 = vmul.f32 1.442695, %v2885_v32 }
 0x5a8   :  { %10105 = vpow2.f32 %v2937_v37  ;;  %v3045_v15 = vsel %vm1250_vm4, %v2994_v53, 0.0  ;;  %v3005_v8 = vrot.slane %v12231_v55, 5  ;;  %v2951_v42 = vmul.f32 1.442695, %v2890_v63 }
 0x5a9   :  { %10107 = vpow2.f32 %v2943_v52  ;;  %v3046_v47 = vrot.slane %v3045_v15, 4  ;;  %v12245_v48 = vrot.slane %v10094_v58, %v11256_v57  ;;  %v2931_v11 = vmul.f32 1.442695, %v2880_v56  ;;  %v9507_v56 = vpop.f32.mrf.mxu0 }
 0x5aa   :  { %10109 = vpow2.f32 %v2945_v49  ;;  %v3006_v7 = vsel %vm1198_vm3, %v3005_v8, %v3004_v28  ;;  %v12248_v35 = vpop.eup %10095  ;;  %v2939_v18 = vmul.f32 1.442695, %v2884_v9  ;;  %v2888_v30 = vsub.f32 %v12171_v45, %v12193_v24 }
 0x5ab   :  { %10111 = vpow2.f32 %v2933_v46  ;;  %v3047_v44 = vadd.f32 %v3046_v47, %v3045_v15  ;;  %v3010_v0 = vsel %vm1195_vm2, %v3009_v10, %v3008_v2  ;;  %v2953_v6 = vmul.f32 1.442695, %v2891_v3 }
 0x5ac   :  { %10113 = vpow2.f32 %v2941_v50  ;;  %v3059_v36 = vsel %vm1250_vm4, %v3006_v7, 0.0  ;;  %v2949_v13 = vmul.f32 1.442695, %v2889_v4  ;;  %v3145_v16 = vmul.f32 %v12055_v38, %v12245_v48 }
 0x5ad   :  { %10115 = vpow2.f32 %v2951_v42  ;;  %v3048_v41 = vrot.slane %v3047_v44, 2  ;;  %v3146_v59 = vmul.f32 %v12057_v40, %v12245_v48  ;;  %v3060_v14 = vrot.slane %v3059_v36, 4 }
 0x5ae   :  { %v3011_v22 = vrot.slane %v12248_v35, 5  ;;  %10117 = vpow2.f32 %v2931_v11  ;;  %v2947_v24 = vmul.f32 1.442695, %v2888_v30  ;;  %v2892_v27 = vsub.f32 %v12187_v33, %v12211_v51 }
 0x5af   :  { %v3049_v45 = vadd.f32 %v3048_v41, %v3047_v44  ;;  %10119 = vpow2.f32 %v2939_v18  ;;  %v3061_v62 = vadd.f32 %v3060_v14, %v3059_v36  ;;  %v3180_v2 = vrot.slane %v3145_v16, %v11256_v57  ;;  %v2520_v44 = vpop.f32.mrf.mxu0 }
 0x5b0   :  { %10121 = vpow2.f32 %v2953_v6  ;;  %v3012_v54 = vsel %vm1198_vm3, %v3011_v22, %v3010_v0  ;;  %v3220_v39 = vrot.slane %v3146_v59, %v11256_v57  ;;  %v2955_v32 = vmul.f32 1.442695, %v2892_v27 }
 0x5b1   :  { %v12262_v28 = vpop.eup %10097  ;;  %v3050_v38 = vrot.slane %v3049_v45, 1  ;;  %v3066_v40 = vsel %vm1250_vm4, %v3012_v54, 0.0  ;;  %10123 = vpow2.f32 %v2947_v24  ;;  %v3062_v10 = vrot.slane %v3061_v62, 2 }
 0x5b2   :  { %v12265_v17 = vpop.eup %10099  ;;  %v3067_v1 = vrot.slane %v3066_v40, 4  ;;  %10125 = vpow2.f32 %v2949_v13  ;;  %v3013_v63 = vrot.slane %v12262_v28, 7  ;;  %v12279_v46 = vadd.f32 %v9504_v26, %v12267_v12 }
 0x5b3   :  { %v12270_v33 = vpop.eup %10101  ;;  %v3051_v51 = vadd.f32 %v3050_v38, %v3049_v45  ;;  %v3063_v52 = vadd.f32 %v3062_v10, %v3061_v62  ;;  %v12282_v49 = vadd.f32 %v12267_v12, %v2510_v60  ;;  %v3147_v3 = vmul.f32 %v12066_v19, %v12245_v48 }
 0x5b4   :  { %v12273_v37 = vpop.eup %10103  ;;  %v3068_v25 = vadd.f32 %v3067_v1, %v3066_v40  ;;  %v3019_v9 = vrot.slane %v12270_v33, 7  ;;  %v3246_v7 = vmul.f32 %v3220_v39, %v12279_v46  ;;  %v3014_v18 = vsel %vm1192_vm1, %v3013_v63, %v12265_v17 }
 0x5b5   :  { %v12276_v58 = vpop.eup %10105  ;;  %10127 = vrcp.f32 %v3051_v51  ;;  %v3064_v53 = vrot.slane %v3063_v52, 1  ;;  %v3015_v8 = vrot.slane %v12273_v37, 6  ;;  %v3206_v47 = vmul.f32 %v3180_v2, %v12282_v49 }
 0x5b6   :  { %v12285_v4 = vpop.eup %10107  ;;  %v3069_v50 = vrot.slane %v3068_v25, 2  ;;  %10129 = vpow2.f32 %v2955_v32  ;;  %v3021_v19 = vrot.slane %v12276_v58, 6  ;;  %v3148_v36 = vmul.f32 %v12074_v61, %v12245_v48 }
 0x5b7   :  { %v12289_v15 = vpop.eup %10109  ;;  %v3025_v42 = vrot.slane %v12285_v4, 7  ;;  %v3065_v30 = vadd.f32 %v3064_v53, %v3063_v52  ;;  %v3268_v16 = vrot.slane %v3147_v3, %v11256_v57  ;;  %v12313_v22 = vadd.f32 %v12267_v12, %v2520_v44 }
 0x5b8   :  { %v12295_v11 = vpop.eup %10111  ;;  %v3070_v26 = vadd.f32 %v3069_v50, %v3068_v25  ;;  %v3027_v41 = vrot.slane %v12289_v15, 6  ;;  %v3016_v45 = vsel %vm1195_vm2, %v3015_v8, %v3014_v18  ;;  %v3254_v48 = vadd.f32 %v3246_v7, %v3206_v47 }
 0x5b9   :  { %v12300_v0 = vpop.eup %10113  ;;  %v3020_v6 = vsel %vm1192_vm1, %v3019_v9, %v12295_v11  ;;  %10131 = vrcp.f32 %v3065_v30  ;;  %v3316_v40 = vrot.slane %v3148_v36, %v11256_v57  ;;  %v3294_v51 = vmul.f32 %v3268_v16, %v12313_v22 }
 0x5ba   :  { %v12306_v13 = vpop.eup %10115  ;;  %v3071_v59 = vrot.slane %v3070_v26, 1  ;;  %v3026_v24 = vsel %vm1192_vm1, %v3025_v42, %v12300_v0  ;;  %v3022_v61 = vsel %vm1195_vm2, %v3021_v19, %v3020_v6  ;;  %v12333_v32 = vadd.f32 %v9507_v56, %v12267_v12 }
 0x5bb   :  { %v12310_v14 = vpop.eup %10117  ;;  %v3031_v38 = vrot.slane %v12306_v13, 7  ;;  %v3028_v1 = vsel %vm1195_vm2, %v3027_v41, %v3026_v24  ;;  %v3302_v53 = vadd.f32 %v3294_v51, %v3254_v48 }
 0x5bc   :  { %v12318_v27 = vpop.eup %10119  ;;  %v3072_v60 = vadd.f32 %v3071_v59, %v3070_v26  ;;  %v3017_v62 = vrot.slane %v12310_v14, 5  ;;  %v3342_v44 = vmul.f32 %v3316_v40, %v12333_v32 }
 0x5bd   :  { %v12322_v54 = vpop.eup %10121  ;;  %v3023_v2 = vrot.slane %v12318_v27, 5 }
 0x5be   :  { %v12327_v10 = vpop.eup %10123  ;;  %10133 = vrcp.f32 %v3072_v60  ;;  %v3018_v39 = vsel %vm1198_vm3, %v3017_v62, %v3016_v45  ;;  %v3033_v3 = vrot.slane %v12322_v54, 6  ;;  %v3350_v16 = vadd.f32 %v3342_v44, %v3302_v53  ;;  %v14505_v45 = vld [vmem:[#allocation50_spill] sm:$0xff] }
 0x5bf   :  { %v3073_v63 = vsel %vm1250_vm4, %v3018_v39, 0.0  ;;  %v3024_v52 = vsel %vm1198_vm3, %v3023_v2, %v3022_v61  ;;  %v3029_v25 = vrot.slane %v12327_v10, 5  ;;  %v12338_v9 = vpop.eup %10125  ;;  %v14506_v61 = vld [vmem:[#allocation49_spill] sm:$0xff] }
 0x5c0   :  { %v3074_v50 = vrot.slane %v3073_v63, 4  ;;  %v3080_v8 = vsel %vm1250_vm4, %v3024_v52, 0.0  ;;  %v3032_v42 = vsel %vm1192_vm1, %v3031_v38, %v12338_v9 }
 0x5c1   :  { %v3081_v47 = vrot.slane %v3080_v8, 4  ;;  %v3030_v56 = vsel %vm1198_vm3, %v3029_v25, %v3028_v1  ;;  %v3034_v41 = vsel %vm1195_vm2, %v3033_v3, %v3032_v42 }
 0x5c2   :  { %v10128_v7 = vpop.eup %10127  ;;  %v3075_v18 = vadd.f32 %v3074_v50, %v3073_v63  ;;  %v3087_v19 = vsel %vm1250_vm4, %v3030_v56, 0.0 }
 0x5c3   :  { %v12347_v30 = vpop.eup %10129  ;;  %v3112_v26 = vrot.slane %v10128_v7, %v11256_v57  ;;  %v3082_v6 = vadd.f32 %v3081_v47, %v3080_v8  ;;  %v3088_v36 = vrot.slane %v3087_v19, 4 }
 0x5c4   :  { %v3076_v59 = vrot.slane %v3075_v18, 2  ;;  %v3035_v1 = vrot.slane %v12347_v30, 5 }
 0x5c5   :  { %v3141_v24 = vmul.f32 %v14505_v45, %v3112_v26  ;;  %v3142_v48 = vmul.f32 %v14506_v61, %v3112_v26  ;;  %v3143_v60 = vmul.f32 %v12100_v34, %v3112_v26  ;;  %v3144_v62 = vmul.f32 %v12215_v43, %v3112_v26 }
 0x5c6   :  { %v3077_v38 = vadd.f32 %v3076_v59, %v3075_v18  ;;  %v3083_v40 = vrot.slane %v3082_v6, 2  ;;  %v3089_v2 = vadd.f32 %v3088_v36, %v3087_v19  ;;  %v10132_v51 = vpop.eup %10131  ;;  %v3036_v47 = vsel %vm1198_vm3, %v3035_v1, %v3034_v41 }
 0x5c7   :  { %v3176_v39 = vrot.slane %v3141_v24, %v11256_v57  ;;  %v3216_v63 = vrot.slane %v3142_v48, %v11256_v57  ;;  %v3264_v52 = vrot.slane %v3143_v60, %v11256_v57  ;;  %v3312_v25 = vrot.slane %v3144_v62, %v11256_v57 }
 0x5c8   :  { %v3120_v3 = vrot.slane %v10132_v51, %v11256_v57  ;;  %v3078_v53 = vrot.slane %v3077_v38, 1  ;;  %v3084_v34 = vadd.f32 %v3083_v40, %v3082_v6  ;;  %v3090_v50 = vrot.slane %v3089_v2, 2 }
 0x5c9   :  { %v3205_v43 = vmul.f32 %v3176_v39, %v12282_v49  ;;  %v3245_v8 = vmul.f32 %v3216_v63, %v12279_v46  ;;  %v3293_v42 = vmul.f32 %v3264_v52, %v12313_v22  ;;  %v3341_v6 = vmul.f32 %v3312_v25, %v12333_v32 }
 0x5ca   :  { %v3149_v56 = vmul.f32 %v12120_v31, %v3120_v3  ;;  %v3150_v7 = vmul.f32 %v12126_v29, %v3120_v3  ;;  %v3151_v44 = vmul.f32 %v12128_v23, %v3120_v3  ;;  %v3152_v18 = vmul.f32 %v12231_v55, %v3120_v3 }
 0x5cb   :  { %v10134_v19 = vpop.eup %10133  ;;  %v3253_v26 = vadd.f32 %v3245_v8, %v3205_v43  ;;  %v3079_v36 = vadd.f32 %v3078_v53, %v3077_v38  ;;  %v3085_v59 = vrot.slane %v3084_v34, 1  ;;  %v3091_v61 = vadd.f32 %v3090_v50, %v3089_v2 }
 0x5cc   :  { %v3184_v45 = vrot.slane %v3149_v56, %v11256_v57  ;;  %v3224_v24 = vrot.slane %v3150_v7, %v11256_v57  ;;  %v3272_v41 = vrot.slane %v3151_v44, %v11256_v57  ;;  %v3124_v29 = vrot.slane %v10134_v19, %v11256_v57 }
 0x5cd   :  { %v3301_v31 = vadd.f32 %v3293_v42, %v3253_v26  ;;  %10135 = vrcp.f32 %v3079_v36  ;;  %v3086_v23 = vadd.f32 %v3085_v59, %v3084_v34  ;;  %v3320_v62 = vrot.slane %v3152_v18, %v11256_v57 }
 0x5ce   :  { %v3207_v55 = vmul.f32 %v3184_v45, %v12282_v49  ;;  %v3247_v48 = vmul.f32 %v3224_v24, %v12279_v46  ;;  %v3295_v60 = vmul.f32 %v3272_v41, %v12313_v22  ;;  %v3153_v40 = vmul.f32 %v12133_v5, %v3124_v29  ;;  %v9510_v5 = vpop.f32.mrf.mxu0 }
 0x5cf   :  { %v3349_v38 = vadd.f32 %v3341_v6, %v3301_v31  ;;  %v3154_v1 = vmul.f32 %v12143_v20, %v3124_v29  ;;  %v3155_v2 = vmul.f32 %v12148_v21, %v3124_v29  ;;  %v3156_v39 = vmul.f32 %v12248_v35, %v3124_v29 }
 0x5d0   :  { %v3255_v51 = vadd.f32 %v3247_v48, %v3207_v55  ;;  %10137 = vrcp.f32 %v3086_v23  ;;  %v3092_v63 = vrot.slane %v3091_v61, 1  ;;  %v3188_v52 = vrot.slane %v3153_v40, %v11256_v57  ;;  %v2530_v44 = vpop.f32.mrf.mxu0 }
 0x5d1   :  { %9522 = vmatprep.mubr.msk.f32.mxu1 %vm377_vm0, %v3349_v38  ;;  %v3228_v25 = vrot.slane %v3154_v1, %v11256_v57  ;;  %v3276_v3 = vrot.slane %v3155_v2, %v11256_v57  ;;  %v3094_v53 = vsel %vm1250_vm4, %v3036_v47, 0.0  ;;  %v3343_v21 = vmul.f32 %v3320_v62, %v12333_v32 }
 0x5d2   :  { %9523 = vmatmul.mubr.msk.f32.vlgmr.msra.gmra.mxu1 %vm377_vm0, %v3350_v16  ;;  %v3303_v20 = vadd.f32 %v3295_v60, %v3255_v51  ;;  %v3093_v34 = vadd.f32 %v3092_v63, %v3091_v61  ;;  %v3095_v35 = vrot.slane %v3094_v53, 4  ;;  %v3208_v50 = vmul.f32 %v3188_v52, %v12282_v49  ;;  %v9513_v36 = vpop.f32.mrf.mxu0 }
 0x5d3   :  { %v3248_v43 = vmul.f32 %v3228_v25, %v12279_v46  ;;  %v3324_v8 = vrot.slane %v3156_v39, %v11256_v57  ;;  %v3296_v47 = vmul.f32 %v3276_v3, %v12313_v22  ;;  %v2531_v29 = vadd.f32 %v12267_v12, %v2530_v44 }
 0x5d4   :  { %v3351_v42 = vadd.f32 %v3343_v21, %v3303_v20  ;;  %10139 = vrcp.f32 %v3093_v34  ;;  %v3096_v56 = vadd.f32 %v3095_v35, %v3094_v53  ;;  %v2540_v23 = vpop.f32.mrf.mxu0  ;;  %v2546_v39 = vadd.f32 %v9513_v36, %v12267_v12 }
 0x5d5   :  { %v3256_v7 = vadd.f32 %v3248_v43, %v3208_v50  ;;  %v3344_v19 = vmul.f32 %v3324_v8, %v12333_v32  ;;  %v12402_v32 = vadd.f32 %v9510_v5, %v12267_v12  ;;  %v2541_v1 = vadd.f32 %v12267_v12, %v2540_v23 }
 0x5d6   :  { %9525 = vmatprep.mubr.msk.f32.mxu1 %vm377_vm0, %v3351_v42  ;;  %v3097_v16 = vrot.slane %v3096_v56, 2 }
 0x5d7   :  { %v3304_v18 = vadd.f32 %v3296_v47, %v3256_v7 }
 0x5d8   :  { %v3098_v26 = vadd.f32 %v3097_v16, %v3096_v56 }
 0x5d9   :  { %v3352_v6 = vadd.f32 %v3344_v19, %v3304_v18 }
 0x5da   :  { %v10136_v49 = vpop.eup %10135  ;;  %v3099_v46 = vrot.slane %v3098_v26, 1 }
 0x5db   :  { %9526 = vmatmul.mubr.msk.f32.gmra.mxu1 %vm377_vm0, %v3352_v6  ;;  %v3128_v59 = vrot.slane %v10136_v49, %v11256_v57 }
 0x5dc   :  { %v3100_v45 = vadd.f32 %v3099_v46, %v3098_v26 }
 0x5dd   :  { %v10138_v24 = vpop.eup %10137  ;;  %v3157_v22 = vmul.f32 %v12265_v17, %v3128_v59  ;;  %v3158_v41 = vmul.f32 %v12262_v28, %v3128_v59  ;;  %v3159_v61 = vmul.f32 %v12273_v37, %v3128_v59  ;;  %v3160_v31 = vmul.f32 %v12310_v14, %v3128_v59 }
 0x5de   :  { %v3132_v55 = vrot.slane %v10138_v24, %v11256_v57  ;;  %10141 = vrcp.f32 %v3100_v45 }
 0x5df   :  { %v3192_v48 = vrot.slane %v3157_v22, %v11256_v57  ;;  %v3232_v60 = vrot.slane %v3158_v41, %v11256_v57  ;;  %v3280_v17 = vrot.slane %v3159_v61, %v11256_v57  ;;  %v3328_v28 = vrot.slane %v3160_v31, %v11256_v57 }
 0x5e0   :  { %v3161_v37 = vmul.f32 %v12295_v11, %v3132_v55  ;;  %v3162_v14 = vmul.f32 %v12270_v33, %v3132_v55  ;;  %v3163_v62 = vmul.f32 %v12276_v58, %v3132_v55  ;;  %v3164_v38 = vmul.f32 %v12318_v27, %v3132_v55 }
 0x5e1   :  { %v10140_v40 = vpop.eup %10139  ;;  %v3209_v2 = vmul.f32 %v3192_v48, %v2531_v29  ;;  %v3249_v51 = vmul.f32 %v3232_v60, %v12402_v32  ;;  %v3297_v33 = vmul.f32 %v3280_v17, %v2541_v1  ;;  %v3345_v3 = vmul.f32 %v3328_v28, %v2546_v39  ;;  %v8767_v17 = vld [vmem:[%s14481_s10 + $0xa8] sm:$0xff] }
 0x5e2   :  { %v3196_v63 = vrot.slane %v3161_v37, %v11256_v57  ;;  %v3236_v52 = vrot.slane %v3162_v14, %v11256_v57  ;;  %v3284_v11 = vrot.slane %v3163_v62, %v11256_v57  ;;  %v3136_v58 = vrot.slane %v10140_v40, %v11256_v57  ;;  %v8744_v28 = vld [vmem:[#allocation8 + $0x3] ss:$0 sm:$0xff] }
 0x5e3   :  { %v3257_v25 = vadd.f32 %v3249_v51, %v3209_v2  ;;  %v3332_v5 = vrot.slane %v3164_v38, %v11256_v57 }
 0x5e4   :  { %v3210_v27 = vmul.f32 %v3196_v63, %v2531_v29  ;;  %v3250_v53 = vmul.f32 %v3236_v52, %v12402_v32  ;;  %v3165_v21 = vmul.f32 %v12300_v0, %v3136_v58  ;;  %v3166_v12 = vmul.f32 %v12285_v4, %v3136_v58 }
 0x5e5   :  { %v3305_v20 = vadd.f32 %v3297_v33, %v3257_v25  ;;  %v3167_v34 = vmul.f32 %v12289_v15, %v3136_v58  ;;  %v3298_v50 = vmul.f32 %v3284_v11, %v2541_v1  ;;  %v3168_v43 = vmul.f32 %v12327_v10, %v3136_v58 }
 0x5e6   :  { %v3258_v35 = vadd.f32 %v3250_v53, %v3210_v27  ;;  %v3200_v42 = vrot.slane %v3165_v21, %v11256_v57  ;;  %v3240_v56 = vrot.slane %v3166_v12, %v11256_v57  ;;  %v3346_v44 = vmul.f32 %v3332_v5, %v2546_v39 }
 0x5e7   :  { %v3353_v8 = vadd.f32 %v3345_v3, %v3305_v20  ;;  %v3288_v7 = vrot.slane %v3167_v34, %v11256_v57  ;;  %v3336_v15 = vrot.slane %v3168_v43, %v11256_v57  ;;  %v3945_v43 = vld [vmem:[#allocation11 + $0x18] sm:$0xff] }
 0x5e8   :  { %v3306_v47 = vadd.f32 %v3298_v50, %v3258_v35  ;;  %v3211_v0 = vmul.f32 %v3200_v42, %v2531_v29  ;;  %v3251_v4 = vmul.f32 %v3240_v56, %v12402_v32  ;;  %v8766_v50 = vld [vmem:[%s14481_s10 + $0xa0] sm:$0xff] }
 0x5e9   :  { %9528 = vmatprep.mubr.msk.f32.mxu1 %vm377_vm0, %v3353_v8  ;;  %v3299_v10 = vmul.f32 %v3288_v7, %v2541_v1  ;;  %v3347_v49 = vmul.f32 %v3336_v15, %v2546_v39  ;;  %v8757_v8 = vld [vmem:[#allocation8 + $0x4] ss:$0 sm:$0xff] }
 0x5ea   :  { %v3354_v16 = vadd.f32 %v3346_v44, %v3306_v47  ;;  %v3259_v19 = vadd.f32 %v3251_v4, %v3211_v0  ;;  %v3944_v4 = vld [vmem:[#allocation11 + $0x10] sm:$0xff] }
 0x5eb   :  { %v10142_v18 = vpop.eup %10141 }
 0x5ec   :  { %9529 = vmatmul.mubr.msk.f32.gmra.mxu1 %vm377_vm0, %v3354_v16  ;;  %v3140_v26 = vrot.slane %v10142_v18, %v11256_v57  ;;  %v3307_v6 = vadd.f32 %v3299_v10, %v3259_v19  ;;  %v3943_v16 = vld [vmem:[#allocation11 + $0x8] sm:$0xff]  ;;  %v3942_v10 = vld [vmem:[#allocation11] sm:$0xff] }
 0x5ee   :  { %v3169_v36 = vmul.f32 %v12338_v9, %v3140_v26  ;;  %v3170_v46 = vmul.f32 %v12306_v13, %v3140_v26  ;;  %v3171_v59 = vmul.f32 %v12322_v54, %v3140_v26  ;;  %v3172_v45 = vmul.f32 %v12347_v30, %v3140_v26  ;;  %v8753_v30 = vld [vmem:[%s14481_s10 + $0x80] sm:$0xff] }
 0x5ef   :  { %v3355_v24 = vadd.f32 %v3347_v49, %v3307_v6  ;;  %9540 = vmatprep.subr.mxu0 %v8753_v30 }
 0x5f0   :  { %v3204_v22 = vrot.slane %v3169_v36, %v11256_v57  ;;  %v3244_v41 = vrot.slane %v3170_v46, %v11256_v57  ;;  %v3292_v61 = vrot.slane %v3171_v59, %v11256_v57  ;;  %v3340_v9 = vrot.slane %v3172_v45, %v11256_v57  ;;  %9541 = vmatpush3.msra.mxu0 %v8753_v30  ;;  %v14511_v30 = vld [vmem:[#allocation33_spill] sm:$0xff] }
 0x5f1   :  { %9531 = vmatprep.mubr.msk.f32.mxu1 %vm377_vm0, %v3355_v24 }
 0x5f2   :  { %v3212_v31 = vmul.f32 %v3204_v22, %v2531_v29  ;;  %v3252_v23 = vmul.f32 %v3244_v41, %v12402_v32  ;;  %v3300_v13 = vmul.f32 %v3292_v61, %v2541_v1  ;;  %v3348_v54 = vmul.f32 %v3340_v9, %v2546_v39  ;;  %v8769_v29 = vld [vmem:[%s14481_s10 + $0xb8] sm:$0xff]  ;;  %v8768_v32 = vld [vmem:[%s14481_s10 + $0xb0] sm:$0xff] }
 0x5f3   :  { %9554 = vmatprep.subr.mxu1 %v8769_v29 }
 0x5f4   :  { %v3260_v55 = vadd.f32 %v3252_v23, %v3212_v31  ;;  %9555 = vmatpush3.msra.mxu1 %v8769_v29  ;;  %v14512_v29 = vld [vmem:[#allocation35_spill] sm:$0xff] }
 0x5f5   :  { %9556 = vmatprep.subr.mxu1 %v8768_v32 }
 0x5f6   :  { %v3308_v48 = vadd.f32 %v3300_v13, %v3260_v55  ;;  %9557 = vmatpush3.msra.mxu1 %v8768_v32  ;;  %v14507_v13 = vld [vmem:[#allocation38_spill] sm:$0xff] }
 0x5f7   :  { %9558 = vmatprep.subr.mxu1 %v8767_v17  ;;  %v14513_v32 = vld [vmem:[#allocation34_spill] sm:$0xff] }
 0x5f8   :  { %v3356_v60 = vadd.f32 %v3348_v54, %v3308_v48  ;;  %9559 = vmatpush3.msra.mxu1 %v8767_v17  ;;  %v14508_v48 = vld [vmem:[#allocation37_spill] sm:$0xff]  ;;  %v14509_v54 = vld [vmem:[#allocation40_spill] sm:$0xff] }
 0x5f9   :  { %9560 = vmatprep.subr.mxu1 %v8766_v50  ;;  %v14514_v17 = vld [vmem:[#allocation36_spill] sm:$0xff] }
 0x5fa   :  { %9532 = vmatmul.mubr.msk.f32.gmra.mxu1 %vm377_vm0, %v3356_v60  ;;  %v14510_v60 = vld [vmem:[#allocation39_spill] sm:$0xff] }
 0x5fb   :  { %9561 = vmatpush3.msra.mxu1 %v8766_v50 }
 0x5fc   :  { %9594 = vmatprep.subr.mxu1 %v3945_v43 }
 0x692   :  { %v9524_v37 = vpop.f32.mrf.mxu1 }
 0x693   :  { %v3466_v14 = vadd.f32 %v9524_v37, %v8744_v28 }
 0x694   :  { %v3460_v62 = vpop.f32.mrf.mxu1 }
 0x695   :  { %v3461_v38 = vadd.f32 %v8744_v28, %v3460_v62  ;;  %v3500_v1 = vmax.f32 %v3466_v14, 0.0 }
 0x697   :  { %v3499_v40 = vmax.f32 %v3461_v38, 0.0 }
 0x699   :  { %9542 = vmatprep.mubr.msk.f32.mxu0 %vm377_vm0, %v3499_v40 }
 0x69a   :  { %9543 = vmatmul.mubr.msk.f32.vlgmr.msra.gmra.mxu0 %vm377_vm0, %v3500_v1 }
 0x69b   :  { %v9527_v2 = vpop.f32.mrf.mxu1 }
 0x69c   :  { %v3476_v51 = vadd.f32 %v9527_v2, %v8744_v28 }
 0x69d   :  { %v3470_v39 = vpop.f32.mrf.mxu1 }
 0x69e   :  { %v3471_v63 = vadd.f32 %v8744_v28, %v3470_v39  ;;  %v3502_v11 = vmax.f32 %v3476_v51, 0.0 }
 0x6a0   :  { %v3501_v52 = vmax.f32 %v3471_v63, 0.0 }
 0x6a2   :  { %9545 = vmatprep.mubr.msk.f32.mxu0 %vm377_vm0, %v3501_v52 }
 0x6a3   :  { %9546 = vmatmul.mubr.msk.f32.gmra.mxu0 %vm377_vm0, %v3502_v11 }
 0x6ac   :  { %v9530_v25 = vpop.f32.mrf.mxu1 }
 0x6ad   :  { %v3486_v33 = vadd.f32 %v9530_v25, %v8744_v28 }
 0x6ae   :  { %v3480_v58 = vpop.f32.mrf.mxu1 }
 0x6af   :  { %v3481_v3 = vadd.f32 %v8744_v28, %v3480_v58  ;;  %v3504_v53 = vmax.f32 %v3486_v33, 0.0 }
 0x6b1   :  { %v3503_v27 = vmax.f32 %v3481_v3, 0.0 }
 0x6b3   :  { %9548 = vmatprep.mubr.msk.f32.mxu0 %vm377_vm0, %v3503_v27  ;;  %v2015_v27 = vpop.xlane.xlu0 %2014 }
 0x6b4   :  { %9549 = vmatmul.mubr.msk.f32.gmra.mxu0 %vm377_vm0, %v3504_v53 }
 0x6ba   :  { %v9533_v5 = vpop.f32.mrf.mxu1 }
 0x6bb   :  { %v3496_v20 = vadd.f32 %v9533_v5, %v8744_v28 }
 0x6bc   :  { %v3490_v21 = vpop.f32.mrf.mxu1 }
 0x6bd   :  { %v3491_v12 = vadd.f32 %v8744_v28, %v3490_v21  ;;  %v3506_v35 = vmax.f32 %v3496_v20, 0.0  ;;  %v8770_v28 = vld [vmem:[#allocation8 + $0x5] ss:$0 sm:$0xff]  ;;  %v2021_v20 = vpop.xlane.xlu0 %2020 }
 0x6bf   :  { %v3505_v34 = vmax.f32 %v3491_v12, 0.0 }
 0x6c1   :  { %9551 = vmatprep.mubr.msk.f32.mxu0 %vm377_vm0, %v3505_v34 }
 0x6c2   :  { %9552 = vmatmul.mubr.msk.f32.gmra.mxu0 %vm377_vm0, %v3506_v35 }
 0x75a   :  { %v9544_v42 = vpop.f32.mrf.mxu0 }
 0x75b   :  { %v3616_v56 = vadd.f32 %v9544_v42, %v8757_v8  ;;  %v2024_v42 = vpop.xlane.xlu0 %2023 }
 0x75c   :  { %v3610_v7 = vpop.f32.mrf.mxu0 }
 0x75d   :  { %v3611_v47 = vadd.f32 %v8757_v8, %v3610_v7  ;;  %v3650_v0 = vmax.f32 %v3616_v56, 0.0  ;;  %v2038_v7 = vmul.f32 0.03125, %v2015_v27 }
 0x75f   :  { %v3649_v44 = vmax.f32 %v3611_v47, 0.0  ;;  %v14515_v47 = vld [vmem:[#allocation42_spill] sm:$0xff] }
 0x761   :  { %9562 = vmatprep.mubr.msk.f32.mxu1 %vm377_vm0, %v3649_v44 }
 0x762   :  { %9563 = vmatmul.mubr.msk.f32.vlgmr.msra.gmra.mxu1 %vm377_vm0, %v3650_v0  ;;  %v2030_v0 = vpop.xlane.xlu0 %2029 }
 0x763   :  { %v9547_v15 = vpop.f32.mrf.mxu0  ;;  %9595 = vmatpush3.msra.mxu1 %v3945_v43  ;;  %v2018_v43 = vpop.xlane.xlu1 %2017 }
 0x764   :  { %9596 = vmatprep.subr.mxu1 %v3944_v4  ;;  %v3626_v18 = vadd.f32 %v9547_v15, %v8757_v8  ;;  %v2039_v56 = vmul.f32 0.03125, %v2018_v43  ;;  %v2041_v15 = vmul.f32 0.03125, %v2024_v42  ;;  %v3948_v43 = vld [vmem:[#allocation11 + $0x28] sm:$0xff] }
 0x765   :  { %v3620_v19 = vpop.f32.mrf.mxu0  ;;  %9597 = vmatpush3.msra.mxu1 %v3944_v4 }
 0x766   :  { %v3621_v26 = vadd.f32 %v8757_v8, %v3620_v19  ;;  %9598 = vmatprep.subr.mxu1 %v3943_v16  ;;  %v3652_v49 = vmax.f32 %v3626_v18, 0.0  ;;  %v12524_v44 = vsub.f32 %v14515_v47, %v2039_v56 }
 0x767   :  { %9599 = vmatpush3.msra.mxu1 %v3943_v16  ;;  %v2027_v18 = vpop.xlane.xlu1 %2026 }
 0x768   :  { %v3651_v6 = vmax.f32 %v3621_v26, 0.0  ;;  %9600 = vmatprep.subr.mxu1 %v3942_v10 }
 0x769   :  { %9601 = vmatpush3.msra.mxu1 %v3942_v10  ;;  %v14516_v10 = vld [vmem:[#allocation43_spill] sm:$0xff] }
 0x76a   :  { %9565 = vmatprep.mubr.msk.f32.mxu1 %vm377_vm0, %v3651_v6  ;;  %v12527_v26 = vsub.f32 %v14516_v10, %v2038_v7  ;;  %v2040_v6 = vmul.f32 0.03125, %v2021_v20 }
 0x76b   :  { %9566 = vmatmul.mubr.msk.f32.gmra.mxu1 %vm377_vm0, %v3652_v49 }
 0x774   :  { %v9550_v36 = vpop.f32.mrf.mxu0 }
 0x775   :  { %v3636_v46 = vadd.f32 %v9550_v36, %v8757_v8 }
 0x776   :  { %v3630_v59 = vpop.f32.mrf.mxu0 }
 0x777   :  { %v3631_v45 = vadd.f32 %v8757_v8, %v3630_v59  ;;  %v3654_v22 = vmax.f32 %v3636_v46, 0.0  ;;  %v2055_v46 = vmul.f32 %v12524_v44, %v12524_v44  ;;  %v14517_v59 = vld [vmem:[#allocation41_spill] sm:$0xff] }
 0x779   :  { %v3653_v24 = vmax.f32 %v3631_v45, 0.0  ;;  %v12535_v45 = vsub.f32 %v14517_v59, %v2041_v15 }
 0x77b   :  { %9568 = vmatprep.mubr.msk.f32.mxu1 %vm377_vm0, %v3653_v24  ;;  %v2043_v24 = vmul.f32 0.03125, %v2030_v0 }
 0x77c   :  { %9569 = vmatmul.mubr.msk.f32.gmra.mxu1 %vm377_vm0, %v3654_v22 }
 0x782   :  { %v9553_v41 = vpop.f32.mrf.mxu0 }
 0x783   :  { %v3646_v61 = vadd.f32 %v9553_v41, %v8757_v8 }
 0x784   :  { %v3640_v31 = vpop.f32.mrf.mxu0 }
 0x785   :  { %v3641_v23 = vadd.f32 %v8757_v8, %v3640_v31  ;;  %v3656_v55 = vmax.f32 %v3646_v61, 0.0  ;;  %v2036_v61 = vpop.xlane.xlu0 %2035  ;;  %v14518_v31 = vld [vmem:[#allocation44_spill] sm:$0xff] }
 0x787   :  { %v3655_v9 = vmax.f32 %v3641_v23, 0.0  ;;  %v12543_v23 = vsub.f32 %v14518_v31, %v2040_v6 }
 0x789   :  { %9571 = vmatprep.mubr.msk.f32.mxu1 %vm377_vm0, %v3655_v9  ;;  %v2042_v9 = vmul.f32 0.03125, %v2027_v18 }
 0x78a   :  { %9572 = vmatmul.mubr.msk.f32.gmra.mxu1 %vm377_vm0, %v3656_v55 }
 0x78b   :  { %9602 = vmatprep.mubr.msk.f32.mxu1 %vm377_vm0, %v14507_v13 }
 0x78e   :  { %9603 = vmatmul.mubr.msk.f32.vlgmr.msra.gmra.mxu1 %vm377_vm0, %v14508_v48 }
 0x78f   :  { %9605 = vmatprep.mubr.msk.f32.mxu1 %vm377_vm0, %v14509_v54 }
 0x792   :  { %9606 = vmatmul.mubr.msk.f32.gmra.mxu1 %vm377_vm0, %v14510_v60 }
 0x793   :  { %9608 = vmatprep.mubr.msk.f32.mxu1 %vm377_vm0, %v14511_v30 }
 0x796   :  { %9609 = vmatmul.mubr.msk.f32.gmra.mxu1 %vm377_vm0, %v14512_v29 }
 0x797   :  { %9611 = vmatprep.mubr.msk.f32.mxu1 %vm377_vm0, %v14513_v32 }
 0x79a   :  { %9612 = vmatmul.mubr.msk.f32.gmra.mxu1 %vm377_vm0, %v14514_v17 }
 0x822   :  { %v9564_v37 = vpop.f32.mrf.mxu1 }
 0x823   :  { %v3766_v14 = vadd.f32 %v9564_v37, %v8770_v28 }
 0x824   :  { %v3760_v62 = vpop.f32.mrf.mxu1 }
 0x825   :  { %v3761_v38 = vadd.f32 %v8770_v28, %v3760_v62  ;;  %v12494_v40 = vadd.f32 %v3766_v14, %v14508_v48  ;;  %v2033_v48 = vpop.xlane.xlu1 %2032  ;;  %v2056_v62 = vmul.f32 %v12543_v23, %v12543_v23 }
 0x826   :  { %v2044_v37 = vmul.f32 0.03125, %v2033_v48 }
 0x827   :  { %v3810_v1 = vsel %vm377_vm0, %v12494_v40, 0.0  ;;  %v12499_v2 = vadd.f32 %v3761_v38, %v14507_v13  ;;  %v2054_v13 = vmul.f32 %v12527_v26, %v12527_v26  ;;  %v14521_v38 = vld [vmem:[#allocation47_spill] sm:$0xff] }
 0x828   :  { %3811 = vadd.xlane.f32.xlu0 %v3810_v1 }
 0x829   :  { %v3807_v51 = vsel %vm377_vm0, %v12499_v2, 0.0  ;;  %v2062_v14 = vsel %vm377_vm0, %v2054_v13, 0.0 }
 0x82a   :  { %3808 = vadd.xlane.f32.xlu1 %v3807_v51 }
 0x82b   :  { %v9567_v39 = vpop.f32.mrf.mxu1 }
 0x82c   :  { %v3776_v63 = vadd.f32 %v9567_v39, %v8770_v28 }
 0x82d   :  { %v3770_v52 = vpop.f32.mrf.mxu1 }
 0x82e   :  { %v3771_v11 = vadd.f32 %v8770_v28, %v3770_v52  ;;  %v12504_v25 = vadd.f32 %v3776_v63, %v14510_v60  ;;  %v14522_v63 = vld [vmem:[#allocation48_spill] sm:$0xff] }
 0x82f   :  { %v12568_v52 = vsub.f32 %v14522_v63, %v2044_v37 }
 0x830   :  { %v3816_v33 = vsel %vm377_vm0, %v12504_v25, 0.0  ;;  %v12509_v58 = vadd.f32 %v3771_v11, %v14509_v54  ;;  %v14519_v54 = vld [vmem:[#allocation45_spill] sm:$0xff]  ;;  %v2068_v11 = vsel %vm377_vm0, %v2056_v62, 0.0 }
 0x831   :  { %3817 = vadd.xlane.f32.xlu0 %v3816_v33  ;;  %v12550_v60 = vsub.f32 %v14519_v54, %v2043_v24 }
 0x832   :  { %v3813_v3 = vsel %vm377_vm0, %v12509_v58, 0.0 }
 0x833   :  { %3814 = vadd.xlane.f32.xlu1 %v3813_v3  ;;  %v2059_v39 = vmul.f32 %v12550_v60, %v12550_v60 }
 0x835   :  { %v2077_v3 = vsel %vm377_vm0, %v2059_v39, 0.0 }
 0x83c   :  { %v9570_v53 = vpop.f32.mrf.mxu1 }
 0x83d   :  { %v3786_v5 = vadd.f32 %v9570_v53, %v8770_v28 }
 0x83e   :  { %v3780_v21 = vpop.f32.mrf.mxu1 }
 0x83f   :  { %v3781_v12 = vadd.f32 %v8770_v28, %v3780_v21  ;;  %v12514_v34 = vadd.f32 %v3786_v5, %v14512_v29  ;;  %v2065_v29 = vsel %vm377_vm0, %v2055_v46, 0.0  ;;  %v2060_v5 = vmul.f32 %v12568_v52, %v12568_v52 }
 0x841   :  { %v3822_v35 = vsel %vm377_vm0, %v12514_v34, 0.0  ;;  %v12519_v50 = vadd.f32 %v3781_v12, %v14511_v30  ;;  %v2045_v30 = vmul.f32 0.03125, %v2036_v61  ;;  %v2080_v21 = vsel %vm377_vm0, %v2060_v5, 0.0  ;;  %v3950_v12 = vld [vmem:[#allocation11 + $0x38] sm:$0xff] }
 0x842   :  { %3823 = vadd.xlane.f32.xlu0 %v3822_v35  ;;  %v3949_v35 = vld [vmem:[#allocation11 + $0x30] sm:$0xff]  ;;  %9574 = vmatprep.subr.mxu0 %v3950_v12 }
 0x843   :  { %v3819_v8 = vsel %vm377_vm0, %v12519_v50, 0.0  ;;  %v12562_v1 = vsub.f32 %v14521_v38, %v2045_v30  ;;  %9575 = vmatpush3.msra.mxu0 %v3950_v12 }
 0x844   :  { %3820 = vadd.xlane.f32.xlu1 %v3819_v8  ;;  %9576 = vmatprep.subr.mxu0 %v3949_v35  ;;  %v3947_v8 = vld [vmem:[#allocation11 + $0x20] sm:$0xff] }
 0x845   :  { %v2061_v27 = vmul.f32 %v12562_v1, %v12562_v1  ;;  %9577 = vmatpush3.msra.mxu0 %v3949_v35 }
 0x846   :  { %9578 = vmatprep.subr.mxu0 %v3948_v43 }
 0x847   :  { %v2083_v20 = vsel %vm377_vm0, %v2061_v27, 0.0  ;;  %9579 = vmatpush3.msra.mxu0 %v3948_v43 }
 0x848   :  { %9580 = vmatprep.subr.mxu0 %v3947_v8 }
 0x849   :  { %9581 = vmatpush3.msra.mxu0 %v3947_v8 }
 0x84a   :  { %v9573_v4 = vpop.f32.mrf.mxu1 }
 0x84b   :  { %v3796_v16 = vadd.f32 %v9573_v4, %v8770_v28 }
 0x84c   :  { %v3790_v19 = vpop.f32.mrf.mxu1 }
 0x84d   :  { %v3791_v49 = vadd.f32 %v8770_v28, %v3790_v19  ;;  %v12530_v36 = vadd.f32 %v3796_v16, %v14514_v17  ;;  %v14520_v17 = vld [vmem:[#allocation46_spill] sm:$0xff] }
 0x84e   :  { %v12556_v28 = vsub.f32 %v14520_v17, %v2042_v9 }
 0x84f   :  { %v3828_v22 = vsel %vm377_vm0, %v12530_v36, 0.0  ;;  %v12540_v41 = vadd.f32 %v3791_v49, %v14513_v32  ;;  %v2057_v32 = vmul.f32 %v12535_v45, %v12535_v45 }
 0x850   :  { %3829 = vadd.xlane.f32.xlu0 %v3828_v22  ;;  %v2058_v33 = vmul.f32 %v12556_v28, %v12556_v28 }
 0x851   :  { %v3825_v55 = vsel %vm377_vm0, %v12540_v41, 0.0  ;;  %v2071_v51 = vsel %vm377_vm0, %v2057_v32, 0.0 }
 0x852   :  { %3826 = vadd.xlane.f32.xlu1 %v3825_v55  ;;  %v2074_v53 = vsel %vm377_vm0, %v2058_v33, 0.0 }
 0x854   :  { %2066 = vadd.xlane.f32.xlu0 %v2065_v29 }
 0x856   :  { %2063 = vadd.xlane.f32.xlu1 %v2062_v14 }
 0x858   :  { %2072 = vadd.xlane.f32.xlu0 %v2071_v51 }
 0x85a   :  { %2069 = vadd.xlane.f32.xlu1 %v2068_v11 }
 0x85c   :  { %2078 = vadd.xlane.f32.xlu0 %v2077_v3 }
 0x85e   :  { %2075 = vadd.xlane.f32.xlu1 %v2074_v53 }
 0x860   :  { %2084 = vadd.xlane.f32.xlu0 %v2083_v20  ;;  %v4213_v20 = vld [vmem:[#allocation11 + $0x58] sm:$0xff] }
 0x861   :  { %9614 = vmatprep.subr.mxu0 %v4213_v20 }
 0x862   :  { %2081 = vadd.xlane.f32.xlu1 %v2080_v21 }
 0x8b1   :  { %v3812_v42 = vpop.xlane.xlu0 %3811 }
 0x8b2   :  { %v3832_v56 = vmul.f32 0.03125, %v3812_v42 }
 0x8b3   :  { %v3809_v7 = vpop.xlane.xlu1 %3808 }
 0x8b4   :  { %v12582_v47 = vsub.f32 %v12494_v40, %v3832_v56  ;;  %v3831_v0 = vmul.f32 0.03125, %v3809_v7 }
 0x8b6   :  { %v12585_v4 = vsub.f32 %v12499_v2, %v3831_v0  ;;  %v3848_v15 = vmul.f32 %v12582_v47, %v12582_v47 }
 0x8b8   :  { %v3858_v16 = vsel %vm377_vm0, %v3848_v15, 0.0  ;;  %v3847_v18 = vmul.f32 %v12585_v4, %v12585_v4 }
 0x8b9   :  { %3859 = vadd.xlane.f32.xlu0 %v3858_v16 }
 0x8ba   :  { %v3818_v19 = vpop.xlane.xlu0 %3817  ;;  %v3855_v10 = vsel %vm377_vm0, %v3847_v18, 0.0 }
 0x8bb   :  { %v3834_v6 = vmul.f32 0.03125, %v3818_v19  ;;  %3856 = vadd.xlane.f32.xlu1 %v3855_v10 }
 0x8bc   :  { %v3815_v40 = vpop.xlane.xlu1 %3814 }
 0x8bd   :  { %v12594_v49 = vsub.f32 %v12504_v25, %v3834_v6  ;;  %v3833_v2 = vmul.f32 0.03125, %v3815_v40 }
 0x8bf   :  { %v12597_v46 = vsub.f32 %v12509_v58, %v3833_v2  ;;  %v3850_v59 = vmul.f32 %v12594_v49, %v12594_v49  ;;  %v8702_v2 = vld [vmem:[%s14523_s12] ss:$0 sm:$0xff] }
 0x8c1   :  { %v3864_v24 = vsel %vm377_vm0, %v3850_v59, 0.0  ;;  %v3849_v22 = vmul.f32 %v12597_v46, %v12597_v46 }
 0x8c2   :  { %3865 = vadd.xlane.f32.xlu0 %v3864_v24 }
 0x8c3   :  { %v3861_v61 = vsel %vm377_vm0, %v3849_v22, 0.0 }
 0x8c4   :  { %3862 = vadd.xlane.f32.xlu1 %v3861_v61 }
 0x8cb   :  { %v3824_v31 = vpop.xlane.xlu0 %3823 }
 0x8cc   :  { %v3836_v9 = vmul.f32 0.03125, %v3824_v31 }
 0x8cd   :  { %v3821_v25 = vpop.xlane.xlu1 %3820 }
 0x8ce   :  { %v12606_v55 = vsub.f32 %v12514_v34, %v3836_v9  ;;  %v3835_v58 = vmul.f32 0.03125, %v3821_v25  ;;  %v8704_v25 = vld [vmem:[%s14523_s12 + $0x1] ss:$0 sm:$0xff] }
 0x8d0   :  { %v12609_v13 = vsub.f32 %v12519_v50, %v3835_v58  ;;  %v3852_v48 = vmul.f32 %v12606_v55, %v12606_v55 }
 0x8d2   :  { %v3870_v54 = vsel %vm377_vm0, %v3852_v48, 0.0  ;;  %v3851_v30 = vmul.f32 %v12609_v13, %v12609_v13 }
 0x8d3   :  { %3871 = vadd.xlane.f32.xlu0 %v3870_v54 }
 0x8d4   :  { %v3867_v29 = vsel %vm377_vm0, %v3851_v30, 0.0 }
 0x8d5   :  { %3868 = vadd.xlane.f32.xlu1 %v3867_v29 }
 0x8d9   :  { %v3830_v32 = vpop.xlane.xlu0 %3829 }
 0x8da   :  { %v3838_v17 = vmul.f32 0.03125, %v3830_v32 }
 0x8db   :  { %v3827_v34 = vpop.xlane.xlu1 %3826 }
 0x8dc   :  { %v12618_v37 = vsub.f32 %v12530_v36, %v3838_v17  ;;  %v3837_v50 = vmul.f32 0.03125, %v3827_v34  ;;  %v4212_v34 = vld [vmem:[#allocation11 + $0x50] sm:$0xff] }
 0x8dd   :  { %v2067_v14 = vpop.xlane.xlu0 %2066 }
 0x8de   :  { %v12621_v62 = vsub.f32 %v12540_v41, %v3837_v50  ;;  %v2087_v38 = vmul.f32 0.03125, %v2067_v14  ;;  %v3854_v51 = vmul.f32 %v12618_v37, %v12618_v37 }
 0x8df   :  { %v2064_v39 = vpop.xlane.xlu1 %2063 }
 0x8e0   :  { %v2096_v63 = vadd.f32 1e-05, %v2087_v38  ;;  %v2086_v11 = vmul.f32 0.03125, %v2064_v39  ;;  %v3876_v33 = vsel %vm377_vm0, %v3854_v51, 0.0  ;;  %v3853_v3 = vmul.f32 %v12621_v62, %v12621_v62 }
 0x8e1   :  { %3877 = vadd.xlane.f32.xlu0 %v3876_v33  ;;  %v2073_v36 = vpop.xlane.xlu0 %2072 }
 0x8e2   :  { %10143 = vrsqrt.f32 %v2096_v63  ;;  %v2095_v27 = vadd.f32 1e-05, %v2086_v11  ;;  %v2089_v53 = vmul.f32 0.03125, %v2073_v36  ;;  %v3873_v41 = vsel %vm377_vm0, %v3853_v3, 0.0 }
 0x8e3   :  { %3874 = vadd.xlane.f32.xlu1 %v3873_v41  ;;  %v2070_v5 = vpop.xlane.xlu1 %2069 }
 0x8e4   :  { %10145 = vrsqrt.f32 %v2095_v27  ;;  %v2098_v21 = vadd.f32 1e-05, %v2089_v53  ;;  %v2088_v12 = vmul.f32 0.03125, %v2070_v5 }
 0x8e5   :  { %v2079_v35 = vpop.xlane.xlu0 %2078 }
 0x8e6   :  { %10147 = vrsqrt.f32 %v2098_v21  ;;  %v2097_v43 = vadd.f32 1e-05, %v2088_v12  ;;  %v2091_v8 = vmul.f32 0.03125, %v2079_v35 }
 0x8e7   :  { %v2076_v42 = vpop.xlane.xlu1 %2075 }
 0x8e8   :  { %10149 = vrsqrt.f32 %v2097_v43  ;;  %v2100_v56 = vadd.f32 1e-05, %v2091_v8  ;;  %v2090_v7 = vmul.f32 0.03125, %v2076_v42  ;;  %v4393_v43 = vld [vmem:[#allocation14 + $0x18] sm:$0xff]  ;;  %v4392_v42 = vld [vmem:[#allocation14 + $0x10] sm:$0xff] }
 0x8e9   :  { %v2085_v0 = vpop.xlane.xlu0 %2084  ;;  %v4542_v8 = vld [vmem:[#allocation14 + $0x38] sm:$0xff]  ;;  %9634 = vmatprep.subr.mxu1 %v4393_v43 }
 0x8ea   :  { %10151 = vrsqrt.f32 %v2100_v56  ;;  %v2099_v15 = vadd.f32 1e-05, %v2090_v7  ;;  %v2093_v16 = vmul.f32 0.03125, %v2085_v0  ;;  %9635 = vmatpush3.msra.mxu1 %v4393_v43 }
 0x8eb   :  { %v2082_v18 = vpop.xlane.xlu1 %2081  ;;  %9636 = vmatprep.subr.mxu1 %v4392_v42 }
 0x8ec   :  { %10153 = vrsqrt.f32 %v2099_v15  ;;  %v2102_v19 = vadd.f32 1e-05, %v2093_v16  ;;  %v2092_v10 = vmul.f32 0.03125, %v2082_v18  ;;  %9637 = vmatpush3.msra.mxu1 %v4392_v42 }
 0x8ee   :  { %10155 = vrsqrt.f32 %v2102_v19  ;;  %v2101_v6 = vadd.f32 1e-05, %v2092_v10  ;;  %v8779_v10 = vld [vmem:[#allocation10] ss:$0 sm:$0xff] }
 0x8ef   :  { %v10144_v40 = vpop.eup %10143 }
 0x8f0   :  { %v2112_v59 = vmul.f32 %v10144_v40, %v12524_v44  ;;  %10157 = vrsqrt.f32 %v2101_v6 }
 0x8f1   :  { %v10146_v24 = vpop.eup %10145 }
 0x8f2   :  { %v2111_v22 = vmul.f32 %v10146_v24, %v12527_v26  ;;  %v2126_v31 = vmul.f32 %v8702_v2, %v2112_v59 }
 0x8f3   :  { %v10148_v61 = vpop.eup %10147 }
 0x8f4   :  { %v2125_v9 = vmul.f32 %v8702_v2, %v2111_v22  ;;  %v2114_v58 = vmul.f32 %v10148_v61, %v12535_v45  ;;  %v2142_v32 = vadd.f32 %v8704_v25, %v2126_v31  ;;  %v4211_v45 = vld [vmem:[#allocation11 + $0x48] sm:$0xff]  ;;  %v8780_v22 = vld [vmem:[#allocation10 + $0x1] ss:$0 sm:$0xff] }
 0x8f5   :  { %v10150_v48 = vpop.eup %10149 }
 0x8f6   :  { %v2141_v54 = vadd.f32 %v8704_v25, %v2125_v9  ;;  %v2113_v30 = vmul.f32 %v10150_v48, %v12543_v23  ;;  %v2128_v44 = vmul.f32 %v8702_v2, %v2114_v58  ;;  %v4541_v48 = vld [vmem:[#allocation14 + $0x30] sm:$0xff] }
 0x8f7   :  { %v10152_v29 = vpop.eup %10151 }
 0x8f8   :  { %9582 = vmatprep.mubr.msk.f32.mxu0 %vm377_vm0, %v2141_v54  ;;  %v2127_v17 = vmul.f32 %v8702_v2, %v2113_v30  ;;  %v2116_v26 = vmul.f32 %v10152_v29, %v12550_v60  ;;  %v2144_v39 = vadd.f32 %v8704_v25, %v2128_v44  ;;  %v4210_v60 = vld [vmem:[#allocation11 + $0x40] sm:$0xff] }
 0x8f9   :  { %v10154_v50 = vpop.eup %10153  ;;  %9583 = vmatmul.mubr.msk.f32.vlgmr.msra.gmra.mxu0 %vm377_vm0, %v2142_v32 }
 0x8fa   :  { %v2143_v14 = vadd.f32 %v8704_v25, %v2127_v17  ;;  %v2115_v38 = vmul.f32 %v10154_v50, %v12556_v28  ;;  %9615 = vmatpush3.msra.mxu0 %v4213_v20  ;;  %v2130_v23 = vmul.f32 %v8702_v2, %v2116_v26 }
 0x8fb   :  { %v10156_v51 = vpop.eup %10155  ;;  %9616 = vmatprep.subr.mxu0 %v4212_v34 }
 0x8fc   :  { %9585 = vmatprep.mubr.msk.f32.mxu0 %vm377_vm0, %v2143_v14  ;;  %v2129_v63 = vmul.f32 %v8702_v2, %v2115_v38  ;;  %v2118_v11 = vmul.f32 %v10156_v51, %v12562_v1  ;;  %9617 = vmatpush3.msra.mxu0 %v4212_v34  ;;  %v2146_v36 = vadd.f32 %v8704_v25, %v2130_v23 }
 0x8fd   :  { %v10158_v33 = vpop.eup %10157  ;;  %9586 = vmatmul.mubr.msk.f32.gmra.mxu0 %vm377_vm0, %v2144_v39  ;;  %9618 = vmatprep.subr.mxu0 %v4211_v45 }
 0x8fe   :  { %v2145_v3 = vadd.f32 %v8704_v25, %v2129_v63  ;;  %v2117_v28 = vmul.f32 %v10158_v33, %v12568_v52  ;;  %9619 = vmatpush3.msra.mxu0 %v4211_v45  ;;  %v2132_v27 = vmul.f32 %v8702_v2, %v2118_v11 }
 0x8ff   :  { %9620 = vmatprep.subr.mxu0 %v4210_v60 }
 0x900   :  { %9588 = vmatprep.mubr.msk.f32.mxu0 %vm377_vm0, %v2145_v3  ;;  %v2131_v53 = vmul.f32 %v8702_v2, %v2117_v28  ;;  %9621 = vmatpush3.msra.mxu0 %v4210_v60  ;;  %v2148_v41 = vadd.f32 %v8704_v25, %v2132_v27 }
 0x901   :  { %9589 = vmatmul.mubr.msk.f32.gmra.mxu0 %vm377_vm0, %v2146_v36  ;;  %9654 = vmatprep.subr.mxu0 %v4542_v8 }
 0x902   :  { %v2147_v1 = vadd.f32 %v8704_v25, %v2131_v53 }
 0x904   :  { %9591 = vmatprep.mubr.msk.f32.mxu0 %vm377_vm0, %v2147_v1 }
 0x905   :  { %9592 = vmatmul.mubr.msk.f32.gmra.mxu0 %vm377_vm0, %v2148_v41 }
 0x942   :  { %v3860_v5 = vpop.xlane.xlu0 %3859 }
 0x943   :  { %v3880_v20 = vmul.f32 0.03125, %v3860_v5 }
 0x944   :  { %v3857_v21 = vpop.xlane.xlu1 %3856 }
 0x945   :  { %v3889_v52 = vadd.f32 1e-05, %v3880_v20  ;;  %v3879_v12 = vmul.f32 0.03125, %v3857_v21  ;;  %v4540_v21 = vld [vmem:[#allocation14 + $0x28] sm:$0xff] }
 0x947   :  { %10159 = vrsqrt.f32 %v3889_v52  ;;  %v3888_v35 = vadd.f32 1e-05, %v3879_v12  ;;  %v4390_v52 = vld [vmem:[#allocation14] sm:$0xff] }
 0x948   :  { %v4539_v12 = vld [vmem:[#allocation14 + $0x20] sm:$0xff] }
 0x949   :  { %10161 = vrsqrt.f32 %v3888_v35 }
 0x94b   :  { %v3866_v56 = vpop.xlane.xlu0 %3865 }
 0x94c   :  { %v3882_v7 = vmul.f32 0.03125, %v3866_v56 }
 0x94d   :  { %v3863_v0 = vpop.xlane.xlu1 %3862 }
 0x94e   :  { %v3891_v15 = vadd.f32 1e-05, %v3882_v7  ;;  %v3881_v16 = vmul.f32 0.03125, %v3863_v0  ;;  %v9604_v0 = vpop.f32.mrf.mxu1 }
 0x950   :  { %10163 = vrsqrt.f32 %v3891_v15  ;;  %v3890_v18 = vadd.f32 1e-05, %v3881_v16 }
 0x952   :  { %10165 = vrsqrt.f32 %v3890_v18  ;;  %v4170_v18 = vpop.f32.mrf.mxu1 }
 0x954   :  { %v10160_v19 = vpop.eup %10159 }
 0x955   :  { %v3905_v6 = vmul.f32 %v10160_v19, %v12582_v47 }
 0x956   :  { %v10162_v40 = vpop.eup %10161 }
 0x957   :  { %v3904_v2 = vmul.f32 %v10162_v40, %v12585_v4  ;;  %v3919_v59 = vmul.f32 %v8779_v10, %v3905_v6 }
 0x959   :  { %v3918_v24 = vmul.f32 %v8779_v10, %v3904_v2  ;;  %v3935_v9 = vadd.f32 %v8780_v22, %v3919_v59 }
 0x95b   :  { %v3934_v61 = vadd.f32 %v8780_v22, %v3918_v24 }
 0x95c   :  { %v3872_v31 = vpop.xlane.xlu0 %3871 }
 0x95d   :  { %v10164_v25 = vpop.eup %10163  ;;  %v3884_v58 = vmul.f32 0.03125, %v3872_v31  ;;  %9622 = vmatprep.mubr.msk.f32.mxu0 %vm377_vm0, %v3934_v61 }
 0x95e   :  { %v3869_v54 = vpop.xlane.xlu1 %3868  ;;  %9623 = vmatmul.mubr.msk.f32.vlgmr.msra.gmra.mxu0 %vm377_vm0, %v3935_v9  ;;  %v3907_v30 = vmul.f32 %v10164_v25, %v12594_v49  ;;  %v4374_v9 = vld [vmem:[%s14344_s13] sm:$0xff]  ;;  %v4375_v25 = vld [vmem:[%s14344_s13 + $0x8] sm:$0xff] }
 0x95f   :  { %v10166_v47 = vpop.eup %10165  ;;  %v3893_v29 = vadd.f32 1e-05, %v3884_v58  ;;  %v3883_v32 = vmul.f32 0.03125, %v3869_v54  ;;  %9655 = vmatpush3.msra.mxu0 %v4542_v8 }
 0x960   :  { %v3906_v4 = vmul.f32 %v10166_v47, %v12597_v46  ;;  %9656 = vmatprep.subr.mxu0 %v4541_v48  ;;  %v3921_v17 = vmul.f32 %v8779_v10, %v3907_v30 }
 0x961   :  { %10167 = vrsqrt.f32 %v3893_v29  ;;  %v3892_v44 = vadd.f32 1e-05, %v3883_v32  ;;  %9657 = vmatpush3.msra.mxu0 %v4541_v48 }
 0x962   :  { %v3920_v26 = vmul.f32 %v8779_v10, %v3906_v4  ;;  %v3937_v50 = vadd.f32 %v8780_v22, %v3921_v17  ;;  %9658 = vmatprep.subr.mxu0 %v4540_v21  ;;  %v4659_v17 = vld [vmem:[#allocation14 + $0x50] sm:$0xff] }
 0x963   :  { %10169 = vrsqrt.f32 %v3892_v44  ;;  %9659 = vmatpush3.msra.mxu0 %v4540_v21 }
 0x964   :  { %v3936_v34 = vadd.f32 %v8780_v22, %v3920_v26  ;;  %9660 = vmatprep.subr.mxu0 %v4539_v12 }
 0x965   :  { %9661 = vmatpush3.msra.mxu0 %v4539_v12 }
 0x966   :  { %9625 = vmatprep.mubr.msk.f32.mxu0 %vm377_vm0, %v3936_v34 }
 0x967   :  { %9626 = vmatmul.mubr.msk.f32.gmra.mxu0 %vm377_vm0, %v3937_v50  ;;  %v4658_v50 = vld [vmem:[#allocation14 + $0x48] sm:$0xff] }
 0x96a   :  { %v3878_v49 = vpop.xlane.xlu0 %3877 }
 0x96b   :  { %v3886_v14 = vmul.f32 0.03125, %v3878_v49 }
 0x96c   :  { %v3875_v38 = vpop.xlane.xlu1 %3874 }
 0x96d   :  { %v3895_v45 = vadd.f32 1e-05, %v3886_v14  ;;  %v3885_v51 = vmul.f32 0.03125, %v3875_v38  ;;  %v4376_v38 = vld [vmem:[%s14344_s13 + $0x10] sm:$0xff] }
 0x96e   :  { %v10168_v39 = vpop.eup %10167 }
 0x96f   :  { %10171 = vrsqrt.f32 %v3895_v45  ;;  %v3894_v46 = vadd.f32 1e-05, %v3885_v51  ;;  %v3909_v23 = vmul.f32 %v10168_v39, %v12606_v55  ;;  %v4657_v45 = vld [vmem:[#allocation14 + $0x40] sm:$0xff] }
 0x970   :  { %v10170_v63 = vpop.eup %10169  ;;  %v4377_v39 = vld [vmem:[%s14344_s13 + $0x18] sm:$0xff] }
 0x971   :  { %10173 = vrsqrt.f32 %v3894_v46  ;;  %v3908_v11 = vmul.f32 %v10170_v63, %v12609_v13  ;;  %v3923_v60 = vmul.f32 %v8779_v10, %v3909_v23  ;;  %v4391_v13 = vld [vmem:[#allocation14 + $0x8] sm:$0xff] }
 0x972   :  { %9638 = vmatprep.subr.mxu1 %v4391_v13 }
 0x973   :  { %v3922_v33 = vmul.f32 %v8779_v10, %v3908_v11  ;;  %v3939_v28 = vadd.f32 %v8780_v22, %v3923_v60  ;;  %9639 = vmatpush3.msra.mxu1 %v4391_v13 }
 0x974   :  { %9640 = vmatprep.subr.mxu1 %v4390_v52 }
 0x975   :  { %v3938_v3 = vadd.f32 %v8780_v22, %v3922_v33  ;;  %9641 = vmatpush3.msra.mxu1 %v4390_v52 }
 0x977   :  { %9628 = vmatprep.mubr.msk.f32.mxu0 %vm377_vm0, %v3938_v3 }
 0x978   :  { %9629 = vmatmul.mubr.msk.f32.gmra.mxu0 %vm377_vm0, %v3939_v28 }
 0x97c   :  { %v10172_v36 = vpop.eup %10171 }
 0x97d   :  { %v3911_v27 = vmul.f32 %v10172_v36, %v12618_v37  ;;  %v4660_v37 = vld [vmem:[#allocation14 + $0x58] sm:$0xff] }
 0x97e   :  { %v10174_v53 = vpop.eup %10173  ;;  %9674 = vmatprep.subr.mxu1 %v4660_v37 }
 0x97f   :  { %v3910_v1 = vmul.f32 %v10174_v53, %v12621_v62  ;;  %v3925_v41 = vmul.f32 %v8779_v10, %v3911_v27 }
 0x981   :  { %v3924_v55 = vmul.f32 %v8779_v10, %v3910_v1  ;;  %v3941_v20 = vadd.f32 %v8780_v22, %v3925_v41  ;;  %v12671_v10 = vld [vmem:[#allocation13] ss:$0 sm:$0xff] }
 0x983   :  { %v3940_v5 = vadd.f32 %v8780_v22, %v3924_v55  ;;  %v9607_v22 = vpop.f32.mrf.mxu1  ;;  %v4378_v55 = vld [vmem:[%s14344_s13 + $0x20] sm:$0xff] }
 0x985   :  { %9631 = vmatprep.mubr.msk.f32.mxu0 %vm377_vm0, %v3940_v5  ;;  %v4180_v54 = vpop.f32.mrf.mxu1 }
 0x986   :  { %9632 = vmatmul.mubr.msk.f32.gmra.mxu0 %vm377_vm0, %v3941_v20  ;;  %v4379_v20 = vld [vmem:[%s14344_s13 + $0x28] sm:$0xff] }
 0x987   :  { %v9610_v63 = vpop.f32.mrf.mxu1 }
 0x989   :  { %v4190_v60 = vpop.f32.mrf.mxu1 }
 0x98b   :  { %v9613_v21 = vpop.f32.mrf.mxu1 }
 0x9b9   :  { %v9584_v62 = vpop.f32.mrf.mxu0 }
 0x9ba   :  { %v4176_v16 = vadd.f32 %v9604_v0, %v9584_v62 }
 0x9bb   :  { %v4041_v35 = vpop.f32.mrf.mxu0 }
 0x9bc   :  { %v4171_v6 = vadd.f32 %v4170_v18, %v4041_v35  ;;  %v4380_v18 = vld [vmem:[%s14344_s13 + $0x30] sm:$0xff] }
 0x9bd   :  { %v9587_v43 = vpop.f32.mrf.mxu0 }
 0x9be   :  { %v4186_v48 = vadd.f32 %v9607_v22, %v9587_v43 }
 0x9bf   :  { %v4051_v8 = vpop.f32.mrf.mxu0 }
 0x9c0   :  { %v4181_v29 = vadd.f32 %v4180_v54, %v4051_v8 }
 0x9c1   :  { %v9590_v42 = vpop.f32.mrf.mxu0 }
 0x9c2   :  { %v4196_v11 = vadd.f32 %v9610_v63, %v9590_v42 }
 0x9c3   :  { %v4061_v56 = vpop.f32.mrf.mxu0 }
 0x9c4   :  { %v4191_v3 = vadd.f32 %v4190_v60, %v4061_v56 }
 0x9c5   :  { %v12667_v7 = vpop.f32.mrf.mxu0 }
 0x9c6   :  { %v4206_v12 = vadd.f32 %v9613_v21, %v12667_v7  ;;  %v4381_v7 = vld [vmem:[%s14344_s13 + $0x38] sm:$0xff] }
 0x9c7   :  { %v12669_v15 = vpop.f32.mrf.mxu0 }
 0xa1e   :  { %v9624_v19 = vpop.f32.mrf.mxu0 }
 0xa1f   :  { %v4344_v40 = vadd.f32 %v9624_v19, %v4176_v16 }
 0xa20   :  { %v4304_v2 = vpop.f32.mrf.mxu0 }
 0xa21   :  { %v4359_v59 = vadd.f32 %v12671_v10, %v4344_v40  ;;  %v4343_v24 = vadd.f32 %v4304_v2, %v4171_v6 }
 0xa23   :  { %v4358_v61 = vadd.f32 %v12671_v10, %v4343_v24  ;;  %v12675_v31 = vmax.f32 %v4359_v59, 0.0  ;;  %v12767_v59 = vld [vmem:[#allocation16 + $0x1] ss:$0 sm:$0xff] }
 0xa25   :  { %14524 = vst [vmem:[#allocation50_spill] sm:$0xff] %v12675_v31  ;;  %v12683_v58 = vmax.f32 %v4358_v61, 0.0  ;;  %v12689_v32 = vadd.f32 %v4375_v25, %v12675_v31 }
 0xa27   :  { %14525 = vst [vmem:[#allocation49_spill] sm:$0xff] %v12683_v58  ;;  %v9627_v30 = vpop.f32.mrf.mxu0  ;;  %v12686_v47 = vadd.f32 %v4374_v9, %v12683_v58 }
 0xa28   :  { %v4346_v4 = vadd.f32 %v9627_v30, %v4186_v48 }
 0xa29   :  { %v4314_v44 = vpop.f32.mrf.mxu0  ;;  %9642 = vmatprep.mubr.msk.f32.mxu1 %vm377_vm0, %v12686_v47  ;;  %9662 = vmatprep.mubr.msk.f32.mxu0 %vm377_vm0, %v12686_v47 }
 0xa2a   :  { %v4361_v26 = vadd.f32 %v12671_v10, %v4346_v4  ;;  %v4345_v34 = vadd.f32 %v4314_v44, %v4181_v29  ;;  %9643 = vmatmul.mubr.msk.f32.vlgmr.msra.gmra.mxu1 %vm377_vm0, %v12689_v32  ;;  %9663 = vmatmul.mubr.msk.f32.vlgmr.msra.gmra.mxu0 %vm377_vm0, %v12689_v32 }
 0xa2b   :  { %9675 = vmatpush3.msra.mxu1 %v4660_v37  ;;  %v4200_v37 = vpop.f32.mrf.mxu1 }
 0xa2c   :  { %v4360_v49 = vadd.f32 %v12671_v10, %v4345_v34  ;;  %9676 = vmatprep.subr.mxu1 %v4659_v17  ;;  %v12701_v14 = vmax.f32 %v4361_v26, 0.0  ;;  %v4201_v35 = vadd.f32 %v4200_v37, %v12669_v15 }
 0xa2d   :  { %9677 = vmatpush3.msra.mxu1 %v4659_v17 }
 0xa2e   :  { %14526 = vst [vmem:[#allocation38_spill] sm:$0xff] %v12701_v14  ;;  %v12706_v51 = vmax.f32 %v4360_v49, 0.0  ;;  %9678 = vmatprep.subr.mxu1 %v4658_v50  ;;  %v4385_v23 = vadd.f32 %v4377_v39, %v12701_v14 }
 0xa2f   :  { %9679 = vmatpush3.msra.mxu1 %v4658_v50 }
 0xa30   :  { %14527 = vst [vmem:[#allocation37_spill] sm:$0xff] %v12706_v51  ;;  %v4384_v46 = vadd.f32 %v4376_v38, %v12706_v51  ;;  %9680 = vmatprep.subr.mxu1 %v4657_v45 }
 0xa31   :  { %9681 = vmatpush3.msra.mxu1 %v4657_v45 }
 0xa32   :  { %9645 = vmatprep.mubr.msk.f32.mxu1 %vm377_vm0, %v4384_v46  ;;  %9665 = vmatprep.mubr.msk.f32.mxu0 %vm377_vm0, %v4384_v46 }
 0xa33   :  { %9646 = vmatmul.mubr.msk.f32.gmra.mxu1 %vm377_vm0, %v4385_v23  ;;  %9666 = vmatmul.mubr.msk.f32.gmra.mxu0 %vm377_vm0, %v4385_v23 }
 0xa38   :  { %v9630_v33 = vpop.f32.mrf.mxu0 }
 0xa39   :  { %v4348_v28 = vadd.f32 %v9630_v33, %v4196_v11 }
 0xa3a   :  { %v4324_v36 = vpop.f32.mrf.mxu0 }
 0xa3b   :  { %v4363_v27 = vadd.f32 %v12671_v10, %v4348_v28  ;;  %v4347_v53 = vadd.f32 %v4324_v36, %v4191_v3 }
 0xa3d   :  { %v4362_v1 = vadd.f32 %v12671_v10, %v4347_v53  ;;  %v12719_v41 = vmax.f32 %v4363_v27, 0.0 }
 0xa3f   :  { %14528 = vst [vmem:[#allocation40_spill] sm:$0xff] %v12719_v41  ;;  %v12724_v5 = vmax.f32 %v4362_v1, 0.0  ;;  %v4387_v52 = vadd.f32 %v4379_v20, %v12719_v41 }
 0xa41   :  { %14529 = vst [vmem:[#allocation39_spill] sm:$0xff] %v12724_v5  ;;  %v4386_v13 = vadd.f32 %v4378_v55, %v12724_v5 }
 0xa43   :  { %9648 = vmatprep.mubr.msk.f32.mxu1 %vm377_vm0, %v4386_v13  ;;  %9668 = vmatprep.mubr.msk.f32.mxu0 %vm377_vm0, %v4386_v13 }
 0xa44   :  { %9649 = vmatmul.mubr.msk.f32.gmra.mxu1 %vm377_vm0, %v4387_v52  ;;  %9669 = vmatmul.mubr.msk.f32.gmra.mxu0 %vm377_vm0, %v4387_v52 }
 0xa46   :  { %v9633_v62 = vpop.f32.mrf.mxu0 }
 0xa47   :  { %v4350_v43 = vadd.f32 %v9633_v62, %v4206_v12 }
 0xa48   :  { %v4334_v8 = vpop.f32.mrf.mxu0 }
 0xa49   :  { %v4365_v42 = vadd.f32 %v12671_v10, %v4350_v43  ;;  %v4349_v56 = vadd.f32 %v4334_v8, %v4201_v35 }
 0xa4b   :  { %v4364_v0 = vadd.f32 %v12671_v10, %v4349_v56  ;;  %v12739_v16 = vmax.f32 %v4365_v42, 0.0  ;;  %v12765_v10 = vld [vmem:[#allocation16] ss:$0 sm:$0xff] }
 0xa4d   :  { %14530 = vst [vmem:[#allocation33_spill] sm:$0xff] %v12739_v16  ;;  %v12744_v19 = vmax.f32 %v4364_v0, 0.0  ;;  %v4389_v6 = vadd.f32 %v4381_v7, %v12739_v16 }
 0xa4f   :  { %14531 = vst [vmem:[#allocation35_spill] sm:$0xff] %v12744_v19  ;;  %v4388_v15 = vadd.f32 %v4380_v18, %v12744_v19 }
 0xa51   :  { %9651 = vmatprep.mubr.msk.f32.mxu1 %vm377_vm0, %v4388_v15  ;;  %9671 = vmatprep.mubr.msk.f32.mxu0 %vm377_vm0, %v4388_v15 }
 0xa52   :  { %9652 = vmatmul.mubr.msk.f32.gmra.mxu1 %vm377_vm0, %v4389_v6  ;;  %9672 = vmatmul.mubr.msk.f32.gmra.mxu0 %vm377_vm0, %v4389_v6 }
 0xa53   :  { %9682 = vmatprep.mubr.msk.f32.mxu1 %vm377_vm0, %v12686_v47 }
 0xa56   :  { %9683 = vmatmul.mubr.msk.f32.vlgmr.msra.gmra.mxu1 %vm377_vm0, %v12689_v32 }
 0xa57   :  { %9685 = vmatprep.mubr.msk.f32.mxu1 %vm377_vm0, %v4384_v46 }
 0xa5a   :  { %9686 = vmatmul.mubr.msk.f32.gmra.mxu1 %vm377_vm0, %v4385_v23 }
 0xa5b   :  { %9688 = vmatprep.mubr.msk.f32.mxu1 %vm377_vm0, %v4386_v13 }
 0xa5e   :  { %9689 = vmatmul.mubr.msk.f32.gmra.mxu1 %vm377_vm0, %v4387_v52 }
 0xa5f   :  { %9691 = vmatprep.mubr.msk.f32.mxu1 %vm377_vm0, %v4388_v15 }
 0xa62   :  { %9692 = vmatmul.mubr.msk.f32.gmra.mxu1 %vm377_vm0, %v4389_v6 }
 0xaea   :  { %v9644_v40 = vpop.f32.mrf.mxu1  ;;  %v9664_v2 = vpop.f32.mrf.mxu0 }
 0xaeb   :  { %v4497_v24 = vadd.f32 %v9644_v40, %v12765_v10  ;;  %v12773_v25 = vadd.f32 %v9664_v2, %v12767_v59 }
 0xaec   :  { %v4491_v22 = vpop.f32.mrf.mxu1  ;;  %v4617_v61 = vpop.f32.mrf.mxu0 }
 0xaed   :  { %v12770_v9 = vmul.f32 0.17677669, %v4497_v24  ;;  %v4492_v48 = vadd.f32 %v12765_v10, %v4491_v22  ;;  %v12777_v54 = vadd.f32 %v12767_v59, %v4617_v61 }
 0xaef   :  { %v4779_v30 = vmul.f32 %v12773_v25, %v12770_v9  ;;  %v12781_v47 = vmul.f32 0.17677669, %v4492_v48  ;;  %v4778_v29 = vmul.f32 %v12777_v54, %v12770_v9 }
 0xaf1   :  { %v4841_v32 = vsel %vm377_vm0, %v4779_v30, 0.0  ;;  %v4775_v4 = vmul.f32 %v12773_v25, %v12781_v47  ;;  %v4774_v44 = vmul.f32 %v12777_v54, %v12781_v47  ;;  %v4834_v17 = vsel %vm377_vm0, %v4778_v29, 0.0 }
 0xaf2   :  { %v4842_v26 = vrot.slane %v4841_v32, 4  ;;  %v4835_v34 = vrot.slane %v4834_v17, 4 }
 0xaf3   :  { %v4813_v50 = vsel %vm377_vm0, %v4775_v4, 0.0  ;;  %v4806_v49 = vsel %vm377_vm0, %v4774_v44, 0.0  ;;  %v9647_v38 = vpop.f32.mrf.mxu1  ;;  %v9667_v45 = vpop.f32.mrf.mxu0 }
 0xaf4   :  { %v4843_v39 = vadd.f32 %v4842_v26, %v4841_v32  ;;  %v4814_v46 = vrot.slane %v4813_v50, 4  ;;  %v4807_v23 = vrot.slane %v4806_v49, 4  ;;  %v4836_v63 = vadd.f32 %v4835_v34, %v4834_v17 }
 0xaf5   :  { %v4507_v11 = vadd.f32 %v9647_v38, %v12765_v10  ;;  %v4633_v60 = vadd.f32 %v9667_v45, %v12767_v59  ;;  %v4501_v7 = vpop.f32.mrf.mxu1 }
 0xaf6   :  { %v4844_v33 = vrot.slane %v4843_v39, 2  ;;  %v4815_v3 = vadd.f32 %v4814_v46, %v4813_v50  ;;  %v4808_v28 = vadd.f32 %v4807_v23, %v4806_v49  ;;  %v4837_v36 = vrot.slane %v4836_v63, 2 }
 0xaf7   :  { %v12795_v27 = vmul.f32 0.17677669, %v4507_v11  ;;  %v4777_v53 = vmul.f32 %v4633_v60, %v12781_v47  ;;  %v4781_v1 = vmul.f32 %v4633_v60, %v12770_v9  ;;  %v4502_v30 = vadd.f32 %v12765_v10, %v4501_v7 }
 0xaf8   :  { %v4845_v55 = vadd.f32 %v4844_v33, %v4843_v39  ;;  %v4816_v20 = vrot.slane %v4815_v3, 2  ;;  %v4809_v13 = vrot.slane %v4808_v28, 2  ;;  %v4838_v21 = vadd.f32 %v4837_v36, %v4836_v63 }
 0xaf9   :  { %v4786_v52 = vmul.f32 %v12777_v54, %v12795_v27  ;;  %v4787_v12 = vmul.f32 %v12773_v25, %v12795_v27  ;;  %v4827_v37 = vsel %vm377_vm0, %v4777_v53, 0.0  ;;  %v4855_v18 = vsel %vm377_vm0, %v4781_v1, 0.0  ;;  %v4627_v1 = vpop.f32.mrf.mxu0 }
 0xafa   :  { %v4846_v62 = vrot.slane %v4845_v55, 1  ;;  %v4817_v35 = vadd.f32 %v4816_v20, %v4815_v3  ;;  %v4810_v43 = vadd.f32 %v4809_v13, %v4808_v28  ;;  %v4839_v8 = vrot.slane %v4838_v21, 1 }
 0xafb   :  { %v4890_v42 = vsel %vm377_vm0, %v4786_v52, 0.0  ;;  %v4897_v56 = vsel %vm377_vm0, %v4787_v12, 0.0  ;;  %v4828_v0 = vrot.slane %v4827_v37, 4  ;;  %v4789_v40 = vmul.f32 %v4633_v60, %v12795_v27 }
 0xafc   :  { %v4818_v15 = vrot.slane %v4817_v35, 1  ;;  %v4811_v6 = vrot.slane %v4810_v43, 1  ;;  %v4891_v2 = vrot.slane %v4890_v42, 4  ;;  %v4898_v24 = vrot.slane %v4897_v56, 4 }
 0xafd   :  { %v4829_v22 = vadd.f32 %v4828_v0, %v4827_v37  ;;  %v4856_v61 = vrot.slane %v4855_v18, 4  ;;  %v12808_v48 = vadd.f32 %v4846_v62, %v4845_v55  ;;  %v12811_v29 = vadd.f32 %v4839_v8, %v4838_v21 }
 0xafe   :  { %v4892_v32 = vadd.f32 %v4891_v2, %v4890_v42  ;;  %v4899_v4 = vadd.f32 %v4898_v24, %v4897_v56  ;;  %v12813_v17 = vadd.f32 %v4818_v15, %v4817_v35  ;;  %v4911_v34 = vsel %vm377_vm0, %v4789_v40, 0.0 }
 0xaff   :  { %v4830_v44 = vrot.slane %v4829_v22, 2  ;;  %v4857_v26 = vadd.f32 %v4856_v61, %v4855_v18  ;;  %v12816_v50 = vadd.f32 %v4811_v6, %v4810_v43  ;;  %v4912_v46 = vrot.slane %v4911_v34, 4 }
 0xb00   :  { %v4893_v49 = vrot.slane %v4892_v32, 2  ;;  %v4900_v38 = vrot.slane %v4899_v4, 2  ;;  %v4532_v23 = vmul.f32 0.17677669, %v4502_v30  ;;  %v12820_v63 = vsel %vm377_vm0, %v12808_v48, -inf }
 0xb01   :  { %v4831_v45 = vadd.f32 %v4830_v44, %v4829_v22  ;;  %v4858_v39 = vrot.slane %v4857_v26, 2  ;;  %v12824_v11 = vsel %vm377_vm0, %v12811_v29, -inf  ;;  %v12828_v3 = vsel %vm377_vm0, %v12813_v17, -inf }
 0xb02   :  { %v4894_v33 = vadd.f32 %v4893_v49, %v4892_v32  ;;  %v4901_v28 = vadd.f32 %v4900_v38, %v4899_v4  ;;  %v4782_v36 = vmul.f32 %v12777_v54, %v4532_v23  ;;  %v4783_v53 = vmul.f32 %v12773_v25, %v4532_v23 }
 0xb03   :  { %v12834_v55 = vsel %vm377_vm0, %v12816_v50, -inf  ;;  %v4832_v20 = vrot.slane %v4831_v45, 1  ;;  %v4859_v13 = vadd.f32 %v4858_v39, %v4857_v26  ;;  %v4785_v21 = vmul.f32 %v4633_v60, %v4532_v23 }
 0xb04   :  { %v4895_v52 = vrot.slane %v4894_v33, 1  ;;  %v4913_v12 = vadd.f32 %v4912_v46, %v4911_v34  ;;  %v4862_v37 = vsel %vm377_vm0, %v4782_v36, 0.0  ;;  %v4869_v62 = vsel %vm377_vm0, %v4783_v53, 0.0 }
 0xb05   :  { %v4863_v35 = vrot.slane %v4862_v37, 4  ;;  %v4628_v43 = vadd.f32 %v12767_v59, %v4627_v1  ;;  %v5039_v25 = vmax.f32 %v12824_v11, %v12820_v63  ;;  %v4902_v54 = vrot.slane %v4901_v28, 1 }
 0xb06   :  { %v4870_v8 = vrot.slane %v4869_v62, 4  ;;  %v4883_v42 = vsel %vm377_vm0, %v4785_v21, 0.0  ;;  %v5032_v56 = vmax.f32 %v12834_v55, %v12828_v3  ;;  %v12844_v60 = vadd.f32 %v4832_v20, %v4831_v45 }
 0xb07   :  { %v4864_v0 = vadd.f32 %v4863_v35, %v4862_v37  ;;  %v4884_v18 = vrot.slane %v4883_v42, 4  ;;  %v12846_v7 = vadd.f32 %v4895_v52, %v4894_v33  ;;  %v4860_v15 = vrot.slane %v4859_v13, 1 }
 0xb08   :  { %v4914_v6 = vrot.slane %v4913_v12, 2  ;;  %v4871_v40 = vadd.f32 %v4870_v8, %v4869_v62  ;;  %v4776_v22 = vmul.f32 %v4628_v43, %v12781_v47  ;;  %v4780_v61 = vmul.f32 %v4628_v43, %v12770_v9  ;;  %v9650_v47 = vpop.f32.mrf.mxu1  ;;  %v9670_v8 = vpop.f32.mrf.mxu0 }
 0xb09   :  { %v4865_v2 = vrot.slane %v4864_v0, 2  ;;  %v4885_v24 = vadd.f32 %v4884_v18, %v4883_v42  ;;  %v12850_v30 = vadd.f32 %v4902_v54, %v4901_v28  ;;  %v4784_v4 = vmul.f32 %v4628_v43, %v4532_v23 }
 0xb0a   :  { %v4872_v32 = vrot.slane %v4871_v40, 2  ;;  %v4788_v44 = vmul.f32 %v4628_v43, %v12795_v27  ;;  %v4820_v49 = vsel %vm377_vm0, %v4776_v22, 0.0  ;;  %v4848_v38 = vsel %vm377_vm0, %v4780_v61, 0.0 }
 0xb0b   :  { %v4866_v26 = vadd.f32 %v4865_v2, %v4864_v0  ;;  %v4886_v34 = vrot.slane %v4885_v24, 2  ;;  %v12855_v45 = vadd.f32 %v4860_v15, %v4859_v13  ;;  %v4821_v46 = vrot.slane %v4820_v49, 4 }
 0xb0c   :  { %v4873_v39 = vadd.f32 %v4872_v32, %v4871_v40  ;;  %v4849_v33 = vrot.slane %v4848_v38, 4  ;;  %v4876_v28 = vsel %vm377_vm0, %v4784_v4, 0.0  ;;  %v4904_v23 = vsel %vm377_vm0, %v4788_v44, 0.0 }
 0xb0d   :  { %v4867_v36 = vrot.slane %v4866_v26, 1  ;;  %v4887_v9 = vadd.f32 %v4886_v34, %v4885_v24  ;;  %v4822_v27 = vadd.f32 %v4821_v46, %v4820_v49  ;;  %v4877_v20 = vrot.slane %v4876_v28, 4 }
 0xb0e   :  { %v4874_v53 = vrot.slane %v4873_v39, 1  ;;  %v4850_v1 = vadd.f32 %v4849_v33, %v4848_v38  ;;  %v4915_v21 = vadd.f32 %v4914_v6, %v4913_v12  ;;  %v4905_v37 = vrot.slane %v4904_v23, 4  ;;  %v4511_v12 = vpop.f32.mrf.mxu1  ;;  %v4637_v38 = vpop.f32.mrf.mxu0 }
 0xb0f   :  { %v12859_v52 = vadd.f32 %v4867_v36, %v4866_v26  ;;  %v4517_v13 = vadd.f32 %v9650_v47, %v12765_v10  ;;  %v4823_v35 = vrot.slane %v4822_v27, 2  ;;  %v4878_v54 = vadd.f32 %v4877_v20, %v4876_v28 }
 0xb10   :  { %v12862_v62 = vadd.f32 %v4874_v53, %v4873_v39  ;;  %v4851_v43 = vrot.slane %v4850_v1, 2  ;;  %v5051_v42 = vsel %vm377_vm0, %v12846_v7, -inf  ;;  %v5052_v0 = vsel %vm377_vm0, %v12850_v30, -inf }
 0xb11   :  { %v4906_v18 = vadd.f32 %v4905_v37, %v4904_v23  ;;  %v12868_v15 = vmul.f32 0.17677669, %v4517_v13  ;;  %v4888_v6 = vrot.slane %v4887_v9, 1  ;;  %v4824_v40 = vadd.f32 %v4823_v35, %v4822_v27 }
 0xb12   :  { %v4852_v2 = vadd.f32 %v4851_v43, %v4850_v1  ;;  %v4879_v24 = vrot.slane %v4878_v54, 2  ;;  %v5044_v22 = vsel %vm377_vm0, %v12859_v52, -inf  ;;  %v5045_v61 = vsel %vm377_vm0, %v12862_v62, -inf }
 0xb13   :  { %v4907_v32 = vrot.slane %v4906_v18, 2  ;;  %v12875_v4 = vadd.f32 %v9670_v8, %v12767_v59  ;;  %v4825_v44 = vrot.slane %v4824_v40, 1  ;;  %v4512_v49 = vadd.f32 %v12765_v10, %v4511_v12 }
 0xb14   :  { %v4853_v26 = vrot.slane %v4852_v2, 1  ;;  %v4880_v34 = vadd.f32 %v4879_v24, %v4878_v54  ;;  %v5053_v39 = vmax.f32 %v5051_v42, %v5052_v0  ;;  %v4916_v46 = vrot.slane %v4915_v21, 1 }
 0xb15   :  { %v4908_v33 = vadd.f32 %v4907_v32, %v4906_v18  ;;  %v4795_v47 = vmul.f32 %v12875_v4, %v12868_v15  ;;  %v12880_v36 = vadd.f32 %v4888_v6, %v4887_v9  ;;  %v4826_v28 = vadd.f32 %v4825_v44, %v4824_v40  ;;  %v9653_v18 = vpop.f32.mrf.mxu1 }
 0xb16   :  { %v4854_v23 = vadd.f32 %v4853_v26, %v4852_v2  ;;  %v4881_v53 = vrot.slane %v4880_v34, 1  ;;  %v5046_v27 = vmax.f32 %v5044_v22, %v5045_v61  ;;  %v12884_v37 = vadd.f32 %v12767_v59, %v4637_v38 }
 0xb17   :  { %v4909_v1 = vrot.slane %v4908_v33, 1  ;;  %v4953_v20 = vsel %vm377_vm0, %v4795_v47, 0.0  ;;  %v5033_v35 = vsel %vm377_vm0, %v4826_v28, -inf  ;;  %v12890_v54 = vmul.f32 0.17677669, %v4512_v49 }
 0xb18   :  { %v12886_v13 = vadd.f32 %v4881_v53, %v4880_v34  ;;  %v5040_v43 = vsel %vm377_vm0, %v4854_v23, -inf  ;;  %v5034_v8 = vmax.f32 %v5032_v56, %v5033_v35  ;;  %v4954_v0 = vrot.slane %v4953_v20, 4 }
 0xb19   :  { %v12892_v9 = vadd.f32 %v4909_v1, %v4908_v33  ;;  %v5041_v42 = vmax.f32 %v5039_v25, %v5040_v43  ;;  %v12900_v12 = vadd.f32 %v4916_v46, %v4915_v21  ;;  %v5035_v6 = vsel %vm377_vm0, %v12844_v60, -inf }
 0xb1a   :  { %v5042_v40 = vsel %vm377_vm0, %v12855_v45, -inf  ;;  %v5047_v2 = vsel %vm377_vm0, %v12886_v13, -inf  ;;  %v5049_v3 = vsel %vm377_vm0, %v12880_v36, -inf  ;;  %v12910_v55 = vmax.f32 %v5034_v8, %v5035_v6 }
 0xb1b   :  { %v5048_v63 = vmax.f32 %v5046_v27, %v5047_v2  ;;  %v5054_v11 = vsel %vm377_vm0, %v12892_v9, -inf  ;;  %v4791_v56 = vmul.f32 %v12875_v4, %v12890_v54  ;;  %v4794_v21 = vmul.f32 %v12884_v37, %v12868_v15 }
 0xb1c   :  { %v5055_v25 = vmax.f32 %v5053_v39, %v5054_v11  ;;  %v4527_v24 = vadd.f32 %v9653_v18, %v12765_v10  ;;  %v12919_v22 = vmax.f32 %v5041_v42, %v5042_v40  ;;  %v5086_v61 = vsub.f32 %v12816_v50, %v12910_v55  ;;  %v5585_v40 = vld [vmem:[#allocation14 + $0x70] sm:$0xff] }
 0xb1d   :  { %v4955_v32 = vadd.f32 %v4954_v0, %v4953_v20  ;;  %v4790_v44 = vmul.f32 %v12884_v37, %v12890_v54  ;;  %v5056_v26 = vsel %vm377_vm0, %v12900_v12, -inf  ;;  %v12927_v34 = vmax.f32 %v5048_v63, %v5049_v3 }
 0xb1e   :  { %v12929_v49 = vmax.f32 %v5055_v25, %v5056_v26  ;;  %v5088_v38 = vsub.f32 %v4826_v28, %v12910_v55  ;;  %v5089_v39 = vsub.f32 %v12844_v60, %v12910_v55  ;;  %v5118_v46 = vmul.f32 1.442695, %v5086_v61  ;;  %v5584_v25 = vld [vmem:[#allocation14 + $0x68] sm:$0xff] }
 0xb1f   :  { %v4946_v33 = vsel %vm377_vm0, %v4794_v21, 0.0  ;;  %v12935_v50 = vmul.f32 0.17677669, %v4527_v24  ;;  %v5090_v47 = vsub.f32 %v12811_v29, %v12919_v22  ;;  %v4956_v53 = vrot.slane %v4955_v32, 2 }
 0xb20   :  { %v4925_v27 = vsel %vm377_vm0, %v4791_v56, 0.0  ;;  %v4918_v1 = vsel %vm377_vm0, %v4790_v44, 0.0  ;;  %v5092_v20 = vsub.f32 %v4854_v23, %v12919_v22  ;;  %v5093_v28 = vsub.f32 %v12855_v45, %v12919_v22 }
 0xb21   :  { %v5094_v60 = vsub.f32 %v12859_v52, %v12927_v34  ;;  %v5096_v35 = vsub.f32 %v12886_v13, %v12927_v34  ;;  %v5097_v43 = vsub.f32 %v12880_v36, %v12927_v34  ;;  %v5098_v29 = vsub.f32 %v12846_v7, %v12929_v49  ;;  %v5586_v52 = vld [vmem:[#allocation14 + $0x78] sm:$0xff] }
 0xb22   :  { %v5100_v8 = vsub.f32 %v12892_v9, %v12929_v49  ;;  %v5122_v42 = vmul.f32 1.442695, %v5088_v38  ;;  %v5101_v23 = vsub.f32 %v12900_v12, %v12929_v49  ;;  %10175 = vpow2.f32 %v5118_v46  ;;  %9694 = vmatprep.subr.mxu0 %v5586_v52  ;;  %v9673_v38 = vpop.f32.mrf.mxu0 }
 0xb23   :  { %v5124_v45 = vmul.f32 1.442695, %v5089_v39  ;;  %v4926_v0 = vrot.slane %v4925_v27, 4  ;;  %v5126_v18 = vmul.f32 1.442695, %v5090_v47  ;;  %v4919_v6 = vrot.slane %v4918_v1, 4  ;;  %9695 = vmatpush3.msra.mxu0 %v5586_v52 }
 0xb24   :  { %v4947_v13 = vrot.slane %v4946_v33, 4  ;;  %v4802_v36 = vmul.f32 %v12884_v37, %v12935_v50  ;;  %v5130_v7 = vmul.f32 1.442695, %v5092_v20  ;;  %v4957_v2 = vadd.f32 %v4956_v53, %v4955_v32  ;;  %9696 = vmatprep.subr.mxu0 %v5585_v40  ;;  %v5583_v39 = vld [vmem:[#allocation14 + $0x60] sm:$0xff] }
 0xb25   :  { %v4927_v3 = vadd.f32 %v4926_v0, %v4925_v27  ;;  %v4803_v9 = vmul.f32 %v12875_v4, %v12935_v50  ;;  %10177 = vpow2.f32 %v5122_v42  ;;  %v4920_v12 = vadd.f32 %v4919_v6, %v4918_v1  ;;  %9697 = vmatpush3.msra.mxu0 %v5585_v40 }
 0xb26   :  { %v4948_v63 = vadd.f32 %v4947_v13, %v4946_v33  ;;  %v5002_v11 = vsel %vm377_vm0, %v4802_v36, 0.0  ;;  %10179 = vpow2.f32 %v5124_v45  ;;  %v5132_v56 = vmul.f32 1.442695, %v5093_v28  ;;  %9698 = vmatprep.subr.mxu0 %v5584_v25 }
 0xb27   :  { %v4928_v21 = vrot.slane %v4927_v3, 2  ;;  %v5003_v24 = vrot.slane %v5002_v11, 4  ;;  %v5134_v61 = vmul.f32 1.442695, %v5094_v60  ;;  %v4921_v44 = vrot.slane %v4920_v12, 2  ;;  %9699 = vmatpush3.msra.mxu0 %v5584_v25 }
 0xb28   :  { %v4949_v32 = vrot.slane %v4948_v63, 2  ;;  %v5009_v26 = vsel %vm377_vm0, %v4803_v9, 0.0  ;;  %v5138_v46 = vmul.f32 1.442695, %v5096_v35  ;;  %v5140_v47 = vmul.f32 1.442695, %v5097_v43  ;;  %9700 = vmatprep.subr.mxu0 %v5583_v39 }
 0xb29   :  { %v4958_v33 = vrot.slane %v4957_v2, 1  ;;  %v5004_v53 = vadd.f32 %v5003_v24, %v5002_v11  ;;  %10181 = vpow2.f32 %v5126_v18  ;;  %v5142_v27 = vmul.f32 1.442695, %v5098_v29  ;;  %9701 = vmatpush3.msra.mxu0 %v5583_v39 }
 0xb2a   :  { %v5146_v1 = vmul.f32 1.442695, %v5100_v8  ;;  %v5010_v20 = vrot.slane %v5009_v26, 4  ;;  %10183 = vpow2.f32 %v5130_v7  ;;  %v4929_v28 = vadd.f32 %v4928_v21, %v4927_v3  ;;  %v4521_v8 = vpop.f32.mrf.mxu1 }
 0xb2b   :  { %v5005_v60 = vrot.slane %v5004_v53, 2  ;;  %v12963_v42 = vadd.f32 %v9673_v38, %v12767_v59  ;;  %10185 = vpow2.f32 %v5132_v56  ;;  %v4922_v45 = vadd.f32 %v4921_v44, %v4920_v12 }
 0xb2c   :  { %v4950_v0 = vadd.f32 %v4949_v32, %v4948_v63  ;;  %v5011_v35 = vadd.f32 %v5010_v20, %v5009_v26  ;;  %10187 = vpow2.f32 %v5134_v61  ;;  %v12965_v43 = vadd.f32 %v4958_v33, %v4957_v2  ;;  %v4647_v26 = vpop.f32.mrf.mxu0 }
 0xb2d   :  { %v5006_v52 = vadd.f32 %v5005_v60, %v5004_v53  ;;  %v4793_v29 = vmul.f32 %v12963_v42, %v12890_v54  ;;  %10189 = vpow2.f32 %v5138_v46  ;;  %v4797_v6 = vmul.f32 %v12963_v42, %v12868_v15  ;;  %v5736_v60 = vld [vmem:[#allocation14 + $0x98] sm:$0xff] }
 0xb2e   :  { %v5012_v18 = vrot.slane %v5011_v35, 2  ;;  %v4805_v13 = vmul.f32 %v12963_v42, %v12935_v50  ;;  %10191 = vpow2.f32 %v5140_v47  ;;  %v5148_v36 = vmul.f32 1.442695, %v5101_v23  ;;  %9714 = vmatprep.subr.mxu1 %v5736_v60 }
 0xb2f   :  { %v4930_v40 = vrot.slane %v4929_v28, 1  ;;  %v4939_v7 = vsel %vm377_vm0, %v4793_v29, 0.0  ;;  %v12974_v2 = vpop.eup %10175  ;;  %v4923_v3 = vrot.slane %v4922_v45, 1  ;;  %v4951_v9 = vrot.slane %v4950_v0, 1  ;;  %9715 = vmatpush3.msra.mxu1 %v5736_v60 }
 0xb30   :  { %v5013_v12 = vadd.f32 %v5012_v18, %v5011_v35  ;;  %v4522_v63 = vadd.f32 %v12765_v10, %v4521_v8  ;;  %10193 = vpow2.f32 %v5142_v27  ;;  %v12979_v11 = vsel %vm377_vm0, %v12965_v43, -inf }
 0xb31   :  { %v5007_v25 = vrot.slane %v5006_v52, 1  ;;  %v4940_v56 = vrot.slane %v4939_v7, 4  ;;  %10195 = vpow2.f32 %v5146_v1  ;;  %v4967_v23 = vsel %vm377_vm0, %v4797_v6, 0.0 }
 0xb32   :  { %v5014_v21 = vrot.slane %v5013_v12, 1  ;;  %v5023_v24 = vsel %vm377_vm0, %v4805_v13, 0.0  ;;  %v12983_v61 = vpop.eup %10177  ;;  %10197 = vpow2.f32 %v5148_v36  ;;  %v12985_v44 = vadd.f32 %v4930_v40, %v4929_v28  ;;  %v5735_v28 = vld [vmem:[#allocation14 + $0x90] sm:$0xff]  ;;  %v5734_v36 = vld [vmem:[#allocation14 + $0x88] sm:$0xff] }
 0xb33   :  { %v4941_v32 = vadd.f32 %v4940_v56, %v4939_v7  ;;  %v4968_v10 = vrot.slane %v4967_v23, 4  ;;  %v12987_v38 = vpop.eup %10179  ;;  %v12989_v39 = vadd.f32 %v4923_v3, %v4922_v45  ;;  %v12991_v46 = vadd.f32 %v4951_v9, %v4950_v0  ;;  %9716 = vmatprep.subr.mxu1 %v5735_v28 }
 0xb34   :  { %v5024_v47 = vrot.slane %v5023_v24, 4  ;;  %v4536_v33 = vmul.f32 0.17677669, %v4522_v63  ;;  %v12993_v53 = vadd.f32 %v5007_v25, %v5006_v52  ;;  %v12995_v27 = vadd.f32 %v5014_v21, %v5013_v12  ;;  %9717 = vmatpush3.msra.mxu1 %v5735_v28 }
 0xb35   :  { %v4942_v1 = vrot.slane %v4941_v32, 2  ;;  %v4969_v20 = vadd.f32 %v4968_v10, %v4967_v23  ;;  %v4648_v45 = vadd.f32 %v12767_v59, %v4647_v26  ;;  %v13005_v52 = vsel %vm377_vm0, %v12985_v44, -inf  ;;  %9718 = vmatprep.subr.mxu1 %v5734_v36 }
 0xb36   :  { %v5025_v29 = vadd.f32 %v5024_v47, %v5023_v24  ;;  %v4798_v8 = vmul.f32 %v12884_v37, %v4536_v33  ;;  %v13000_v0 = vpop.eup %10181  ;;  %v4799_v13 = vmul.f32 %v12875_v4, %v4536_v33  ;;  %v13012_v37 = vsel %vm377_vm0, %v12989_v39, -inf  ;;  %9719 = vmatpush3.msra.mxu1 %v5734_v36 }
 0xb37   :  { %v4943_v6 = vadd.f32 %v4942_v1, %v4941_v32  ;;  %v13008_v40 = vpop.eup %10183  ;;  %v4970_v59 = vrot.slane %v4969_v20, 2  ;;  %v4801_v7 = vmul.f32 %v12963_v42, %v4536_v33  ;;  %v13020_v12 = vsel %vm377_vm0, %v12991_v46, -inf }
 0xb38   :  { %v4974_v3 = vsel %vm377_vm0, %v4798_v8, 0.0  ;;  %v13016_v9 = vpop.eup %10185  ;;  %v13024_v4 = vsel %vm377_vm0, %v12993_v53, -inf  ;;  %v13028_v63 = vsel %vm377_vm0, %v12995_v27, -inf  ;;  %v5026_v56 = vrot.slane %v5025_v29, 2 }
 0xb39   :  { %v4975_v25 = vrot.slane %v4974_v3, 4  ;;  %v13030_v42 = vpop.eup %10187  ;;  %v4981_v21 = vsel %vm377_vm0, %v4799_v13, 0.0  ;;  %v4995_v23 = vsel %vm377_vm0, %v4801_v7, 0.0  ;;  %v4792_v24 = vmul.f32 %v4648_v45, %v12890_v54 }
 0xb3a   :  { %v13035_v32 = vpop.eup %10189  ;;  %v4944_v26 = vrot.slane %v4943_v6, 1  ;;  %v4982_v1 = vrot.slane %v4981_v21, 4  ;;  %v4971_v28 = vadd.f32 %v4970_v59, %v4969_v20  ;;  %v4996_v8 = vrot.slane %v4995_v23, 4 }
 0xb3b   :  { %v4976_v47 = vadd.f32 %v4975_v25, %v4974_v3  ;;  %v13039_v60 = vpop.eup %10191  ;;  %v4796_v13 = vmul.f32 %v4648_v45, %v12868_v15  ;;  %v4800_v18 = vmul.f32 %v4648_v45, %v4536_v33  ;;  %v5027_v3 = vadd.f32 %v5026_v56, %v5025_v29 }
 0xb3c   :  { %v4983_v16 = vadd.f32 %v4982_v1, %v4981_v21  ;;  %v4997_v25 = vadd.f32 %v4996_v8, %v4995_v23  ;;  %v4804_v36 = vmul.f32 %v4648_v45, %v12935_v50  ;;  %v4932_v20 = vsel %vm377_vm0, %v4792_v24, 0.0 }
 0xb3d   :  { %v4977_v35 = vrot.slane %v4976_v47, 2  ;;  %v13046_v10 = vpop.eup %10193  ;;  %v13052_v15 = vadd.f32 %v4944_v26, %v4943_v6  ;;  %v4933_v54 = vrot.slane %v4932_v20, 4  ;;  %v4972_v7 = vrot.slane %v4971_v28, 1 }
 0xb3e   :  { %v13050_v59 = vpop.eup %10195  ;;  %v4984_v19 = vrot.slane %v4983_v16, 2  ;;  %v4998_v5 = vrot.slane %v4997_v25, 2  ;;  %v4960_v21 = vsel %vm377_vm0, %v4796_v13, 0.0  ;;  %v4988_v29 = vsel %vm377_vm0, %v4800_v18, 0.0 }
 0xb3f   :  { %v4978_v33 = vadd.f32 %v4977_v35, %v4976_v47  ;;  %v13054_v41 = vpop.eup %10197  ;;  %v4934_v50 = vadd.f32 %v4933_v54, %v4932_v20  ;;  %v4961_v45 = vrot.slane %v4960_v21, 4  ;;  %v5028_v24 = vrot.slane %v5027_v3, 1 }
 0xb40   :  { %v4985_v23 = vadd.f32 %v4984_v19, %v4983_v16  ;;  %v4999_v1 = vadd.f32 %v4998_v5, %v4997_v25  ;;  %v4989_v8 = vrot.slane %v4988_v29, 4  ;;  %v5016_v6 = vsel %vm377_vm0, %v4804_v36, 0.0 }
 0xb41   :  { %v4979_v56 = vrot.slane %v4978_v33, 1  ;;  %v4935_v47 = vrot.slane %v4934_v50, 2  ;;  %v4962_v14 = vadd.f32 %v4961_v45, %v4960_v21  ;;  %v5017_v58 = vrot.slane %v5016_v6, 4 }
 0xb42   :  { %v4986_v26 = vrot.slane %v4985_v23, 1  ;;  %v5000_v51 = vrot.slane %v4999_v1, 1  ;;  %v4990_v31 = vadd.f32 %v4989_v8, %v4988_v29  ;;  %v5087_v18 = vsub.f32 %v12813_v17, %v12910_v55 }
 0xb43   :  { %v13059_v35 = vadd.f32 %v4979_v56, %v4978_v33  ;;  %v4936_v16 = vadd.f32 %v4935_v47, %v4934_v50  ;;  %v4963_v19 = vrot.slane %v4962_v14, 2  ;;  %v5091_v5 = vsub.f32 %v12808_v48, %v12919_v22 }
 0xb44   :  { %v13063_v13 = vadd.f32 %v4986_v26, %v4985_v23  ;;  %v4991_v25 = vrot.slane %v4990_v31, 2  ;;  %v5018_v36 = vadd.f32 %v5017_v58, %v5016_v6  ;;  %v5095_v20 = vsub.f32 %v12862_v62, %v12927_v34 }
 0xb45   :  { %v5072_v54 = vsel %vm377_vm0, %v13059_v35, -inf  ;;  %v4937_v21 = vrot.slane %v4936_v16, 1  ;;  %v4964_v17 = vadd.f32 %v4963_v19, %v4962_v14  ;;  %v5099_v55 = vsub.f32 %v12850_v30, %v12929_v49 }
 0xb46   :  { %v5073_v33 = vsel %vm377_vm0, %v13063_v13, -inf  ;;  %v13075_v29 = vadd.f32 %v4972_v7, %v4971_v28  ;;  %v13077_v56 = vadd.f32 %v5000_v51, %v4999_v1  ;;  %v4992_v48 = vadd.f32 %v4991_v25, %v4990_v31 }
 0xb47   :  { %v5019_v22 = vrot.slane %v5018_v36, 2  ;;  %v4938_v23 = vadd.f32 %v4937_v21, %v4936_v16  ;;  %v4965_v50 = vrot.slane %v4964_v17, 1  ;;  %v5120_v58 = vmul.f32 1.442695, %v5087_v18 }
 0xb48   :  { %v5128_v45 = vmul.f32 1.442695, %v5091_v5  ;;  %v5074_v8 = vmax.f32 %v5072_v54, %v5073_v33  ;;  %v4993_v62 = vrot.slane %v4992_v48, 1  ;;  %v5136_v6 = vmul.f32 1.442695, %v5095_v20 }
 0xb49   :  { %v5020_v34 = vadd.f32 %v5019_v22, %v5018_v36  ;;  %v4966_v26 = vadd.f32 %v4965_v50, %v4964_v17  ;;  %v5061_v14 = vsel %vm377_vm0, %v4938_v23, -inf  ;;  %10199 = vpow2.f32 %v5120_v58 }
 0xb4a   :  { %v5144_v47 = vmul.f32 1.442695, %v5099_v55  ;;  %v4994_v30 = vadd.f32 %v4993_v62, %v4992_v48  ;;  %v14532_v51 = vmax.f32 %v13012_v37, %v13005_v52  ;;  %10201 = vpow2.f32 %v5128_v45 }
 0xb4b   :  { %v5021_v49 = vrot.slane %v5020_v34, 1  ;;  %v5029_v28 = vadd.f32 %v5028_v24, %v5027_v3  ;;  %v5063_v7 = vsel %vm377_vm0, %v13052_v15, -inf  ;;  %v5068_v1 = vsel %vm377_vm0, %v4966_v26, -inf }
 0xb4c   :  { %v5062_v31 = vmax.f32 %v14532_v51, %v5061_v14  ;;  %10203 = vpow2.f32 %v5136_v6  ;;  %v14533_v19 = vmax.f32 %v13020_v12, %v12979_v11  ;;  %v5075_v54 = vsel %vm377_vm0, %v4994_v30, -inf }
 0xb4d   :  { %v5022_v18 = vadd.f32 %v5021_v49, %v5020_v34  ;;  %v5070_v52 = vsel %vm377_vm0, %v13075_v29, -inf  ;;  %v5077_v37 = vsel %vm377_vm0, %v13077_v56, -inf  ;;  %v5076_v3 = vmax.f32 %v5074_v8, %v5075_v54 }
 0xb4e   :  { %v5064_v16 = vmax.f32 %v5062_v31, %v5063_v7  ;;  %v5069_v5 = vmax.f32 %v14533_v19, %v5068_v1  ;;  %10205 = vpow2.f32 %v5144_v47  ;;  %v5222_v33 = vrot.slane %v13008_v40, 6 }
 0xb4f   :  { %v5082_v25 = vsel %vm377_vm0, %v5022_v18, -inf  ;;  %v13097_v11 = vmax.f32 %v5076_v3, %v5077_v37  ;;  %v14534_v12 = vmax.f32 %v13024_v4, %v13028_v63  ;;  %v5084_v55 = vsel %vm377_vm0, %v5029_v28, -inf }
 0xb50   :  { %v5071_v24 = vmax.f32 %v5069_v5, %v5070_v52  ;;  %v5102_v36 = vsub.f32 %v12989_v39, %v5064_v16  ;;  %v5104_v20 = vsub.f32 %v4938_v23, %v5064_v16  ;;  %v5105_v17 = vsub.f32 %v13052_v15, %v5064_v16 }
 0xb51   :  { %v5083_v21 = vmax.f32 %v14534_v12, %v5082_v25  ;;  %v5224_v58 = vrot.slane %v13016_v9, 5  ;;  %v5228_v39 = vrot.slane %v13035_v32, 6  ;;  %v5230_v23 = vrot.slane %v13039_v60, 5 }
 0xb52   :  { %v5106_v48 = vsub.f32 %v12991_v46, %v5071_v24  ;;  %v5108_v22 = vsub.f32 %v4966_v26, %v5071_v24  ;;  %v5150_v50 = vmul.f32 1.442695, %v5102_v36  ;;  %v5109_v8 = vsub.f32 %v13075_v29, %v5071_v24 }
 0xb53   :  { %v13108_v45 = vmax.f32 %v5083_v21, %v5084_v55  ;;  %v5112_v4 = vsub.f32 %v4994_v30, %v13097_v11  ;;  %v5154_v63 = vmul.f32 1.442695, %v5104_v20  ;;  %v5156_v15 = vmul.f32 1.442695, %v5105_v17 }
 0xb54   :  { %v5234_v62 = vrot.slane %v13050_v59, 6  ;;  %v5236_v46 = vrot.slane %v13054_v41, 5  ;;  %v5113_v34 = vsub.f32 %v13077_v56, %v13097_v11  ;;  %v5158_v6 = vmul.f32 1.442695, %v5106_v48 }
 0xb55   :  { %v5116_v26 = vsub.f32 %v5022_v18, %v13108_v45  ;;  %v5117_v14 = vsub.f32 %v5029_v28, %v13108_v45  ;;  %10207 = vpow2.f32 %v5150_v50  ;;  %v5162_v47 = vmul.f32 1.442695, %v5108_v22 }
 0xb56   :  { %v5110_v29 = vsub.f32 %v13059_v35, %v13097_v11  ;;  %v5114_v30 = vsub.f32 %v12993_v53, %v13108_v45  ;;  %10209 = vpow2.f32 %v5154_v63  ;;  %v5103_v49 = vsub.f32 %v12985_v44, %v5064_v16  ;;  %v13123_v51 = vpop.eup %10199 }
 0xb57   :  { %10211 = vpow2.f32 %v5156_v15  ;;  %v5164_v56 = vmul.f32 1.442695, %v5109_v8  ;;  %v5170_v31 = vmul.f32 1.442695, %v5112_v4  ;;  %v5107_v7 = vsub.f32 %v12965_v43, %v5071_v24  ;;  %v13126_v1 = vpop.eup %10201 }
 0xb58   :  { %10213 = vpow2.f32 %v5158_v6  ;;  %v5172_v28 = vmul.f32 1.442695, %v5113_v34  ;;  %v5214_v18 = vrot.slane %v13123_v51, 7  ;;  %v5111_v35 = vsub.f32 %v13063_v13, %v13097_v11 }
 0xb59   :  { %v13131_v53 = vpop.eup %10203  ;;  %10215 = vpow2.f32 %v5162_v47  ;;  %v5178_v44 = vmul.f32 1.442695, %v5116_v26  ;;  %v5180_v16 = vmul.f32 1.442695, %v5117_v14  ;;  %v5220_v19 = vrot.slane %v13126_v1, 7 }
 0xb5a   :  { %v5215_v5 = vsel %vm1192_vm1, %v5214_v18, %v12974_v2  ;;  %v5226_v43 = vrot.slane %v13131_v53, 7  ;;  %v5115_v54 = vsub.f32 %v12995_v27, %v13108_v45  ;;  %v5152_v52 = vmul.f32 1.442695, %v5103_v49 }
 0xb5b   :  { %v13139_v37 = vpop.eup %10205  ;;  %10217 = vpow2.f32 %v5164_v56  ;;  %v14535_v13 = vrot.slane %v12983_v61, 6  ;;  %v5221_v24 = vsel %vm1192_vm1, %v5220_v19, %v13000_v0  ;;  %v5160_v25 = vmul.f32 1.442695, %v5107_v7 }
 0xb5c   :  { %v14536_v36 = vrot.slane %v12987_v38, 5  ;;  %v5223_v11 = vsel %vm1195_vm2, %v5222_v33, %v5221_v24  ;;  %v5227_v27 = vsel %vm1192_vm1, %v5226_v43, %v13030_v42  ;;  %v5168_v12 = vmul.f32 1.442695, %v5111_v35 }
 0xb5d   :  { %v5217_v3 = vsel %vm1195_vm2, %v14535_v13, %v5215_v5  ;;  %10219 = vpow2.f32 %v5170_v31  ;;  %v5225_v21 = vsel %vm1198_vm3, %v5224_v58, %v5223_v11  ;;  %v5229_v17 = vsel %vm1195_vm2, %v5228_v39, %v5227_v27 }
 0xb5e   :  { %v5219_v20 = vsel %vm1198_vm3, %v14536_v36, %v5217_v3  ;;  %v5232_v55 = vrot.slane %v13139_v37, 7  ;;  %10221 = vpow2.f32 %v5172_v28  ;;  %v5231_v48 = vsel %vm1198_vm3, %v5230_v23, %v5229_v17 }
 0xb5f   :  { %v5270_v22 = vsel %vm1250_vm4, %v5219_v20, 0.0  ;;  %v5277_v50 = vsel %vm1250_vm4, %v5225_v21, 0.0  ;;  %10223 = vpow2.f32 %v5178_v44  ;;  %v5284_v58 = vsel %vm1250_vm4, %v5231_v48, 0.0 }
 0xb60   :  { %v5233_v33 = vsel %vm1192_vm1, %v5232_v55, %v13046_v10  ;;  %v5271_v45 = vrot.slane %v5270_v22, 4  ;;  %v5278_v8 = vrot.slane %v5277_v50, 4  ;;  %10225 = vpow2.f32 %v5152_v52 }
 0xb61   :  { %v5235_v4 = vsel %vm1195_vm2, %v5234_v62, %v5233_v33  ;;  %v5176_v39 = vmul.f32 1.442695, %v5115_v54  ;;  %v5285_v34 = vrot.slane %v5284_v58, 4  ;;  %v5166_v26 = vmul.f32 1.442695, %v5110_v29 }
 0xb62   :  { %v5237_v63 = vsel %vm1198_vm3, %v5236_v46, %v5235_v4  ;;  %v5272_v15 = vadd.f32 %v5271_v45, %v5270_v22  ;;  %v5279_v23 = vadd.f32 %v5278_v8, %v5277_v50  ;;  %v13163_v6 = vpop.eup %10207  ;;  %v5174_v14 = vmul.f32 1.442695, %v5114_v30 }
 0xb63   :  { %v5291_v47 = vsel %vm1250_vm4, %v5237_v63, 0.0  ;;  %10227 = vpow2.f32 %v5160_v25  ;;  %v13166_v49 = vpop.eup %10209  ;;  %v5286_v31 = vadd.f32 %v5285_v34, %v5284_v58  ;;  %v9684_v25 = vpop.f32.mrf.mxu1 }
 0xb64   :  { %10229 = vpow2.f32 %v5180_v16  ;;  %v5273_v62 = vrot.slane %v5272_v15, 2  ;;  %v5280_v56 = vrot.slane %v5279_v23, 2  ;;  %v13168_v7 = vpop.eup %10211  ;;  %v5292_v28 = vrot.slane %v5291_v47, 4 }
 0xb65   :  { %10231 = vpow2.f32 %v5168_v12  ;;  %v13170_v46 = vpop.eup %10213  ;;  %v5287_v44 = vrot.slane %v5286_v31, 2  ;;  %v5240_v17 = vrot.slane %v13166_v49, 6  ;;  %v4735_v48 = vpop.f32.mrf.mxu1  ;;  %v5242_v8 = vrot.slane %v13168_v7, 5 }
 0xb66   :  { %v5274_v18 = vadd.f32 %v5273_v62, %v5272_v15  ;;  %v5281_v35 = vadd.f32 %v5280_v56, %v5279_v23  ;;  %10233 = vpow2.f32 %v5176_v39  ;;  %v13172_v29 = vpop.eup %10215  ;;  %v5293_v30 = vadd.f32 %v5292_v28, %v5291_v47 }
 0xb67   :  { %10235 = vpow2.f32 %v5166_v26  ;;  %v5288_v5 = vadd.f32 %v5287_v44, %v5286_v31  ;;  %v5246_v33 = vrot.slane %v13172_v29, 6 }
 0xb68   :  { %10237 = vpow2.f32 %v5174_v14  ;;  %v5275_v19 = vrot.slane %v5274_v18, 1  ;;  %v5282_v16 = vrot.slane %v5281_v35, 1  ;;  %v13174_v43 = vpop.eup %10217  ;;  %v5294_v54 = vrot.slane %v5293_v30, 2  ;;  %v9687_v14 = vpop.f32.mrf.mxu1 }
 0xb69   :  { %v5289_v3 = vrot.slane %v5288_v5, 1  ;;  %v5248_v63 = vrot.slane %v13174_v43, 5 }
 0xb6a   :  { %v5276_v52 = vadd.f32 %v5275_v19, %v5274_v18  ;;  %v5283_v13 = vadd.f32 %v5282_v16, %v5281_v35  ;;  %v13176_v24 = vpop.eup %10219  ;;  %v5295_v36 = vadd.f32 %v5294_v54, %v5293_v30  ;;  %v13215_v19 = vld [vmem:[#allocation16 + $0x2] ss:$0 sm:$0xff] }
 0xb6b   :  { %v13178_v20 = vpop.eup %10221  ;;  %v5290_v11 = vadd.f32 %v5289_v3, %v5288_v5  ;;  %v5252_v15 = vrot.slane %v13176_v24, 6 }
 0xb6c   :  { %10239 = vrcp.f32 %v5276_v52  ;;  %v13180_v27 = vpop.eup %10223  ;;  %v5296_v12 = vrot.slane %v5295_v36, 1  ;;  %v5254_v30 = vrot.slane %v13178_v20, 5 }
 0xb6d   :  { %10241 = vrcp.f32 %v5283_v13  ;;  %v13182_v21 = vpop.eup %10225  ;;  %v5258_v26 = vrot.slane %v13180_v27, 6 }
 0xb6e   :  { %10243 = vrcp.f32 %v5290_v11  ;;  %v5297_v55 = vadd.f32 %v5296_v12, %v5295_v36  ;;  %v5238_v22 = vrot.slane %v13182_v21, 7  ;;  %v4745_v11 = vpop.f32.mrf.mxu1 }
 0xb70   :  { %v13186_v50 = vpop.eup %10227  ;;  %10245 = vrcp.f32 %v5297_v55  ;;  %v5239_v4 = vsel %vm1192_vm1, %v5238_v22, %v13163_v6 }
 0xb71   :  { %v13189_v45 = vpop.eup %10229  ;;  %v5244_v58 = vrot.slane %v13186_v50, 7  ;;  %v5241_v23 = vsel %vm1195_vm2, %v5240_v17, %v5239_v4 }
 0xb72   :  { %v13195_v39 = vpop.eup %10231  ;;  %v5243_v47 = vsel %vm1198_vm3, %v5242_v8, %v5241_v23  ;;  %v5260_v52 = vrot.slane %v13189_v45, 5 }
 0xb73   :  { %v13200_v34 = vpop.eup %10233  ;;  %v5245_v62 = vsel %vm1192_vm1, %v5244_v58, %v13170_v46  ;;  %v5250_v56 = vrot.slane %v13195_v39, 7  ;;  %v5298_v35 = vsel %vm1250_vm4, %v5243_v47, 0.0 }
 0xb74   :  { %v13207_v31 = vpop.eup %10235  ;;  %v5247_v28 = vsel %vm1195_vm2, %v5246_v33, %v5245_v62  ;;  %v5256_v18 = vrot.slane %v13200_v34, 7  ;;  %v5299_v54 = vrot.slane %v5298_v35, 4  ;;  %v4741_v33 = vadd.f32 %v9684_v25, %v13215_v19 }
 0xb75   :  { %v13212_v44 = vpop.eup %10237  ;;  %v5249_v16 = vsel %vm1198_vm3, %v5248_v63, %v5247_v28  ;;  %v5251_v5 = vsel %vm1192_vm1, %v5250_v56, %v13207_v31  ;;  %v13238_v28 = vadd.f32 %v9687_v14, %v13215_v19  ;;  %v13241_v25 = vadd.f32 %v13215_v19, %v4745_v11 }
 0xb76   :  { %v5253_v13 = vsel %vm1195_vm2, %v5252_v15, %v5251_v5  ;;  %v5257_v3 = vsel %vm1192_vm1, %v5256_v18, %v13212_v44  ;;  %v5305_v36 = vsel %vm1250_vm4, %v5249_v16, 0.0  ;;  %v5300_v55 = vadd.f32 %v5299_v54, %v5298_v35 }
 0xb77   :  { %v5255_v12 = vsel %vm1198_vm3, %v5254_v30, %v5253_v13  ;;  %v5259_v17 = vsel %vm1195_vm2, %v5258_v26, %v5257_v3  ;;  %v5306_v22 = vrot.slane %v5305_v36, 4  ;;  %v4736_v26 = vadd.f32 %v13215_v19, %v4735_v48 }
 0xb78   :  { %v5261_v8 = vsel %vm1198_vm3, %v5260_v52, %v5259_v17  ;;  %v5312_v4 = vsel %vm1250_vm4, %v5255_v12, 0.0  ;;  %v5301_v63 = vrot.slane %v5300_v55, 2 }
 0xb79   :  { %v10240_v58 = vpop.eup %10239  ;;  %v13230_v15 = vadd.f32 %v5306_v22, %v5305_v36  ;;  %v5313_v23 = vrot.slane %v5312_v4, 4  ;;  %v13233_v47 = vsel %vm1250_vm4, %v5261_v8, 0.0 }
 0xb7a   :  { %v10242_v62 = vpop.eup %10241  ;;  %v5337_v56 = vrot.slane %v10240_v58, %v11256_v57  ;;  %v5302_v30 = vadd.f32 %v5301_v63, %v5300_v55  ;;  %v5320_v5 = vrot.slane %v13233_v47, 4 }
 0xb7b   :  { %v10244_v18 = vpop.eup %10243  ;;  %v5341_v35 = vrot.slane %v10242_v62, %v11256_v57  ;;  %v5308_v16 = vrot.slane %v13230_v15, 2  ;;  %v5314_v13 = vadd.f32 %v5313_v23, %v5312_v4 }
 0xb7c   :  { %v5345_v54 = vrot.slane %v10244_v18, %v11256_v57  ;;  %v5367_v52 = vmul.f32 %v13123_v51, %v5337_v56  ;;  %v5366_v48 = vmul.f32 %v12974_v2, %v5337_v56  ;;  %v5369_v36 = vmul.f32 %v12987_v38, %v5337_v56 }
 0xb7d   :  { %v5371_v14 = vmul.f32 %v13126_v1, %v5341_v35  ;;  %v5370_v3 = vmul.f32 %v13000_v0, %v5341_v35  ;;  %v5373_v11 = vmul.f32 %v13016_v9, %v5341_v35  ;;  %v10246_v12 = vpop.eup %10245 }
 0xb7e   :  { %v5375_v17 = vmul.f32 %v13131_v53, %v5345_v54  ;;  %v5441_v55 = vrot.slane %v5367_v52, %v11256_v57  ;;  %v5374_v22 = vmul.f32 %v13030_v42, %v5345_v54  ;;  %v5401_v51 = vrot.slane %v5366_v48, %v11256_v57 }
 0xb7f   :  { %v5349_v2 = vrot.slane %v10246_v12, %v11256_v57  ;;  %v5445_v8 = vrot.slane %v5371_v14, %v11256_v57  ;;  %v5405_v1 = vrot.slane %v5370_v3, %v11256_v57  ;;  %v5377_v0 = vmul.f32 %v13039_v60, %v5345_v54 }
 0xb80   :  { %v5449_v38 = vrot.slane %v5375_v17, %v11256_v57  ;;  %v5470_v9 = vmul.f32 %v5441_v55, %v4741_v33  ;;  %v5409_v4 = vrot.slane %v5374_v22, %v11256_v57  ;;  %v5430_v53 = vmul.f32 %v5401_v51, %v4736_v26 }
 0xb81   :  { %v5379_v58 = vmul.f32 %v13139_v37, %v5349_v2  ;;  %v5471_v63 = vmul.f32 %v5445_v8, %v4741_v33  ;;  %v5378_v42 = vmul.f32 %v13046_v10, %v5349_v2  ;;  %v5431_v23 = vmul.f32 %v5405_v1, %v4736_v26 }
 0xb82   :  { %v5472_v62 = vmul.f32 %v5449_v38, %v4741_v33  ;;  %v5432_v18 = vmul.f32 %v5409_v4, %v4736_v26  ;;  %v5381_v52 = vmul.f32 %v13054_v41, %v5349_v2  ;;  %v5368_v48 = vmul.f32 %v12983_v61, %v5337_v56 }
 0xb83   :  { %v5453_v60 = vrot.slane %v5379_v58, %v11256_v57  ;;  %v5413_v14 = vrot.slane %v5378_v42, %v11256_v57  ;;  %v5478_v3 = vadd.f32 %v5470_v9, %v5430_v53  ;;  %v5537_v12 = vrot.slane %v5369_v36, %v11256_v57 }
 0xb84   :  { %v5479_v17 = vadd.f32 %v5471_v63, %v5431_v23  ;;  %v5480_v55 = vadd.f32 %v5472_v62, %v5432_v18  ;;  %v5541_v37 = vrot.slane %v5373_v11, %v11256_v57  ;;  %v5545_v10 = vrot.slane %v5377_v0, %v11256_v57 }
 0xb85   :  { %v5473_v22 = vmul.f32 %v5453_v60, %v4741_v33  ;;  %v5433_v51 = vmul.f32 %v5413_v14, %v4736_v26  ;;  %v5549_v8 = vrot.slane %v5381_v52, %v11256_v57  ;;  %v5372_v41 = vmul.f32 %v13008_v40, %v5341_v35 }
 0xb86   :  { %v5566_v61 = vmul.f32 %v5537_v12, %v13238_v28  ;;  %v5567_v56 = vmul.f32 %v5541_v37, %v13238_v28  ;;  %v5568_v1 = vmul.f32 %v5545_v10, %v13238_v28  ;;  %v5376_v36 = vmul.f32 %v13035_v32, %v5345_v54 }
 0xb87   :  { %v5481_v38 = vadd.f32 %v5473_v22, %v5433_v51  ;;  %v5380_v9 = vmul.f32 %v13050_v59, %v5349_v2  ;;  %v5489_v11 = vrot.slane %v5368_v48, %v11256_v57  ;;  %v5493_v33 = vrot.slane %v5372_v41, %v11256_v57 }
 0xb88   :  { %v5497_v26 = vrot.slane %v5376_v36, %v11256_v57  ;;  %v5303_v0 = vrot.slane %v5302_v30, 1  ;;  %v5309_v40 = vadd.f32 %v5308_v16, %v13230_v15  ;;  %v5315_v35 = vrot.slane %v5314_v13, 2 }
 0xb89   :  { %v5501_v4 = vrot.slane %v5380_v9, %v11256_v57  ;;  %v5518_v53 = vmul.f32 %v5489_v11, %v13241_v25  ;;  %v5519_v58 = vmul.f32 %v5493_v33, %v13241_v25  ;;  %v5321_v32 = vadd.f32 %v5320_v5, %v13233_v47 }
 0xb8a   :  { %v5520_v59 = vmul.f32 %v5497_v26, %v13241_v25  ;;  %v5304_v54 = vadd.f32 %v5303_v0, %v5302_v30  ;;  %v5310_v2 = vrot.slane %v5309_v40, 1  ;;  %v5316_v63 = vadd.f32 %v5315_v35, %v5314_v13 }
 0xb8b   :  { %v5521_v42 = vmul.f32 %v5501_v4, %v13241_v25  ;;  %v5527_v23 = vadd.f32 %v5519_v58, %v5479_v17  ;;  %v5322_v62 = vrot.slane %v5321_v32, 2  ;;  %v5526_v18 = vadd.f32 %v5518_v53, %v5478_v3  ;;  %v9690_v3 = vpop.f32.mrf.mxu1 }
 0xb8c   :  { %v5311_v15 = vadd.f32 %v5310_v2, %v5309_v40  ;;  %v5317_v16 = vrot.slane %v5316_v63, 1  ;;  %10247 = vrcp.f32 %v5304_v54  ;;  %v5528_v52 = vadd.f32 %v5520_v59, %v5480_v55 }
 0xb8d   :  { %v5575_v48 = vadd.f32 %v5567_v56, %v5527_v23  ;;  %v5323_v60 = vadd.f32 %v5322_v62, %v5321_v32  ;;  %v5574_v14 = vadd.f32 %v5566_v61, %v5526_v18  ;;  %v5529_v5 = vadd.f32 %v5521_v42, %v5481_v38  ;;  %v4755_v22 = vpop.f32.mrf.mxu1 }
 0xb8e   :  { %v5318_v12 = vadd.f32 %v5317_v16, %v5316_v63  ;;  %10249 = vrcp.f32 %v5311_v15  ;;  %v5576_v47 = vadd.f32 %v5568_v1, %v5528_v52  ;;  %v5569_v30 = vmul.f32 %v5549_v8, %v13238_v28 }
 0xb8f   :  { %v5324_v37 = vrot.slane %v5323_v60, 1  ;;  %9702 = vmatprep.mubr.msk.f32.mxu0 %vm377_vm0, %v5574_v14  ;;  %v4761_v38 = vadd.f32 %v9690_v3, %v13215_v19  ;;  %v9693_v11 = vpop.f32.mrf.mxu1 }
 0xb90   :  { %10251 = vrcp.f32 %v5318_v12  ;;  %9703 = vmatmul.mubr.msk.f32.vlgmr.msra.gmra.mxu0 %vm377_vm0, %v5575_v48  ;;  %v5577_v13 = vadd.f32 %v5569_v30, %v5529_v5 }
 0xb91   :  { %v5325_v25 = vadd.f32 %v5324_v37, %v5323_v60  ;;  %9705 = vmatprep.mubr.msk.f32.mxu0 %vm377_vm0, %v5576_v47  ;;  %v4765_v54 = vpop.f32.mrf.mxu1 }
 0xb92   :  { %v4766_v16 = vadd.f32 %v13215_v19, %v4765_v54  ;;  %v6184_v54 = vld [vmem:[#allocation19 + $0x8] sm:$0xff] }
 0xb93   :  { %10253 = vrcp.f32 %v5325_v25  ;;  %v4771_v25 = vadd.f32 %v9693_v11, %v13215_v19  ;;  %v5886_v11 = vld [vmem:[#allocation14 + $0xb8] sm:$0xff] }
 0xb94   :  { %9706 = vmatmul.mubr.msk.f32.gmra.mxu0 %vm377_vm0, %v5577_v13  ;;  %9734 = vmatprep.subr.mxu0 %v5886_v11 }
 0xb95   :  { %9735 = vmatpush3.msra.mxu0 %v5886_v11 }
 0xb99   :  { %v10248_v17 = vpop.eup %10247 }
 0xb9a   :  { %v5353_v55 = vrot.slane %v10248_v17, %v11256_v57 }
 0xb9b   :  { %v10250_v10 = vpop.eup %10249 }
 0xb9c   :  { %v5357_v51 = vrot.slane %v10250_v10, %v11256_v57  ;;  %v5383_v28 = vmul.f32 %v13182_v21, %v5353_v55  ;;  %v5382_v8 = vmul.f32 %v13163_v6, %v5353_v55  ;;  %v4756_v6 = vadd.f32 %v13215_v19, %v4755_v22 }
 0xb9d   :  { %v10252_v41 = vpop.eup %10251 }
 0xb9e   :  { %v5361_v61 = vrot.slane %v10252_v41, %v11256_v57  ;;  %v5387_v56 = vmul.f32 %v13186_v50, %v5357_v51  ;;  %v5457_v1 = vrot.slane %v5383_v28, %v11256_v57  ;;  %v5386_v36 = vmul.f32 %v13170_v46, %v5357_v51 }
 0xb9f   :  { %v5417_v9 = vrot.slane %v5382_v8, %v11256_v57  ;;  %v5385_v46 = vmul.f32 %v13168_v7, %v5353_v55  ;;  %v5389_v35 = vmul.f32 %v13174_v43, %v5357_v51  ;;  %v5388_v7 = vmul.f32 %v13172_v29, %v5357_v51 }
 0xba0   :  { %v10254_v33 = vpop.eup %10253  ;;  %v5391_v26 = vmul.f32 %v13195_v39, %v5361_v61  ;;  %v5461_v21 = vrot.slane %v5387_v56, %v11256_v57  ;;  %v5390_v0 = vmul.f32 %v13207_v31, %v5361_v61  ;;  %v5421_v40 = vrot.slane %v5386_v36, %v11256_v57 }
 0xba1   :  { %v5365_v50 = vrot.slane %v10254_v33, %v11256_v57  ;;  %v5474_v53 = vmul.f32 %v5457_v1, %v4761_v38  ;;  %v5434_v39 = vmul.f32 %v5417_v9, %v4756_v6  ;;  %v5384_v31 = vmul.f32 %v13166_v49, %v5353_v55  ;;  %v6186_v9 = vld [vmem:[#allocation19 + $0x18] sm:$0xff]  ;;  %v5885_v33 = vld [vmem:[#allocation14 + $0xb0] sm:$0xff] }
 0xba2   :  { %v5465_v4 = vrot.slane %v5391_v26, %v11256_v57  ;;  %v5425_v58 = vrot.slane %v5390_v0, %v11256_v57  ;;  %v5475_v2 = vmul.f32 %v5461_v21, %v4761_v38  ;;  %v5435_v63 = vmul.f32 %v5421_v40, %v4756_v6  ;;  %v5884_v26 = vld [vmem:[#allocation14 + $0xa8] sm:$0xff]  ;;  %9736 = vmatprep.subr.mxu0 %v5885_v33  ;;  %v8833_v21 = vld [vmem:[#allocation16 + $0x3] ss:$0 sm:$0xff] }
 0xba3   :  { %v5395_v32 = vmul.f32 %v13200_v34, %v5365_v50  ;;  %v5394_v59 = vmul.f32 %v13212_v44, %v5365_v50  ;;  %v5393_v42 = vmul.f32 %v13178_v20, %v5361_v61  ;;  %v5482_v15 = vadd.f32 %v5474_v53, %v5434_v39  ;;  %9737 = vmatpush3.msra.mxu0 %v5885_v33 }
 0xba4   :  { %v5476_v23 = vmul.f32 %v5465_v4, %v4761_v38  ;;  %v5436_v18 = vmul.f32 %v5425_v58, %v4756_v6  ;;  %v5553_v34 = vrot.slane %v5385_v46, %v11256_v57  ;;  %v5557_v44 = vrot.slane %v5389_v35, %v11256_v57  ;;  %9738 = vmatprep.subr.mxu0 %v5884_v26 }
 0xba5   :  { %v5469_v43 = vrot.slane %v5395_v32, %v11256_v57  ;;  %v5429_v62 = vrot.slane %v5394_v59, %v11256_v57  ;;  %v5392_v48 = vmul.f32 %v13176_v24, %v5361_v61  ;;  %v5396_v20 = vmul.f32 %v13180_v27, %v5365_v50  ;;  %9739 = vmatpush3.msra.mxu0 %v5884_v26  ;;  %v6185_v32 = vld [vmem:[#allocation19 + $0x10] sm:$0xff] }
 0xba6   :  { %v5483_v29 = vadd.f32 %v5475_v2, %v5435_v63  ;;  %v5397_v60 = vmul.f32 %v13189_v45, %v5365_v50  ;;  %v5505_v14 = vrot.slane %v5384_v31, %v11256_v57  ;;  %v5509_v12 = vrot.slane %v5388_v7, %v11256_v57  ;;  %v6183_v2 = vld [vmem:[#allocation19] sm:$0xff]  ;;  %v6453_v63 = vld [vmem:[#allocation19 + $0x58] sm:$0xff] }
 0xba7   :  { %v5477_v49 = vmul.f32 %v5469_v43, %v4761_v38  ;;  %v5437_v52 = vmul.f32 %v5429_v62, %v4756_v6  ;;  %v5484_v47 = vadd.f32 %v5476_v23, %v5436_v18  ;;  %v5561_v5 = vrot.slane %v5393_v42, %v11256_v57  ;;  %v5733_v38 = vld [vmem:[#allocation14 + $0x80] sm:$0xff] }
 0xba8   :  { %v5513_v37 = vrot.slane %v5392_v48, %v11256_v57  ;;  %v5517_v30 = vrot.slane %v5396_v20, %v11256_v57  ;;  %v5522_v13 = vmul.f32 %v5505_v14, %v4766_v16  ;;  %v5523_v24 = vmul.f32 %v5509_v12, %v4766_v16  ;;  %9720 = vmatprep.subr.mxu1 %v5733_v38  ;;  %v6168_v20 = vld [vmem:[%s14348_s17 + $0x8] sm:$0xff]  ;;  %v6169_v14 = vld [vmem:[%s14348_s17 + $0x10] sm:$0xff] }
 0xba9   :  { %v5485_v3 = vadd.f32 %v5477_v49, %v5437_v52  ;;  %v5570_v17 = vmul.f32 %v5553_v34, %v4771_v25  ;;  %v5571_v55 = vmul.f32 %v5557_v44, %v4771_v25  ;;  %v5565_v22 = vrot.slane %v5397_v60, %v11256_v57  ;;  %9721 = vmatpush3.msra.mxu1 %v5733_v38  ;;  %v6167_v49 = vld [vmem:[%s14348_s17] sm:$0xff]  ;;  %v14538_v12 = vld [vmem:[#allocation50_spill] sm:$0xff]  ;;  %v8842_v38 = vld [vmem:[#allocation16 + $0x4] ss:$0 sm:$0xff] }
 0xbaa   :  { %v5524_v27 = vmul.f32 %v5513_v37, %v4766_v16  ;;  %v5530_v45 = vadd.f32 %v5522_v13, %v5482_v15  ;;  %v5531_v10 = vadd.f32 %v5523_v24, %v5483_v29  ;;  %v5572_v51 = vmul.f32 %v5561_v5, %v4771_v25  ;;  %9754 = vmatprep.subr.mxu1 %v6186_v9  ;;  %v14537_v29 = vld [vmem:[#allocation49_spill] sm:$0xff] }
 0xbab   :  { %v5525_v28 = vmul.f32 %v5517_v30, %v4766_v16  ;;  %v5573_v19 = vmul.f32 %v5565_v22, %v4771_v25  ;;  %v13352_v60 = vadd.f32 %v6167_v49, %v14537_v29  ;;  %v14539_v5 = vld [vmem:[#allocation37_spill] sm:$0xff]  ;;  %v6170_v30 = vld [vmem:[%s14348_s17 + $0x18] sm:$0xff]  ;;  %v6452_v25 = vld [vmem:[#allocation19 + $0x50] sm:$0xff] }
 0xbac   :  { %v5532_v8 = vadd.f32 %v5524_v27, %v5484_v47  ;;  %v5578_v41 = vadd.f32 %v5570_v17, %v5530_v45  ;;  %v5579_v61 = vadd.f32 %v5571_v55, %v5531_v10  ;;  %v13361_v47 = vadd.f32 %v6168_v20, %v14538_v12  ;;  %v6171_v13 = vld [vmem:[%s14348_s17 + $0x20] sm:$0xff]  ;;  %v14541_v17 = vld [vmem:[#allocation39_spill] sm:$0xff]  ;;  %v6172_v45 = vld [vmem:[%s14348_s17 + $0x28] sm:$0xff] }
 0xbad   :  { %v5533_v1 = vadd.f32 %v5525_v28, %v5485_v3  ;;  %v13364_v37 = vadd.f32 %v6169_v14, %v14539_v5  ;;  %v6451_v24 = vld [vmem:[#allocation19 + $0x48] sm:$0xff]  ;;  %v13380_v55 = vadd.f32 %v6171_v13, %v14541_v17  ;;  %v6450_v10 = vld [vmem:[#allocation19 + $0x40] sm:$0xff]  ;;  %v6173_v22 = vld [vmem:[%s14348_s17 + $0x30] sm:$0xff] }
 0xbae   :  { %v5580_v56 = vadd.f32 %v5572_v51, %v5532_v8  ;;  %9708 = vmatprep.mubr.msk.f32.mxu0 %vm377_vm0, %v5578_v41  ;;  %v14540_v3 = vld [vmem:[#allocation38_spill] sm:$0xff]  ;;  %v14542_v51 = vld [vmem:[#allocation40_spill] sm:$0xff]  ;;  %v14543_v8 = vld [vmem:[#allocation35_spill] sm:$0xff] }
 0xbaf   :  { %9709 = vmatmul.mubr.msk.f32.gmra.mxu0 %vm377_vm0, %v5579_v61  ;;  %v5581_v36 = vadd.f32 %v5573_v19, %v5533_v1  ;;  %v13377_v27 = vadd.f32 %v6170_v30, %v14540_v3  ;;  %v13393_v28 = vadd.f32 %v6172_v45, %v14542_v51  ;;  %v13396_v41 = vadd.f32 %v6173_v22, %v14543_v8  ;;  %v6174_v61 = vld [vmem:[%s14348_s17 + $0x38] sm:$0xff] }
 0xbb0   :  { %9711 = vmatprep.mubr.msk.f32.mxu0 %vm377_vm0, %v5580_v56  ;;  %v14544_v56 = vld [vmem:[#allocation33_spill] sm:$0xff]  ;;  %v5883_v19 = vld [vmem:[#allocation14 + $0xa0] sm:$0xff] }
 0xbb1   :  { %v13406_v1 = vadd.f32 %v6174_v61, %v14544_v56  ;;  %9740 = vmatprep.subr.mxu0 %v5883_v19 }
 0xbb2   :  { %9741 = vmatpush3.msra.mxu0 %v5883_v19 }
 0xbb3   :  { %9712 = vmatmul.mubr.msk.f32.gmra.mxu0 %vm377_vm0, %v5581_v36  ;;  %v6335_v36 = vld [vmem:[#allocation19 + $0x38] sm:$0xff] }
 0xbb4   :  { %9774 = vmatprep.subr.mxu0 %v6335_v36 }
 0xc50   :  { %v9704_v6 = vpop.f32.mrf.mxu0 }
 0xc51   :  { %v5691_v0 = vadd.f32 %v9704_v6, %v8833_v21 }
 0xc52   :  { %v5685_v50 = vpop.f32.mrf.mxu0 }
 0xc53   :  { %v5686_v40 = vadd.f32 %v8833_v21, %v5685_v50  ;;  %v5725_v4 = vmax.f32 %v5691_v0, 0.0 }
 0xc54   :  { %v9707_v46 = vpop.f32.mrf.mxu0 }
 0xc55   :  { %v5724_v35 = vmax.f32 %v5686_v40, 0.0  ;;  %v5701_v53 = vadd.f32 %v9707_v46, %v8833_v21 }
 0xc56   :  { %v5695_v58 = vpop.f32.mrf.mxu0 }
 0xc57   :  { %v5696_v39 = vadd.f32 %v8833_v21, %v5695_v58  ;;  %9722 = vmatprep.mubr.msk.f32.mxu1 %vm377_vm0, %v5724_v35  ;;  %v5727_v31 = vmax.f32 %v5701_v53, 0.0  ;;  %v6334_v35 = vld [vmem:[#allocation19 + $0x30] sm:$0xff]  ;;  %v6333_v53 = vld [vmem:[#allocation19 + $0x28] sm:$0xff] }
 0xc58   :  { %9723 = vmatmul.mubr.msk.f32.vlgmr.msra.gmra.mxu1 %vm377_vm0, %v5725_v4 }
 0xc59   :  { %v5726_v59 = vmax.f32 %v5696_v39, 0.0  ;;  %9755 = vmatpush3.msra.mxu1 %v6186_v9  ;;  %v6332_v39 = vld [vmem:[#allocation19 + $0x20] sm:$0xff] }
 0xc5a   :  { %9756 = vmatprep.subr.mxu1 %v6185_v32 }
 0xc5b   :  { %9725 = vmatprep.mubr.msk.f32.mxu1 %vm377_vm0, %v5726_v59  ;;  %9757 = vmatpush3.msra.mxu1 %v6185_v32 }
 0xc5c   :  { %9726 = vmatmul.mubr.msk.f32.gmra.mxu1 %vm377_vm0, %v5727_v31  ;;  %9758 = vmatprep.subr.mxu1 %v6184_v54 }
 0xc5d   :  { %9759 = vmatpush3.msra.mxu1 %v6184_v54 }
 0xc5e   :  { %9760 = vmatprep.subr.mxu1 %v6183_v2 }
 0xc5f   :  { %9761 = vmatpush3.msra.mxu1 %v6183_v2 }
 0xc60   :  { %9794 = vmatprep.subr.mxu1 %v6453_v63 }
 0xc6f   :  { %v9710_v42 = vpop.f32.mrf.mxu0 }
 0xc70   :  { %v5711_v7 = vadd.f32 %v9710_v42, %v8833_v21 }
 0xc71   :  { %v5705_v43 = vpop.f32.mrf.mxu0 }
 0xc72   :  { %v5706_v23 = vadd.f32 %v8833_v21, %v5705_v43  ;;  %v5729_v15 = vmax.f32 %v5711_v7, 0.0 }
 0xc73   :  { %v9713_v62 = vpop.f32.mrf.mxu0 }
 0xc74   :  { %v5728_v18 = vmax.f32 %v5706_v23, 0.0  ;;  %v5721_v34 = vadd.f32 %v9713_v62, %v8833_v21 }
 0xc75   :  { %v5715_v44 = vpop.f32.mrf.mxu0 }
 0xc76   :  { %v5716_v16 = vadd.f32 %v8833_v21, %v5715_v44  ;;  %9728 = vmatprep.mubr.msk.f32.mxu1 %vm377_vm0, %v5728_v18  ;;  %v5731_v48 = vmax.f32 %v5721_v34, 0.0 }
 0xc77   :  { %9729 = vmatmul.mubr.msk.f32.gmra.mxu1 %vm377_vm0, %v5729_v15  ;;  %v8851_v15 = vld [vmem:[#allocation16 + $0x5] ss:$0 sm:$0xff] }
 0xc78   :  { %v5730_v52 = vmax.f32 %v5716_v16, 0.0 }
 0xc7a   :  { %9731 = vmatprep.mubr.msk.f32.mxu1 %vm377_vm0, %v5730_v52 }
 0xc7b   :  { %9732 = vmatmul.mubr.msk.f32.gmra.mxu1 %vm377_vm0, %v5731_v48 }
 0xc7c   :  { %9762 = vmatprep.mubr.msk.f32.mxu1 %vm377_vm0, %v13352_v60 }
 0xc7f   :  { %9763 = vmatmul.mubr.msk.f32.vlgmr.msra.gmra.mxu1 %vm377_vm0, %v13361_v47 }
 0xc80   :  { %9765 = vmatprep.mubr.msk.f32.mxu1 %vm377_vm0, %v13364_v37  ;;  %9795 = vmatpush3.msra.mxu1 %v6453_v63 }
 0xc81   :  { %9796 = vmatprep.subr.mxu1 %v6452_v25 }
 0xc82   :  { %9797 = vmatpush3.msra.mxu1 %v6452_v25 }
 0xc83   :  { %9766 = vmatmul.mubr.msk.f32.gmra.mxu1 %vm377_vm0, %v13377_v27  ;;  %9798 = vmatprep.subr.mxu1 %v6451_v24 }
 0xc84   :  { %9768 = vmatprep.mubr.msk.f32.mxu1 %vm377_vm0, %v13380_v55  ;;  %9799 = vmatpush3.msra.mxu1 %v6451_v24 }
 0xc85   :  { %9800 = vmatprep.subr.mxu1 %v6450_v10 }
 0xc86   :  { %9801 = vmatpush3.msra.mxu1 %v6450_v10 }
 0xc87   :  { %9769 = vmatmul.mubr.msk.f32.gmra.mxu1 %vm377_vm0, %v13393_v28 }
 0xc88   :  { %9771 = vmatprep.mubr.msk.f32.mxu1 %vm377_vm0, %v13396_v41 }
 0xc8b   :  { %9772 = vmatmul.mubr.msk.f32.gmra.mxu1 %vm377_vm0, %v13406_v1 }
 0xc8c   :  { %9802 = vmatprep.mubr.msk.f32.mxu1 %vm377_vm0, %v13352_v60 }
 0xc8f   :  { %9803 = vmatmul.mubr.msk.f32.vlgmr.msra.gmra.mxu1 %vm377_vm0, %v13361_v47 }
 0xc90   :  { %9805 = vmatprep.mubr.msk.f32.mxu1 %vm377_vm0, %v13364_v37 }
 0xc93   :  { %9806 = vmatmul.mubr.msk.f32.gmra.mxu1 %vm377_vm0, %v13377_v27 }
 0xc94   :  { %9808 = vmatprep.mubr.msk.f32.mxu1 %vm377_vm0, %v13380_v55 }
 0xc97   :  { %9809 = vmatmul.mubr.msk.f32.gmra.mxu1 %vm377_vm0, %v13393_v28 }
 0xc98   :  { %9811 = vmatprep.mubr.msk.f32.mxu1 %vm377_vm0, %v13396_v41 }
 0xc9b   :  { %9812 = vmatmul.mubr.msk.f32.gmra.mxu1 %vm377_vm0, %v13406_v1 }
 0xd18   :  { %v9724_v9 = vpop.f32.mrf.mxu1 }
 0xd19   :  { %v5841_v11 = vadd.f32 %v9724_v9, %v8842_v38 }
 0xd1a   :  { %v5835_v33 = vpop.f32.mrf.mxu1 }
 0xd1b   :  { %v5836_v26 = vadd.f32 %v8842_v38, %v5835_v33  ;;  %v5875_v0 = vmax.f32 %v5841_v11, 0.0 }
 0xd1c   :  { %v9727_v21 = vpop.f32.mrf.mxu1 }
 0xd1d   :  { %v5874_v6 = vmax.f32 %v5836_v26, 0.0  ;;  %v5851_v50 = vadd.f32 %v9727_v21, %v8842_v38 }
 0xd1e   :  { %v5845_v40 = vpop.f32.mrf.mxu1 }
 0xd1f   :  { %v5846_v46 = vadd.f32 %v8842_v38, %v5845_v40  ;;  %9742 = vmatprep.mubr.msk.f32.mxu0 %vm377_vm0, %v5874_v6  ;;  %v5877_v58 = vmax.f32 %v5851_v50, 0.0  ;;  %v13484_v40 = vld [vmem:[#allocation20 + $0x1] ss:$0 sm:$0xff] }
 0xd20   :  { %9743 = vmatmul.mubr.msk.f32.vlgmr.msra.gmra.mxu0 %vm377_vm0, %v5875_v0 }
 0xd21   :  { %v5876_v4 = vmax.f32 %v5846_v46, 0.0  ;;  %9775 = vmatpush3.msra.mxu0 %v6335_v36 }
 0xd22   :  { %9776 = vmatprep.subr.mxu0 %v6334_v35 }
 0xd23   :  { %9745 = vmatprep.mubr.msk.f32.mxu0 %vm377_vm0, %v5876_v4  ;;  %9777 = vmatpush3.msra.mxu0 %v6334_v35 }
 0xd24   :  { %9746 = vmatmul.mubr.msk.f32.gmra.mxu0 %vm377_vm0, %v5877_v58  ;;  %9778 = vmatprep.subr.mxu0 %v6333_v53 }
 0xd25   :  { %9779 = vmatpush3.msra.mxu0 %v6333_v53 }
 0xd26   :  { %9780 = vmatprep.subr.mxu0 %v6332_v39 }
 0xd27   :  { %9781 = vmatpush3.msra.mxu0 %v6332_v39 }
 0xd37   :  { %v9730_v32 = vpop.f32.mrf.mxu1 }
 0xd38   :  { %v5861_v59 = vadd.f32 %v9730_v32, %v8842_v38 }
 0xd39   :  { %v5855_v54 = vpop.f32.mrf.mxu1 }
 0xd3a   :  { %v5856_v31 = vadd.f32 %v8842_v38, %v5855_v54  ;;  %v5879_v42 = vmax.f32 %v5861_v59, 0.0 }
 0xd3b   :  { %v9733_v2 = vpop.f32.mrf.mxu1 }
 0xd3c   :  { %v5878_v63 = vmax.f32 %v5856_v31, 0.0  ;;  %v5871_v7 = vadd.f32 %v9733_v2, %v8842_v38 }
 0xd3d   :  { %v5865_v43 = vpop.f32.mrf.mxu1 }
 0xd3e   :  { %v5866_v23 = vadd.f32 %v8842_v38, %v5865_v43  ;;  %9748 = vmatprep.mubr.msk.f32.mxu0 %vm377_vm0, %v5878_v63  ;;  %v5881_v18 = vmax.f32 %v5871_v7, 0.0 }
 0xd3f   :  { %9749 = vmatmul.mubr.msk.f32.gmra.mxu0 %vm377_vm0, %v5879_v42 }
 0xd40   :  { %v5880_v62 = vmax.f32 %v5866_v23, 0.0 }
 0xd42   :  { %9751 = vmatprep.mubr.msk.f32.mxu0 %vm377_vm0, %v5880_v62 }
 0xd43   :  { %9752 = vmatmul.mubr.msk.f32.gmra.mxu0 %vm377_vm0, %v5881_v18 }
 0xd44   :  { %9782 = vmatprep.mubr.msk.f32.mxu0 %vm377_vm0, %v13352_v60 }
 0xd47   :  { %9783 = vmatmul.mubr.msk.f32.vlgmr.msra.gmra.mxu0 %vm377_vm0, %v13361_v47 }
 0xd48   :  { %9785 = vmatprep.mubr.msk.f32.mxu0 %vm377_vm0, %v13364_v37 }
 0xd4b   :  { %9786 = vmatmul.mubr.msk.f32.gmra.mxu0 %vm377_vm0, %v13377_v27 }
 0xd4c   :  { %9788 = vmatprep.mubr.msk.f32.mxu0 %vm377_vm0, %v13380_v55  ;;  %v9764_v55 = vpop.f32.mrf.mxu1 }
 0xd4e   :  { %v6284_v45 = vpop.f32.mrf.mxu1 }
 0xd4f   :  { %9789 = vmatmul.mubr.msk.f32.gmra.mxu0 %vm377_vm0, %v13393_v28  ;;  %v13470_v28 = vld [vmem:[#allocation20] ss:$0 sm:$0xff] }
 0xd50   :  { %9791 = vmatprep.mubr.msk.f32.mxu0 %vm377_vm0, %v13396_v41  ;;  %v9767_v10 = vpop.f32.mrf.mxu1  ;;  %v6290_v38 = vadd.f32 %v9764_v55, %v13470_v28  ;;  %v6285_v9 = vadd.f32 %v13470_v28, %v6284_v45  ;;  %v7379_v45 = vld [vmem:[#allocation19 + $0x78] sm:$0xff] }
 0xd51   :  { %v6300_v11 = vadd.f32 %v9767_v10, %v13470_v28  ;;  %v7378_v10 = vld [vmem:[#allocation19 + $0x70] sm:$0xff]  ;;  %9814 = vmatprep.subr.mxu0 %v7379_v45 }
 0xd52   :  { %v6294_v61 = vpop.f32.mrf.mxu1  ;;  %v13491_v53 = vmul.f32 0.17677669, %v6290_v38  ;;  %v13493_v58 = vmul.f32 0.17677669, %v6285_v9  ;;  %9815 = vmatpush3.msra.mxu0 %v7379_v45 }
 0xd53   :  { %9792 = vmatmul.mubr.msk.f32.gmra.mxu0 %vm377_vm0, %v13406_v1  ;;  %v6295_v26 = vadd.f32 %v13470_v28, %v6294_v61  ;;  %v13495_v39 = vmul.f32 0.17677669, %v6300_v11  ;;  %9816 = vmatprep.subr.mxu0 %v7378_v10 }
 0xd54   :  { %v9770_v63 = vpop.f32.mrf.mxu1  ;;  %9817 = vmatpush3.msra.mxu0 %v7378_v10 }
 0xd55   :  { %v13497_v59 = vmul.f32 0.17677669, %v6295_v26 }
 0xde0   :  { %v9744_v34 = vpop.f32.mrf.mxu0 }
 0xde1   :  { %v5991_v44 = vadd.f32 %v9744_v34, %v8851_v15 }
 0xde2   :  { %v5985_v16 = vpop.f32.mrf.mxu0 }
 0xde3   :  { %v5986_v49 = vadd.f32 %v8851_v15, %v5985_v16  ;;  %v13451_v52 = vadd.f32 %v5991_v44, %v14538_v12 }
 0xde4   :  { %v9747_v48 = vpop.f32.mrf.mxu0 }
 0xde5   :  { %14545 = vst [vmem:[#allocation34_spill] sm:$0xff] %v13451_v52  ;;  %v6001_v20 = vadd.f32 %v9747_v48, %v8851_v15  ;;  %v6035_v60 = vsel %vm377_vm0, %v13451_v52, 0.0  ;;  %v13456_v14 = vadd.f32 %v5986_v49, %v14537_v29  ;;  %v6304_v48 = vpop.f32.mrf.mxu1 }
 0xde6   :  { %6036 = vadd.xlane.f32.xlu0 %v6035_v60  ;;  %v5995_v47 = vpop.f32.mrf.mxu0 }
 0xde7   :  { %14546 = vst [vmem:[#allocation36_spill] sm:$0xff] %v13456_v14  ;;  %v5996_v37 = vadd.f32 %v8851_v15, %v5995_v47  ;;  %v6032_v30 = vsel %vm377_vm0, %v13456_v14, 0.0  ;;  %v13461_v25 = vadd.f32 %v6001_v20, %v14540_v3  ;;  %v9773_v26 = vpop.f32.mrf.mxu1 }
 0xde8   :  { %6033 = vadd.xlane.f32.xlu1 %v6032_v30 }
 0xde9   :  { %14547 = vst [vmem:[#allocation42_spill] sm:$0xff] %v13461_v25  ;;  %v6041_v13 = vsel %vm377_vm0, %v13461_v25, 0.0  ;;  %v13466_v24 = vadd.f32 %v5996_v37, %v14539_v5 }
 0xdea   :  { %6042 = vadd.xlane.f32.xlu0 %v6041_v13 }
 0xdeb   :  { %14548 = vst [vmem:[#allocation43_spill] sm:$0xff] %v13466_v24  ;;  %v6038_v27 = vsel %vm377_vm0, %v13466_v24, 0.0 }
 0xdec   :  { %6039 = vadd.xlane.f32.xlu1 %v6038_v27 }
 0xdff   :  { %v9750_v22 = vpop.f32.mrf.mxu0 }
 0xe00   :  { %v6011_v41 = vadd.f32 %v9750_v22, %v8851_v15 }
 0xe01   :  { %v6005_v1 = vpop.f32.mrf.mxu0 }
 0xe02   :  { %v6006_v19 = vadd.f32 %v8851_v15, %v6005_v1  ;;  %v13473_v36 = vadd.f32 %v6011_v41, %v14542_v51 }
 0xe03   :  { %v9753_v33 = vpop.f32.mrf.mxu0 }
 0xe04   :  { %14549 = vst [vmem:[#allocation41_spill] sm:$0xff] %v13473_v36  ;;  %v6021_v21 = vadd.f32 %v9753_v33, %v8851_v15  ;;  %v6047_v6 = vsel %vm377_vm0, %v13473_v36, 0.0  ;;  %v13482_v0 = vadd.f32 %v6006_v19, %v14541_v17  ;;  %v7377_v33 = vld [vmem:[#allocation19 + $0x68] sm:$0xff] }
 0xe05   :  { %6048 = vadd.xlane.f32.xlu0 %v6047_v6  ;;  %v6015_v50 = vpop.f32.mrf.mxu0  ;;  %9818 = vmatprep.subr.mxu0 %v7377_v33 }
 0xe06   :  { %14550 = vst [vmem:[#allocation44_spill] sm:$0xff] %v13482_v0  ;;  %v6016_v46 = vadd.f32 %v8851_v15, %v6015_v50  ;;  %v6044_v35 = vsel %vm377_vm0, %v13482_v0, 0.0  ;;  %v13489_v4 = vadd.f32 %v6021_v21, %v14544_v56  ;;  %9819 = vmatpush3.msra.mxu0 %v7377_v33 }
 0xe07   :  { %6045 = vadd.xlane.f32.xlu1 %v6044_v35  ;;  %v9784_v32 = vpop.f32.mrf.mxu0 }
 0xe08   :  { %14551 = vst [vmem:[#allocation45_spill] sm:$0xff] %v13489_v4  ;;  %v6416_v54 = vadd.f32 %v9784_v32, %v13484_v40  ;;  %v6053_v31 = vsel %vm377_vm0, %v13489_v4, 0.0  ;;  %v13503_v2 = vadd.f32 %v6016_v46, %v14543_v8 }
 0xe09   :  { %6054 = vadd.xlane.f32.xlu0 %v6053_v31  ;;  %v6410_v42 = vpop.f32.mrf.mxu0 }
 0xe0a   :  { %14552 = vst [vmem:[#allocation46_spill] sm:$0xff] %v13503_v2  ;;  %v6568_v7 = vmul.f32 %v6416_v54, %v13493_v58  ;;  %v6572_v43 = vmul.f32 %v6416_v54, %v13491_v53  ;;  %v6576_v23 = vmul.f32 %v6416_v54, %v13497_v59  ;;  %v6580_v62 = vmul.f32 %v6416_v54, %v13495_v39 }
 0xe0b   :  { %v6411_v18 = vadd.f32 %v13484_v40, %v6410_v42  ;;  %v6050_v15 = vsel %vm377_vm0, %v13503_v2, 0.0  ;;  %v7376_v42 = vld [vmem:[#allocation19 + $0x60] sm:$0xff] }
 0xe0c   :  { %v6606_v34 = vsel %vm377_vm0, %v6568_v7, 0.0  ;;  %v6634_v44 = vsel %vm377_vm0, %v6572_v43, 0.0  ;;  %v6662_v16 = vsel %vm377_vm0, %v6576_v23, 0.0  ;;  %v6690_v49 = vsel %vm377_vm0, %v6580_v62, 0.0  ;;  %6051 = vadd.xlane.f32.xlu1 %v6050_v15  ;;  %9820 = vmatprep.subr.mxu0 %v7376_v42 }
 0xe0d   :  { %v6607_v20 = vrot.slane %v6606_v34, 4  ;;  %v6635_v60 = vrot.slane %v6634_v44, 4  ;;  %v6663_v47 = vrot.slane %v6662_v16, 4  ;;  %v6691_v37 = vrot.slane %v6690_v49, 4  ;;  %9821 = vmatpush3.msra.mxu0 %v7376_v42 }
 0xe0e   :  { %v6567_v30 = vmul.f32 %v6411_v18, %v13493_v58  ;;  %v6571_v13 = vmul.f32 %v6411_v18, %v13491_v53  ;;  %v6575_v27 = vmul.f32 %v6411_v18, %v13497_v59  ;;  %v6579_v55 = vmul.f32 %v6411_v18, %v13495_v39 }
 0xe0f   :  { %v6608_v22 = vadd.f32 %v6607_v20, %v6606_v34  ;;  %v6636_v41 = vadd.f32 %v6635_v60, %v6634_v44  ;;  %v6664_v61 = vadd.f32 %v6663_v47, %v6662_v16  ;;  %v6692_v1 = vadd.f32 %v6691_v37, %v6690_v49  ;;  %v6314_v44 = vpop.f32.mrf.mxu1 }
 0xe10   :  { %v6599_v19 = vsel %vm377_vm0, %v6567_v30, 0.0  ;;  %v6627_v38 = vsel %vm377_vm0, %v6571_v13, 0.0  ;;  %v6655_v9 = vsel %vm377_vm0, %v6575_v27, 0.0  ;;  %v6683_v11 = vsel %vm377_vm0, %v6579_v55, 0.0  ;;  %v9787_v13 = vpop.f32.mrf.mxu0 }
 0xe11   :  { %v6609_v21 = vrot.slane %v6608_v22, 2  ;;  %v6637_v6 = vrot.slane %v6636_v41, 2  ;;  %v6665_v50 = vrot.slane %v6664_v61, 2  ;;  %v6693_v46 = vrot.slane %v6692_v1, 2 }
 0xe12   :  { %v6600_v35 = vrot.slane %v6599_v19, 4  ;;  %v6628_v32 = vrot.slane %v6627_v38, 4  ;;  %v6656_v54 = vrot.slane %v6655_v9, 4  ;;  %v6684_v31 = vrot.slane %v6683_v11, 4 }
 0xe13   :  { %v6610_v7 = vadd.f32 %v6609_v21, %v6608_v22  ;;  %v6638_v43 = vadd.f32 %v6637_v6, %v6636_v41  ;;  %v6666_v23 = vadd.f32 %v6665_v50, %v6664_v61  ;;  %v6694_v62 = vadd.f32 %v6693_v46, %v6692_v1 }
 0xe14   :  { %v6601_v18 = vadd.f32 %v6600_v35, %v6599_v19  ;;  %v6629_v15 = vadd.f32 %v6628_v32, %v6627_v38  ;;  %v6310_v34 = vadd.f32 %v9770_v63, %v13470_v28  ;;  %v6657_v20 = vadd.f32 %v6656_v54, %v6655_v9 }
 0xe15   :  { %v6611_v16 = vrot.slane %v6610_v7, 1  ;;  %v6639_v49 = vrot.slane %v6638_v43, 1  ;;  %v6685_v60 = vadd.f32 %v6684_v31, %v6683_v11  ;;  %v6667_v47 = vrot.slane %v6666_v23, 1  ;;  %v6420_v11 = vpop.f32.mrf.mxu0 }
 0xe16   :  { %v6695_v37 = vrot.slane %v6694_v62, 1  ;;  %v6602_v30 = vrot.slane %v6601_v18, 2  ;;  %v6305_v27 = vadd.f32 %v13470_v28, %v6304_v48  ;;  %v6320_v55 = vadd.f32 %v9773_v26, %v13470_v28 }
 0xe17   :  { %v6315_v45 = vadd.f32 %v13470_v28, %v6314_v44  ;;  %v6630_v10 = vrot.slane %v6629_v15, 2  ;;  %v13528_v22 = vmul.f32 0.17677669, %v6310_v34  ;;  %v13530_v63 = vadd.f32 %v6611_v16, %v6610_v7 }
 0xe18   :  { %v13532_v41 = vadd.f32 %v6639_v49, %v6638_v43  ;;  %v6658_v61 = vrot.slane %v6657_v20, 2  ;;  %v6686_v1 = vrot.slane %v6685_v60, 2  ;;  %v13534_v19 = vadd.f32 %v6667_v47, %v6666_v23 }
 0xe19   :  { %v13536_v38 = vadd.f32 %v6695_v37, %v6694_v62  ;;  %v6603_v9 = vadd.f32 %v6602_v30, %v6601_v18  ;;  %v6426_v48 = vadd.f32 %v9787_v13, %v13484_v40  ;;  %v13539_v33 = vmul.f32 0.17677669, %v6305_v27 }
 0xe1a   :  { %v13541_v28 = vmul.f32 0.17677669, %v6320_v55  ;;  %v13543_v26 = vmul.f32 0.17677669, %v6315_v45  ;;  %v6631_v21 = vadd.f32 %v6630_v10, %v6629_v15  ;;  %v13551_v32 = vsel %vm377_vm0, %v13530_v63, -inf }
 0xe1b   :  { %v6570_v6 = vmul.f32 %v6426_v48, %v13493_v58  ;;  %v6574_v50 = vmul.f32 %v6426_v48, %v13491_v53  ;;  %v6578_v46 = vmul.f32 %v6426_v48, %v13497_v59  ;;  %v6582_v35 = vmul.f32 %v6426_v48, %v13495_v39 }
 0xe1c   :  { %v6659_v54 = vadd.f32 %v6658_v61, %v6657_v20  ;;  %v6687_v31 = vadd.f32 %v6686_v1, %v6685_v60  ;;  %v6421_v42 = vadd.f32 %v13484_v40, %v6420_v11  ;;  %v13556_v7 = vsel %vm377_vm0, %v13532_v41, -inf }
 0xe1d   :  { %v13560_v43 = vsel %vm377_vm0, %v13534_v19, -inf  ;;  %v13564_v23 = vsel %vm377_vm0, %v13536_v38, -inf  ;;  %v6604_v62 = vrot.slane %v6603_v9, 1  ;;  %v6620_v18 = vsel %vm377_vm0, %v6570_v6, 0.0 }
 0xe1e   :  { %v6648_v15 = vsel %vm377_vm0, %v6574_v50, 0.0  ;;  %v6676_v34 = vsel %vm377_vm0, %v6578_v46, 0.0  ;;  %v6704_v44 = vsel %vm377_vm0, %v6582_v35, 0.0  ;;  %v6621_v16 = vrot.slane %v6620_v18, 4 }
 0xe1f   :  { %v6649_v49 = vrot.slane %v6648_v15, 4  ;;  %v6677_v20 = vrot.slane %v6676_v34, 4  ;;  %v6705_v60 = vrot.slane %v6704_v44, 4  ;;  %v6569_v47 = vmul.f32 %v6421_v42, %v13493_v58 }
 0xe20   :  { %v6573_v37 = vmul.f32 %v6421_v42, %v13491_v53  ;;  %v6577_v30 = vmul.f32 %v6421_v42, %v13497_v59  ;;  %v6581_v13 = vmul.f32 %v6421_v42, %v13495_v39  ;;  %v6632_v27 = vrot.slane %v6631_v21, 1 }
 0xe21   :  { %v6660_v55 = vrot.slane %v6659_v54, 1  ;;  %v6622_v45 = vadd.f32 %v6621_v16, %v6620_v18  ;;  %v6650_v10 = vadd.f32 %v6649_v49, %v6648_v15  ;;  %v6613_v61 = vsel %vm377_vm0, %v6569_v47, 0.0 }
 0xe22   :  { %v6641_v1 = vsel %vm377_vm0, %v6573_v37, 0.0  ;;  %v6669_v48 = vsel %vm377_vm0, %v6577_v30, 0.0  ;;  %v6697_v11 = vsel %vm377_vm0, %v6581_v13, 0.0  ;;  %v6678_v50 = vadd.f32 %v6677_v20, %v6676_v34  ;;  %v9790_v30 = vpop.f32.mrf.mxu0 }
 0xe23   :  { %v6623_v6 = vrot.slane %v6622_v45, 2  ;;  %v6651_v58 = vrot.slane %v6650_v10, 2  ;;  %v6706_v53 = vadd.f32 %v6705_v60, %v6704_v44  ;;  %v6614_v46 = vrot.slane %v6613_v61, 4 }
 0xe24   :  { %v6642_v59 = vrot.slane %v6641_v1, 4  ;;  %v6670_v35 = vrot.slane %v6669_v48, 4  ;;  %v6698_v39 = vrot.slane %v6697_v11, 4  ;;  %v13578_v42 = vadd.f32 %v6604_v62, %v6603_v9 }
 0xe25   :  { %v6688_v18 = vrot.slane %v6687_v31, 1  ;;  %v6624_v15 = vadd.f32 %v6623_v6, %v6622_v45  ;;  %v6652_v16 = vadd.f32 %v6651_v58, %v6650_v10  ;;  %v6615_v49 = vadd.f32 %v6614_v46, %v6613_v61 }
 0xe26   :  { %v6643_v47 = vadd.f32 %v6642_v59, %v6641_v1  ;;  %v6671_v37 = vadd.f32 %v6670_v35, %v6669_v48  ;;  %v6699_v2 = vadd.f32 %v6698_v39, %v6697_v11  ;;  %v13580_v4 = vadd.f32 %v6632_v27, %v6631_v21 }
 0xe27   :  { %v13582_v13 = vadd.f32 %v6660_v55, %v6659_v54  ;;  %v6679_v34 = vrot.slane %v6678_v50, 2  ;;  %v6707_v44 = vrot.slane %v6706_v53, 2  ;;  %v6616_v20 = vrot.slane %v6615_v49, 2 }
 0xe28   :  { %v6644_v60 = vrot.slane %v6643_v47, 2  ;;  %v6672_v0 = vrot.slane %v6671_v37, 2  ;;  %v6700_v36 = vrot.slane %v6699_v2, 2  ;;  %v13584_v9 = vadd.f32 %v6688_v18, %v6687_v31 }
 0xe29   :  { %v6625_v62 = vrot.slane %v6624_v15, 1  ;;  %v6653_v45 = vrot.slane %v6652_v16, 1  ;;  %v6436_v10 = vadd.f32 %v9790_v30, %v13484_v40  ;;  %v6617_v61 = vadd.f32 %v6616_v20, %v6615_v49 }
 0xe2a   :  { %v6645_v1 = vadd.f32 %v6644_v60, %v6643_v47  ;;  %v6673_v48 = vadd.f32 %v6672_v0, %v6671_v37  ;;  %v6701_v11 = vadd.f32 %v6700_v36, %v6699_v2  ;;  %v6823_v21 = vsel %vm377_vm0, %v13578_v42, -inf }
 0xe2b   :  { %v6830_v54 = vsel %vm377_vm0, %v13580_v4, -inf  ;;  %v6837_v27 = vsel %vm377_vm0, %v13582_v13, -inf  ;;  %v6680_v55 = vadd.f32 %v6679_v34, %v6678_v50  ;;  %v6708_v31 = vadd.f32 %v6707_v44, %v6706_v53 }
 0xe2c   :  { %v6618_v6 = vrot.slane %v6617_v61, 1  ;;  %v6646_v58 = vrot.slane %v6645_v1, 1  ;;  %v6674_v46 = vrot.slane %v6673_v48, 1  ;;  %v13593_v59 = vadd.f32 %v6625_v62, %v6624_v15 }
 0xe2d   :  { %v6654_v35 = vadd.f32 %v6653_v45, %v6652_v16  ;;  %v6702_v39 = vrot.slane %v6701_v11, 1  ;;  %v6584_v36 = vmul.f32 %v6436_v10, %v13539_v33  ;;  %v6588_v49 = vmul.f32 %v6436_v10, %v13528_v22 }
 0xe2e   :  { %v13596_v0 = vadd.f32 %v6618_v6, %v6617_v61  ;;  %v6647_v2 = vadd.f32 %v6646_v58, %v6645_v1  ;;  %v13598_v18 = vadd.f32 %v6674_v46, %v6673_v48  ;;  %v6825_v47 = vmax.f32 %v6823_v21, %v13551_v32  ;;  %v6430_v46 = vpop.f32.mrf.mxu0 }
 0xe2f   :  { %v6832_v50 = vmax.f32 %v6830_v54, %v13556_v7  ;;  %v6681_v53 = vrot.slane %v6680_v55, 1  ;;  %v6592_v37 = vmul.f32 %v6436_v10, %v13543_v26  ;;  %v6709_v15 = vrot.slane %v6708_v31, 1 }
 0xe30   :  { %v6826_v16 = vsel %vm377_vm0, %v13596_v0, -inf  ;;  %v6833_v30 = vsel %vm377_vm0, %v6647_v2, -inf  ;;  %v6596_v34 = vmul.f32 %v6436_v10, %v13541_v28  ;;  %v6828_v44 = vsel %vm377_vm0, %v13593_v59, -inf }
 0xe31   :  { %v6827_v20 = vmax.f32 %v6825_v47, %v6826_v16  ;;  %v6834_v60 = vmax.f32 %v6832_v50, %v6833_v30  ;;  %v6718_v32 = vsel %vm377_vm0, %v6584_v36, 0.0  ;;  %v6835_v7 = vsel %vm377_vm0, %v6654_v35, -inf }
 0xe32   :  { %v13612_v62 = vadd.f32 %v6702_v39, %v6701_v11  ;;  %v6840_v45 = vsel %vm377_vm0, %v13598_v18, -inf  ;;  %v6746_v61 = vsel %vm377_vm0, %v6588_v49, 0.0  ;;  %v6839_v1 = vmax.f32 %v6837_v27, %v13560_v43 }
 0xe33   :  { %v13618_v48 = vmax.f32 %v6827_v20, %v6828_v44  ;;  %v6836_v10 = vmax.f32 %v6834_v60, %v6835_v7  ;;  %v6774_v21 = vsel %vm377_vm0, %v6592_v37, 0.0  ;;  %v6844_v54 = vsel %vm377_vm0, %v13584_v9, -inf }
 0xe34   :  { %v13623_v6 = vadd.f32 %v6681_v53, %v6680_v55  ;;  %v6719_v58 = vrot.slane %v6718_v32, 4  ;;  %v6802_v11 = vsel %vm377_vm0, %v6596_v34, 0.0  ;;  %v6841_v39 = vmax.f32 %v6839_v1, %v6840_v45 }
 0xe35   :  { %v6880_v36 = vsub.f32 %v13530_v63, %v13618_v48  ;;  %v6883_v43 = vsub.f32 %v13580_v4, %v6836_v10  ;;  %v6747_v27 = vrot.slane %v6746_v61, 4  ;;  %v13629_v49 = vadd.f32 %v6709_v15, %v6708_v31 }
 0xe36   :  { %v6847_v47 = vsel %vm377_vm0, %v13612_v62, -inf  ;;  %v6884_v50 = vsub.f32 %v13532_v41, %v6836_v10  ;;  %v6775_v55 = vrot.slane %v6774_v21, 4  ;;  %v6846_v53 = vmax.f32 %v6844_v54, %v13564_v23 }
 0xe37   :  { %v6885_v37 = vsub.f32 %v6647_v2, %v6836_v10  ;;  %v6803_v16 = vrot.slane %v6802_v11, 4  ;;  %v6431_v30 = vadd.f32 %v13484_v40, %v6430_v46  ;;  %v6842_v63 = vsel %vm377_vm0, %v13623_v6, -inf }
 0xe38   :  { %v6886_v34 = vsub.f32 %v6654_v35, %v6836_v10  ;;  %v6913_v4 = vmul.f32 1.442695, %v6880_v36  ;;  %v6720_v44 = vadd.f32 %v6719_v58, %v6718_v32  ;;  %v13638_v31 = vmax.f32 %v6841_v39, %v6842_v63 }
 0xe39   :  { %v6848_v15 = vmax.f32 %v6846_v53, %v6847_v47  ;;  %v6919_v20 = vmul.f32 1.442695, %v6883_v43  ;;  %v6748_v60 = vadd.f32 %v6747_v27, %v6746_v61  ;;  %v6849_v41 = vsel %vm377_vm0, %v13629_v49, -inf }
 0xe3a   :  { %v6921_v7 = vmul.f32 1.442695, %v6884_v50  ;;  %v6776_v23 = vadd.f32 %v6775_v55, %v6774_v21  ;;  %v6879_v2 = vsub.f32 %v13578_v42, %v13618_v48  ;;  %v6881_v45 = vsub.f32 %v13596_v0, %v13618_v48 }
 0xe3b   :  { %v6923_v1 = vmul.f32 1.442695, %v6885_v37  ;;  %v6804_v35 = vadd.f32 %v6803_v16, %v6802_v11  ;;  %10255 = vpow2.f32 %v6913_v4  ;;  %v6925_v32 = vmul.f32 1.442695, %v6886_v34 }
 0xe3c   :  { %v6721_v10 = vrot.slane %v6720_v44, 2  ;;  %v6583_v54 = vmul.f32 %v6431_v30, %v13539_v33  ;;  %v13647_v58 = vmax.f32 %v6848_v15, %v6849_v41  ;;  %v6887_v61 = vsub.f32 %v13582_v13, %v13638_v31 }
 0xe3d   :  { %10257 = vpow2.f32 %v6919_v20  ;;  %v6749_v21 = vrot.slane %v6748_v60, 2  ;;  %v6888_v42 = vsub.f32 %v13534_v19, %v13638_v31  ;;  %v6889_v0 = vsub.f32 %v13598_v18, %v13638_v31 }
 0xe3e   :  { %10259 = vpow2.f32 %v6921_v7  ;;  %v6587_v11 = vmul.f32 %v6431_v30, %v13528_v22  ;;  %v6911_v46 = vmul.f32 1.442695, %v6879_v2  ;;  %v6777_v39 = vrot.slane %v6776_v23, 2  ;;  %v9793_v7 = vpop.f32.mrf.mxu0 }
 0xe3f   :  { %10261 = vpow2.f32 %v6923_v1  ;;  %v6805_v36 = vrot.slane %v6804_v35, 2  ;;  %v6915_v43 = vmul.f32 1.442695, %v6881_v45  ;;  %v6722_v27 = vadd.f32 %v6721_v10, %v6720_v44 }
 0xe40   :  { %10263 = vpow2.f32 %v6925_v32  ;;  %v6711_v13 = vsel %vm377_vm0, %v6583_v54, 0.0  ;;  %v6891_v47 = vsub.f32 %v13584_v9, %v13647_v58  ;;  %v6892_v19 = vsub.f32 %v13536_v38, %v13647_v58 }
 0xe41   :  { %v6750_v50 = vadd.f32 %v6749_v21, %v6748_v60  ;;  %v6712_v18 = vrot.slane %v6711_v13, 4  ;;  %v6893_v55 = vsub.f32 %v13612_v62, %v13647_v58  ;;  %v6591_v53 = vmul.f32 %v6431_v30, %v13543_v26 }
 0xe42   :  { %v6595_v37 = vmul.f32 %v6431_v30, %v13541_v28  ;;  %v6739_v16 = vsel %vm377_vm0, %v6587_v11, 0.0  ;;  %10265 = vpow2.f32 %v6911_v46  ;;  %v6778_v63 = vadd.f32 %v6777_v39, %v6776_v23  ;;  %v7529_v46 = vld [vmem:[#allocation19 + $0x98] sm:$0xff]  ;;  %v7528_v39 = vld [vmem:[#allocation19 + $0x90] sm:$0xff] }
 0xe43   :  { %v6806_v34 = vadd.f32 %v6805_v36, %v6804_v35  ;;  %v6713_v4 = vadd.f32 %v6712_v18, %v6711_v13  ;;  %10267 = vpow2.f32 %v6915_v43  ;;  %v6927_v9 = vmul.f32 1.442695, %v6887_v61  ;;  %9834 = vmatprep.subr.mxu1 %v7529_v46 }
 0xe44   :  { %v6723_v44 = vrot.slane %v6722_v27, 1  ;;  %v6740_v15 = vrot.slane %v6739_v16, 4  ;;  %v6929_v38 = vmul.f32 1.442695, %v6888_v42  ;;  %v6931_v20 = vmul.f32 1.442695, %v6889_v0  ;;  %9835 = vmatpush3.msra.mxu1 %v7529_v46 }
 0xe45   :  { %v6751_v60 = vrot.slane %v6750_v50, 1  ;;  %v6714_v41 = vrot.slane %v6713_v4, 2  ;;  %v6935_v62 = vmul.f32 1.442695, %v6891_v47  ;;  %v6767_v45 = vsel %vm377_vm0, %v6591_v53, 0.0  ;;  %9836 = vmatprep.subr.mxu1 %v7528_v39 }
 0xe46   :  { %v6741_v2 = vadd.f32 %v6740_v15, %v6739_v16  ;;  %v6795_v30 = vsel %vm377_vm0, %v6595_v37, 0.0  ;;  %v6779_v1 = vrot.slane %v6778_v63, 1  ;;  %v6807_v32 = vrot.slane %v6806_v34, 1  ;;  %9837 = vmatpush3.msra.mxu1 %v7528_v39 }
 0xe47   :  { %v6768_v23 = vrot.slane %v6767_v45, 4  ;;  %v6796_v35 = vrot.slane %v6795_v30, 4  ;;  %10269 = vpow2.f32 %v6927_v9  ;;  %v13668_v10 = vadd.f32 %v6723_v44, %v6722_v27 }
 0xe48   :  { %v6715_v54 = vadd.f32 %v6714_v41, %v6713_v4  ;;  %v6446_v61 = vadd.f32 %v9793_v7, %v13484_v40  ;;  %v13671_v21 = vpop.eup %10255  ;;  %10271 = vpow2.f32 %v6929_v38  ;;  %v6937_v42 = vmul.f32 1.442695, %v6892_v19  ;;  %v7527_v19 = vld [vmem:[#allocation19 + $0x88] sm:$0xff] }
 0xe49   :  { %14553 = vst [vmem:[#allocation47_spill] sm:$0xff] %v13671_v21  ;;  %v13673_v0 = vadd.f32 %v6751_v60, %v6750_v50  ;;  %v6742_v11 = vrot.slane %v6741_v2, 2  ;;  %10273 = vpow2.f32 %v6931_v20  ;;  %v6769_v43 = vadd.f32 %v6768_v23, %v6767_v45  ;;  %9838 = vmatprep.subr.mxu1 %v7527_v19  ;;  %v6440_v23 = vpop.f32.mrf.mxu0 }
 0xe4a   :  { %v13675_v36 = vpop.eup %10257  ;;  %v6797_v13 = vadd.f32 %v6796_v35, %v6795_v30  ;;  %10275 = vpow2.f32 %v6935_v62  ;;  %v6939_v47 = vmul.f32 1.442695, %v6893_v55  ;;  %v13679_v18 = vadd.f32 %v6779_v1, %v6778_v63  ;;  %9839 = vmatpush3.msra.mxu1 %v7527_v19 }
 0xe4b   :  { %v13677_v27 = vpop.eup %10259  ;;  %v13681_v53 = vadd.f32 %v6807_v32, %v6806_v34  ;;  %v13688_v16 = vsel %vm377_vm0, %v13668_v10, -inf  ;;  %v6716_v4 = vrot.slane %v6715_v54, 1  ;;  %v6586_v9 = vmul.f32 %v6446_v61, %v13539_v33 }
 0xe4c   :  { %v13683_v50 = vpop.eup %10261  ;;  %v7013_v37 = vrot.slane %v13677_v27, 7  ;;  %10277 = vpow2.f32 %v6937_v42  ;;  %v13696_v63 = vsel %vm377_vm0, %v13673_v0, -inf  ;;  %v6743_v34 = vadd.f32 %v6742_v11, %v6741_v2 }
 0xe4d   :  { %v13691_v44 = vpop.eup %10263  ;;  %v7015_v55 = vrot.slane %v13683_v50, 6  ;;  %v6770_v20 = vrot.slane %v6769_v43, 2  ;;  %v6798_v60 = vrot.slane %v6797_v13, 2  ;;  %10279 = vpow2.f32 %v6939_v47 }
 0xe4e   :  { %v7014_v15 = vsel %vm1192_vm1, %v7013_v37, %v13675_v36  ;;  %v7017_v38 = vrot.slane %v13691_v44, 5  ;;  %v13704_v7 = vsel %vm377_vm0, %v13679_v18, -inf  ;;  %v13708_v62 = vsel %vm377_vm0, %v13681_v53, -inf }
 0xe4f   :  { %v7016_v41 = vsel %vm1195_vm2, %v7015_v55, %v7014_v15  ;;  %v13710_v2 = vpop.eup %10265  ;;  %v7007_v45 = vrot.slane %v13671_v21, 7  ;;  %v13714_v1 = vadd.f32 %v6716_v4, %v6715_v54  ;;  %v6732_v32 = vsel %vm377_vm0, %v6586_v9, 0.0 }
 0xe50   :  { %14554 = vst [vmem:[#allocation48_spill] sm:$0xff] %v13710_v2  ;;  %v7018_v30 = vsel %vm1198_vm3, %v7017_v38, %v7016_v41  ;;  %v13717_v35 = vpop.eup %10267  ;;  %v6744_v11 = vrot.slane %v6743_v34, 1  ;;  %v6590_v46 = vmul.f32 %v6446_v61, %v13528_v22  ;;  %v6594_v39 = vmul.f32 %v6446_v61, %v13543_v26 }
 0xe51   :  { %v7070_v42 = vsel %vm1250_vm4, %v7018_v30, 0.0  ;;  %v6771_v19 = vadd.f32 %v6770_v20, %v6769_v43  ;;  %v6799_v37 = vadd.f32 %v6798_v60, %v6797_v13  ;;  %v6733_v55 = vrot.slane %v6732_v32, 4 }
 0xe52   :  { %v7071_v47 = vrot.slane %v7070_v42, 4  ;;  %v6598_v15 = vmul.f32 %v6446_v61, %v13541_v28  ;;  %v6441_v54 = vadd.f32 %v13484_v40, %v6440_v23  ;;  %v6882_v4 = vsub.f32 %v13593_v59, %v13618_v48 }
 0xe53   :  { %v13730_v38 = vsel %vm1192_vm1, %v7007_v45, %v13710_v2  ;;  %v13735_v43 = vsel %vm377_vm0, %v13714_v1, -inf  ;;  %v13739_v40 = vadd.f32 %v6744_v11, %v6743_v34  ;;  %v6734_v13 = vadd.f32 %v6733_v55, %v6732_v32 }
 0xe54   :  { %v7072_v30 = vadd.f32 %v7071_v47, %v7070_v42  ;;  %v13737_v61 = vpop.eup %10269  ;;  %v6760_v59 = vsel %vm377_vm0, %v6590_v46, 0.0  ;;  %v6788_v48 = vsel %vm377_vm0, %v6594_v39, 0.0  ;;  %v6772_v60 = vrot.slane %v6771_v19, 1 }
 0xe55   :  { %v13743_v20 = vpop.eup %10271  ;;  %v6800_v45 = vrot.slane %v6799_v37, 1  ;;  %v6761_v23 = vrot.slane %v6760_v59, 4  ;;  %v6789_v41 = vrot.slane %v6788_v48, 4  ;;  %v6816_v9 = vsel %vm377_vm0, %v6598_v15, 0.0 }
 0xe56   :  { %v13745_v42 = vpop.eup %10273  ;;  %v7073_v47 = vrot.slane %v7072_v30, 2  ;;  %v6585_v24 = vmul.f32 %v6441_v54, %v13539_v33  ;;  %v6589_v34 = vmul.f32 %v6441_v54, %v13528_v22  ;;  %v6735_v11 = vrot.slane %v6734_v13, 2 }
 0xe57   :  { %v13750_v32 = vpop.eup %10275  ;;  %v6762_v46 = vadd.f32 %v6761_v23, %v6760_v59  ;;  %v6790_v39 = vadd.f32 %v6789_v41, %v6788_v48  ;;  %v6817_v55 = vrot.slane %v6816_v9, 4  ;;  %v13756_v14 = vsel %vm377_vm0, %v13739_v40, -inf }
 0xe58   :  { %v6593_v52 = vmul.f32 %v6441_v54, %v13543_v26  ;;  %v6725_v15 = vsel %vm377_vm0, %v6585_v24, 0.0  ;;  %v6597_v59 = vmul.f32 %v6441_v54, %v13541_v28  ;;  %v7074_v41 = vadd.f32 %v7073_v47, %v7072_v30 }
 0xe59   :  { %v13760_v33 = vpop.eup %10277  ;;  %v6763_v22 = vrot.slane %v6762_v46, 2  ;;  %v6791_v56 = vrot.slane %v6790_v39, 2  ;;  %v6818_v8 = vadd.f32 %v6817_v55, %v6816_v9  ;;  %v6726_v48 = vrot.slane %v6725_v15, 4 }
 0xe5a   :  { %v6753_v23 = vsel %vm377_vm0, %v6589_v34, 0.0  ;;  %v6781_v25 = vsel %vm377_vm0, %v6593_v52, 0.0  ;;  %v13765_v51 = vpop.eup %10279  ;;  %v13768_v26 = vadd.f32 %v6772_v60, %v6771_v19  ;;  %v13770_v24 = vadd.f32 %v6800_v45, %v6799_v37 }
 0xe5b   :  { %v6736_v3 = vadd.f32 %v6735_v11, %v6734_v13  ;;  %v6860_v9 = vmax.f32 %v13756_v14, %v13696_v63  ;;  %v6727_v55 = vadd.f32 %v6726_v48, %v6725_v15  ;;  %v6754_v28 = vrot.slane %v6753_v23, 4 }
 0xe5c   :  { %v6782_v54 = vrot.slane %v6781_v25, 4  ;;  %v6764_v30 = vadd.f32 %v6763_v22, %v6762_v46  ;;  %v6792_v47 = vadd.f32 %v6791_v56, %v6790_v39  ;;  %v6819_v34 = vrot.slane %v6818_v8, 2 }
 0xe5d   :  { %v6809_v52 = vsel %vm377_vm0, %v6597_v59, 0.0  ;;  %v7075_v5 = vrot.slane %v7074_v41, 1  ;;  %v6728_v12 = vrot.slane %v6727_v55, 2  ;;  %v6755_v29 = vadd.f32 %v6754_v28, %v6753_v23 }
 0xe5e   :  { %v6783_v17 = vadd.f32 %v6782_v54, %v6781_v25  ;;  %v6865_v19 = vsel %vm377_vm0, %v13768_v26, -inf  ;;  %v6872_v37 = vsel %vm377_vm0, %v13770_v24, -inf  ;;  %v6737_v13 = vrot.slane %v6736_v3, 1 }
 0xe5f   :  { %v6810_v14 = vrot.slane %v6809_v52, 4  ;;  %v6729_v63 = vadd.f32 %v6728_v12, %v6727_v55  ;;  %v6756_v60 = vrot.slane %v6755_v29, 2  ;;  %v6917_v11 = vmul.f32 1.442695, %v6882_v4 }
 0xe60   :  { %v6784_v45 = vrot.slane %v6783_v17, 2  ;;  %v6765_v56 = vrot.slane %v6764_v30, 1  ;;  %v6793_v46 = vrot.slane %v6792_v47, 1  ;;  %v6820_v39 = vadd.f32 %v6819_v34, %v6818_v8 }
 0xe61   :  { %v6811_v15 = vadd.f32 %v6810_v14, %v6809_v52  ;;  %v7076_v22 = vadd.f32 %v7075_v5, %v7074_v41  ;;  %v6730_v59 = vrot.slane %v6729_v63, 1  ;;  %v6757_v48 = vadd.f32 %v6756_v60, %v6755_v29 }
 0xe62   :  { %v6785_v25 = vadd.f32 %v6784_v45, %v6783_v17  ;;  %v13779_v23 = vadd.f32 %v6737_v13, %v6736_v3  ;;  %10281 = vpow2.f32 %v6917_v11  ;;  %v14555_v54 = vsub.f32 %v13623_v6, %v13638_v31 }
 0xe63   :  { %v6812_v28 = vrot.slane %v6811_v15, 2  ;;  %v6731_v12 = vadd.f32 %v6730_v59, %v6729_v63  ;;  %v6758_v55 = vrot.slane %v6757_v48, 1  ;;  %v6894_v4 = vsub.f32 %v13629_v49, %v13647_v58 }
 0xe64   :  { %v6933_v21 = vmul.f32 1.442695, %v14555_v54  ;;  %v6786_v2 = vrot.slane %v6785_v25, 1  ;;  %v13786_v8 = vadd.f32 %v6765_v56, %v6764_v30  ;;  %v13788_v5 = vadd.f32 %v6793_v46, %v6792_v47 }
 0xe65   :  { %v6821_v29 = vrot.slane %v6820_v39, 1  ;;  %v6813_v17 = vadd.f32 %v6812_v28, %v6811_v15  ;;  %v6759_v3 = vadd.f32 %v6758_v55, %v6757_v48  ;;  %v6854_v34 = vsel %vm377_vm0, %v6731_v12, -inf }
 0xe66   :  { %v6787_v41 = vadd.f32 %v6786_v2, %v6785_v25  ;;  %10283 = vpow2.f32 %v6933_v21  ;;  %v6867_v6 = vmax.f32 %v6865_v19, %v13704_v7  ;;  %v14556_v52 = vmax.f32 %v13735_v43, %v13688_v16 }
 0xe67   :  { %v6814_v31 = vrot.slane %v6813_v17, 1  ;;  %10285 = vrcp.f32 %v7076_v22  ;;  %v6856_v49 = vsel %vm377_vm0, %v13779_v23, -inf  ;;  %v6861_v58 = vsel %vm377_vm0, %v6759_v3, -inf }
 0xe68   :  { %v6855_v13 = vmax.f32 %v14556_v52, %v6854_v34  ;;  %v6868_v30 = vsel %vm377_vm0, %v6787_v41, -inf  ;;  %v6941_v47 = vmul.f32 1.442695, %v6894_v4  ;;  %v6862_v21 = vmax.f32 %v6860_v9, %v6861_v58 }
 0xe69   :  { %v13799_v2 = vadd.f32 %v6814_v31, %v6813_v17  ;;  %v6869_v7 = vmax.f32 %v6867_v6, %v6868_v30  ;;  %v6874_v19 = vmax.f32 %v6872_v37, %v13708_v62  ;;  %v13804_v63 = vadd.f32 %v6821_v29, %v6820_v39 }
 0xe6a   :  { %v13801_v14 = vmax.f32 %v6855_v13, %v6856_v49  ;;  %v6863_v16 = vsel %vm377_vm0, %v13786_v8, -inf  ;;  %v6870_v43 = vsel %vm377_vm0, %v13788_v5, -inf  ;;  %v7021_v56 = vrot.slane %v13745_v42, 6 }
 0xe6b   :  { %v6864_v60 = vmax.f32 %v6862_v21, %v6863_v16  ;;  %v13810_v45 = vmax.f32 %v6869_v7, %v6870_v43  ;;  %v6875_v11 = vsel %vm377_vm0, %v13799_v2, -inf  ;;  %10287 = vpow2.f32 %v6941_v47 }
 0xe6c   :  { %v6895_v9 = vsub.f32 %v13714_v1, %v13801_v14  ;;  %v6876_v62 = vmax.f32 %v6874_v19, %v6875_v11  ;;  %v6896_v37 = vsub.f32 %v13668_v10, %v13801_v14  ;;  %v14557_v46 = vrot.slane %v13743_v20, 7 }
 0xe6d   :  { %v7025_v15 = vrot.slane %v13760_v33, 7  ;;  %v6897_v22 = vsub.f32 %v6731_v12, %v13801_v14  ;;  %v6900_v59 = vsub.f32 %v13673_v0, %v6864_v60  ;;  %v6877_v1 = vsel %vm377_vm0, %v13804_v63, -inf }
 0xe6e   :  { %v7020_v39 = vsel %vm1192_vm1, %v14557_v46, %v13737_v61  ;;  %v6901_v48 = vsub.f32 %v6759_v3, %v6864_v60  ;;  %v13828_v25 = vmax.f32 %v6876_v62, %v6877_v1  ;;  %v6904_v10 = vsub.f32 %v13679_v18, %v13810_v45  ;;  %v9804_v62 = vpop.f32.mrf.mxu1 }
 0xe6f   :  { %v6943_v28 = vmul.f32 1.442695, %v6895_v9  ;;  %v6945_v54 = vmul.f32 1.442695, %v6896_v37  ;;  %v13832_v55 = vpop.eup %10281  ;;  %v14558_v4 = vrot.slane %v13717_v35, 6  ;;  %v7022_v0 = vsel %vm1195_vm2, %v7021_v56, %v7020_v39 }
 0xe70   :  { %v6899_v29 = vsub.f32 %v13739_v40, %v6864_v60  ;;  %v6905_v17 = vsub.f32 %v6787_v41, %v13810_v45  ;;  %v7026_v3 = vsel %vm1192_vm1, %v7025_v15, %v13750_v32  ;;  %v7027_v18 = vrot.slane %v13765_v51, 6 }
 0xe71   :  { %v7010_v12 = vsel %vm1195_vm2, %v14558_v4, %v13730_v38  ;;  %v6947_v34 = vmul.f32 1.442695, %v6897_v22  ;;  %v6953_v6 = vmul.f32 1.442695, %v6900_v59  ;;  %v6903_v31 = vsub.f32 %v13768_v26, %v13810_v45 }
 0xe72   :  { %10289 = vpow2.f32 %v6945_v54  ;;  %v6955_v52 = vmul.f32 1.442695, %v6901_v48  ;;  %v6898_v38 = vsub.f32 %v13779_v23, %v13801_v14  ;;  %v6908_v40 = vsub.f32 %v13681_v53, %v13828_v25  ;;  %v6528_v54 = vpop.f32.mrf.mxu1 }
 0xe73   :  { %v13848_v13 = vpop.eup %10283  ;;  %10291 = vpow2.f32 %v6943_v28  ;;  %v6961_v41 = vmul.f32 1.442695, %v6904_v10  ;;  %v7011_v49 = vrot.slane %v13832_v55, 5  ;;  %v6951_v30 = vmul.f32 1.442695, %v6899_v29 }
 0xe74   :  { %v10286_v58 = vpop.eup %10285  ;;  %10293 = vpow2.f32 %v6953_v6  ;;  %v6963_v47 = vmul.f32 1.442695, %v6905_v17  ;;  %v6902_v26 = vsub.f32 %v13786_v8, %v6864_v60  ;;  %v6907_v21 = vsub.f32 %v13770_v24, %v13828_v25  ;;  %v13884_v17 = vld [vmem:[#allocation20 + $0x2] ss:$0 sm:$0xff] }
 0xe75   :  { %v6909_v23 = vsub.f32 %v13799_v2, %v13828_v25  ;;  %10295 = vpow2.f32 %v6947_v34  ;;  %v7012_v14 = vsel %vm1198_vm3, %v7011_v49, %v7010_v12  ;;  %v6959_v53 = vmul.f32 1.442695, %v6903_v31 }
 0xe76   :  { %10297 = vpow2.f32 %v6955_v52  ;;  %v7063_v7 = vsel %vm1250_vm4, %v7012_v14, 0.0  ;;  %v7023_v19 = vrot.slane %v13848_v13, 5  ;;  %v6969_v16 = vmul.f32 1.442695, %v6908_v40 }
 0xe77   :  { %10299 = vpow2.f32 %v6961_v41  ;;  %v7064_v43 = vrot.slane %v7063_v7, 4  ;;  %v13862_v8 = vrot.slane %v10286_v58, %v11256_v57  ;;  %v6949_v60 = vmul.f32 1.442695, %v6898_v38  ;;  %v9807_v38 = vpop.f32.mrf.mxu1 }
 0xe78   :  { %10301 = vpow2.f32 %v6963_v47  ;;  %v7024_v24 = vsel %vm1198_vm3, %v7023_v19, %v7022_v0  ;;  %v13865_v2 = vpop.eup %10287  ;;  %v6957_v9 = vmul.f32 1.442695, %v6902_v26  ;;  %v6906_v56 = vsub.f32 %v13788_v5, %v13810_v45 }
 0xe79   :  { %10303 = vpow2.f32 %v6951_v30  ;;  %v7065_v11 = vadd.f32 %v7064_v43, %v7063_v7  ;;  %v7028_v37 = vsel %vm1195_vm2, %v7027_v18, %v7026_v3  ;;  %v6971_v46 = vmul.f32 1.442695, %v6909_v23 }
 0xe7a   :  { %10305 = vpow2.f32 %v6959_v53  ;;  %v7077_v39 = vsel %vm1250_vm4, %v7024_v24, 0.0  ;;  %v6967_v15 = vmul.f32 1.442695, %v6907_v21  ;;  %v7163_v59 = vmul.f32 %v13675_v36, %v13862_v8 }
 0xe7b   :  { %10307 = vpow2.f32 %v6969_v16  ;;  %v7066_v22 = vrot.slane %v7065_v11, 2  ;;  %v7164_v1 = vmul.f32 %v13677_v27, %v13862_v8  ;;  %v7078_v48 = vrot.slane %v7077_v39, 4 }
 0xe7c   :  { %v7029_v10 = vrot.slane %v13865_v2, 5  ;;  %10309 = vpow2.f32 %v6949_v60  ;;  %v6965_v45 = vmul.f32 1.442695, %v6906_v56  ;;  %v6910_v28 = vsub.f32 %v13804_v63, %v13828_v25 }
 0xe7d   :  { %v7067_v5 = vadd.f32 %v7066_v22, %v7065_v11  ;;  %10311 = vpow2.f32 %v6957_v9  ;;  %v7079_v4 = vadd.f32 %v7078_v48, %v7077_v39  ;;  %v7198_v3 = vrot.slane %v7163_v59, %v11256_v57  ;;  %v6538_v11 = vpop.f32.mrf.mxu1 }
 0xe7e   :  { %10313 = vpow2.f32 %v6971_v46  ;;  %v7030_v12 = vsel %vm1198_vm3, %v7029_v10, %v7028_v37  ;;  %v7238_v6 = vrot.slane %v7164_v1, %v11256_v57  ;;  %v6973_v31 = vmul.f32 1.442695, %v6910_v28 }
 0xe7f   :  { %v13879_v0 = vpop.eup %10289  ;;  %v7068_v36 = vrot.slane %v7067_v5, 1  ;;  %v7084_v27 = vsel %vm1250_vm4, %v7030_v12, 0.0  ;;  %10315 = vpow2.f32 %v6965_v45  ;;  %v7080_v18 = vrot.slane %v7079_v4, 2 }
 0xe80   :  { %v13882_v29 = vpop.eup %10291  ;;  %v7085_v34 = vrot.slane %v7084_v27, 4  ;;  %10317 = vpow2.f32 %v6967_v15  ;;  %v7031_v40 = vrot.slane %v13879_v0, 7  ;;  %v13896_v30 = vadd.f32 %v9804_v62, %v13884_v17 }
 0xe81   :  { %v13887_v63 = vpop.eup %10293  ;;  %v7069_v25 = vadd.f32 %v7068_v36, %v7067_v5  ;;  %v7081_v41 = vadd.f32 %v7080_v18, %v7079_v4  ;;  %v13899_v47 = vadd.f32 %v13884_v17, %v6528_v54  ;;  %v7165_v23 = vmul.f32 %v13683_v50, %v13862_v8 }
 0xe82   :  { %v13890_v52 = vpop.eup %10295  ;;  %v7086_v49 = vadd.f32 %v7085_v34, %v7084_v27  ;;  %v7037_v26 = vrot.slane %v13887_v63, 7  ;;  %v7264_v24 = vmul.f32 %v7238_v6, %v13896_v30  ;;  %v7032_v9 = vsel %vm1192_vm1, %v7031_v40, %v13882_v29 }
 0xe83   :  { %v13893_v58 = vpop.eup %10297  ;;  %10319 = vrcp.f32 %v7069_v25  ;;  %v7082_v14 = vrot.slane %v7081_v41, 1  ;;  %v7033_v19 = vrot.slane %v13890_v52, 6  ;;  %v7224_v43 = vmul.f32 %v7198_v3, %v13899_v47 }
 0xe84   :  { %v13902_v21 = vpop.eup %10299  ;;  %v7087_v53 = vrot.slane %v7086_v49, 2  ;;  %10321 = vpow2.f32 %v6973_v31  ;;  %v7039_v50 = vrot.slane %v13893_v58, 6  ;;  %v7166_v39 = vmul.f32 %v13691_v44, %v13862_v8 }
 0xe85   :  { %v13906_v7 = vpop.eup %10301  ;;  %v7043_v16 = vrot.slane %v13902_v21, 7  ;;  %v7083_v56 = vadd.f32 %v7082_v14, %v7081_v41  ;;  %v7286_v59 = vrot.slane %v7165_v23, %v11256_v57  ;;  %v13930_v10 = vadd.f32 %v13884_v17, %v6538_v11 }
 0xe86   :  { %v13912_v60 = vpop.eup %10303  ;;  %v7088_v62 = vadd.f32 %v7087_v53, %v7086_v49  ;;  %v7045_v22 = vrot.slane %v13906_v7, 6  ;;  %v7034_v5 = vsel %vm1195_vm2, %v7033_v19, %v7032_v9  ;;  %v7272_v8 = vadd.f32 %v7264_v24, %v7224_v43 }
 0xe87   :  { %v13917_v37 = vpop.eup %10305  ;;  %v7038_v46 = vsel %vm1192_vm1, %v7037_v26, %v13912_v60  ;;  %10323 = vrcp.f32 %v7083_v56  ;;  %v7334_v27 = vrot.slane %v7166_v39, %v11256_v57  ;;  %v7312_v25 = vmul.f32 %v7286_v59, %v13930_v10 }
 0xe88   :  { %v13923_v15 = vpop.eup %10307  ;;  %v7089_v1 = vrot.slane %v7088_v62, 1  ;;  %v7044_v45 = vsel %vm1192_vm1, %v7043_v16, %v13917_v37  ;;  %v7040_v44 = vsel %vm1195_vm2, %v7039_v50, %v7038_v46  ;;  %v13950_v31 = vadd.f32 %v9807_v38, %v13884_v17 }
 0xe89   :  { %v13927_v48 = vpop.eup %10309  ;;  %v7049_v36 = vrot.slane %v13923_v15, 7  ;;  %v7046_v34 = vsel %vm1195_vm2, %v7045_v22, %v7044_v45  ;;  %v7320_v14 = vadd.f32 %v7312_v25, %v7272_v8 }
 0xe8a   :  { %v13935_v28 = vpop.eup %10311  ;;  %v7090_v54 = vadd.f32 %v7089_v1, %v7088_v62  ;;  %v7035_v4 = vrot.slane %v13927_v48, 5  ;;  %v7360_v11 = vmul.f32 %v7334_v27, %v13950_v31 }
 0xe8b   :  { %v13939_v12 = vpop.eup %10313  ;;  %v7041_v3 = vrot.slane %v13935_v28, 5 }
 0xe8c   :  { %v13944_v18 = vpop.eup %10315  ;;  %10325 = vrcp.f32 %v7090_v54  ;;  %v7036_v6 = vsel %vm1198_vm3, %v7035_v4, %v7034_v5  ;;  %v7051_v23 = vrot.slane %v13939_v12, 6  ;;  %v7368_v59 = vadd.f32 %v7360_v11, %v7320_v14  ;;  %v14559_v5 = vld [vmem:[#allocation48_spill] sm:$0xff] }
 0xe8d   :  { %v7091_v40 = vsel %vm1250_vm4, %v7036_v6, 0.0  ;;  %v7042_v41 = vsel %vm1198_vm3, %v7041_v3, %v7040_v44  ;;  %v7047_v49 = vrot.slane %v13944_v18, 5  ;;  %v13955_v26 = vpop.eup %10317  ;;  %v14560_v44 = vld [vmem:[#allocation47_spill] sm:$0xff] }
 0xe8e   :  { %v7092_v53 = vrot.slane %v7091_v40, 4  ;;  %v7098_v19 = vsel %vm1250_vm4, %v7042_v41, 0.0  ;;  %v7050_v16 = vsel %vm1192_vm1, %v7049_v36, %v13955_v26 }
 0xe8f   :  { %v7099_v43 = vrot.slane %v7098_v19, 4  ;;  %v7048_v38 = vsel %vm1198_vm3, %v7047_v49, %v7046_v34  ;;  %v7052_v22 = vsel %vm1195_vm2, %v7051_v23, %v7050_v16 }
 0xe90   :  { %v10320_v24 = vpop.eup %10319  ;;  %v7093_v9 = vadd.f32 %v7092_v53, %v7091_v40  ;;  %v7105_v50 = vsel %vm1250_vm4, %v7048_v38, 0.0 }
 0xe91   :  { %v13964_v56 = vpop.eup %10321  ;;  %v7130_v62 = vrot.slane %v10320_v24, %v11256_v57  ;;  %v7100_v46 = vadd.f32 %v7099_v43, %v7098_v19  ;;  %v7106_v39 = vrot.slane %v7105_v50, 4 }
 0xe92   :  { %v7094_v1 = vrot.slane %v7093_v9, 2  ;;  %v7053_v34 = vrot.slane %v13964_v56, 5 }
 0xe93   :  { %v7159_v45 = vmul.f32 %v14559_v5, %v7130_v62  ;;  %v7160_v8 = vmul.f32 %v14560_v44, %v7130_v62  ;;  %v7161_v54 = vmul.f32 %v13717_v35, %v7130_v62  ;;  %v7162_v4 = vmul.f32 %v13832_v55, %v7130_v62 }
 0xe94   :  { %v7095_v36 = vadd.f32 %v7094_v1, %v7093_v9  ;;  %v7101_v27 = vrot.slane %v7100_v46, 2  ;;  %v7107_v3 = vadd.f32 %v7106_v39, %v7105_v50  ;;  %v10324_v25 = vpop.eup %10323  ;;  %v7054_v43 = vsel %vm1198_vm3, %v7053_v34, %v7052_v22 }
 0xe95   :  { %v7194_v6 = vrot.slane %v7159_v45, %v11256_v57  ;;  %v7234_v40 = vrot.slane %v7160_v8, %v11256_v57  ;;  %v7282_v41 = vrot.slane %v7161_v54, %v11256_v57  ;;  %v7330_v49 = vrot.slane %v7162_v4, %v11256_v57 }
 0xe96   :  { %v7138_v23 = vrot.slane %v10324_v25, %v11256_v57  ;;  %v7096_v14 = vrot.slane %v7095_v36, 1  ;;  %v7102_v35 = vadd.f32 %v7101_v27, %v7100_v46  ;;  %v7108_v53 = vrot.slane %v7107_v3, 2 }
 0xe97   :  { %v7223_v55 = vmul.f32 %v7194_v6, %v13899_v47  ;;  %v7263_v19 = vmul.f32 %v7234_v40, %v13896_v30  ;;  %v7311_v16 = vmul.f32 %v7282_v41, %v13930_v10  ;;  %v7359_v46 = vmul.f32 %v7330_v49, %v13950_v31 }
 0xe98   :  { %v7167_v38 = vmul.f32 %v13737_v61, %v7138_v23  ;;  %v7168_v24 = vmul.f32 %v13743_v20, %v7138_v23  ;;  %v7169_v11 = vmul.f32 %v13745_v42, %v7138_v23  ;;  %v7170_v9 = vmul.f32 %v13848_v13, %v7138_v23 }
 0xe99   :  { %v10326_v50 = vpop.eup %10325  ;;  %v7271_v62 = vadd.f32 %v7263_v19, %v7223_v55  ;;  %v7097_v39 = vadd.f32 %v7096_v14, %v7095_v36  ;;  %v7103_v1 = vrot.slane %v7102_v35, 1  ;;  %v7109_v44 = vadd.f32 %v7108_v53, %v7107_v3 }
 0xe9a   :  { %v7202_v5 = vrot.slane %v7167_v38, %v11256_v57  ;;  %v7242_v45 = vrot.slane %v7168_v24, %v11256_v57  ;;  %v7290_v22 = vrot.slane %v7169_v11, %v11256_v57  ;;  %v7142_v20 = vrot.slane %v10326_v50, %v11256_v57 }
 0xe9b   :  { %v7319_v61 = vadd.f32 %v7311_v16, %v7271_v62  ;;  %10327 = vrcp.f32 %v7097_v39  ;;  %v7104_v42 = vadd.f32 %v7103_v1, %v7102_v35  ;;  %v7338_v4 = vrot.slane %v7170_v9, %v11256_v57 }
 0xe9c   :  { %v7225_v13 = vmul.f32 %v7202_v5, %v13899_v47  ;;  %v7265_v8 = vmul.f32 %v7242_v45, %v13896_v30  ;;  %v7313_v54 = vmul.f32 %v7290_v22, %v13930_v10  ;;  %v7171_v27 = vmul.f32 %v13750_v32, %v7142_v20  ;;  %v9810_v32 = vpop.f32.mrf.mxu1 }
 0xe9d   :  { %v7367_v36 = vadd.f32 %v7359_v46, %v7319_v61  ;;  %v7172_v34 = vmul.f32 %v13760_v33, %v7142_v20  ;;  %v7173_v3 = vmul.f32 %v13765_v51, %v7142_v20  ;;  %v7174_v6 = vmul.f32 %v13865_v2, %v7142_v20 }
 0xe9e   :  { %v7273_v25 = vadd.f32 %v7265_v8, %v7225_v13  ;;  %10329 = vrcp.f32 %v7104_v42  ;;  %v7110_v40 = vrot.slane %v7109_v44, 1  ;;  %v7206_v41 = vrot.slane %v7171_v27, %v11256_v57  ;;  %v6548_v11 = vpop.f32.mrf.mxu1 }
 0xe9f   :  { %9822 = vmatprep.mubr.msk.f32.mxu0 %vm377_vm0, %v7367_v36  ;;  %v7246_v49 = vrot.slane %v7172_v34, %v11256_v57  ;;  %v7294_v23 = vrot.slane %v7173_v3, %v11256_v57  ;;  %v7112_v14 = vsel %vm1250_vm4, %v7054_v43, 0.0  ;;  %v7361_v51 = vmul.f32 %v7338_v4, %v13950_v31 }
 0xea0   :  { %9823 = vmatmul.mubr.msk.f32.vlgmr.msra.gmra.mxu0 %vm377_vm0, %v7368_v59  ;;  %v7321_v33 = vadd.f32 %v7313_v54, %v7273_v25  ;;  %v7111_v35 = vadd.f32 %v7110_v40, %v7109_v44  ;;  %v7113_v2 = vrot.slane %v7112_v14, 4  ;;  %v7226_v53 = vmul.f32 %v7206_v41, %v13899_v47  ;;  %v9813_v39 = vpop.f32.mrf.mxu1 }
 0xea1   :  { %v7266_v55 = vmul.f32 %v7246_v49, %v13896_v30  ;;  %v7342_v19 = vrot.slane %v7174_v6, %v11256_v57  ;;  %v7314_v43 = vmul.f32 %v7294_v23, %v13930_v10  ;;  %v6549_v20 = vadd.f32 %v13884_v17, %v6548_v11 }
 0xea2   :  { %v7369_v16 = vadd.f32 %v7361_v51, %v7321_v33  ;;  %10331 = vrcp.f32 %v7111_v35  ;;  %v7114_v38 = vadd.f32 %v7113_v2, %v7112_v14  ;;  %v6558_v42 = vpop.f32.mrf.mxu1  ;;  %v6564_v6 = vadd.f32 %v9813_v39, %v13884_v17 }
 0xea3   :  { %v7274_v24 = vadd.f32 %v7266_v55, %v7226_v53  ;;  %v7362_v50 = vmul.f32 %v7342_v19, %v13950_v31  ;;  %v14019_v31 = vadd.f32 %v9810_v32, %v13884_v17  ;;  %v6559_v34 = vadd.f32 %v13884_v17, %v6558_v42 }
 0xea4   :  { %9825 = vmatprep.mubr.msk.f32.mxu0 %vm377_vm0, %v7369_v16  ;;  %v7115_v59 = vrot.slane %v7114_v38, 2 }
 0xea5   :  { %v7322_v9 = vadd.f32 %v7314_v43, %v7274_v24 }
 0xea6   :  { %v7116_v62 = vadd.f32 %v7115_v59, %v7114_v38 }
 0xea7   :  { %v7370_v46 = vadd.f32 %v7362_v50, %v7322_v9 }
 0xea8   :  { %v10328_v47 = vpop.eup %10327  ;;  %v7117_v30 = vrot.slane %v7116_v62, 1 }
 0xea9   :  { %9826 = vmatmul.mubr.msk.f32.gmra.mxu0 %vm377_vm0, %v7370_v46  ;;  %v7146_v1 = vrot.slane %v10328_v47, %v11256_v57 }
 0xeaa   :  { %v7118_v5 = vadd.f32 %v7117_v30, %v7116_v62 }
 0xeab   :  { %v10330_v45 = vpop.eup %10329  ;;  %v7175_v10 = vmul.f32 %v13882_v29, %v7146_v1  ;;  %v7176_v22 = vmul.f32 %v13879_v0, %v7146_v1  ;;  %v7177_v44 = vmul.f32 %v13890_v52, %v7146_v1  ;;  %v7178_v61 = vmul.f32 %v13927_v48, %v7146_v1 }
 0xeac   :  { %v7150_v13 = vrot.slane %v10330_v45, %v11256_v57  ;;  %10333 = vrcp.f32 %v7118_v5 }
 0xead   :  { %v7210_v8 = vrot.slane %v7175_v10, %v11256_v57  ;;  %v7250_v54 = vrot.slane %v7176_v22, %v11256_v57  ;;  %v7298_v29 = vrot.slane %v7177_v44, %v11256_v57  ;;  %v7346_v0 = vrot.slane %v7178_v61, %v11256_v57 }
 0xeae   :  { %v7179_v52 = vmul.f32 %v13912_v60, %v7150_v13  ;;  %v7180_v48 = vmul.f32 %v13887_v63, %v7150_v13  ;;  %v7181_v4 = vmul.f32 %v13893_v58, %v7150_v13  ;;  %v7182_v36 = vmul.f32 %v13935_v28, %v7150_v13 }
 0xeaf   :  { %v10332_v27 = vpop.eup %10331  ;;  %v7227_v3 = vmul.f32 %v7210_v8, %v6549_v20  ;;  %v7267_v25 = vmul.f32 %v7250_v54, %v14019_v31  ;;  %v7315_v63 = vmul.f32 %v7298_v29, %v6559_v34  ;;  %v7363_v23 = vmul.f32 %v7346_v0, %v6564_v6  ;;  %v7679_v29 = vld [vmem:[#allocation19 + $0xb8] sm:$0xff]  ;;  %v7678_v0 = vld [vmem:[#allocation19 + $0xb0] sm:$0xff] }
 0xeb0   :  { %v7214_v40 = vrot.slane %v7179_v52, %v11256_v57  ;;  %v7254_v41 = vrot.slane %v7180_v48, %v11256_v57  ;;  %v7302_v60 = vrot.slane %v7181_v4, %v11256_v57  ;;  %v7154_v58 = vrot.slane %v10332_v27, %v11256_v57  ;;  %9854 = vmatprep.subr.mxu0 %v7679_v29  ;;  %v7677_v52 = vld [vmem:[#allocation19 + $0xa8] sm:$0xff] }
 0xeb1   :  { %v7275_v49 = vadd.f32 %v7267_v25, %v7227_v3  ;;  %v7350_v32 = vrot.slane %v7182_v36, %v11256_v57  ;;  %9855 = vmatpush3.msra.mxu0 %v7679_v29  ;;  %v14567_v29 = vld [vmem:[#allocation35_spill] sm:$0xff] }
 0xeb2   :  { %v7228_v28 = vmul.f32 %v7214_v40, %v6549_v20  ;;  %v7268_v14 = vmul.f32 %v7254_v41, %v14019_v31  ;;  %v7183_v51 = vmul.f32 %v13917_v37, %v7154_v58  ;;  %v7184_v17 = vmul.f32 %v13902_v21, %v7154_v58  ;;  %9856 = vmatprep.subr.mxu0 %v7678_v0 }
 0xeb3   :  { %v7323_v33 = vadd.f32 %v7315_v63, %v7275_v49  ;;  %v7185_v35 = vmul.f32 %v13906_v7, %v7154_v58  ;;  %v7316_v53 = vmul.f32 %v7302_v60, %v6559_v34  ;;  %v7186_v55 = vmul.f32 %v13944_v18, %v7154_v58  ;;  %9857 = vmatpush3.msra.mxu0 %v7678_v0  ;;  %v14568_v0 = vld [vmem:[#allocation33_spill] sm:$0xff] }
 0xeb4   :  { %v7276_v2 = vadd.f32 %v7268_v14, %v7228_v28  ;;  %v7218_v16 = vrot.slane %v7183_v51, %v11256_v57  ;;  %v7258_v38 = vrot.slane %v7184_v17, %v11256_v57  ;;  %v7364_v11 = vmul.f32 %v7350_v32, %v6564_v6  ;;  %9858 = vmatprep.subr.mxu0 %v7677_v52 }
 0xeb5   :  { %v7371_v19 = vadd.f32 %v7363_v23, %v7323_v33  ;;  %v7306_v24 = vrot.slane %v7185_v35, %v11256_v57  ;;  %v7354_v7 = vrot.slane %v7186_v55, %v11256_v57  ;;  %9859 = vmatpush3.msra.mxu0 %v7677_v52  ;;  %v8898_v55 = vld [vmem:[#allocation20 + $0x4] ss:$0 sm:$0xff]  ;;  %v8907_v52 = vld [vmem:[#allocation20 + $0x5] ss:$0 sm:$0xff] }
 0xeb6   :  { %v7324_v43 = vadd.f32 %v7316_v53, %v7276_v2  ;;  %v7229_v37 = vmul.f32 %v7218_v16, %v6549_v20  ;;  %v7269_v21 = vmul.f32 %v7258_v38, %v14019_v31  ;;  %v7676_v2 = vld [vmem:[#allocation19 + $0xa0] sm:$0xff] }
 0xeb7   :  { %9828 = vmatprep.mubr.msk.f32.mxu0 %vm377_vm0, %v7371_v19  ;;  %v7317_v18 = vmul.f32 %v7306_v24, %v6559_v34  ;;  %v7365_v47 = vmul.f32 %v7354_v7, %v6564_v6  ;;  %9860 = vmatprep.subr.mxu0 %v7676_v2  ;;  %v7963_v53 = vld [vmem:[%s14352_s21 + $0x18] sm:$0xff]  ;;  %v7961_v7 = vld [vmem:[%s14352_s21 + $0x8] sm:$0xff] }
 0xeb8   :  { %v7372_v59 = vadd.f32 %v7364_v11, %v7324_v43  ;;  %v7277_v50 = vadd.f32 %v7269_v21, %v7229_v37  ;;  %9861 = vmatpush3.msra.mxu0 %v7676_v2  ;;  %v7962_v37 = vld [vmem:[%s14352_s21 + $0x10] sm:$0xff] }
 0xeb9   :  { %v10334_v9 = vpop.eup %10333  ;;  %9894 = vmatprep.subr.mxu0 %v7963_v53 }
 0xeba   :  { %9829 = vmatmul.mubr.msk.f32.gmra.mxu0 %vm377_vm0, %v7372_v59  ;;  %v7158_v62 = vrot.slane %v10334_v9, %v11256_v57  ;;  %v7325_v46 = vadd.f32 %v7317_v18, %v7277_v50  ;;  %v7960_v50 = vld [vmem:[%s14352_s21] sm:$0xff] }
 0xebc   :  { %v7187_v39 = vmul.f32 %v13955_v26, %v7158_v62  ;;  %v7188_v30 = vmul.f32 %v13923_v15, %v7158_v62  ;;  %v7189_v1 = vmul.f32 %v13939_v12, %v7158_v62  ;;  %v7190_v5 = vmul.f32 %v13964_v56, %v7158_v62  ;;  %v7526_v56 = vld [vmem:[#allocation19 + $0x80] sm:$0xff] }
 0xebd   :  { %v7373_v45 = vadd.f32 %v7365_v47, %v7325_v46  ;;  %9840 = vmatprep.subr.mxu1 %v7526_v56 }
 0xebe   :  { %v7222_v10 = vrot.slane %v7187_v39, %v11256_v57  ;;  %v7262_v22 = vrot.slane %v7188_v30, %v11256_v57  ;;  %v7310_v44 = vrot.slane %v7189_v1, %v11256_v57  ;;  %v7358_v26 = vrot.slane %v7190_v5, %v11256_v57  ;;  %9841 = vmatpush3.msra.mxu1 %v7526_v56  ;;  %v8889_v57 = vld [vmem:[#allocation20 + $0x3] ss:$0 sm:$0xff] }
 0xebf   :  { %9831 = vmatprep.mubr.msk.f32.mxu0 %vm377_vm0, %v7373_v45  ;;  %v14566_v56 = vld [vmem:[#allocation40_spill] sm:$0xff] }
 0xec0   :  { %v7230_v61 = vmul.f32 %v7222_v10, %v6549_v20  ;;  %v7270_v42 = vmul.f32 %v7262_v22, %v14019_v31  ;;  %v7318_v15 = vmul.f32 %v7310_v44, %v6559_v34  ;;  %v7366_v12 = vmul.f32 %v7358_v26, %v6564_v6 }
 0xec2   :  { %v7278_v13 = vadd.f32 %v7270_v42, %v7230_v61 }
 0xec4   :  { %v7326_v8 = vadd.f32 %v7318_v15, %v7278_v13  ;;  %v14561_v13 = vld [vmem:[#allocation49_spill] sm:$0xff]  ;;  %v14562_v15 = vld [vmem:[#allocation50_spill] sm:$0xff] }
 0xec6   :  { %v7374_v54 = vadd.f32 %v7366_v12, %v7326_v8  ;;  %v14563_v8 = vld [vmem:[#allocation37_spill] sm:$0xff]  ;;  %v14564_v12 = vld [vmem:[#allocation38_spill] sm:$0xff] }
 0xec8   :  { %9832 = vmatmul.mubr.msk.f32.gmra.mxu0 %vm377_vm0, %v7374_v54  ;;  %v14565_v54 = vld [vmem:[#allocation39_spill] sm:$0xff] }
 0xf60   :  { %v9824_v31 = vpop.f32.mrf.mxu0 }
 0xf61   :  { %v7484_v20 = vadd.f32 %v9824_v31, %v8889_v57 }
 0xf62   :  { %v7478_v48 = vpop.f32.mrf.mxu0 }
 0xf63   :  { %v7479_v4 = vadd.f32 %v8889_v57, %v7478_v48  ;;  %v7518_v27 = vmax.f32 %v7484_v20, 0.0 }
 0xf65   :  { %v7517_v36 = vmax.f32 %v7479_v4, 0.0 }
 0xf67   :  { %9842 = vmatprep.mubr.msk.f32.mxu1 %vm377_vm0, %v7517_v36 }
 0xf68   :  { %9843 = vmatmul.mubr.msk.f32.vlgmr.msra.gmra.mxu1 %vm377_vm0, %v7518_v27 }
 0xf69   :  { %v9827_v34 = vpop.f32.mrf.mxu0 }
 0xf6a   :  { %v7494_v3 = vadd.f32 %v9827_v34, %v8889_v57 }
 0xf6b   :  { %v7488_v25 = vpop.f32.mrf.mxu0 }
 0xf6c   :  { %v7489_v6 = vadd.f32 %v8889_v57, %v7488_v25  ;;  %v7520_v41 = vmax.f32 %v7494_v3, 0.0 }
 0xf6e   :  { %v7519_v40 = vmax.f32 %v7489_v6, 0.0 }
 0xf70   :  { %9845 = vmatprep.mubr.msk.f32.mxu1 %vm377_vm0, %v7519_v40 }
 0xf71   :  { %9846 = vmatmul.mubr.msk.f32.gmra.mxu1 %vm377_vm0, %v7520_v41 }
 0xf7a   :  { %v9830_v60 = vpop.f32.mrf.mxu0 }
 0xf7b   :  { %v7504_v49 = vadd.f32 %v9830_v60, %v8889_v57 }
 0xf7c   :  { %v7498_v63 = vpop.f32.mrf.mxu0 }
 0xf7d   :  { %v7499_v58 = vadd.f32 %v8889_v57, %v7498_v63  ;;  %v7522_v28 = vmax.f32 %v7504_v49, 0.0 }
 0xf7f   :  { %v7521_v23 = vmax.f32 %v7499_v58, 0.0 }
 0xf81   :  { %9848 = vmatprep.mubr.msk.f32.mxu1 %vm377_vm0, %v7521_v23 }
 0xf82   :  { %9849 = vmatmul.mubr.msk.f32.gmra.mxu1 %vm377_vm0, %v7522_v28  ;;  %v6037_v28 = vpop.xlane.xlu0 %6036 }
 0xf88   :  { %v9833_v14 = vpop.f32.mrf.mxu0 }
 0xf89   :  { %v7514_v32 = vadd.f32 %v9833_v14, %v8889_v57 }
 0xf8a   :  { %v7508_v33 = vpop.f32.mrf.mxu0 }
 0xf8b   :  { %v7509_v51 = vadd.f32 %v8889_v57, %v7508_v33  ;;  %v7524_v35 = vmax.f32 %v7514_v32, 0.0 }
 0xf8d   :  { %v7523_v17 = vmax.f32 %v7509_v51, 0.0  ;;  %v6034_v51 = vpop.xlane.xlu1 %6033 }
 0xf8f   :  { %9851 = vmatprep.mubr.msk.f32.mxu1 %vm377_vm0, %v7523_v17 }
 0xf90   :  { %9852 = vmatmul.mubr.msk.f32.gmra.mxu1 %vm377_vm0, %v7524_v35 }
0x1028   :  { %v9844_v19 = vpop.f32.mrf.mxu1 }
0x1029   :  { %v7634_v16 = vadd.f32 %v9844_v19, %v8898_v55  ;;  %v6057_v19 = vmul.f32 0.03125, %v6037_v28 }
0x102a   :  { %v7628_v38 = vpop.f32.mrf.mxu1 }
0x102b   :  { %v7629_v24 = vadd.f32 %v8898_v55, %v7628_v38  ;;  %v7668_v11 = vmax.f32 %v7634_v16, 0.0  ;;  %v6056_v16 = vmul.f32 0.03125, %v6034_v51  ;;  %v8921_v51 = vld [vmem:[%s14352_s21 + $0x30] sm:$0xff] }
0x102d   :  { %v7667_v43 = vmax.f32 %v7629_v24, 0.0 }
0x102f   :  { %9862 = vmatprep.mubr.msk.f32.mxu0 %vm377_vm0, %v7667_v43 }
0x1030   :  { %9863 = vmatmul.mubr.msk.f32.vlgmr.msra.gmra.mxu0 %vm377_vm0, %v7668_v11  ;;  %v14569_v11 = vld [vmem:[#allocation34_spill] sm:$0xff] }
0x1031   :  { %v9847_v21 = vpop.f32.mrf.mxu1  ;;  %9895 = vmatpush3.msra.mxu0 %v7963_v53  ;;  %v6043_v53 = vpop.xlane.xlu0 %6042 }
0x1032   :  { %9896 = vmatprep.subr.mxu0 %v7962_v37  ;;  %v7644_v59 = vadd.f32 %v9847_v21, %v8898_v55  ;;  %v6059_v38 = vmul.f32 0.03125, %v6043_v53 }
0x1033   :  { %v7638_v9 = vpop.f32.mrf.mxu1  ;;  %9897 = vmatpush3.msra.mxu0 %v7962_v37  ;;  %v14138_v37 = vsub.f32 %v14569_v11, %v6057_v19 }
0x1034   :  { %v7639_v18 = vadd.f32 %v8898_v55, %v7638_v9  ;;  %9898 = vmatprep.subr.mxu0 %v7961_v7  ;;  %v7670_v46 = vmax.f32 %v7644_v59, 0.0  ;;  %v14570_v9 = vld [vmem:[#allocation36_spill] sm:$0xff] }
0x1035   :  { %9899 = vmatpush3.msra.mxu0 %v7961_v7  ;;  %v6049_v24 = vpop.xlane.xlu0 %6048 }
0x1036   :  { %v7669_v62 = vmax.f32 %v7639_v18, 0.0  ;;  %9900 = vmatprep.subr.mxu0 %v7960_v50 }
0x1037   :  { %9901 = vmatpush3.msra.mxu0 %v7960_v50  ;;  %v14141_v50 = vsub.f32 %v14570_v9, %v6056_v16 }
0x1038   :  { %9865 = vmatprep.mubr.msk.f32.mxu0 %vm377_vm0, %v7669_v62 }
0x1039   :  { %9866 = vmatmul.mubr.msk.f32.gmra.mxu0 %vm377_vm0, %v7670_v46 }
0x1042   :  { %v9850_v47 = vpop.f32.mrf.mxu1 }
0x1043   :  { %v7654_v39 = vadd.f32 %v9850_v47, %v8898_v55  ;;  %v14571_v47 = vld [vmem:[#allocation42_spill] sm:$0xff] }
0x1044   :  { %v7648_v30 = vpop.f32.mrf.mxu1 }
0x1045   :  { %v7649_v1 = vadd.f32 %v8898_v55, %v7648_v30  ;;  %v7672_v45 = vmax.f32 %v7654_v39, 0.0  ;;  %v14147_v39 = vsub.f32 %v14571_v47, %v6059_v38  ;;  %v6061_v30 = vmul.f32 0.03125, %v6049_v24 }
0x1047   :  { %v7671_v5 = vmax.f32 %v7649_v1, 0.0 }
0x1049   :  { %9868 = vmatprep.mubr.msk.f32.mxu0 %vm377_vm0, %v7671_v5 }
0x104a   :  { %9869 = vmatmul.mubr.msk.f32.gmra.mxu0 %vm377_vm0, %v7672_v45  ;;  %v6073_v45 = vmul.f32 %v14138_v37, %v14138_v37 }
0x1050   :  { %v9853_v10 = vpop.f32.mrf.mxu1 }
0x1051   :  { %v7664_v22 = vadd.f32 %v9853_v10, %v8898_v55  ;;  %v6055_v10 = vpop.xlane.xlu0 %6054 }
0x1052   :  { %v7658_v44 = vpop.f32.mrf.mxu1 }
0x1053   :  { %v7659_v61 = vadd.f32 %v8898_v55, %v7658_v44  ;;  %v7674_v26 = vmax.f32 %v7664_v22, 0.0  ;;  %v6040_v55 = vpop.xlane.xlu1 %6039  ;;  %v14572_v22 = vld [vmem:[#allocation43_spill] sm:$0xff] }
0x1054   :  { %v6058_v18 = vmul.f32 0.03125, %v6040_v55 }
0x1055   :  { %v7673_v42 = vmax.f32 %v7659_v61, 0.0 }
0x1056   :  { %v14157_v44 = vsub.f32 %v14572_v22, %v6058_v18 }
0x1057   :  { %9871 = vmatprep.mubr.msk.f32.mxu0 %vm377_vm0, %v7673_v42  ;;  %v6046_v7 = vpop.xlane.xlu1 %6045 }
0x1058   :  { %9872 = vmatmul.mubr.msk.f32.gmra.mxu0 %vm377_vm0, %v7674_v26  ;;  %v6060_v61 = vmul.f32 0.03125, %v6046_v7  ;;  %v6072_v26 = vmul.f32 %v14141_v50, %v14141_v50 }
0x1059   :  { %9902 = vmatprep.mubr.msk.f32.mxu0 %vm377_vm0, %v14561_v13 }
0x105c   :  { %9903 = vmatmul.mubr.msk.f32.vlgmr.msra.gmra.mxu0 %vm377_vm0, %v14562_v15 }
0x105d   :  { %9905 = vmatprep.mubr.msk.f32.mxu0 %vm377_vm0, %v14563_v8 }
0x1060   :  { %9906 = vmatmul.mubr.msk.f32.gmra.mxu0 %vm377_vm0, %v14564_v12 }
0x1061   :  { %9908 = vmatprep.mubr.msk.f32.mxu0 %vm377_vm0, %v14565_v54 }
0x1064   :  { %9909 = vmatmul.mubr.msk.f32.gmra.mxu0 %vm377_vm0, %v14566_v56 }
0x1065   :  { %9911 = vmatprep.mubr.msk.f32.mxu0 %vm377_vm0, %v14567_v29 }
0x1068   :  { %9912 = vmatmul.mubr.msk.f32.gmra.mxu0 %vm377_vm0, %v14568_v0 }
0x10f0   :  { %v9864_v57 = vpop.f32.mrf.mxu0 }
0x10f1   :  { %v7784_v31 = vadd.f32 %v9864_v57, %v8907_v52  ;;  %v6080_v57 = vsel %vm377_vm0, %v6072_v26, 0.0 }
0x10f2   :  { %v7778_v20 = vpop.f32.mrf.mxu0 }
0x10f3   :  { %v7779_v48 = vadd.f32 %v8907_v52, %v7778_v20  ;;  %v14108_v4 = vadd.f32 %v7784_v31, %v14562_v15  ;;  %v14573_v15 = vld [vmem:[#allocation41_spill] sm:$0xff]  ;;  %v6074_v31 = vmul.f32 %v14157_v44, %v14157_v44 }
0x10f4   :  { %v14575_v20 = vld [vmem:[#allocation45_spill] sm:$0xff] }
0x10f5   :  { %v7828_v36 = vsel %vm377_vm0, %v14108_v4, 0.0  ;;  %v14113_v27 = vadd.f32 %v7779_v48, %v14561_v13  ;;  %v6052_v13 = vpop.xlane.xlu1 %6051 }
0x10f6   :  { %7829 = vadd.xlane.f32.xlu0 %v7828_v36 }
0x10f7   :  { %v7825_v34 = vsel %vm377_vm0, %v14113_v27, 0.0 }
0x10f8   :  { %7826 = vadd.xlane.f32.xlu1 %v7825_v34 }
0x10f9   :  { %v9867_v3 = vpop.f32.mrf.mxu0 }
0x10fa   :  { %v7794_v25 = vadd.f32 %v9867_v3, %v8907_v52  ;;  %v14576_v3 = vld [vmem:[#allocation46_spill] sm:$0xff] }
0x10fb   :  { %v7788_v6 = vpop.f32.mrf.mxu0 }
0x10fc   :  { %v7789_v40 = vadd.f32 %v8907_v52, %v7788_v6  ;;  %v14118_v41 = vadd.f32 %v7794_v25, %v14564_v12  ;;  %v6063_v12 = vmul.f32 0.03125, %v6055_v10  ;;  %v6086_v6 = vsel %vm377_vm0, %v6074_v31, 0.0 }
0x10fe   :  { %v7834_v60 = vsel %vm377_vm0, %v14118_v41, 0.0  ;;  %v14123_v49 = vadd.f32 %v7789_v40, %v14563_v8  ;;  %v14164_v8 = vsub.f32 %v14573_v15, %v6061_v30  ;;  %v14176_v48 = vsub.f32 %v14575_v20, %v6063_v12 }
0x10ff   :  { %7835 = vadd.xlane.f32.xlu0 %v7834_v60 }
0x1100   :  { %v7831_v63 = vsel %vm377_vm0, %v14123_v49, 0.0  ;;  %v6077_v34 = vmul.f32 %v14164_v8, %v14164_v8 }
0x1101   :  { %7832 = vadd.xlane.f32.xlu1 %v7831_v63  ;;  %v6079_v63 = vmul.f32 %v14176_v48, %v14176_v48 }
0x1102   :  { %v6095_v60 = vsel %vm377_vm0, %v6077_v34, 0.0 }
0x1103   :  { %v6101_v28 = vsel %vm377_vm0, %v6079_v63, 0.0 }
0x110a   :  { %v9870_v58 = vpop.f32.mrf.mxu0 }
0x110b   :  { %v7804_v23 = vadd.f32 %v9870_v58, %v8907_v52 }
0x110c   :  { %v7798_v14 = vpop.f32.mrf.mxu0 }
0x110d   :  { %v7799_v32 = vadd.f32 %v8907_v52, %v7798_v14  ;;  %v14128_v33 = vadd.f32 %v7804_v23, %v14566_v56  ;;  %v6075_v56 = vmul.f32 %v14147_v39, %v14147_v39 }
0x110f   :  { %v7840_v17 = vsel %vm377_vm0, %v14128_v33, 0.0  ;;  %v14133_v35 = vadd.f32 %v7799_v32, %v14565_v54  ;;  %v6083_v54 = vsel %vm377_vm0, %v6073_v45, 0.0  ;;  %v6089_v36 = vsel %vm377_vm0, %v6075_v56, 0.0  ;;  %v8922_v32 = vld [vmem:[%s14352_s21 + $0x38] sm:$0xff] }
0x1110   :  { %7841 = vadd.xlane.f32.xlu0 %v7840_v17  ;;  %9874 = vmatprep.subr.mxu1 %v8922_v32  ;;  %v8920_v17 = vld [vmem:[%s14352_s21 + $0x28] sm:$0xff] }
0x1111   :  { %v7837_v2 = vsel %vm377_vm0, %v14133_v35, 0.0  ;;  %9875 = vmatpush3.msra.mxu1 %v8922_v32 }
0x1112   :  { %7838 = vadd.xlane.f32.xlu1 %v7837_v2  ;;  %9876 = vmatprep.subr.mxu1 %v8921_v51  ;;  %v8919_v2 = vld [vmem:[%s14352_s21 + $0x20] sm:$0xff] }
0x1113   :  { %9877 = vmatpush3.msra.mxu1 %v8921_v51 }
0x1114   :  { %9878 = vmatprep.subr.mxu1 %v8920_v17 }
0x1115   :  { %9879 = vmatpush3.msra.mxu1 %v8920_v17 }
0x1116   :  { %9880 = vmatprep.subr.mxu1 %v8919_v2 }
0x1117   :  { %9881 = vmatpush3.msra.mxu1 %v8919_v2 }
0x1118   :  { %v9873_v43 = vpop.f32.mrf.mxu0 }
0x1119   :  { %v7814_v21 = vadd.f32 %v9873_v43, %v8907_v52 }
0x111a   :  { %v7808_v59 = vpop.f32.mrf.mxu0 }
0x111b   :  { %v7809_v62 = vadd.f32 %v8907_v52, %v7808_v59  ;;  %v14144_v46 = vadd.f32 %v7814_v21, %v14568_v0  ;;  %v6062_v52 = vmul.f32 0.03125, %v6052_v13 }
0x111d   :  { %v7846_v1 = vsel %vm377_vm0, %v14144_v46, 0.0  ;;  %v14152_v5 = vadd.f32 %v7809_v62, %v14567_v29  ;;  %v14574_v29 = vld [vmem:[#allocation44_spill] sm:$0xff]  ;;  %v14182_v25 = vsub.f32 %v14576_v3, %v6062_v52 }
0x111e   :  { %7847 = vadd.xlane.f32.xlu0 %v7846_v1  ;;  %v14170_v0 = vsub.f32 %v14574_v29, %v6060_v61 }
0x111f   :  { %v7843_v42 = vsel %vm377_vm0, %v14152_v5, 0.0  ;;  %v6078_v23 = vmul.f32 %v14182_v25, %v14182_v25 }
0x1120   :  { %7844 = vadd.xlane.f32.xlu1 %v7843_v42  ;;  %v6076_v40 = vmul.f32 %v14170_v0, %v14170_v0 }
0x1121   :  { %v6098_v14 = vsel %vm377_vm0, %v6078_v23, 0.0 }
0x1122   :  { %6084 = vadd.xlane.f32.xlu0 %v6083_v54  ;;  %v6092_v58 = vsel %vm377_vm0, %v6076_v40, 0.0 }
0x1124   :  { %6081 = vadd.xlane.f32.xlu1 %v6080_v57 }
0x1126   :  { %6090 = vadd.xlane.f32.xlu0 %v6089_v36 }
0x1128   :  { %6087 = vadd.xlane.f32.xlu1 %v6086_v6 }
0x112a   :  { %6096 = vadd.xlane.f32.xlu0 %v6095_v60 }
0x112c   :  { %6093 = vadd.xlane.f32.xlu1 %v6092_v58 }
0x112e   :  { %6102 = vadd.xlane.f32.xlu0 %v6101_v28 }
0x1130   :  { %6099 = vadd.xlane.f32.xlu1 %v6098_v14 }
0x117f   :  { %v7830_v53 = vpop.xlane.xlu0 %7829 }
0x1180   :  { %v7850_v55 = vmul.f32 0.03125, %v7830_v53 }
0x1181   :  { %v7827_v19 = vpop.xlane.xlu1 %7826 }
0x1182   :  { %v14208_v16 = vsub.f32 %v14108_v4, %v7850_v55  ;;  %v7849_v38 = vmul.f32 0.03125, %v7827_v19 }
0x1184   :  { %v14211_v24 = vsub.f32 %v14113_v27, %v7849_v38  ;;  %v7866_v43 = vmul.f32 %v14208_v16, %v14208_v16 }
0x1186   :  { %v7876_v11 = vsel %vm377_vm0, %v7866_v43, 0.0  ;;  %v7865_v21 = vmul.f32 %v14211_v24, %v14211_v24 }
0x1187   :  { %7877 = vadd.xlane.f32.xlu0 %v7876_v11 }
0x1188   :  { %v7836_v7 = vpop.xlane.xlu0 %7835  ;;  %v7873_v59 = vsel %vm377_vm0, %v7865_v21, 0.0 }
0x1189   :  { %v7852_v9 = vmul.f32 0.03125, %v7836_v7  ;;  %7874 = vadd.xlane.f32.xlu1 %v7873_v59 }
0x118a   :  { %v7833_v4 = vpop.xlane.xlu1 %7832 }
0x118b   :  { %v14220_v18 = vsub.f32 %v14118_v41, %v7852_v9  ;;  %v7851_v27 = vmul.f32 0.03125, %v7833_v4  ;;  %v8942_v9 = vld [vmem:[%s14352_s21 + $0x58] sm:$0xff] }
0x118c   :  { %v8860_v4 = vld [vmem:[#allocation17] ss:$0 sm:$0xff]  ;;  %9914 = vmatprep.subr.mxu1 %v8942_v9 }
0x118d   :  { %v14223_v62 = vsub.f32 %v14123_v49, %v7851_v27  ;;  %v7868_v47 = vmul.f32 %v14220_v18, %v14220_v18 }
0x118f   :  { %v7882_v30 = vsel %vm377_vm0, %v7868_v47, 0.0  ;;  %v7867_v1 = vmul.f32 %v14223_v62, %v14223_v62 }
0x1190   :  { %7883 = vadd.xlane.f32.xlu0 %v7882_v30 }
0x1191   :  { %v7879_v45 = vsel %vm377_vm0, %v7867_v1, 0.0 }
0x1192   :  { %7880 = vadd.xlane.f32.xlu1 %v7879_v45 }
0x1199   :  { %v7842_v10 = vpop.xlane.xlu0 %7841 }
0x119a   :  { %v7854_v22 = vmul.f32 0.03125, %v7842_v10 }
0x119b   :  { %v7839_v41 = vpop.xlane.xlu1 %7838 }
0x119c   :  { %v14232_v61 = vsub.f32 %v14128_v33, %v7854_v22  ;;  %v7853_v49 = vmul.f32 0.03125, %v7839_v41  ;;  %v8861_v22 = vld [vmem:[#allocation17 + $0x1] ss:$0 sm:$0xff] }
0x119e   :  { %v14235_v42 = vsub.f32 %v14133_v35, %v7853_v49  ;;  %v7870_v26 = vmul.f32 %v14232_v61, %v14232_v61 }
0x11a0   :  { %v7888_v13 = vsel %vm377_vm0, %v7870_v26, 0.0  ;;  %v7869_v15 = vmul.f32 %v14235_v42, %v14235_v42 }
0x11a1   :  { %7889 = vadd.xlane.f32.xlu0 %v7888_v13 }
0x11a2   :  { %v7885_v12 = vsel %vm377_vm0, %v7869_v15, 0.0 }
0x11a3   :  { %7886 = vadd.xlane.f32.xlu1 %v7885_v12 }
0x11a7   :  { %v7848_v54 = vpop.xlane.xlu0 %7847 }
0x11a8   :  { %v7856_v56 = vmul.f32 0.03125, %v7848_v54 }
0x11a9   :  { %v7845_v33 = vpop.xlane.xlu1 %7844 }
0x11aa   :  { %v14244_v29 = vsub.f32 %v14144_v46, %v7856_v56  ;;  %v7855_v35 = vmul.f32 0.03125, %v7845_v33 }
0x11ab   :  { %v6085_v52 = vpop.xlane.xlu0 %6084 }
0x11ac   :  { %v14247_v57 = vsub.f32 %v14152_v5, %v7855_v35  ;;  %v6105_v31 = vmul.f32 0.03125, %v6085_v52  ;;  %v7872_v20 = vmul.f32 %v14244_v29, %v14244_v29 }
0x11ad   :  { %v6082_v36 = vpop.xlane.xlu1 %6081 }
0x11ae   :  { %v6114_v34 = vadd.f32 1e-05, %v6105_v31  ;;  %v6104_v3 = vmul.f32 0.03125, %v6082_v36  ;;  %v7894_v6 = vsel %vm377_vm0, %v7872_v20, 0.0  ;;  %v7871_v40 = vmul.f32 %v14247_v57, %v14247_v57 }
0x11af   :  { %7895 = vadd.xlane.f32.xlu0 %v7894_v6  ;;  %v6091_v46 = vpop.xlane.xlu0 %6090 }
0x11b0   :  { %10335 = vrsqrt.f32 %v6114_v34  ;;  %v6113_v60 = vadd.f32 1e-05, %v6104_v3  ;;  %v6107_v63 = vmul.f32 0.03125, %v6091_v46  ;;  %v7891_v5 = vsel %vm377_vm0, %v7871_v40, 0.0  ;;  %v8939_v34 = vld [vmem:[%s14352_s21 + $0x40] sm:$0xff] }
0x11b1   :  { %7892 = vadd.xlane.f32.xlu1 %v7891_v5  ;;  %v6088_v58 = vpop.xlane.xlu1 %6087 }
0x11b2   :  { %10337 = vrsqrt.f32 %v6113_v60  ;;  %v6116_v23 = vadd.f32 1e-05, %v6107_v63  ;;  %v6106_v28 = vmul.f32 0.03125, %v6088_v58 }
0x11b3   :  { %v6097_v14 = vpop.xlane.xlu0 %6096 }
0x11b4   :  { %10339 = vrsqrt.f32 %v6116_v23  ;;  %v6115_v32 = vadd.f32 1e-05, %v6106_v28  ;;  %v6109_v51 = vmul.f32 0.03125, %v6097_v14 }
0x11b5   :  { %v6094_v17 = vpop.xlane.xlu1 %6093 }
0x11b6   :  { %10341 = vrsqrt.f32 %v6115_v32  ;;  %v6118_v2 = vadd.f32 1e-05, %v6109_v51  ;;  %v6108_v53 = vmul.f32 0.03125, %v6094_v17  ;;  %v8395_v32 = vld [vmem:[#allocation22 + $0x18] sm:$0xff]  ;;  %v8394_v51 = vld [vmem:[#allocation22 + $0x10] sm:$0xff] }
0x11b7   :  { %v6103_v55 = vpop.xlane.xlu0 %6102  ;;  %9934 = vmatprep.subr.mxu0 %v8395_v32 }
0x11b8   :  { %10343 = vrsqrt.f32 %v6118_v2  ;;  %v6117_v19 = vadd.f32 1e-05, %v6108_v53  ;;  %v6111_v38 = vmul.f32 0.03125, %v6103_v55  ;;  %9935 = vmatpush3.msra.mxu0 %v8395_v32 }
0x11b9   :  { %v6100_v43 = vpop.xlane.xlu1 %6099  ;;  %9936 = vmatprep.subr.mxu0 %v8394_v51 }
0x11ba   :  { %10345 = vrsqrt.f32 %v6117_v19  ;;  %v6120_v11 = vadd.f32 1e-05, %v6111_v38  ;;  %v6110_v21 = vmul.f32 0.03125, %v6100_v43  ;;  %9937 = vmatpush3.msra.mxu0 %v8394_v51 }
0x11bc   :  { %10347 = vrsqrt.f32 %v6120_v11  ;;  %v6119_v7 = vadd.f32 1e-05, %v6110_v21  ;;  %v8916_v11 = vld [vmem:[%s14351_s20] ss:$0 sm:$0xff] }
0x11bd   :  { %v10336_v59 = vpop.eup %10335 }
0x11be   :  { %v6130_v27 = vmul.f32 %v10336_v59, %v14138_v37  ;;  %10349 = vrsqrt.f32 %v6119_v7 }
0x11bf   :  { %v10338_v47 = vpop.eup %10337 }
0x11c0   :  { %v6129_v30 = vmul.f32 %v10338_v47, %v14141_v50  ;;  %v6144_v45 = vmul.f32 %v8860_v4, %v6130_v27  ;;  %v8941_v50 = vld [vmem:[%s14352_s21 + $0x50] sm:$0xff] }
0x11c1   :  { %v10340_v1 = vpop.eup %10339 }
0x11c2   :  { %v6143_v10 = vmul.f32 %v8860_v4, %v6129_v30  ;;  %v6132_v41 = vmul.f32 %v10340_v1, %v14147_v39  ;;  %v6160_v12 = vadd.f32 %v8861_v22, %v6144_v45 }
0x11c3   :  { %v10342_v49 = vpop.eup %10341 }
0x11c4   :  { %v6159_v26 = vadd.f32 %v8861_v22, %v6143_v10  ;;  %v6131_v13 = vmul.f32 %v10342_v49, %v14157_v44  ;;  %v6146_v54 = vmul.f32 %v8860_v4, %v6132_v41  ;;  %v8940_v44 = vld [vmem:[%s14352_s21 + $0x48] sm:$0xff] }
0x11c5   :  { %v10344_v15 = vpop.eup %10343 }
0x11c6   :  { %v6134_v37 = vmul.f32 %v10344_v15, %v14164_v8  ;;  %9882 = vmatprep.mubr.msk.f32.mxu1 %vm377_vm0, %v6159_v26  ;;  %v6145_v56 = vmul.f32 %v8860_v4, %v6131_v13  ;;  %v6162_v8 = vadd.f32 %v8861_v22, %v6146_v54 }
0x11c7   :  { %v10346_v33 = vpop.eup %10345  ;;  %9883 = vmatmul.mubr.msk.f32.vlgmr.msra.gmra.mxu1 %vm377_vm0, %v6160_v12 }
0x11c8   :  { %v6161_v39 = vadd.f32 %v8861_v22, %v6145_v56  ;;  %v6133_v35 = vmul.f32 %v10346_v33, %v14170_v0  ;;  %9915 = vmatpush3.msra.mxu1 %v8942_v9  ;;  %v6148_v31 = vmul.f32 %v8860_v4, %v6134_v37 }
0x11c9   :  { %v10348_v52 = vpop.eup %10347  ;;  %9916 = vmatprep.subr.mxu1 %v8941_v50 }
0x11ca   :  { %v6136_v20 = vmul.f32 %v10348_v52, %v14176_v48  ;;  %9885 = vmatprep.mubr.msk.f32.mxu1 %vm377_vm0, %v6161_v39  ;;  %v6147_v36 = vmul.f32 %v8860_v4, %v6133_v35  ;;  %9917 = vmatpush3.msra.mxu1 %v8941_v50  ;;  %v6164_v40 = vadd.f32 %v8861_v22, %v6148_v31 }
0x11cb   :  { %v10350_v0 = vpop.eup %10349  ;;  %9886 = vmatmul.mubr.msk.f32.gmra.mxu1 %vm377_vm0, %v6162_v8  ;;  %9918 = vmatprep.subr.mxu1 %v8940_v44 }
0x11cc   :  { %v6163_v3 = vadd.f32 %v8861_v22, %v6147_v36  ;;  %v6135_v6 = vmul.f32 %v10350_v0, %v14182_v25  ;;  %9919 = vmatpush3.msra.mxu1 %v8940_v44  ;;  %v6150_v46 = vmul.f32 %v8860_v4, %v6136_v20 }
0x11cd   :  { %9920 = vmatprep.subr.mxu1 %v8939_v34 }
0x11ce   :  { %9888 = vmatprep.mubr.msk.f32.mxu1 %vm377_vm0, %v6163_v3  ;;  %v6149_v48 = vmul.f32 %v8860_v4, %v6135_v6  ;;  %9921 = vmatpush3.msra.mxu1 %v8939_v34  ;;  %v6166_v63 = vadd.f32 %v8861_v22, %v6150_v46  ;;  %v8918_v4 = vld [vmem:[%s14351_s20 + $0x1] ss:$0 sm:$0xff] }
0x11cf   :  { %9889 = vmatmul.mubr.msk.f32.gmra.mxu1 %vm377_vm0, %v6164_v40 }
0x11d0   :  { %v6165_v60 = vadd.f32 %v8861_v22, %v6149_v48 }
0x11d2   :  { %9891 = vmatprep.mubr.msk.f32.mxu1 %vm377_vm0, %v6165_v60 }
0x11d3   :  { %9892 = vmatmul.mubr.msk.f32.gmra.mxu1 %vm377_vm0, %v6166_v63  ;;  %v8392_v63 = vld [vmem:[#allocation22] sm:$0xff] }
0x1210   :  { %v7878_v5 = vpop.xlane.xlu0 %7877 }
0x1211   :  { %v7898_v58 = vmul.f32 0.03125, %v7878_v5 }
0x1212   :  { %v7875_v23 = vpop.xlane.xlu1 %7874 }
0x1213   :  { %v7907_v25 = vadd.f32 1e-05, %v7898_v58  ;;  %v7897_v28 = vmul.f32 0.03125, %v7875_v23 }
0x1215   :  { %10351 = vrsqrt.f32 %v7907_v25  ;;  %v7906_v14 = vadd.f32 1e-05, %v7897_v28 }
0x1217   :  { %10353 = vrsqrt.f32 %v7906_v14  ;;  %v9904_v14 = vpop.f32.mrf.mxu0 }
0x1219   :  { %v7884_v17 = vpop.xlane.xlu0 %7883 }
0x121a   :  { %v7900_v2 = vmul.f32 0.03125, %v7884_v17  ;;  %v8188_v17 = vpop.f32.mrf.mxu0 }
0x121b   :  { %v7881_v53 = vpop.xlane.xlu1 %7880 }
0x121c   :  { %v7909_v55 = vadd.f32 1e-05, %v7900_v2  ;;  %v7899_v19 = vmul.f32 0.03125, %v7881_v53 }
0x121e   :  { %10355 = vrsqrt.f32 %v7909_v55  ;;  %v7908_v38 = vadd.f32 1e-05, %v7899_v19  ;;  %v8951_v19 = vld [vmem:[%s14353_s22] ss:$0 sm:$0xff] }
0x1220   :  { %10357 = vrsqrt.f32 %v7908_v38 }
0x1222   :  { %v10352_v43 = vpop.eup %10351 }
0x1223   :  { %v7923_v21 = vmul.f32 %v10352_v43, %v14208_v16 }
0x1224   :  { %v10354_v7 = vpop.eup %10353 }
0x1225   :  { %v7922_v59 = vmul.f32 %v10354_v7, %v14211_v24  ;;  %v7937_v9 = vmul.f32 %v8916_v11, %v7923_v21  ;;  %v9907_v21 = vpop.f32.mrf.mxu0 }
0x1227   :  { %v7936_v27 = vmul.f32 %v8916_v11, %v7922_v59  ;;  %v7953_v30 = vadd.f32 %v8918_v4, %v7937_v9 }
0x1229   :  { %v7952_v47 = vadd.f32 %v8918_v4, %v7936_v27  ;;  %v8198_v27 = vpop.f32.mrf.mxu0 }
0x122a   :  { %v7890_v1 = vpop.xlane.xlu0 %7889 }
0x122b   :  { %v10356_v45 = vpop.eup %10355  ;;  %v7902_v10 = vmul.f32 0.03125, %v7890_v1  ;;  %9922 = vmatprep.mubr.msk.f32.mxu1 %vm377_vm0, %v7952_v47 }
0x122c   :  { %v7925_v22 = vmul.f32 %v10356_v45, %v14220_v18  ;;  %v7887_v41 = vpop.xlane.xlu1 %7886  ;;  %9923 = vmatmul.mubr.msk.f32.vlgmr.msra.gmra.mxu1 %vm377_vm0, %v7953_v30 }
0x122d   :  { %v10358_v16 = vpop.eup %10357  ;;  %v7911_v24 = vadd.f32 1e-05, %v7902_v10  ;;  %v7901_v49 = vmul.f32 0.03125, %v7887_v41 }
0x122e   :  { %v7924_v26 = vmul.f32 %v10358_v16, %v14223_v62  ;;  %v7939_v15 = vmul.f32 %v8916_v11, %v7925_v22 }
0x122f   :  { %10359 = vrsqrt.f32 %v7911_v24  ;;  %v7910_v13 = vadd.f32 1e-05, %v7901_v49  ;;  %v9910_v49 = vpop.f32.mrf.mxu0 }
0x1230   :  { %v7938_v12 = vmul.f32 %v8916_v11, %v7924_v26  ;;  %v7955_v37 = vadd.f32 %v8918_v4, %v7939_v15 }
0x1231   :  { %10361 = vrsqrt.f32 %v7910_v13  ;;  %v8208_v13 = vpop.f32.mrf.mxu0 }
0x1232   :  { %v7954_v54 = vadd.f32 %v8918_v4, %v7938_v12 }
0x1234   :  { %9925 = vmatprep.mubr.msk.f32.mxu1 %vm377_vm0, %v7954_v54 }
0x1235   :  { %9926 = vmatmul.mubr.msk.f32.gmra.mxu1 %vm377_vm0, %v7955_v37 }
0x1238   :  { %v7896_v18 = vpop.xlane.xlu0 %7895 }
0x1239   :  { %v7904_v56 = vmul.f32 0.03125, %v7896_v18 }
0x123a   :  { %v7893_v50 = vpop.xlane.xlu1 %7892 }
0x123b   :  { %v7913_v33 = vadd.f32 1e-05, %v7904_v56  ;;  %v7903_v39 = vmul.f32 0.03125, %v7893_v50 }
0x123c   :  { %v10360_v35 = vpop.eup %10359 }
0x123d   :  { %v7927_v44 = vmul.f32 %v10360_v35, %v14232_v61  ;;  %10363 = vrsqrt.f32 %v7913_v33  ;;  %v7912_v62 = vadd.f32 1e-05, %v7903_v39  ;;  %v9913_v35 = vpop.f32.mrf.mxu0 }
0x123e   :  { %v10362_v52 = vpop.eup %10361 }
0x123f   :  { %10365 = vrsqrt.f32 %v7912_v62  ;;  %v7926_v8 = vmul.f32 %v10362_v52, %v14235_v42  ;;  %v7941_v31 = vmul.f32 %v8916_v11, %v7927_v44  ;;  %v8393_v42 = vld [vmem:[#allocation22 + $0x8] sm:$0xff]  ;;  %v8218_v62 = vpop.f32.mrf.mxu0 }
0x1240   :  { %9938 = vmatprep.subr.mxu0 %v8393_v42 }
0x1241   :  { %v7940_v20 = vmul.f32 %v8916_v11, %v7926_v8  ;;  %v7957_v34 = vadd.f32 %v8918_v4, %v7941_v31  ;;  %9939 = vmatpush3.msra.mxu0 %v8393_v42  ;;  %v8532_v42 = vld [vmem:[#allocation23] sm:$0xff] }
0x1242   :  { %9940 = vmatprep.subr.mxu0 %v8392_v63 }
0x1243   :  { %v7956_v36 = vadd.f32 %v8918_v4, %v7940_v20  ;;  %9941 = vmatpush3.msra.mxu0 %v8392_v63 }
0x1245   :  { %9928 = vmatprep.mubr.msk.f32.mxu1 %vm377_vm0, %v7956_v36 }
0x1246   :  { %9929 = vmatmul.mubr.msk.f32.gmra.mxu1 %vm377_vm0, %v7957_v34 }
0x124a   :  { %v10364_v0 = vpop.eup %10363 }
0x124b   :  { %v7929_v3 = vmul.f32 %v10364_v0, %v14244_v29 }
0x124c   :  { %v10366_v6 = vpop.eup %10365 }
0x124d   :  { %v7928_v61 = vmul.f32 %v10366_v6, %v14247_v57  ;;  %v7943_v40 = vmul.f32 %v8916_v11, %v7929_v3 }
0x124f   :  { %v7942_v46 = vmul.f32 %v8916_v11, %v7928_v61  ;;  %v7959_v60 = vadd.f32 %v8918_v4, %v7943_v40  ;;  %v8952_v61 = vld [vmem:[%s14355_s24] ss:$0 sm:$0xff] }
0x1251   :  { %v7958_v48 = vadd.f32 %v8918_v4, %v7942_v46  ;;  %v8533_v46 = vld [vmem:[#allocation23 + $0x8] sm:$0xff] }
0x1253   :  { %9931 = vmatprep.mubr.msk.f32.mxu1 %vm377_vm0, %v7958_v48 }
0x1254   :  { %9932 = vmatmul.mubr.msk.f32.gmra.mxu1 %vm377_vm0, %v7959_v60 }
0x1287   :  { %v9884_v5 = vpop.f32.mrf.mxu1 }
0x1288   :  { %v8194_v51 = vadd.f32 %v9904_v14, %v9884_v5 }
0x1289   :  { %v8059_v58 = vpop.f32.mrf.mxu1 }
0x128a   :  { %v8189_v53 = vadd.f32 %v8188_v17, %v8059_v58  ;;  %v8534_v17 = vld [vmem:[#allocation23 + $0x10] sm:$0xff] }
0x128b   :  { %v9887_v29 = vpop.f32.mrf.mxu1 }
0x128c   :  { %v8204_v9 = vadd.f32 %v9907_v21, %v9887_v29 }
0x128d   :  { %v8069_v23 = vpop.f32.mrf.mxu1 }
0x128e   :  { %v8199_v30 = vadd.f32 %v8198_v27, %v8069_v23 }
0x128f   :  { %v9890_v25 = vpop.f32.mrf.mxu1 }
0x1290   :  { %v8214_v26 = vadd.f32 %v9910_v49, %v9890_v25 }
0x1291   :  { %v8079_v57 = vpop.f32.mrf.mxu1 }
0x1292   :  { %v8209_v12 = vadd.f32 %v8208_v13, %v8079_v57 }
0x1293   :  { %v9893_v28 = vpop.f32.mrf.mxu1 }
0x1294   :  { %v8224_v44 = vadd.f32 %v9913_v35, %v9893_v28 }
0x1295   :  { %v8089_v32 = vpop.f32.mrf.mxu1 }
0x1296   :  { %v8219_v8 = vadd.f32 %v8218_v62, %v8089_v32 }
0x12ec   :  { %v9924_v2 = vpop.f32.mrf.mxu1 }
0x12ed   :  { %v8362_v55 = vadd.f32 %v9924_v2, %v8194_v51 }
0x12ee   :  { %v8322_v38 = vpop.f32.mrf.mxu1 }
0x12ef   :  { %v8361_v43 = vadd.f32 %v8322_v38, %v8189_v53  ;;  %v8377_v11 = vadd.f32 %v8951_v19, %v8362_v55 }
0x12f1   :  { %v8376_v7 = vadd.f32 %v8951_v19, %v8361_v43  ;;  %v8385_v4 = vmax.f32 %v8377_v11, 0.0  ;;  %v8535_v11 = vld [vmem:[#allocation23 + $0x18] sm:$0xff] }
0x12f3   :  { %v8384_v59 = vmax.f32 %v8376_v7, 0.0 }
0x12f5   :  { %v9927_v47 = vpop.f32.mrf.mxu1  ;;  %9942 = vmatprep.mubr.msk.f32.mxu0 %vm377_vm0, %v8384_v59 }
0x12f6   :  { %v8364_v1 = vadd.f32 %v9927_v47, %v8204_v9  ;;  %9943 = vmatmul.mubr.msk.f32.vlgmr.msra.gmra.mxu0 %vm377_vm0, %v8385_v4 }
0x12f7   :  { %v8332_v45 = vpop.f32.mrf.mxu1 }
0x12f8   :  { %v8363_v10 = vadd.f32 %v8332_v45, %v8199_v30  ;;  %v8379_v22 = vadd.f32 %v8951_v19, %v8364_v1 }
0x12fa   :  { %v8378_v41 = vadd.f32 %v8951_v19, %v8363_v10  ;;  %v8387_v24 = vmax.f32 %v8379_v22, 0.0 }
0x12fc   :  { %v8386_v16 = vmax.f32 %v8378_v41, 0.0 }
0x12fe   :  { %9945 = vmatprep.mubr.msk.f32.mxu0 %vm377_vm0, %v8386_v16 }
0x12ff   :  { %9946 = vmatmul.mubr.msk.f32.gmra.mxu0 %vm377_vm0, %v8387_v24 }
0x1306   :  { %v9930_v15 = vpop.f32.mrf.mxu1 }
0x1307   :  { %v8366_v54 = vadd.f32 %v9930_v15, %v8214_v26 }
0x1308   :  { %v8342_v37 = vpop.f32.mrf.mxu1 }
0x1309   :  { %v8365_v18 = vadd.f32 %v8342_v37, %v8209_v12  ;;  %v8381_v56 = vadd.f32 %v8951_v19, %v8366_v54 }
0x130b   :  { %v8380_v50 = vadd.f32 %v8951_v19, %v8365_v18  ;;  %v8389_v39 = vmax.f32 %v8381_v56, 0.0 }
0x130d   :  { %v8388_v33 = vmax.f32 %v8380_v50, 0.0 }
0x130f   :  { %9948 = vmatprep.mubr.msk.f32.mxu0 %vm377_vm0, %v8388_v33 }
0x1310   :  { %9949 = vmatmul.mubr.msk.f32.gmra.mxu0 %vm377_vm0, %v8389_v39 }
0x1314   :  { %v9933_v52 = vpop.f32.mrf.mxu1 }
0x1315   :  { %v8368_v31 = vadd.f32 %v9933_v52, %v8224_v44 }
0x1316   :  { %v8352_v20 = vpop.f32.mrf.mxu1 }
0x1317   :  { %v8367_v36 = vadd.f32 %v8352_v20, %v8219_v8  ;;  %v8383_v34 = vadd.f32 %v8951_v19, %v8368_v31  ;;  %v8961_v20 = vld [vmem:[#allocation2] ss:$0 sm:$0xff] }
0x1319   :  { %v8382_v0 = vadd.f32 %v8951_v19, %v8367_v36  ;;  %v8391_v6 = vmax.f32 %v8383_v34, 0.0 }
0x131b   :  { %v8390_v3 = vmax.f32 %v8382_v0, 0.0 }
0x131d   :  { %9951 = vmatprep.mubr.msk.f32.mxu0 %vm377_vm0, %v8390_v3 }
0x131e   :  { %9952 = vmatmul.mubr.msk.f32.gmra.mxu0 %vm377_vm0, %v8391_v6 }
0x13b6   :  { %v9944_v40 = vpop.f32.mrf.mxu0 }
0x13b7   :  { %v8499_v48 = vadd.f32 %v9944_v40, %v8952_v61 }
0x13b8   :  { %v8493_v60 = vpop.f32.mrf.mxu0 }
0x13b9   :  { %v8494_v63 = vadd.f32 %v8952_v61, %v8493_v60  ;;  %v8537_v5 = vmul.f32 %v8533_v46, %v8499_v48 }
0x13bb   :  { %v8547_v58 = vsel %vm377_vm0, %v8537_v5, 0.0  ;;  %v8536_v29 = vmul.f32 %v8532_v42, %v8494_v63 }
0x13bc   :  { %8548 = vadd.xlane.f32.xlu0 %v8547_v58 }
0x13bd   :  { %v8544_v23 = vsel %vm377_vm0, %v8536_v29, 0.0 }
0x13be   :  { %8545 = vadd.xlane.f32.xlu1 %v8544_v23 }
0x13bf   :  { %v9947_v25 = vpop.f32.mrf.mxu0 }
0x13c0   :  { %v8509_v55 = vadd.f32 %v9947_v25, %v8952_v61 }
0x13c1   :  { %v8503_v57 = vpop.f32.mrf.mxu0 }
0x13c2   :  { %v8504_v14 = vadd.f32 %v8952_v61, %v8503_v57  ;;  %v8539_v59 = vmul.f32 %v8535_v11, %v8509_v55 }
0x13c4   :  { %v8538_v43 = vmul.f32 %v8534_v17, %v8504_v14  ;;  %v8553_v9 = vsel %vm377_vm0, %v8539_v59, 0.0 }
0x13c6   :  { %v8550_v7 = vsel %vm377_vm0, %v8538_v43, 0.0 }
0x13d0   :  { %v9950_v28 = vpop.f32.mrf.mxu0 }
0x13d1   :  { %v8519_v32 = vadd.f32 %v9950_v28, %v8952_v61 }
0x13d2   :  { %v8513_v51 = vpop.f32.mrf.mxu0 }
0x13d3   :  { %v8514_v2 = vadd.f32 %v8952_v61, %v8513_v51  ;;  %v8541_v53 = vmul.f32 %v8533_v46, %v8519_v32 }
0x13d5   :  { %v8559_v19 = vsel %vm377_vm0, %v8541_v53, 0.0  ;;  %v8540_v38 = vmul.f32 %v8532_v42, %v8514_v2 }
0x13d6   :  { %8560 = vadd.xlane.f32.xlu0 %v8559_v19 }
0x13d7   :  { %v8556_v21 = vsel %vm377_vm0, %v8540_v38, 0.0 }
0x13d8   :  { %8557 = vadd.xlane.f32.xlu1 %v8556_v21 }
0x13da   :  { %8551 = vadd.xlane.f32.xlu0 %v8550_v7 }
0x13de   :  { %v9953_v4 = vpop.f32.mrf.mxu0  ;;  %8554 = vadd.xlane.f32.xlu0 %v8553_v9 }
0x13df   :  { %v8529_v47 = vadd.f32 %v9953_v4, %v8952_v61 }
0x13e0   :  { %v8523_v27 = vpop.f32.mrf.mxu0 }
0x13e1   :  { %v8524_v30 = vadd.f32 %v8952_v61, %v8523_v27  ;;  %v8543_v10 = vmul.f32 %v8535_v11, %v8529_v47 }
0x13e3   :  { %v8542_v1 = vmul.f32 %v8534_v17, %v8524_v30  ;;  %v8565_v22 = vsel %vm377_vm0, %v8543_v10, 0.0 }
0x13e5   :  { %v8562_v45 = vsel %vm377_vm0, %v8542_v1, 0.0 }
0x13e6   :  { %8563 = vadd.xlane.f32.xlu1 %v8562_v45 }
0x13ea   :  { %8566 = vadd.xlane.f32.xlu1 %v8565_v22 }
0x1445   :  { %v8549_v41 = vpop.xlane.xlu0 %8548 }
0x1447   :  { %v8546_v24 = vpop.xlane.xlu1 %8545 }
0x1448   :  { %v8568_v26 = vadd.f32 %v8549_v41, %v8546_v24 }
0x145f   :  { %v8561_v16 = vpop.xlane.xlu0 %8560 }
0x1461   :  { %v8558_v54 = vpop.xlane.xlu1 %8557 }
0x1462   :  { %v8577_v33 = vadd.f32 %v8561_v16, %v8558_v54 }
0x1463   :  { %v8552_v49 = vpop.xlane.xlu0 %8551 }
0x1464   :  { %v8569_v13 = vadd.f32 %v8568_v26, %v8552_v49 }
0x1467   :  { %v8555_v15 = vpop.xlane.xlu0 %8554 }
0x1468   :  { %v8570_v12 = vadd.f32 %v8569_v13, %v8555_v15 }
0x146a   :  { %v8571_v37 = vrot.slane %v8570_v12, 4 }
0x146c   :  { %v8572_v18 = vadd.f32 %v8571_v37, %v8570_v12 }
0x146e   :  { %v8573_v56 = vrot.slane %v8572_v18, 2 }
0x146f   :  { %v8564_v50 = vpop.xlane.xlu1 %8563 }
0x1470   :  { %v8574_v39 = vadd.f32 %v8573_v56, %v8572_v18  ;;  %v8578_v35 = vadd.f32 %v8577_v33, %v8564_v50 }
0x1472   :  { %v8575_v44 = vrot.slane %v8574_v39, 1 }
0x1473   :  { %v8567_v62 = vpop.xlane.xlu1 %8566 }
0x1474   :  { %v8579_v52 = vadd.f32 %v8578_v35, %v8567_v62  ;;  %v8576_v8 = vadd.f32 %v8575_v44, %v8574_v39 }
0x1476   :  { %v8580_v31 = vrot.slane %v8579_v52, 4  ;;  %v8593_v34 = vadd.f32 %v8961_v20, %v8576_v8 }
0x1478   :  { %v8581_v36 = vadd.f32 %v8580_v31, %v8579_v52  ;;  %v8595_v6 = vsub.f32 0.0, %v8593_v34 }
0x147a   :  { %v8582_v0 = vrot.slane %v8581_v36, 2  ;;  %v8597_v46 = vmul.f32 1.442695, %v8595_v6 }
0x147c   :  { %v8583_v3 = vadd.f32 %v8582_v0, %v8581_v36  ;;  %10367 = vpow2.f32 %v8597_v46 }
0x147e   :  { %v8584_v61 = vrot.slane %v8583_v3, 1 }
0x1480   :  { %v8585_v40 = vadd.f32 %v8584_v61, %v8583_v3 }
0x1482   :  { %v8594_v48 = vadd.f32 %v8961_v20, %v8585_v40 }
0x1484   :  { %v8596_v60 = vsub.f32 0.0, %v8594_v48 }
0x1486   :  { %v8599_v42 = vmul.f32 1.442695, %v8596_v60 }
0x1488   :  { %10369 = vpow2.f32 %v8599_v42 }
0x1489   :  { %v10368_v63 = vpop.eup %10367 }
0x148a   :  { %v8601_v58 = vadd.f32 1.0, %v10368_v63 }
0x1495   :  { %v10370_v5 = vpop.eup %10369 }
0x1496   :  { %v8602_v29 = vadd.f32 1.0, %v10370_v5 }
0x1498   :  { %10371 = vrcp.f32 %v8602_v29 }
0x1499   :  { %10373 = vrcp.f32 %v8601_v58 }
0x14a5   :  { %v10372_v23 = vpop.eup %10371 }
0x14a6   :  { %v8609_v25 = vrot.slane %v10372_v23, 7  ;;  %v10374_v57 = vpop.eup %10373 }
0x14a8   :  { %v8610_v28 = vsel %vm1192_vm1, %v8609_v25, %v10374_v57 }
0x14a9   :  { %8613 = vst.msk [vmem:[%s14358_s27] sm:$0x3] %vm8612_vm5, %v8610_v28 }
0x14aa   :  { %8618 = vsyncpa [#allocation4], 1 }
0x14ab   :  { %8619 = vsyncpa [#allocation6], 1 }
0x14ac   :  { %8620 = vsyncpa [#allocation9], 1 }
0x14ad   :  { %8621 = vsyncpa [#allocation12], 1 }
0x14ae   :  { %8622 = vsyncpa [#allocation15], 1 }
0x14af   :  { %8623 = vsyncpa [#allocation18], 1 }
0x14b0   :  { %8624 = vsyncpa [#allocation21], 1 }
0x14b1   :  { %8625 = vsyncpa [#allocation24], 1 }

</bundles_post_ra>
